<compile_context>
chip_gen: v6e
topology: v6e:2x2x1
jax: 0.10.0
libtpu: 0.0.40
codegen_flags: <defaults>
</compile_context>

<pallas_src>
import functools

import jax
import jax.numpy as jnp
from jax.experimental import pallas as pl
from jax.experimental.pallas import tpu as pltpu

KSIZE = 4
BN_EPS = 1e-5
LANE = 128      # output channels padded to a multiple of this (lane-dense stores)
SUBLANE = 16    # bf16 sublane packing; all flat-row slice offsets align to this


def _round_up(x, m):
    return (x + m - 1) // m * m


def _choose_tm(ho, wc, target_m=512):
    """tm = ho_block * wc with ho_block | ho, tm close to target_m rows."""
    ho_block = max(1, min(ho, max(1, target_m // wc)))
    while ho % ho_block:
        ho_block -= 1
    return ho_block * wc


# ---------------------------------------------------------------------------
# Fused conv kernel.  For one output row-block:
#   out = act( sum_t  src[taps[t][0]][rows + taps[t][1] * wc, :] @ w[t]  + shift )
# ---------------------------------------------------------------------------
def _conv_taps_kernel(s0, s1, s2, s3, w_ref, shift_ref, o_ref, *,
                      taps, tm, wc, neg_slope):
    base = pl.program_id(1) * tm
    srcs = (s0, s1, s2, s3)
    acc = jnp.zeros(o_ref.shape, jnp.float32)
    for t, (si, dh) in enumerate(taps):
        start = pl.multiple_of(base + dh * wc, SUBLANE)
        lhs = srcs[si][pl.ds(start, tm), :]
        acc = acc + jnp.dot(lhs, w_ref[t], preferred_element_type=jnp.float32)
    acc = acc + shift_ref[...]
    if neg_slope is not None:                      # LeakyReLU
        acc = jnp.where(acc > 0, acc, neg_slope * acc)
    o_ref[...] = acc.astype(o_ref.dtype)


def _conv_taps_call(srcs, w_taps, shift, *, taps, ho, wc, tm, neg_slope,
                    out_dtype):
    n, l_in, k = srcs[0].shape
    n_taps, _, cout_p = w_taps.shape
    mb = (ho * wc) // tm

    src_spec = pl.BlockSpec((None, l_in, k), lambda b, m: (b, 0, 0))
    kernel = functools.partial(_conv_taps_kernel, taps=taps, tm=tm, wc=wc,
                               neg_slope=neg_slope)
    return pl.pallas_call(
        kernel,
        out_shape=jax.ShapeDtypeStruct((n, ho * wc, cout_p), out_dtype),
        grid_spec=pltpu.PrefetchScalarGridSpec(
            num_scalar_prefetch=0,
            grid=(n, mb),
            in_specs=[src_spec, src_spec, src_spec, src_spec,
                      pl.BlockSpec((n_taps, k, cout_p), lambda b, m: (0, 0, 0)),
                      pl.BlockSpec((1, cout_p), lambda b, m: (0, 0))],
            out_specs=pl.BlockSpec((None, tm, cout_p), lambda b, m: (b, m, 0)),
        ),
        compiler_params=pltpu.CompilerParams(
            dimension_semantics=("parallel", "parallel"),
            vmem_limit_bytes=32 * 1024 * 1024),
    )(*srcs, w_taps, shift)


# ---------------------------------------------------------------------------
# Layer wrappers: cheap JAX-side re-arrangement, all heavy work in the kernel.
# ---------------------------------------------------------------------------
_S2_TAPS = ((0, 0), (1, 0), (2, 0), (3, 0), (0, 1), (1, 1), (2, 1), (3, 1))
_S1_TAPS = tuple((kw, kh) for kh in range(4) for kw in range(4))


def conv4x4_s2(x, w_taps, shift, *, neg_slope, out_dtype):
    """Conv2d(k=4, s=2, p=1, bias=False) [+ folded BN] + shift + act.  x: NHWC."""
    n, h, wd, cin = x.shape
    ho, wo = h // 2, wd // 2
    wc = _round_up(wo, SUBLANE)                     # junk cols >= wo are dropped
    xp = jnp.pad(x, ((0, 0), (1, 1), (1, 2 * wc + 1 - wd), (0, 0)))
    # merge column pairs into the channel axis (free); B is shifted by one pair
    xa = xp[:, :, 0:2 * wc, :].reshape(n, h + 2, wc, 2 * cin)
    xb = xp[:, :, 2:2 * wc + 2, :].reshape(n, h + 2, wc, 2 * cin)
    hh = ho + 1
    srcs = [xa[:, 0::2].reshape(n, hh * wc, 2 * cin),   # even rows, cols (2w, 2w+1)
            xb[:, 0::2].reshape(n, hh * wc, 2 * cin),   # even rows, cols (2w+2, 2w+3)
            xa[:, 1::2].reshape(n, hh * wc, 2 * cin),   # odd  rows, cols (2w, 2w+1)
            xb[:, 1::2].reshape(n, hh * wc, 2 * cin)]   # odd  rows, cols (2w+2, 2w+3)
    tm = _choose_tm(ho, wc)
    out = _conv_taps_call(srcs, w_taps, shift, taps=_S2_TAPS, ho=ho, wc=wc,
                          tm=tm, neg_slope=neg_slope, out_dtype=out_dtype)
    out = out.reshape(n, ho, wc, out.shape[-1])
    return out[:, :, :wo, :] if wc != wo else out


def conv4x4_s1(x, w_taps, shift, *, neg_slope, out_dtype):
    """Conv2d(k=4, s=1, p=1, bias=False) + shift + act.  x: NHWC."""
    n, h, wd, cin = x.shape
    ho, wo = h - 1, wd - 1
    wc = _round_up(wo, SUBLANE)
    xp = jnp.pad(x, ((0, 0), (1, 1), (1, wc + 2 - wd), (0, 0)))
    hh = h + 2
    srcs = [xp[:, :, s:s + wc, :].reshape(n, hh * wc, cin) for s in range(4)]
    tm = _choose_tm(ho, wc)
    out = _conv_taps_call(srcs, w_taps, shift, taps=_S1_TAPS, ho=ho, wc=wc,
                          tm=tm, neg_slope=neg_slope, out_dtype=out_dtype)
    out = out.reshape(n, ho, wc, out.shape[-1])
    return out[:, :, :wo, :] if wc != wo else out


# ---------------------------------------------------------------------------
# Parameters: conv weights stored as (kh, kw, Cin, Cout).  To import real
# PyTorch weights (Cout, Cin, kh, kw) use w.transpose(2, 3, 1, 0).
# ---------------------------------------------------------------------------
def _fold_bn(w, bn):
    cout = w.shape[-1]
    if bn is None:
        return w, jnp.zeros((cout,), jnp.float32)
    scale = bn["gamma"] / jnp.sqrt(bn["var"] + BN_EPS)
    shift = bn["beta"] - bn["mean"] * scale
    return w * scale, shift


def _make_taps_s2(w, cout_p):
    """(4,4,Cin,Cout) -> (8, 2Cin, Coutp) bf16; tap order (kh, column-pair)."""
    cout = w.shape[-1]
    mats = [jnp.concatenate([w[kh, 2 * j], w[kh, 2 * j + 1]], axis=0)
            for kh in range(4) for j in range(2)]
    wt = jnp.pad(jnp.stack(mats), ((0, 0), (0, 0), (0, cout_p - cout)))
    return wt.astype(jnp.bfloat16)


def _make_taps_s1(w, cout_p):
    """(4,4,Cin,Cout) -> (16, Cin, Coutp) bf16; tap order kh*4 + kw."""
    kh, kw, cin, cout = w.shape
    wt = jnp.pad(w.reshape(kh * kw, cin, cout),
                 ((0, 0), (0, 0), (0, cout_p - cout)))
    return wt.astype(jnp.bfloat16)


def init_discriminator_params(key, nch_in, nch_ker):
    chans = [(nch_in, nch_ker), (nch_ker, 2 * nch_ker),
             (2 * nch_ker, 4 * nch_ker), (4 * nch_ker, 8 * nch_ker),
             (8 * nch_ker, 1)]
    params = []
    for i, (cin, cout) in enumerate(chans):
        key, sub = jax.random.split(key)
        layer = {"w": jax.random.normal(sub, (KSIZE, KSIZE, cin, cout),
                                        jnp.float32) * 0.02}
        if i < 4:   # norm='bnorm' layers (dsc1..dsc4)
            layer["bn"] = {"gamma": jnp.ones((cout,), jnp.float32),
                           "beta": jnp.zeros((cout,), jnp.float32),
                           "mean": jnp.zeros((cout,), jnp.float32),
                           "var": jnp.ones((cout,), jnp.float32)}
        params.append(layer)
    return params


def discriminator_forward(params, x_nchw):
    """x: (N, nch_in, H, W) NCHW -> (N, 1, H/16 - 1, W/16 - 1)."""
    h = jnp.transpose(x_nchw, (0, 2, 3, 1)).astype(jnp.bfloat16)   # NCHW -> NHWC
    for i, layer in enumerate(params):
        w = layer["w"]
        cin, cout = w.shape[2], w.shape[3]
        cout_p = _round_up(cout, LANE)
        if h.shape[-1] != cin:   # previous layer's lane-padded (all-zero) channels
            w = jnp.pad(w, ((0, 0), (0, 0), (0, h.shape[-1] - cin), (0, 0)))
        wf, shift = _fold_bn(w, layer.get("bn"))
        shift_p = jnp.pad(shift, (0, cout_p - cout)).reshape(1, cout_p)
        if i < 4:
            h = conv4x4_s2(h, _make_taps_s2(wf, cout_p), shift_p,
                           neg_slope=0.2, out_dtype=jnp.bfloat16)
        else:
            h = conv4x4_s1(h, _make_taps_s1(wf, cout_p), shift_p,
                           neg_slope=None, out_dtype=jnp.float32)
            h = h[..., :cout]
    return jnp.transpose(h, (0, 3, 1, 2))


# ---------------------------------------------------------------------------
# Pure-XLA f32 reference (for a loose numerical check).
# ---------------------------------------------------------------------------
def _reference_forward(params, x_nchw):
    h = jnp.transpose(x_nchw, (0, 2, 3, 1)).astype(jnp.float32)
    for i, layer in enumerate(params):
        stride = 2 if i < 4 else 1
        h = jax.lax.conv_general_dilated(
            h, layer["w"], window_strides=(stride, stride),
            padding=((1, 1), (1, 1)),
            dimension_numbers=("NHWC", "HWIO", "NHWC"))
        bn = layer.get("bn")
        if bn is not None:
            scale = bn["gamma"] / jnp.sqrt(bn["var"] + BN_EPS)
            h = h * scale + (bn["beta"] - bn["mean"] * scale)
            h = jnp.where(h > 0, h, 0.2 * h)
    return jnp.transpose(h, (0, 3, 1, 2))


# ---------------------------------------------------------------------------
if __name__ == "__main__":
    NCH_IN, NCH_KER = 3, 16
    B, H, W = 2, 64, 64     # 4 stride-2 convs + one stride-1 conv -> 3x3 patch map

    key = jax.random.PRNGKey(0)
    kp, kx = jax.random.split(key)
    params = init_discriminator_params(kp, NCH_IN, NCH_KER)
    x = jax.random.normal(kx, (B, NCH_IN, H, W), jnp.float32)

    y = jax.block_until_ready(jax.jit(discriminator_forward)(params, x))

    assert y.shape == (B, 1, H // 16 - 1, W // 16 - 1), y.shape
    assert bool(jnp.all(jnp.isfinite(y)))

    # loose check vs. f32 XLA reference (kernel runs the MXU in bf16)
    y_ref = jax.block_until_ready(jax.jit(_reference_forward)(params, x))
    err = float(jnp.max(jnp.abs(y - y_ref)))
    ref = float(jnp.max(jnp.abs(y_ref)))
    assert err <= 0.08 * ref + 3e-4, (err, ref)

    print("KERNEL_OK")
</pallas_src>

<mosaic_0001>
module attributes {stable_mosaic.version = 11 : i64} {
  func.func @_conv_taps_kernel(%arg0: i32, %arg1: i32, %arg2: memref<1x1056x6xbf16, #tpu.memory_space<vmem>>, %arg3: memref<1x1056x6xbf16, #tpu.memory_space<vmem>>, %arg4: memref<1x1056x6xbf16, #tpu.memory_space<vmem>>, %arg5: memref<1x1056x6xbf16, #tpu.memory_space<vmem>>, %arg6: memref<8x6x128xbf16, #tpu.memory_space<vmem>>, %arg7: memref<1x128xf32, #tpu.memory_space<vmem>>, %arg8: memref<1x512x128xbf16, #tpu.memory_space<vmem>>) attributes {dimension_semantics = [#tpu.dimension_semantics<parallel>, #tpu.dimension_semantics<parallel>], iteration_bounds = array<i64: 2, 2>, scalar_prefetch = 0 : i64, scratch_operands = 0 : i64, tpu.core_type = #tpu.core_type<tc>, window_params = [{transform_indices = @transform_0, window_bounds = array<i64: 1, 1056, 6>}, {transform_indices = @transform_1, window_bounds = array<i64: 1, 1056, 6>}, {transform_indices = @transform_2, window_bounds = array<i64: 1, 1056, 6>}, {transform_indices = @transform_3, window_bounds = array<i64: 1, 1056, 6>}, {pipeline_mode = #tpu.pipeline_mode<synchronous>, transform_indices = @transform_4, window_bounds = array<i64: 8, 6, 128>}, {pipeline_mode = #tpu.pipeline_mode<synchronous>, transform_indices = @transform_5, window_bounds = array<i64: 1, 128>}, {transform_indices = @transform_6, window_bounds = array<i64: 1, 512, 128>}]} {
    %c512_i32 = arith.constant 512 : i32
    %0 = arith.muli %arg1, %c512_i32 : i32
    %cst = arith.constant 0.000000e+00 : f32
    %1 = vector.broadcast %cst : f32 to vector<512x128xf32>
    %c0_i32 = arith.constant 0 : i32
    %2 = arith.addi %0, %c0_i32 : i32
    %3 = tpu.assume_multiple %2, 16 : i32
    %c0 = arith.constant 0 : index
    %4 = arith.index_cast %3 : i32 to index
    %c0_0 = arith.constant 0 : index
    %5 = vector.load %arg2[%c0, %4, %c0_0] : memref<1x1056x6xbf16, #tpu.memory_space<vmem>>, vector<1x512x6xbf16>
    %6 = vector.shape_cast %5 : vector<1x512x6xbf16> to vector<512x6xbf16>
    %c0_1 = arith.constant 0 : index
    %c0_2 = arith.constant 0 : index
    %c0_3 = arith.constant 0 : index
    %7 = vector.load %arg6[%c0_1, %c0_2, %c0_3] : memref<8x6x128xbf16, #tpu.memory_space<vmem>>, vector<1x6x128xbf16>
    %8 = vector.shape_cast %7 : vector<1x6x128xbf16> to vector<6x128xbf16>
    %cst_4 = arith.constant dense<0.000000e+00> : vector<512x128xf32>
    %9 = tpu.matmul %6, %8, %cst_4 {dimension_numbers = #tpu.dot_dimension_numbers<[1], [0], [0], [1], [0, 0, 1, 1], [], []>} : vector<512x6xbf16>, vector<6x128xbf16>, vector<512x128xf32> -> vector<512x128xf32>
    %10 = arith.addf %1, %9 : vector<512x128xf32>
    %c0_i32_5 = arith.constant 0 : i32
    %11 = arith.addi %0, %c0_i32_5 : i32
    %12 = tpu.assume_multiple %11, 16 : i32
    %c0_6 = arith.constant 0 : index
    %13 = arith.index_cast %12 : i32 to index
    %c0_7 = arith.constant 0 : index
    %14 = vector.load %arg3[%c0_6, %13, %c0_7] : memref<1x1056x6xbf16, #tpu.memory_space<vmem>>, vector<1x512x6xbf16>
    %15 = vector.shape_cast %14 : vector<1x512x6xbf16> to vector<512x6xbf16>
    %c1 = arith.constant 1 : index
    %c0_8 = arith.constant 0 : index
    %c0_9 = arith.constant 0 : index
    %16 = vector.load %arg6[%c1, %c0_8, %c0_9] : memref<8x6x128xbf16, #tpu.memory_space<vmem>>, vector<1x6x128xbf16>
    %17 = vector.shape_cast %16 : vector<1x6x128xbf16> to vector<6x128xbf16>
    %cst_10 = arith.constant dense<0.000000e+00> : vector<512x128xf32>
    %18 = tpu.matmul %15, %17, %cst_10 {dimension_numbers = #tpu.dot_dimension_numbers<[1], [0], [0], [1], [0, 0, 1, 1], [], []>} : vector<512x6xbf16>, vector<6x128xbf16>, vector<512x128xf32> -> vector<512x128xf32>
    %19 = arith.addf %10, %18 : vector<512x128xf32>
    %c0_i32_11 = arith.constant 0 : i32
    %20 = arith.addi %0, %c0_i32_11 : i32
    %21 = tpu.assume_multiple %20, 16 : i32
    %c0_12 = arith.constant 0 : index
    %22 = arith.index_cast %21 : i32 to index
    %c0_13 = arith.constant 0 : index
    %23 = vector.load %arg4[%c0_12, %22, %c0_13] : memref<1x1056x6xbf16, #tpu.memory_space<vmem>>, vector<1x512x6xbf16>
    %24 = vector.shape_cast %23 : vector<1x512x6xbf16> to vector<512x6xbf16>
    %c2 = arith.constant 2 : index
    %c0_14 = arith.constant 0 : index
    %c0_15 = arith.constant 0 : index
    %25 = vector.load %arg6[%c2, %c0_14, %c0_15] : memref<8x6x128xbf16, #tpu.memory_space<vmem>>, vector<1x6x128xbf16>
    %26 = vector.shape_cast %25 : vector<1x6x128xbf16> to vector<6x128xbf16>
    %cst_16 = arith.constant dense<0.000000e+00> : vector<512x128xf32>
    %27 = tpu.matmul %24, %26, %cst_16 {dimension_numbers = #tpu.dot_dimension_numbers<[1], [0], [0], [1], [0, 0, 1, 1], [], []>} : vector<512x6xbf16>, vector<6x128xbf16>, vector<512x128xf32> -> vector<512x128xf32>
    %28 = arith.addf %19, %27 : vector<512x128xf32>
    %c0_i32_17 = arith.constant 0 : i32
    %29 = arith.addi %0, %c0_i32_17 : i32
    %30 = tpu.assume_multiple %29, 16 : i32
    %c0_18 = arith.constant 0 : index
    %31 = arith.index_cast %30 : i32 to index
    %c0_19 = arith.constant 0 : index
    %32 = vector.load %arg5[%c0_18, %31, %c0_19] : memref<1x1056x6xbf16, #tpu.memory_space<vmem>>, vector<1x512x6xbf16>
    %33 = vector.shape_cast %32 : vector<1x512x6xbf16> to vector<512x6xbf16>
    %c3 = arith.constant 3 : index
    %c0_20 = arith.constant 0 : index
    %c0_21 = arith.constant 0 : index
    %34 = vector.load %arg6[%c3, %c0_20, %c0_21] : memref<8x6x128xbf16, #tpu.memory_space<vmem>>, vector<1x6x128xbf16>
    %35 = vector.shape_cast %34 : vector<1x6x128xbf16> to vector<6x128xbf16>
    %cst_22 = arith.constant dense<0.000000e+00> : vector<512x128xf32>
    %36 = tpu.matmul %33, %35, %cst_22 {dimension_numbers = #tpu.dot_dimension_numbers<[1], [0], [0], [1], [0, 0, 1, 1], [], []>} : vector<512x6xbf16>, vector<6x128xbf16>, vector<512x128xf32> -> vector<512x128xf32>
    %37 = arith.addf %28, %36 : vector<512x128xf32>
    %c32_i32 = arith.constant 32 : i32
    %38 = arith.addi %0, %c32_i32 : i32
    %39 = tpu.assume_multiple %38, 16 : i32
    %c0_23 = arith.constant 0 : index
    %40 = arith.index_cast %39 : i32 to index
    %c0_24 = arith.constant 0 : index
    %41 = vector.load %arg2[%c0_23, %40, %c0_24] : memref<1x1056x6xbf16, #tpu.memory_space<vmem>>, vector<1x512x6xbf16>
    %42 = vector.shape_cast %41 : vector<1x512x6xbf16> to vector<512x6xbf16>
    %c4 = arith.constant 4 : index
    %c0_25 = arith.constant 0 : index
    %c0_26 = arith.constant 0 : index
    %43 = vector.load %arg6[%c4, %c0_25, %c0_26] : memref<8x6x128xbf16, #tpu.memory_space<vmem>>, vector<1x6x128xbf16>
    %44 = vector.shape_cast %43 : vector<1x6x128xbf16> to vector<6x128xbf16>
    %cst_27 = arith.constant dense<0.000000e+00> : vector<512x128xf32>
    %45 = tpu.matmul %42, %44, %cst_27 {dimension_numbers = #tpu.dot_dimension_numbers<[1], [0], [0], [1], [0, 0, 1, 1], [], []>} : vector<512x6xbf16>, vector<6x128xbf16>, vector<512x128xf32> -> vector<512x128xf32>
    %46 = arith.addf %37, %45 : vector<512x128xf32>
    %c32_i32_28 = arith.constant 32 : i32
    %47 = arith.addi %0, %c32_i32_28 : i32
    %48 = tpu.assume_multiple %47, 16 : i32
    %c0_29 = arith.constant 0 : index
    %49 = arith.index_cast %48 : i32 to index
    %c0_30 = arith.constant 0 : index
    %50 = vector.load %arg3[%c0_29, %49, %c0_30] : memref<1x1056x6xbf16, #tpu.memory_space<vmem>>, vector<1x512x6xbf16>
    %51 = vector.shape_cast %50 : vector<1x512x6xbf16> to vector<512x6xbf16>
    %c5 = arith.constant 5 : index
    %c0_31 = arith.constant 0 : index
    %c0_32 = arith.constant 0 : index
    %52 = vector.load %arg6[%c5, %c0_31, %c0_32] : memref<8x6x128xbf16, #tpu.memory_space<vmem>>, vector<1x6x128xbf16>
    %53 = vector.shape_cast %52 : vector<1x6x128xbf16> to vector<6x128xbf16>
    %cst_33 = arith.constant dense<0.000000e+00> : vector<512x128xf32>
    %54 = tpu.matmul %51, %53, %cst_33 {dimension_numbers = #tpu.dot_dimension_numbers<[1], [0], [0], [1], [0, 0, 1, 1], [], []>} : vector<512x6xbf16>, vector<6x128xbf16>, vector<512x128xf32> -> vector<512x128xf32>
    %55 = arith.addf %46, %54 : vector<512x128xf32>
    %c32_i32_34 = arith.constant 32 : i32
    %56 = arith.addi %0, %c32_i32_34 : i32
    %57 = tpu.assume_multiple %56, 16 : i32
    %c0_35 = arith.constant 0 : index
    %58 = arith.index_cast %57 : i32 to index
    %c0_36 = arith.constant 0 : index
    %59 = vector.load %arg4[%c0_35, %58, %c0_36] : memref<1x1056x6xbf16, #tpu.memory_space<vmem>>, vector<1x512x6xbf16>
    %60 = vector.shape_cast %59 : vector<1x512x6xbf16> to vector<512x6xbf16>
    %c6 = arith.constant 6 : index
    %c0_37 = arith.constant 0 : index
    %c0_38 = arith.constant 0 : index
    %61 = vector.load %arg6[%c6, %c0_37, %c0_38] : memref<8x6x128xbf16, #tpu.memory_space<vmem>>, vector<1x6x128xbf16>
    %62 = vector.shape_cast %61 : vector<1x6x128xbf16> to vector<6x128xbf16>
    %cst_39 = arith.constant dense<0.000000e+00> : vector<512x128xf32>
    %63 = tpu.matmul %60, %62, %cst_39 {dimension_numbers = #tpu.dot_dimension_numbers<[1], [0], [0], [1], [0, 0, 1, 1], [], []>} : vector<512x6xbf16>, vector<6x128xbf16>, vector<512x128xf32> -> vector<512x128xf32>
    %64 = arith.addf %55, %63 : vector<512x128xf32>
    %c32_i32_40 = arith.constant 32 : i32
    %65 = arith.addi %0, %c32_i32_40 : i32
    %66 = tpu.assume_multiple %65, 16 : i32
    %c0_41 = arith.constant 0 : index
    %67 = arith.index_cast %66 : i32 to index
    %c0_42 = arith.constant 0 : index
    %68 = vector.load %arg5[%c0_41, %67, %c0_42] : memref<1x1056x6xbf16, #tpu.memory_space<vmem>>, vector<1x512x6xbf16>
    %69 = vector.shape_cast %68 : vector<1x512x6xbf16> to vector<512x6xbf16>
    %c7 = arith.constant 7 : index
    %c0_43 = arith.constant 0 : index
    %c0_44 = arith.constant 0 : index
    %70 = vector.load %arg6[%c7, %c0_43, %c0_44] : memref<8x6x128xbf16, #tpu.memory_space<vmem>>, vector<1x6x128xbf16>
    %71 = vector.shape_cast %70 : vector<1x6x128xbf16> to vector<6x128xbf16>
    %cst_45 = arith.constant dense<0.000000e+00> : vector<512x128xf32>
    %72 = tpu.matmul %69, %71, %cst_45 {dimension_numbers = #tpu.dot_dimension_numbers<[1], [0], [0], [1], [0, 0, 1, 1], [], []>} : vector<512x6xbf16>, vector<6x128xbf16>, vector<512x128xf32> -> vector<512x128xf32>
    %73 = arith.addf %64, %72 : vector<512x128xf32>
    %c0_46 = arith.constant 0 : index
    %c0_47 = arith.constant 0 : index
    %74 = vector.load %arg7[%c0_46, %c0_47] : memref<1x128xf32, #tpu.memory_space<vmem>>, vector<1x128xf32>
    %75 = vector.broadcast %74 : vector<1x128xf32> to vector<512x128xf32>
    %76 = arith.addf %73, %75 : vector<512x128xf32>
    %cst_48 = arith.constant 0.000000e+00 : f32
    %77 = vector.broadcast %cst_48 : f32 to vector<512x128xf32>
    %78 = arith.cmpf ogt, %76, %77 : vector<512x128xf32>
    %cst_49 = arith.constant 2.000000e-01 : f32
    %79 = vector.broadcast %cst_49 : f32 to vector<512x128xf32>
    %80 = arith.mulf %79, %76 : vector<512x128xf32>
    %81 = arith.select %78, %76, %80 : vector<512x128xi1>, vector<512x128xf32>
    %82 = arith.truncf %81 : vector<512x128xf32> to vector<512x128xbf16>
    %c0_50 = arith.constant 0 : index
    %c0_51 = arith.constant 0 : index
    %c0_52 = arith.constant 0 : index
    %83 = vector.load %arg8[%c0_50, %c0_51, %c0_52] : memref<1x512x128xbf16, #tpu.memory_space<vmem>>, vector<1x512x128xbf16>
    %84 = vector.shape_cast %83 : vector<1x512x128xbf16> to vector<512x128xbf16>
    %85 = vector.shape_cast %82 : vector<512x128xbf16> to vector<1x512x128xbf16>
    tpu.vector_store %arg8[%c0_50, %c0_51, %c0_52], %85 {strides = array<i32>} : memref<1x512x128xbf16, #tpu.memory_space<vmem>>, vector<1x512x128xbf16>,
    return
  }
  func.func @transform_0(%arg0: i32, %arg1: i32) -> (i32, i32, i32) {
    %c0_i32 = arith.constant 0 : i32
    %c0_i32_0 = arith.constant 0 : i32
    %c0_i32_1 = arith.constant 0 : i32
    return %arg0, %c0_i32, %c0_i32_0 : i32, i32, i32
  }
  func.func @transform_1(%arg0: i32, %arg1: i32) -> (i32, i32, i32) {
    %c0_i32 = arith.constant 0 : i32
    %c0_i32_0 = arith.constant 0 : i32
    %c0_i32_1 = arith.constant 0 : i32
    return %arg0, %c0_i32, %c0_i32_0 : i32, i32, i32
  }
  func.func @transform_2(%arg0: i32, %arg1: i32) -> (i32, i32, i32) {
    %c0_i32 = arith.constant 0 : i32
    %c0_i32_0 = arith.constant 0 : i32
    %c0_i32_1 = arith.constant 0 : i32
    return %arg0, %c0_i32, %c0_i32_0 : i32, i32, i32
  }
  func.func @transform_3(%arg0: i32, %arg1: i32) -> (i32, i32, i32) {
    %c0_i32 = arith.constant 0 : i32
    %c0_i32_0 = arith.constant 0 : i32
    %c0_i32_1 = arith.constant 0 : i32
    return %arg0, %c0_i32, %c0_i32_0 : i32, i32, i32
  }
  func.func @transform_4(%arg0: i32, %arg1: i32) -> (i32, i32, i32) {
    %c0_i32 = arith.constant 0 : i32
    %c0_i32_0 = arith.constant 0 : i32
    %c0_i32_1 = arith.constant 0 : i32
    %c0_i32_2 = arith.constant 0 : i32
    return %c0_i32, %c0_i32_0, %c0_i32_1 : i32, i32, i32
  }
  func.func @transform_5(%arg0: i32, %arg1: i32) -> (i32, i32) {
    %c0_i32 = arith.constant 0 : i32
    %c0_i32_0 = arith.constant 0 : i32
    %c0_i32_1 = arith.constant 0 : i32
    return %c0_i32, %c0_i32_0 : i32, i32
  }
  func.func @transform_6(%arg0: i32, %arg1: i32) -> (i32, i32, i32) {
    %c0_i32 = arith.constant 0 : i32
    %c0_i32_0 = arith.constant 0 : i32
    return %arg0, %arg1, %c0_i32 : i32, i32, i32
  }
}

module attributes {stable_mosaic.version = 11 : i64} {
  func.func @_conv_taps_kernel(%arg0: i32, %arg1: i32, %arg2: memref<1x272x256xbf16, #tpu.memory_space<vmem>>, %arg3: memref<1x272x256xbf16, #tpu.memory_space<vmem>>, %arg4: memref<1x272x256xbf16, #tpu.memory_space<vmem>>, %arg5: memref<1x272x256xbf16, #tpu.memory_space<vmem>>, %arg6: memref<8x256x128xbf16, #tpu.memory_space<vmem>>, %arg7: memref<1x128xf32, #tpu.memory_space<vmem>>, %arg8: memref<1x256x128xbf16, #tpu.memory_space<vmem>>) attributes {dimension_semantics = [#tpu.dimension_semantics<parallel>, #tpu.dimension_semantics<parallel>], iteration_bounds = array<i64: 2, 1>, scalar_prefetch = 0 : i64, scratch_operands = 0 : i64, tpu.core_type = #tpu.core_type<tc>, window_params = [{transform_indices = @transform_0, window_bounds = array<i64: 1, 272, 256>}, {transform_indices = @transform_1, window_bounds = array<i64: 1, 272, 256>}, {transform_indices = @transform_2, window_bounds = array<i64: 1, 272, 256>}, {transform_indices = @transform_3, window_bounds = array<i64: 1, 272, 256>}, {pipeline_mode = #tpu.pipeline_mode<synchronous>, transform_indices = @transform_4, window_bounds = array<i64: 8, 256, 128>}, {pipeline_mode = #tpu.pipeline_mode<synchronous>, transform_indices = @transform_5, window_bounds = array<i64: 1, 128>}, {transform_indices = @transform_6, window_bounds = array<i64: 1, 256, 128>}]} {
    %c256_i32 = arith.constant 256 : i32
    %0 = arith.muli %arg1, %c256_i32 : i32
    %cst = arith.constant 0.000000e+00 : f32
    %1 = vector.broadcast %cst : f32 to vector<256x128xf32>
    %c0_i32 = arith.constant 0 : i32
    %2 = arith.addi %0, %c0_i32 : i32
    %3 = tpu.assume_multiple %2, 16 : i32
    %c0 = arith.constant 0 : index
    %4 = arith.index_cast %3 : i32 to index
    %c0_0 = arith.constant 0 : index
    %5 = vector.load %arg2[%c0, %4, %c0_0] : memref<1x272x256xbf16, #tpu.memory_space<vmem>>, vector<1x256x256xbf16>
    %6 = vector.shape_cast %5 : vector<1x256x256xbf16> to vector<256x256xbf16>
    %c0_1 = arith.constant 0 : index
    %c0_2 = arith.constant 0 : index
    %c0_3 = arith.constant 0 : index
    %7 = vector.load %arg6[%c0_1, %c0_2, %c0_3] : memref<8x256x128xbf16, #tpu.memory_space<vmem>>, vector<1x256x128xbf16>
    %8 = vector.shape_cast %7 : vector<1x256x128xbf16> to vector<256x128xbf16>
    %cst_4 = arith.constant dense<0.000000e+00> : vector<256x128xf32>
    %9 = tpu.matmul %6, %8, %cst_4 {dimension_numbers = #tpu.dot_dimension_numbers<[1], [0], [0], [1], [0, 0, 1, 1], [], []>} : vector<256x256xbf16>, vector<256x128xbf16>, vector<256x128xf32> -> vector<256x128xf32>
    %10 = arith.addf %1, %9 : vector<256x128xf32>
    %c0_i32_5 = arith.constant 0 : i32
    %11 = arith.addi %0, %c0_i32_5 : i32
    %12 = tpu.assume_multiple %11, 16 : i32
    %c0_6 = arith.constant 0 : index
    %13 = arith.index_cast %12 : i32 to index
    %c0_7 = arith.constant 0 : index
    %14 = vector.load %arg3[%c0_6, %13, %c0_7] : memref<1x272x256xbf16, #tpu.memory_space<vmem>>, vector<1x256x256xbf16>
    %15 = vector.shape_cast %14 : vector<1x256x256xbf16> to vector<256x256xbf16>
    %c1 = arith.constant 1 : index
    %c0_8 = arith.constant 0 : index
    %c0_9 = arith.constant 0 : index
    %16 = vector.load %arg6[%c1, %c0_8, %c0_9] : memref<8x256x128xbf16, #tpu.memory_space<vmem>>, vector<1x256x128xbf16>
    %17 = vector.shape_cast %16 : vector<1x256x128xbf16> to vector<256x128xbf16>
    %cst_10 = arith.constant dense<0.000000e+00> : vector<256x128xf32>
    %18 = tpu.matmul %15, %17, %cst_10 {dimension_numbers = #tpu.dot_dimension_numbers<[1], [0], [0], [1], [0, 0, 1, 1], [], []>} : vector<256x256xbf16>, vector<256x128xbf16>, vector<256x128xf32> -> vector<256x128xf32>
    %19 = arith.addf %10, %18 : vector<256x128xf32>
    %c0_i32_11 = arith.constant 0 : i32
    %20 = arith.addi %0, %c0_i32_11 : i32
    %21 = tpu.assume_multiple %20, 16 : i32
    %c0_12 = arith.constant 0 : index
    %22 = arith.index_cast %21 : i32 to index
    %c0_13 = arith.constant 0 : index
    %23 = vector.load %arg4[%c0_12, %22, %c0_13] : memref<1x272x256xbf16, #tpu.memory_space<vmem>>, vector<1x256x256xbf16>
    %24 = vector.shape_cast %23 : vector<1x256x256xbf16> to vector<256x256xbf16>
    %c2 = arith.constant 2 : index
    %c0_14 = arith.constant 0 : index
    %c0_15 = arith.constant 0 : index
    %25 = vector.load %arg6[%c2, %c0_14, %c0_15] : memref<8x256x128xbf16, #tpu.memory_space<vmem>>, vector<1x256x128xbf16>
    %26 = vector.shape_cast %25 : vector<1x256x128xbf16> to vector<256x128xbf16>
    %cst_16 = arith.constant dense<0.000000e+00> : vector<256x128xf32>
    %27 = tpu.matmul %24, %26, %cst_16 {dimension_numbers = #tpu.dot_dimension_numbers<[1], [0], [0], [1], [0, 0, 1, 1], [], []>} : vector<256x256xbf16>, vector<256x128xbf16>, vector<256x128xf32> -> vector<256x128xf32>
    %28 = arith.addf %19, %27 : vector<256x128xf32>
    %c0_i32_17 = arith.constant 0 : i32
    %29 = arith.addi %0, %c0_i32_17 : i32
    %30 = tpu.assume_multiple %29, 16 : i32
    %c0_18 = arith.constant 0 : index
    %31 = arith.index_cast %30 : i32 to index
    %c0_19 = arith.constant 0 : index
    %32 = vector.load %arg5[%c0_18, %31, %c0_19] : memref<1x272x256xbf16, #tpu.memory_space<vmem>>, vector<1x256x256xbf16>
    %33 = vector.shape_cast %32 : vector<1x256x256xbf16> to vector<256x256xbf16>
    %c3 = arith.constant 3 : index
    %c0_20 = arith.constant 0 : index
    %c0_21 = arith.constant 0 : index
    %34 = vector.load %arg6[%c3, %c0_20, %c0_21] : memref<8x256x128xbf16, #tpu.memory_space<vmem>>, vector<1x256x128xbf16>
    %35 = vector.shape_cast %34 : vector<1x256x128xbf16> to vector<256x128xbf16>
    %cst_22 = arith.constant dense<0.000000e+00> : vector<256x128xf32>
    %36 = tpu.matmul %33, %35, %cst_22 {dimension_numbers = #tpu.dot_dimension_numbers<[1], [0], [0], [1], [0, 0, 1, 1], [], []>} : vector<256x256xbf16>, vector<256x128xbf16>, vector<256x128xf32> -> vector<256x128xf32>
    %37 = arith.addf %28, %36 : vector<256x128xf32>
    %c16_i32 = arith.constant 16 : i32
    %38 = arith.addi %0, %c16_i32 : i32
    %39 = tpu.assume_multiple %38, 16 : i32
    %c0_23 = arith.constant 0 : index
    %40 = arith.index_cast %39 : i32 to index
    %c0_24 = arith.constant 0 : index
    %41 = vector.load %arg2[%c0_23, %40, %c0_24] : memref<1x272x256xbf16, #tpu.memory_space<vmem>>, vector<1x256x256xbf16>
    %42 = vector.shape_cast %41 : vector<1x256x256xbf16> to vector<256x256xbf16>
    %c4 = arith.constant 4 : index
    %c0_25 = arith.constant 0 : index
    %c0_26 = arith.constant 0 : index
    %43 = vector.load %arg6[%c4, %c0_25, %c0_26] : memref<8x256x128xbf16, #tpu.memory_space<vmem>>, vector<1x256x128xbf16>
    %44 = vector.shape_cast %43 : vector<1x256x128xbf16> to vector<256x128xbf16>
    %cst_27 = arith.constant dense<0.000000e+00> : vector<256x128xf32>
    %45 = tpu.matmul %42, %44, %cst_27 {dimension_numbers = #tpu.dot_dimension_numbers<[1], [0], [0], [1], [0, 0, 1, 1], [], []>} : vector<256x256xbf16>, vector<256x128xbf16>, vector<256x128xf32> -> vector<256x128xf32>
    %46 = arith.addf %37, %45 : vector<256x128xf32>
    %c16_i32_28 = arith.constant 16 : i32
    %47 = arith.addi %0, %c16_i32_28 : i32
    %48 = tpu.assume_multiple %47, 16 : i32
    %c0_29 = arith.constant 0 : index
    %49 = arith.index_cast %48 : i32 to index
    %c0_30 = arith.constant 0 : index
    %50 = vector.load %arg3[%c0_29, %49, %c0_30] : memref<1x272x256xbf16, #tpu.memory_space<vmem>>, vector<1x256x256xbf16>
    %51 = vector.shape_cast %50 : vector<1x256x256xbf16> to vector<256x256xbf16>
    %c5 = arith.constant 5 : index
    %c0_31 = arith.constant 0 : index
    %c0_32 = arith.constant 0 : index
    %52 = vector.load %arg6[%c5, %c0_31, %c0_32] : memref<8x256x128xbf16, #tpu.memory_space<vmem>>, vector<1x256x128xbf16>
    %53 = vector.shape_cast %52 : vector<1x256x128xbf16> to vector<256x128xbf16>
    %cst_33 = arith.constant dense<0.000000e+00> : vector<256x128xf32>
    %54 = tpu.matmul %51, %53, %cst_33 {dimension_numbers = #tpu.dot_dimension_numbers<[1], [0], [0], [1], [0, 0, 1, 1], [], []>} : vector<256x256xbf16>, vector<256x128xbf16>, vector<256x128xf32> -> vector<256x128xf32>
    %55 = arith.addf %46, %54 : vector<256x128xf32>
    %c16_i32_34 = arith.constant 16 : i32
    %56 = arith.addi %0, %c16_i32_34 : i32
    %57 = tpu.assume_multiple %56, 16 : i32
    %c0_35 = arith.constant 0 : index
    %58 = arith.index_cast %57 : i32 to index
    %c0_36 = arith.constant 0 : index
    %59 = vector.load %arg4[%c0_35, %58, %c0_36] : memref<1x272x256xbf16, #tpu.memory_space<vmem>>, vector<1x256x256xbf16>
    %60 = vector.shape_cast %59 : vector<1x256x256xbf16> to vector<256x256xbf16>
    %c6 = arith.constant 6 : index
    %c0_37 = arith.constant 0 : index
    %c0_38 = arith.constant 0 : index
    %61 = vector.load %arg6[%c6, %c0_37, %c0_38] : memref<8x256x128xbf16, #tpu.memory_space<vmem>>, vector<1x256x128xbf16>
    %62 = vector.shape_cast %61 : vector<1x256x128xbf16> to vector<256x128xbf16>
    %cst_39 = arith.constant dense<0.000000e+00> : vector<256x128xf32>
    %63 = tpu.matmul %60, %62, %cst_39 {dimension_numbers = #tpu.dot_dimension_numbers<[1], [0], [0], [1], [0, 0, 1, 1], [], []>} : vector<256x256xbf16>, vector<256x128xbf16>, vector<256x128xf32> -> vector<256x128xf32>
    %64 = arith.addf %55, %63 : vector<256x128xf32>
    %c16_i32_40 = arith.constant 16 : i32
    %65 = arith.addi %0, %c16_i32_40 : i32
    %66 = tpu.assume_multiple %65, 16 : i32
    %c0_41 = arith.constant 0 : index
    %67 = arith.index_cast %66 : i32 to index
    %c0_42 = arith.constant 0 : index
    %68 = vector.load %arg5[%c0_41, %67, %c0_42] : memref<1x272x256xbf16, #tpu.memory_space<vmem>>, vector<1x256x256xbf16>
    %69 = vector.shape_cast %68 : vector<1x256x256xbf16> to vector<256x256xbf16>
    %c7 = arith.constant 7 : index
    %c0_43 = arith.constant 0 : index
    %c0_44 = arith.constant 0 : index
    %70 = vector.load %arg6[%c7, %c0_43, %c0_44] : memref<8x256x128xbf16, #tpu.memory_space<vmem>>, vector<1x256x128xbf16>
    %71 = vector.shape_cast %70 : vector<1x256x128xbf16> to vector<256x128xbf16>
    %cst_45 = arith.constant dense<0.000000e+00> : vector<256x128xf32>
    %72 = tpu.matmul %69, %71, %cst_45 {dimension_numbers = #tpu.dot_dimension_numbers<[1], [0], [0], [1], [0, 0, 1, 1], [], []>} : vector<256x256xbf16>, vector<256x128xbf16>, vector<256x128xf32> -> vector<256x128xf32>
    %73 = arith.addf %64, %72 : vector<256x128xf32>
    %c0_46 = arith.constant 0 : index
    %c0_47 = arith.constant 0 : index
    %74 = vector.load %arg7[%c0_46, %c0_47] : memref<1x128xf32, #tpu.memory_space<vmem>>, vector<1x128xf32>
    %75 = vector.broadcast %74 : vector<1x128xf32> to vector<256x128xf32>
    %76 = arith.addf %73, %75 : vector<256x128xf32>
    %cst_48 = arith.constant 0.000000e+00 : f32
    %77 = vector.broadcast %cst_48 : f32 to vector<256x128xf32>
    %78 = arith.cmpf ogt, %76, %77 : vector<256x128xf32>
    %cst_49 = arith.constant 2.000000e-01 : f32
    %79 = vector.broadcast %cst_49 : f32 to vector<256x128xf32>
    %80 = arith.mulf %79, %76 : vector<256x128xf32>
    %81 = arith.select %78, %76, %80 : vector<256x128xi1>, vector<256x128xf32>
    %82 = arith.truncf %81 : vector<256x128xf32> to vector<256x128xbf16>
    %c0_50 = arith.constant 0 : index
    %c0_51 = arith.constant 0 : index
    %c0_52 = arith.constant 0 : index
    %83 = vector.load %arg8[%c0_50, %c0_51, %c0_52] : memref<1x256x128xbf16, #tpu.memory_space<vmem>>, vector<1x256x128xbf16>
    %84 = vector.shape_cast %83 : vector<1x256x128xbf16> to vector<256x128xbf16>
    %85 = vector.shape_cast %82 : vector<256x128xbf16> to vector<1x256x128xbf16>
    tpu.vector_store %arg8[%c0_50, %c0_51, %c0_52], %85 {strides = array<i32>} : memref<1x256x128xbf16, #tpu.memory_space<vmem>>, vector<1x256x128xbf16>,
    return
  }
  func.func @transform_0(%arg0: i32, %arg1: i32) -> (i32, i32, i32) {
    %c0_i32 = arith.constant 0 : i32
    %c0_i32_0 = arith.constant 0 : i32
    %c0_i32_1 = arith.constant 0 : i32
    return %arg0, %c0_i32, %c0_i32_0 : i32, i32, i32
  }
  func.func @transform_1(%arg0: i32, %arg1: i32) -> (i32, i32, i32) {
    %c0_i32 = arith.constant 0 : i32
    %c0_i32_0 = arith.constant 0 : i32
    %c0_i32_1 = arith.constant 0 : i32
    return %arg0, %c0_i32, %c0_i32_0 : i32, i32, i32
  }
  func.func @transform_2(%arg0: i32, %arg1: i32) -> (i32, i32, i32) {
    %c0_i32 = arith.constant 0 : i32
    %c0_i32_0 = arith.constant 0 : i32
    %c0_i32_1 = arith.constant 0 : i32
    return %arg0, %c0_i32, %c0_i32_0 : i32, i32, i32
  }
  func.func @transform_3(%arg0: i32, %arg1: i32) -> (i32, i32, i32) {
    %c0_i32 = arith.constant 0 : i32
    %c0_i32_0 = arith.constant 0 : i32
    %c0_i32_1 = arith.constant 0 : i32
    return %arg0, %c0_i32, %c0_i32_0 : i32, i32, i32
  }
  func.func @transform_4(%arg0: i32, %arg1: i32) -> (i32, i32, i32) {
    %c0_i32 = arith.constant 0 : i32
    %c0_i32_0 = arith.constant 0 : i32
    %c0_i32_1 = arith.constant 0 : i32
    %c0_i32_2 = arith.constant 0 : i32
    return %c0_i32, %c0_i32_0, %c0_i32_1 : i32, i32, i32
  }
  func.func @transform_5(%arg0: i32, %arg1: i32) -> (i32, i32) {
    %c0_i32 = arith.constant 0 : i32
    %c0_i32_0 = arith.constant 0 : i32
    %c0_i32_1 = arith.constant 0 : i32
    return %c0_i32, %c0_i32_0 : i32, i32
  }
  func.func @transform_6(%arg0: i32, %arg1: i32) -> (i32, i32, i32) {
    %c0_i32 = arith.constant 0 : i32
    %c0_i32_0 = arith.constant 0 : i32
    return %arg0, %arg1, %c0_i32 : i32, i32, i32
  }
}

module attributes {stable_mosaic.version = 11 : i64} {
  func.func @_conv_taps_kernel(%arg0: i32, %arg1: i32, %arg2: memref<1x144x256xbf16, #tpu.memory_space<vmem>>, %arg3: memref<1x144x256xbf16, #tpu.memory_space<vmem>>, %arg4: memref<1x144x256xbf16, #tpu.memory_space<vmem>>, %arg5: memref<1x144x256xbf16, #tpu.memory_space<vmem>>, %arg6: memref<8x256x128xbf16, #tpu.memory_space<vmem>>, %arg7: memref<1x128xf32, #tpu.memory_space<vmem>>, %arg8: memref<1x128x128xbf16, #tpu.memory_space<vmem>>) attributes {dimension_semantics = [#tpu.dimension_semantics<parallel>, #tpu.dimension_semantics<parallel>], iteration_bounds = array<i64: 2, 1>, scalar_prefetch = 0 : i64, scratch_operands = 0 : i64, tpu.core_type = #tpu.core_type<tc>, window_params = [{transform_indices = @transform_0, window_bounds = array<i64: 1, 144, 256>}, {transform_indices = @transform_1, window_bounds = array<i64: 1, 144, 256>}, {transform_indices = @transform_2, window_bounds = array<i64: 1, 144, 256>}, {transform_indices = @transform_3, window_bounds = array<i64: 1, 144, 256>}, {pipeline_mode = #tpu.pipeline_mode<synchronous>, transform_indices = @transform_4, window_bounds = array<i64: 8, 256, 128>}, {pipeline_mode = #tpu.pipeline_mode<synchronous>, transform_indices = @transform_5, window_bounds = array<i64: 1, 128>}, {transform_indices = @transform_6, window_bounds = array<i64: 1, 128, 128>}]} {
    %c128_i32 = arith.constant 128 : i32
    %0 = arith.muli %arg1, %c128_i32 : i32
    %cst = arith.constant 0.000000e+00 : f32
    %1 = vector.broadcast %cst : f32 to vector<128x128xf32>
    %c0_i32 = arith.constant 0 : i32
    %2 = arith.addi %0, %c0_i32 : i32
    %3 = tpu.assume_multiple %2, 16 : i32
    %c0 = arith.constant 0 : index
    %4 = arith.index_cast %3 : i32 to index
    %c0_0 = arith.constant 0 : index
    %5 = vector.load %arg2[%c0, %4, %c0_0] : memref<1x144x256xbf16, #tpu.memory_space<vmem>>, vector<1x128x256xbf16>
    %6 = vector.shape_cast %5 : vector<1x128x256xbf16> to vector<128x256xbf16>
    %c0_1 = arith.constant 0 : index
    %c0_2 = arith.constant 0 : index
    %c0_3 = arith.constant 0 : index
    %7 = vector.load %arg6[%c0_1, %c0_2, %c0_3] : memref<8x256x128xbf16, #tpu.memory_space<vmem>>, vector<1x256x128xbf16>
    %8 = vector.shape_cast %7 : vector<1x256x128xbf16> to vector<256x128xbf16>
    %cst_4 = arith.constant dense<0.000000e+00> : vector<128x128xf32>
    %9 = tpu.matmul %6, %8, %cst_4 {dimension_numbers = #tpu.dot_dimension_numbers<[1], [0], [0], [1], [0, 0, 1, 1], [], []>} : vector<128x256xbf16>, vector<256x128xbf16>, vector<128x128xf32> -> vector<128x128xf32>
    %10 = arith.addf %1, %9 : vector<128x128xf32>
    %c0_i32_5 = arith.constant 0 : i32
    %11 = arith.addi %0, %c0_i32_5 : i32
    %12 = tpu.assume_multiple %11, 16 : i32
    %c0_6 = arith.constant 0 : index
    %13 = arith.index_cast %12 : i32 to index
    %c0_7 = arith.constant 0 : index
    %14 = vector.load %arg3[%c0_6, %13, %c0_7] : memref<1x144x256xbf16, #tpu.memory_space<vmem>>, vector<1x128x256xbf16>
    %15 = vector.shape_cast %14 : vector<1x128x256xbf16> to vector<128x256xbf16>
    %c1 = arith.constant 1 : index
    %c0_8 = arith.constant 0 : index
    %c0_9 = arith.constant 0 : index
    %16 = vector.load %arg6[%c1, %c0_8, %c0_9] : memref<8x256x128xbf16, #tpu.memory_space<vmem>>, vector<1x256x128xbf16>
    %17 = vector.shape_cast %16 : vector<1x256x128xbf16> to vector<256x128xbf16>
    %cst_10 = arith.constant dense<0.000000e+00> : vector<128x128xf32>
    %18 = tpu.matmul %15, %17, %cst_10 {dimension_numbers = #tpu.dot_dimension_numbers<[1], [0], [0], [1], [0, 0, 1, 1], [], []>} : vector<128x256xbf16>, vector<256x128xbf16>, vector<128x128xf32> -> vector<128x128xf32>
    %19 = arith.addf %10, %18 : vector<128x128xf32>
    %c0_i32_11 = arith.constant 0 : i32
    %20 = arith.addi %0, %c0_i32_11 : i32
    %21 = tpu.assume_multiple %20, 16 : i32
    %c0_12 = arith.constant 0 : index
    %22 = arith.index_cast %21 : i32 to index
    %c0_13 = arith.constant 0 : index
    %23 = vector.load %arg4[%c0_12, %22, %c0_13] : memref<1x144x256xbf16, #tpu.memory_space<vmem>>, vector<1x128x256xbf16>
    %24 = vector.shape_cast %23 : vector<1x128x256xbf16> to vector<128x256xbf16>
    %c2 = arith.constant 2 : index
    %c0_14 = arith.constant 0 : index
    %c0_15 = arith.constant 0 : index
    %25 = vector.load %arg6[%c2, %c0_14, %c0_15] : memref<8x256x128xbf16, #tpu.memory_space<vmem>>, vector<1x256x128xbf16>
    %26 = vector.shape_cast %25 : vector<1x256x128xbf16> to vector<256x128xbf16>
    %cst_16 = arith.constant dense<0.000000e+00> : vector<128x128xf32>
    %27 = tpu.matmul %24, %26, %cst_16 {dimension_numbers = #tpu.dot_dimension_numbers<[1], [0], [0], [1], [0, 0, 1, 1], [], []>} : vector<128x256xbf16>, vector<256x128xbf16>, vector<128x128xf32> -> vector<128x128xf32>
    %28 = arith.addf %19, %27 : vector<128x128xf32>
    %c0_i32_17 = arith.constant 0 : i32
    %29 = arith.addi %0, %c0_i32_17 : i32
    %30 = tpu.assume_multiple %29, 16 : i32
    %c0_18 = arith.constant 0 : index
    %31 = arith.index_cast %30 : i32 to index
    %c0_19 = arith.constant 0 : index
    %32 = vector.load %arg5[%c0_18, %31, %c0_19] : memref<1x144x256xbf16, #tpu.memory_space<vmem>>, vector<1x128x256xbf16>
    %33 = vector.shape_cast %32 : vector<1x128x256xbf16> to vector<128x256xbf16>
    %c3 = arith.constant 3 : index
    %c0_20 = arith.constant 0 : index
    %c0_21 = arith.constant 0 : index
    %34 = vector.load %arg6[%c3, %c0_20, %c0_21] : memref<8x256x128xbf16, #tpu.memory_space<vmem>>, vector<1x256x128xbf16>
    %35 = vector.shape_cast %34 : vector<1x256x128xbf16> to vector<256x128xbf16>
    %cst_22 = arith.constant dense<0.000000e+00> : vector<128x128xf32>
    %36 = tpu.matmul %33, %35, %cst_22 {dimension_numbers = #tpu.dot_dimension_numbers<[1], [0], [0], [1], [0, 0, 1, 1], [], []>} : vector<128x256xbf16>, vector<256x128xbf16>, vector<128x128xf32> -> vector<128x128xf32>
    %37 = arith.addf %28, %36 : vector<128x128xf32>
    %c16_i32 = arith.constant 16 : i32
    %38 = arith.addi %0, %c16_i32 : i32
    %39 = tpu.assume_multiple %38, 16 : i32
    %c0_23 = arith.constant 0 : index
    %40 = arith.index_cast %39 : i32 to index
    %c0_24 = arith.constant 0 : index
    %41 = vector.load %arg2[%c0_23, %40, %c0_24] : memref<1x144x256xbf16, #tpu.memory_space<vmem>>, vector<1x128x256xbf16>
    %42 = vector.shape_cast %41 : vector<1x128x256xbf16> to vector<128x256xbf16>
    %c4 = arith.constant 4 : index
    %c0_25 = arith.constant 0 : index
    %c0_26 = arith.constant 0 : index
    %43 = vector.load %arg6[%c4, %c0_25, %c0_26] : memref<8x256x128xbf16, #tpu.memory_space<vmem>>, vector<1x256x128xbf16>
    %44 = vector.shape_cast %43 : vector<1x256x128xbf16> to vector<256x128xbf16>
    %cst_27 = arith.constant dense<0.000000e+00> : vector<128x128xf32>
    %45 = tpu.matmul %42, %44, %cst_27 {dimension_numbers = #tpu.dot_dimension_numbers<[1], [0], [0], [1], [0, 0, 1, 1], [], []>} : vector<128x256xbf16>, vector<256x128xbf16>, vector<128x128xf32> -> vector<128x128xf32>
    %46 = arith.addf %37, %45 : vector<128x128xf32>
    %c16_i32_28 = arith.constant 16 : i32
    %47 = arith.addi %0, %c16_i32_28 : i32
    %48 = tpu.assume_multiple %47, 16 : i32
    %c0_29 = arith.constant 0 : index
    %49 = arith.index_cast %48 : i32 to index
    %c0_30 = arith.constant 0 : index
    %50 = vector.load %arg3[%c0_29, %49, %c0_30] : memref<1x144x256xbf16, #tpu.memory_space<vmem>>, vector<1x128x256xbf16>
    %51 = vector.shape_cast %50 : vector<1x128x256xbf16> to vector<128x256xbf16>
    %c5 = arith.constant 5 : index
    %c0_31 = arith.constant 0 : index
    %c0_32 = arith.constant 0 : index
    %52 = vector.load %arg6[%c5, %c0_31, %c0_32] : memref<8x256x128xbf16, #tpu.memory_space<vmem>>, vector<1x256x128xbf16>
    %53 = vector.shape_cast %52 : vector<1x256x128xbf16> to vector<256x128xbf16>
    %cst_33 = arith.constant dense<0.000000e+00> : vector<128x128xf32>
    %54 = tpu.matmul %51, %53, %cst_33 {dimension_numbers = #tpu.dot_dimension_numbers<[1], [0], [0], [1], [0, 0, 1, 1], [], []>} : vector<128x256xbf16>, vector<256x128xbf16>, vector<128x128xf32> -> vector<128x128xf32>
    %55 = arith.addf %46, %54 : vector<128x128xf32>
    %c16_i32_34 = arith.constant 16 : i32
    %56 = arith.addi %0, %c16_i32_34 : i32
    %57 = tpu.assume_multiple %56, 16 : i32
    %c0_35 = arith.constant 0 : index
    %58 = arith.index_cast %57 : i32 to index
    %c0_36 = arith.constant 0 : index
    %59 = vector.load %arg4[%c0_35, %58, %c0_36] : memref<1x144x256xbf16, #tpu.memory_space<vmem>>, vector<1x128x256xbf16>
    %60 = vector.shape_cast %59 : vector<1x128x256xbf16> to vector<128x256xbf16>
    %c6 = arith.constant 6 : index
    %c0_37 = arith.constant 0 : index
    %c0_38 = arith.constant 0 : index
    %61 = vector.load %arg6[%c6, %c0_37, %c0_38] : memref<8x256x128xbf16, #tpu.memory_space<vmem>>, vector<1x256x128xbf16>
    %62 = vector.shape_cast %61 : vector<1x256x128xbf16> to vector<256x128xbf16>
    %cst_39 = arith.constant dense<0.000000e+00> : vector<128x128xf32>
    %63 = tpu.matmul %60, %62, %cst_39 {dimension_numbers = #tpu.dot_dimension_numbers<[1], [0], [0], [1], [0, 0, 1, 1], [], []>} : vector<128x256xbf16>, vector<256x128xbf16>, vector<128x128xf32> -> vector<128x128xf32>
    %64 = arith.addf %55, %63 : vector<128x128xf32>
    %c16_i32_40 = arith.constant 16 : i32
    %65 = arith.addi %0, %c16_i32_40 : i32
    %66 = tpu.assume_multiple %65, 16 : i32
    %c0_41 = arith.constant 0 : index
    %67 = arith.index_cast %66 : i32 to index
    %c0_42 = arith.constant 0 : index
    %68 = vector.load %arg5[%c0_41, %67, %c0_42] : memref<1x144x256xbf16, #tpu.memory_space<vmem>>, vector<1x128x256xbf16>
    %69 = vector.shape_cast %68 : vector<1x128x256xbf16> to vector<128x256xbf16>
    %c7 = arith.constant 7 : index
    %c0_43 = arith.constant 0 : index
    %c0_44 = arith.constant 0 : index
    %70 = vector.load %arg6[%c7, %c0_43, %c0_44] : memref<8x256x128xbf16, #tpu.memory_space<vmem>>, vector<1x256x128xbf16>
    %71 = vector.shape_cast %70 : vector<1x256x128xbf16> to vector<256x128xbf16>
    %cst_45 = arith.constant dense<0.000000e+00> : vector<128x128xf32>
    %72 = tpu.matmul %69, %71, %cst_45 {dimension_numbers = #tpu.dot_dimension_numbers<[1], [0], [0], [1], [0, 0, 1, 1], [], []>} : vector<128x256xbf16>, vector<256x128xbf16>, vector<128x128xf32> -> vector<128x128xf32>
    %73 = arith.addf %64, %72 : vector<128x128xf32>
    %c0_46 = arith.constant 0 : index
    %c0_47 = arith.constant 0 : index
    %74 = vector.load %arg7[%c0_46, %c0_47] : memref<1x128xf32, #tpu.memory_space<vmem>>, vector<1x128xf32>
    %75 = vector.broadcast %74 : vector<1x128xf32> to vector<128x128xf32>
    %76 = arith.addf %73, %75 : vector<128x128xf32>
    %cst_48 = arith.constant 0.000000e+00 : f32
    %77 = vector.broadcast %cst_48 : f32 to vector<128x128xf32>
    %78 = arith.cmpf ogt, %76, %77 : vector<128x128xf32>
    %cst_49 = arith.constant 2.000000e-01 : f32
    %79 = vector.broadcast %cst_49 : f32 to vector<128x128xf32>
    %80 = arith.mulf %79, %76 : vector<128x128xf32>
    %81 = arith.select %78, %76, %80 : vector<128x128xi1>, vector<128x128xf32>
    %82 = arith.truncf %81 : vector<128x128xf32> to vector<128x128xbf16>
    %c0_50 = arith.constant 0 : index
    %c0_51 = arith.constant 0 : index
    %c0_52 = arith.constant 0 : index
    %83 = vector.load %arg8[%c0_50, %c0_51, %c0_52] : memref<1x128x128xbf16, #tpu.memory_space<vmem>>, vector<1x128x128xbf16>
    %84 = vector.shape_cast %83 : vector<1x128x128xbf16> to vector<128x128xbf16>
    %85 = vector.shape_cast %82 : vector<128x128xbf16> to vector<1x128x128xbf16>
    tpu.vector_store %arg8[%c0_50, %c0_51, %c0_52], %85 {strides = array<i32>} : memref<1x128x128xbf16, #tpu.memory_space<vmem>>, vector<1x128x128xbf16>,
    return
  }
  func.func @transform_0(%arg0: i32, %arg1: i32) -> (i32, i32, i32) {
    %c0_i32 = arith.constant 0 : i32
    %c0_i32_0 = arith.constant 0 : i32
    %c0_i32_1 = arith.constant 0 : i32
    return %arg0, %c0_i32, %c0_i32_0 : i32, i32, i32
  }
  func.func @transform_1(%arg0: i32, %arg1: i32) -> (i32, i32, i32) {
    %c0_i32 = arith.constant 0 : i32
    %c0_i32_0 = arith.constant 0 : i32
    %c0_i32_1 = arith.constant 0 : i32
    return %arg0, %c0_i32, %c0_i32_0 : i32, i32, i32
  }
  func.func @transform_2(%arg0: i32, %arg1: i32) -> (i32, i32, i32) {
    %c0_i32 = arith.constant 0 : i32
    %c0_i32_0 = arith.constant 0 : i32
    %c0_i32_1 = arith.constant 0 : i32
    return %arg0, %c0_i32, %c0_i32_0 : i32, i32, i32
  }
  func.func @transform_3(%arg0: i32, %arg1: i32) -> (i32, i32, i32) {
    %c0_i32 = arith.constant 0 : i32
    %c0_i32_0 = arith.constant 0 : i32
    %c0_i32_1 = arith.constant 0 : i32
    return %arg0, %c0_i32, %c0_i32_0 : i32, i32, i32
  }
  func.func @transform_4(%arg0: i32, %arg1: i32) -> (i32, i32, i32) {
    %c0_i32 = arith.constant 0 : i32
    %c0_i32_0 = arith.constant 0 : i32
    %c0_i32_1 = arith.constant 0 : i32
    %c0_i32_2 = arith.constant 0 : i32
    return %c0_i32, %c0_i32_0, %c0_i32_1 : i32, i32, i32
  }
  func.func @transform_5(%arg0: i32, %arg1: i32) -> (i32, i32) {
    %c0_i32 = arith.constant 0 : i32
    %c0_i32_0 = arith.constant 0 : i32
    %c0_i32_1 = arith.constant 0 : i32
    return %c0_i32, %c0_i32_0 : i32, i32
  }
  func.func @transform_6(%arg0: i32, %arg1: i32) -> (i32, i32, i32) {
    %c0_i32 = arith.constant 0 : i32
    %c0_i32_0 = arith.constant 0 : i32
    return %arg0, %arg1, %c0_i32 : i32, i32, i32
  }
}

module attributes {stable_mosaic.version = 11 : i64} {
  func.func @_conv_taps_kernel(%arg0: i32, %arg1: i32, %arg2: memref<1x96x128xbf16, #tpu.memory_space<vmem>>, %arg3: memref<1x96x128xbf16, #tpu.memory_space<vmem>>, %arg4: memref<1x96x128xbf16, #tpu.memory_space<vmem>>, %arg5: memref<1x96x128xbf16, #tpu.memory_space<vmem>>, %arg6: memref<16x128x128xbf16, #tpu.memory_space<vmem>>, %arg7: memref<1x128xf32, #tpu.memory_space<vmem>>, %arg8: memref<1x48x128xf32, #tpu.memory_space<vmem>>) attributes {dimension_semantics = [#tpu.dimension_semantics<parallel>, #tpu.dimension_semantics<parallel>], iteration_bounds = array<i64: 2, 1>, scalar_prefetch = 0 : i64, scratch_operands = 0 : i64, tpu.core_type = #tpu.core_type<tc>, window_params = [{transform_indices = @transform_0, window_bounds = array<i64: 1, 96, 128>}, {transform_indices = @transform_1, window_bounds = array<i64: 1, 96, 128>}, {transform_indices = @transform_2, window_bounds = array<i64: 1, 96, 128>}, {transform_indices = @transform_3, window_bounds = array<i64: 1, 96, 128>}, {pipeline_mode = #tpu.pipeline_mode<synchronous>, transform_indices = @transform_4, window_bounds = array<i64: 16, 128, 128>}, {pipeline_mode = #tpu.pipeline_mode<synchronous>, transform_indices = @transform_5, window_bounds = array<i64: 1, 128>}, {transform_indices = @transform_6, window_bounds = array<i64: 1, 48, 128>}]} {
    %c48_i32 = arith.constant 48 : i32
    %0 = arith.muli %arg1, %c48_i32 : i32
    %cst = arith.constant 0.000000e+00 : f32
    %1 = vector.broadcast %cst : f32 to vector<48x128xf32>
    %c0_i32 = arith.constant 0 : i32
    %2 = arith.addi %0, %c0_i32 : i32
    %3 = tpu.assume_multiple %2, 16 : i32
    %c0 = arith.constant 0 : index
    %4 = arith.index_cast %3 : i32 to index
    %c0_0 = arith.constant 0 : index
    %5 = vector.load %arg2[%c0, %4, %c0_0] : memref<1x96x128xbf16, #tpu.memory_space<vmem>>, vector<1x48x128xbf16>
    %6 = vector.shape_cast %5 : vector<1x48x128xbf16> to vector<48x128xbf16>
    %c0_1 = arith.constant 0 : index
    %c0_2 = arith.constant 0 : index
    %c0_3 = arith.constant 0 : index
    %7 = vector.load %arg6[%c0_1, %c0_2, %c0_3] : memref<16x128x128xbf16, #tpu.memory_space<vmem>>, vector<1x128x128xbf16>
    %8 = vector.shape_cast %7 : vector<1x128x128xbf16> to vector<128x128xbf16>
    %cst_4 = arith.constant dense<0.000000e+00> : vector<48x128xf32>
    %9 = tpu.matmul %6, %8, %cst_4 {dimension_numbers = #tpu.dot_dimension_numbers<[1], [0], [0], [1], [0, 0, 1, 1], [], []>} : vector<48x128xbf16>, vector<128x128xbf16>, vector<48x128xf32> -> vector<48x128xf32>
    %10 = arith.addf %1, %9 : vector<48x128xf32>
    %c0_i32_5 = arith.constant 0 : i32
    %11 = arith.addi %0, %c0_i32_5 : i32
    %12 = tpu.assume_multiple %11, 16 : i32
    %c0_6 = arith.constant 0 : index
    %13 = arith.index_cast %12 : i32 to index
    %c0_7 = arith.constant 0 : index
    %14 = vector.load %arg3[%c0_6, %13, %c0_7] : memref<1x96x128xbf16, #tpu.memory_space<vmem>>, vector<1x48x128xbf16>
    %15 = vector.shape_cast %14 : vector<1x48x128xbf16> to vector<48x128xbf16>
    %c1 = arith.constant 1 : index
    %c0_8 = arith.constant 0 : index
    %c0_9 = arith.constant 0 : index
    %16 = vector.load %arg6[%c1, %c0_8, %c0_9] : memref<16x128x128xbf16, #tpu.memory_space<vmem>>, vector<1x128x128xbf16>
    %17 = vector.shape_cast %16 : vector<1x128x128xbf16> to vector<128x128xbf16>
    %cst_10 = arith.constant dense<0.000000e+00> : vector<48x128xf32>
    %18 = tpu.matmul %15, %17, %cst_10 {dimension_numbers = #tpu.dot_dimension_numbers<[1], [0], [0], [1], [0, 0, 1, 1], [], []>} : vector<48x128xbf16>, vector<128x128xbf16>, vector<48x128xf32> -> vector<48x128xf32>
    %19 = arith.addf %10, %18 : vector<48x128xf32>
    %c0_i32_11 = arith.constant 0 : i32
    %20 = arith.addi %0, %c0_i32_11 : i32
    %21 = tpu.assume_multiple %20, 16 : i32
    %c0_12 = arith.constant 0 : index
    %22 = arith.index_cast %21 : i32 to index
    %c0_13 = arith.constant 0 : index
    %23 = vector.load %arg4[%c0_12, %22, %c0_13] : memref<1x96x128xbf16, #tpu.memory_space<vmem>>, vector<1x48x128xbf16>
    %24 = vector.shape_cast %23 : vector<1x48x128xbf16> to vector<48x128xbf16>
    %c2 = arith.constant 2 : index
    %c0_14 = arith.constant 0 : index
    %c0_15 = arith.constant 0 : index
    %25 = vector.load %arg6[%c2, %c0_14, %c0_15] : memref<16x128x128xbf16, #tpu.memory_space<vmem>>, vector<1x128x128xbf16>
    %26 = vector.shape_cast %25 : vector<1x128x128xbf16> to vector<128x128xbf16>
    %cst_16 = arith.constant dense<0.000000e+00> : vector<48x128xf32>
    %27 = tpu.matmul %24, %26, %cst_16 {dimension_numbers = #tpu.dot_dimension_numbers<[1], [0], [0], [1], [0, 0, 1, 1], [], []>} : vector<48x128xbf16>, vector<128x128xbf16>, vector<48x128xf32> -> vector<48x128xf32>
    %28 = arith.addf %19, %27 : vector<48x128xf32>
    %c0_i32_17 = arith.constant 0 : i32
    %29 = arith.addi %0, %c0_i32_17 : i32
    %30 = tpu.assume_multiple %29, 16 : i32
    %c0_18 = arith.constant 0 : index
    %31 = arith.index_cast %30 : i32 to index
    %c0_19 = arith.constant 0 : index
    %32 = vector.load %arg5[%c0_18, %31, %c0_19] : memref<1x96x128xbf16, #tpu.memory_space<vmem>>, vector<1x48x128xbf16>
    %33 = vector.shape_cast %32 : vector<1x48x128xbf16> to vector<48x128xbf16>
    %c3 = arith.constant 3 : index
    %c0_20 = arith.constant 0 : index
    %c0_21 = arith.constant 0 : index
    %34 = vector.load %arg6[%c3, %c0_20, %c0_21] : memref<16x128x128xbf16, #tpu.memory_space<vmem>>, vector<1x128x128xbf16>
    %35 = vector.shape_cast %34 : vector<1x128x128xbf16> to vector<128x128xbf16>
    %cst_22 = arith.constant dense<0.000000e+00> : vector<48x128xf32>
    %36 = tpu.matmul %33, %35, %cst_22 {dimension_numbers = #tpu.dot_dimension_numbers<[1], [0], [0], [1], [0, 0, 1, 1], [], []>} : vector<48x128xbf16>, vector<128x128xbf16>, vector<48x128xf32> -> vector<48x128xf32>
    %37 = arith.addf %28, %36 : vector<48x128xf32>
    %c16_i32 = arith.constant 16 : i32
    %38 = arith.addi %0, %c16_i32 : i32
    %39 = tpu.assume_multiple %38, 16 : i32
    %c0_23 = arith.constant 0 : index
    %40 = arith.index_cast %39 : i32 to index
    %c0_24 = arith.constant 0 : index
    %41 = vector.load %arg2[%c0_23, %40, %c0_24] : memref<1x96x128xbf16, #tpu.memory_space<vmem>>, vector<1x48x128xbf16>
    %42 = vector.shape_cast %41 : vector<1x48x128xbf16> to vector<48x128xbf16>
    %c4 = arith.constant 4 : index
    %c0_25 = arith.constant 0 : index
    %c0_26 = arith.constant 0 : index
    %43 = vector.load %arg6[%c4, %c0_25, %c0_26] : memref<16x128x128xbf16, #tpu.memory_space<vmem>>, vector<1x128x128xbf16>
    %44 = vector.shape_cast %43 : vector<1x128x128xbf16> to vector<128x128xbf16>
    %cst_27 = arith.constant dense<0.000000e+00> : vector<48x128xf32>
    %45 = tpu.matmul %42, %44, %cst_27 {dimension_numbers = #tpu.dot_dimension_numbers<[1], [0], [0], [1], [0, 0, 1, 1], [], []>} : vector<48x128xbf16>, vector<128x128xbf16>, vector<48x128xf32> -> vector<48x128xf32>
    %46 = arith.addf %37, %45 : vector<48x128xf32>
    %c16_i32_28 = arith.constant 16 : i32
    %47 = arith.addi %0, %c16_i32_28 : i32
    %48 = tpu.assume_multiple %47, 16 : i32
    %c0_29 = arith.constant 0 : index
    %49 = arith.index_cast %48 : i32 to index
    %c0_30 = arith.constant 0 : index
    %50 = vector.load %arg3[%c0_29, %49, %c0_30] : memref<1x96x128xbf16, #tpu.memory_space<vmem>>, vector<1x48x128xbf16>
    %51 = vector.shape_cast %50 : vector<1x48x128xbf16> to vector<48x128xbf16>
    %c5 = arith.constant 5 : index
    %c0_31 = arith.constant 0 : index
    %c0_32 = arith.constant 0 : index
    %52 = vector.load %arg6[%c5, %c0_31, %c0_32] : memref<16x128x128xbf16, #tpu.memory_space<vmem>>, vector<1x128x128xbf16>
    %53 = vector.shape_cast %52 : vector<1x128x128xbf16> to vector<128x128xbf16>
    %cst_33 = arith.constant dense<0.000000e+00> : vector<48x128xf32>
    %54 = tpu.matmul %51, %53, %cst_33 {dimension_numbers = #tpu.dot_dimension_numbers<[1], [0], [0], [1], [0, 0, 1, 1], [], []>} : vector<48x128xbf16>, vector<128x128xbf16>, vector<48x128xf32> -> vector<48x128xf32>
    %55 = arith.addf %46, %54 : vector<48x128xf32>
    %c16_i32_34 = arith.constant 16 : i32
    %56 = arith.addi %0, %c16_i32_34 : i32
    %57 = tpu.assume_multiple %56, 16 : i32
    %c0_35 = arith.constant 0 : index
    %58 = arith.index_cast %57 : i32 to index
    %c0_36 = arith.constant 0 : index
    %59 = vector.load %arg4[%c0_35, %58, %c0_36] : memref<1x96x128xbf16, #tpu.memory_space<vmem>>, vector<1x48x128xbf16>
    %60 = vector.shape_cast %59 : vector<1x48x128xbf16> to vector<48x128xbf16>
    %c6 = arith.constant 6 : index
    %c0_37 = arith.constant 0 : index
    %c0_38 = arith.constant 0 : index
    %61 = vector.load %arg6[%c6, %c0_37, %c0_38] : memref<16x128x128xbf16, #tpu.memory_space<vmem>>, vector<1x128x128xbf16>
    %62 = vector.shape_cast %61 : vector<1x128x128xbf16> to vector<128x128xbf16>
    %cst_39 = arith.constant dense<0.000000e+00> : vector<48x128xf32>
    %63 = tpu.matmul %60, %62, %cst_39 {dimension_numbers = #tpu.dot_dimension_numbers<[1], [0], [0], [1], [0, 0, 1, 1], [], []>} : vector<48x128xbf16>, vector<128x128xbf16>, vector<48x128xf32> -> vector<48x128xf32>
    %64 = arith.addf %55, %63 : vector<48x128xf32>
    %c16_i32_40 = arith.constant 16 : i32
    %65 = arith.addi %0, %c16_i32_40 : i32
    %66 = tpu.assume_multiple %65, 16 : i32
    %c0_41 = arith.constant 0 : index
    %67 = arith.index_cast %66 : i32 to index
    %c0_42 = arith.constant 0 : index
    %68 = vector.load %arg5[%c0_41, %67, %c0_42] : memref<1x96x128xbf16, #tpu.memory_space<vmem>>, vector<1x48x128xbf16>
    %69 = vector.shape_cast %68 : vector<1x48x128xbf16> to vector<48x128xbf16>
    %c7 = arith.constant 7 : index
    %c0_43 = arith.constant 0 : index
    %c0_44 = arith.constant 0 : index
    %70 = vector.load %arg6[%c7, %c0_43, %c0_44] : memref<16x128x128xbf16, #tpu.memory_space<vmem>>, vector<1x128x128xbf16>
    %71 = vector.shape_cast %70 : vector<1x128x128xbf16> to vector<128x128xbf16>
    %cst_45 = arith.constant dense<0.000000e+00> : vector<48x128xf32>
    %72 = tpu.matmul %69, %71, %cst_45 {dimension_numbers = #tpu.dot_dimension_numbers<[1], [0], [0], [1], [0, 0, 1, 1], [], []>} : vector<48x128xbf16>, vector<128x128xbf16>, vector<48x128xf32> -> vector<48x128xf32>
    %73 = arith.addf %64, %72 : vector<48x128xf32>
    %c32_i32 = arith.constant 32 : i32
    %74 = arith.addi %0, %c32_i32 : i32
    %75 = tpu.assume_multiple %74, 16 : i32
    %c0_46 = arith.constant 0 : index
    %76 = arith.index_cast %75 : i32 to index
    %c0_47 = arith.constant 0 : index
    %77 = vector.load %arg2[%c0_46, %76, %c0_47] : memref<1x96x128xbf16, #tpu.memory_space<vmem>>, vector<1x48x128xbf16>
    %78 = vector.shape_cast %77 : vector<1x48x128xbf16> to vector<48x128xbf16>
    %c8 = arith.constant 8 : index
    %c0_48 = arith.constant 0 : index
    %c0_49 = arith.constant 0 : index
    %79 = vector.load %arg6[%c8, %c0_48, %c0_49] : memref<16x128x128xbf16, #tpu.memory_space<vmem>>, vector<1x128x128xbf16>
    %80 = vector.shape_cast %79 : vector<1x128x128xbf16> to vector<128x128xbf16>
    %cst_50 = arith.constant dense<0.000000e+00> : vector<48x128xf32>
    %81 = tpu.matmul %78, %80, %cst_50 {dimension_numbers = #tpu.dot_dimension_numbers<[1], [0], [0], [1], [0, 0, 1, 1], [], []>} : vector<48x128xbf16>, vector<128x128xbf16>, vector<48x128xf32> -> vector<48x128xf32>
    %82 = arith.addf %73, %81 : vector<48x128xf32>
    %c32_i32_51 = arith.constant 32 : i32
    %83 = arith.addi %0, %c32_i32_51 : i32
    %84 = tpu.assume_multiple %83, 16 : i32
    %c0_52 = arith.constant 0 : index
    %85 = arith.index_cast %84 : i32 to index
    %c0_53 = arith.constant 0 : index
    %86 = vector.load %arg3[%c0_52, %85, %c0_53] : memref<1x96x128xbf16, #tpu.memory_space<vmem>>, vector<1x48x128xbf16>
    %87 = vector.shape_cast %86 : vector<1x48x128xbf16> to vector<48x128xbf16>
    %c9 = arith.constant 9 : index
    %c0_54 = arith.constant 0 : index
    %c0_55 = arith.constant 0 : index
    %88 = vector.load %arg6[%c9, %c0_54, %c0_55] : memref<16x128x128xbf16, #tpu.memory_space<vmem>>, vector<1x128x128xbf16>
    %89 = vector.shape_cast %88 : vector<1x128x128xbf16> to vector<128x128xbf16>
    %cst_56 = arith.constant dense<0.000000e+00> : vector<48x128xf32>
    %90 = tpu.matmul %87, %89, %cst_56 {dimension_numbers = #tpu.dot_dimension_numbers<[1], [0], [0], [1], [0, 0, 1, 1], [], []>} : vector<48x128xbf16>, vector<128x128xbf16>, vector<48x128xf32> -> vector<48x128xf32>
    %91 = arith.addf %82, %90 : vector<48x128xf32>
    %c32_i32_57 = arith.constant 32 : i32
    %92 = arith.addi %0, %c32_i32_57 : i32
    %93 = tpu.assume_multiple %92, 16 : i32
    %c0_58 = arith.constant 0 : index
    %94 = arith.index_cast %93 : i32 to index
    %c0_59 = arith.constant 0 : index
    %95 = vector.load %arg4[%c0_58, %94, %c0_59] : memref<1x96x128xbf16, #tpu.memory_space<vmem>>, vector<1x48x128xbf16>
    %96 = vector.shape_cast %95 : vector<1x48x128xbf16> to vector<48x128xbf16>
    %c10 = arith.constant 10 : index
    %c0_60 = arith.constant 0 : index
    %c0_61 = arith.constant 0 : index
    %97 = vector.load %arg6[%c10, %c0_60, %c0_61] : memref<16x128x128xbf16, #tpu.memory_space<vmem>>, vector<1x128x128xbf16>
    %98 = vector.shape_cast %97 : vector<1x128x128xbf16> to vector<128x128xbf16>
    %cst_62 = arith.constant dense<0.000000e+00> : vector<48x128xf32>
    %99 = tpu.matmul %96, %98, %cst_62 {dimension_numbers = #tpu.dot_dimension_numbers<[1], [0], [0], [1], [0, 0, 1, 1], [], []>} : vector<48x128xbf16>, vector<128x128xbf16>, vector<48x128xf32> -> vector<48x128xf32>
    %100 = arith.addf %91, %99 : vector<48x128xf32>
    %c32_i32_63 = arith.constant 32 : i32
    %101 = arith.addi %0, %c32_i32_63 : i32
    %102 = tpu.assume_multiple %101, 16 : i32
    %c0_64 = arith.constant 0 : index
    %103 = arith.index_cast %102 : i32 to index
    %c0_65 = arith.constant 0 : index
    %104 = vector.load %arg5[%c0_64, %103, %c0_65] : memref<1x96x128xbf16, #tpu.memory_space<vmem>>, vector<1x48x128xbf16>
    %105 = vector.shape_cast %104 : vector<1x48x128xbf16> to vector<48x128xbf16>
    %c11 = arith.constant 11 : index
    %c0_66 = arith.constant 0 : index
    %c0_67 = arith.constant 0 : index
    %106 = vector.load %arg6[%c11, %c0_66, %c0_67] : memref<16x128x128xbf16, #tpu.memory_space<vmem>>, vector<1x128x128xbf16>
    %107 = vector.shape_cast %106 : vector<1x128x128xbf16> to vector<128x128xbf16>
    %cst_68 = arith.constant dense<0.000000e+00> : vector<48x128xf32>
    %108 = tpu.matmul %105, %107, %cst_68 {dimension_numbers = #tpu.dot_dimension_numbers<[1], [0], [0], [1], [0, 0, 1, 1], [], []>} : vector<48x128xbf16>, vector<128x128xbf16>, vector<48x128xf32> -> vector<48x128xf32>
    %109 = arith.addf %100, %108 : vector<48x128xf32>
    %c48_i32_69 = arith.constant 48 : i32
    %110 = arith.addi %0, %c48_i32_69 : i32
    %111 = tpu.assume_multiple %110, 16 : i32
    %c0_70 = arith.constant 0 : index
    %112 = arith.index_cast %111 : i32 to index
    %c0_71 = arith.constant 0 : index
    %113 = vector.load %arg2[%c0_70, %112, %c0_71] : memref<1x96x128xbf16, #tpu.memory_space<vmem>>, vector<1x48x128xbf16>
    %114 = vector.shape_cast %113 : vector<1x48x128xbf16> to vector<48x128xbf16>
    %c12 = arith.constant 12 : index
    %c0_72 = arith.constant 0 : index
    %c0_73 = arith.constant 0 : index
    %115 = vector.load %arg6[%c12, %c0_72, %c0_73] : memref<16x128x128xbf16, #tpu.memory_space<vmem>>, vector<1x128x128xbf16>
    %116 = vector.shape_cast %115 : vector<1x128x128xbf16> to vector<128x128xbf16>
    %cst_74 = arith.constant dense<0.000000e+00> : vector<48x128xf32>
    %117 = tpu.matmul %114, %116, %cst_74 {dimension_numbers = #tpu.dot_dimension_numbers<[1], [0], [0], [1], [0, 0, 1, 1], [], []>} : vector<48x128xbf16>, vector<128x128xbf16>, vector<48x128xf32> -> vector<48x128xf32>
    %118 = arith.addf %109, %117 : vector<48x128xf32>
    %c48_i32_75 = arith.constant 48 : i32
    %119 = arith.addi %0, %c48_i32_75 : i32
    %120 = tpu.assume_multiple %119, 16 : i32
    %c0_76 = arith.constant 0 : index
    %121 = arith.index_cast %120 : i32 to index
    %c0_77 = arith.constant 0 : index
    %122 = vector.load %arg3[%c0_76, %121, %c0_77] : memref<1x96x128xbf16, #tpu.memory_space<vmem>>, vector<1x48x128xbf16>
    %123 = vector.shape_cast %122 : vector<1x48x128xbf16> to vector<48x128xbf16>
    %c13 = arith.constant 13 : index
    %c0_78 = arith.constant 0 : index
    %c0_79 = arith.constant 0 : index
    %124 = vector.load %arg6[%c13, %c0_78, %c0_79] : memref<16x128x128xbf16, #tpu.memory_space<vmem>>, vector<1x128x128xbf16>
    %125 = vector.shape_cast %124 : vector<1x128x128xbf16> to vector<128x128xbf16>
    %cst_80 = arith.constant dense<0.000000e+00> : vector<48x128xf32>
    %126 = tpu.matmul %123, %125, %cst_80 {dimension_numbers = #tpu.dot_dimension_numbers<[1], [0], [0], [1], [0, 0, 1, 1], [], []>} : vector<48x128xbf16>, vector<128x128xbf16>, vector<48x128xf32> -> vector<48x128xf32>
    %127 = arith.addf %118, %126 : vector<48x128xf32>
    %c48_i32_81 = arith.constant 48 : i32
    %128 = arith.addi %0, %c48_i32_81 : i32
    %129 = tpu.assume_multiple %128, 16 : i32
    %c0_82 = arith.constant 0 : index
    %130 = arith.index_cast %129 : i32 to index
    %c0_83 = arith.constant 0 : index
    %131 = vector.load %arg4[%c0_82, %130, %c0_83] : memref<1x96x128xbf16, #tpu.memory_space<vmem>>, vector<1x48x128xbf16>
    %132 = vector.shape_cast %131 : vector<1x48x128xbf16> to vector<48x128xbf16>
    %c14 = arith.constant 14 : index
    %c0_84 = arith.constant 0 : index
    %c0_85 = arith.constant 0 : index
    %133 = vector.load %arg6[%c14, %c0_84, %c0_85] : memref<16x128x128xbf16, #tpu.memory_space<vmem>>, vector<1x128x128xbf16>
    %134 = vector.shape_cast %133 : vector<1x128x128xbf16> to vector<128x128xbf16>
    %cst_86 = arith.constant dense<0.000000e+00> : vector<48x128xf32>
    %135 = tpu.matmul %132, %134, %cst_86 {dimension_numbers = #tpu.dot_dimension_numbers<[1], [0], [0], [1], [0, 0, 1, 1], [], []>} : vector<48x128xbf16>, vector<128x128xbf16>, vector<48x128xf32> -> vector<48x128xf32>
    %136 = arith.addf %127, %135 : vector<48x128xf32>
    %c48_i32_87 = arith.constant 48 : i32
    %137 = arith.addi %0, %c48_i32_87 : i32
    %138 = tpu.assume_multiple %137, 16 : i32
    %c0_88 = arith.constant 0 : index
    %139 = arith.index_cast %138 : i32 to index
    %c0_89 = arith.constant 0 : index
    %140 = vector.load %arg5[%c0_88, %139, %c0_89] : memref<1x96x128xbf16, #tpu.memory_space<vmem>>, vector<1x48x128xbf16>
    %141 = vector.shape_cast %140 : vector<1x48x128xbf16> to vector<48x128xbf16>
    %c15 = arith.constant 15 : index
    %c0_90 = arith.constant 0 : index
    %c0_91 = arith.constant 0 : index
    %142 = vector.load %arg6[%c15, %c0_90, %c0_91] : memref<16x128x128xbf16, #tpu.memory_space<vmem>>, vector<1x128x128xbf16>
    %143 = vector.shape_cast %142 : vector<1x128x128xbf16> to vector<128x128xbf16>
    %cst_92 = arith.constant dense<0.000000e+00> : vector<48x128xf32>
    %144 = tpu.matmul %141, %143, %cst_92 {dimension_numbers = #tpu.dot_dimension_numbers<[1], [0], [0], [1], [0, 0, 1, 1], [], []>} : vector<48x128xbf16>, vector<128x128xbf16>, vector<48x128xf32> -> vector<48x128xf32>
    %145 = arith.addf %136, %144 : vector<48x128xf32>
    %c0_93 = arith.constant 0 : index
    %c0_94 = arith.constant 0 : index
    %146 = vector.load %arg7[%c0_93, %c0_94] : memref<1x128xf32, #tpu.memory_space<vmem>>, vector<1x128xf32>
    %147 = vector.broadcast %146 : vector<1x128xf32> to vector<48x128xf32>
    %148 = arith.addf %145, %147 : vector<48x128xf32>
    %c0_95 = arith.constant 0 : index
    %c0_96 = arith.constant 0 : index
    %c0_97 = arith.constant 0 : index
    %149 = vector.load %arg8[%c0_95, %c0_96, %c0_97] : memref<1x48x128xf32, #tpu.memory_space<vmem>>, vector<1x48x128xf32>
    %150 = vector.shape_cast %149 : vector<1x48x128xf32> to vector<48x128xf32>
    %151 = vector.shape_cast %148 : vector<48x128xf32> to vector<1x48x128xf32>
    tpu.vector_store %arg8[%c0_95, %c0_96, %c0_97], %151 {strides = array<i32>} : memref<1x48x128xf32, #tpu.memory_space<vmem>>, vector<1x48x128xf32>,
    return
  }
  func.func @transform_0(%arg0: i32, %arg1: i32) -> (i32, i32, i32) {
    %c0_i32 = arith.constant 0 : i32
    %c0_i32_0 = arith.constant 0 : i32
    %c0_i32_1 = arith.constant 0 : i32
    return %arg0, %c0_i32, %c0_i32_0 : i32, i32, i32
  }
  func.func @transform_1(%arg0: i32, %arg1: i32) -> (i32, i32, i32) {
    %c0_i32 = arith.constant 0 : i32
    %c0_i32_0 = arith.constant 0 : i32
    %c0_i32_1 = arith.constant 0 : i32
    return %arg0, %c0_i32, %c0_i32_0 : i32, i32, i32
  }
  func.func @transform_2(%arg0: i32, %arg1: i32) -> (i32, i32, i32) {
    %c0_i32 = arith.constant 0 : i32
    %c0_i32_0 = arith.constant 0 : i32
    %c0_i32_1 = arith.constant 0 : i32
    return %arg0, %c0_i32, %c0_i32_0 : i32, i32, i32
  }
  func.func @transform_3(%arg0: i32, %arg1: i32) -> (i32, i32, i32) {
    %c0_i32 = arith.constant 0 : i32
    %c0_i32_0 = arith.constant 0 : i32
    %c0_i32_1 = arith.constant 0 : i32
    return %arg0, %c0_i32, %c0_i32_0 : i32, i32, i32
  }
  func.func @transform_4(%arg0: i32, %arg1: i32) -> (i32, i32, i32) {
    %c0_i32 = arith.constant 0 : i32
    %c0_i32_0 = arith.constant 0 : i32
    %c0_i32_1 = arith.constant 0 : i32
    %c0_i32_2 = arith.constant 0 : i32
    return %c0_i32, %c0_i32_0, %c0_i32_1 : i32, i32, i32
  }
  func.func @transform_5(%arg0: i32, %arg1: i32) -> (i32, i32) {
    %c0_i32 = arith.constant 0 : i32
    %c0_i32_0 = arith.constant 0 : i32
    %c0_i32_1 = arith.constant 0 : i32
    return %c0_i32, %c0_i32_0 : i32, i32
  }
  func.func @transform_6(%arg0: i32, %arg1: i32) -> (i32, i32, i32) {
    %c0_i32 = arith.constant 0 : i32
    %c0_i32_0 = arith.constant 0 : i32
    return %arg0, %arg1, %c0_i32 : i32, i32, i32
  }
}

module attributes {stable_mosaic.version = 11 : i64} {
  func.func @_conv_taps_kernel(%arg0: i32, %arg1: i32, %arg2: memref<1x80x256xbf16, #tpu.memory_space<vmem>>, %arg3: memref<1x80x256xbf16, #tpu.memory_space<vmem>>, %arg4: memref<1x80x256xbf16, #tpu.memory_space<vmem>>, %arg5: memref<1x80x256xbf16, #tpu.memory_space<vmem>>, %arg6: memref<8x256x128xbf16, #tpu.memory_space<vmem>>, %arg7: memref<1x128xf32, #tpu.memory_space<vmem>>, %arg8: memref<1x64x128xbf16, #tpu.memory_space<vmem>>) attributes {dimension_semantics = [#tpu.dimension_semantics<parallel>, #tpu.dimension_semantics<parallel>], iteration_bounds = array<i64: 2, 1>, scalar_prefetch = 0 : i64, scratch_operands = 0 : i64, tpu.core_type = #tpu.core_type<tc>, window_params = [{transform_indices = @transform_0, window_bounds = array<i64: 1, 80, 256>}, {transform_indices = @transform_1, window_bounds = array<i64: 1, 80, 256>}, {transform_indices = @transform_2, window_bounds = array<i64: 1, 80, 256>}, {transform_indices = @transform_3, window_bounds = array<i64: 1, 80, 256>}, {pipeline_mode = #tpu.pipeline_mode<synchronous>, transform_indices = @transform_4, window_bounds = array<i64: 8, 256, 128>}, {pipeline_mode = #tpu.pipeline_mode<synchronous>, transform_indices = @transform_5, window_bounds = array<i64: 1, 128>}, {transform_indices = @transform_6, window_bounds = array<i64: 1, 64, 128>}]} {
    %c64_i32 = arith.constant 64 : i32
    %0 = arith.muli %arg1, %c64_i32 : i32
    %cst = arith.constant 0.000000e+00 : f32
    %1 = vector.broadcast %cst : f32 to vector<64x128xf32>
    %c0_i32 = arith.constant 0 : i32
    %2 = arith.addi %0, %c0_i32 : i32
    %3 = tpu.assume_multiple %2, 16 : i32
    %c0 = arith.constant 0 : index
    %4 = arith.index_cast %3 : i32 to index
    %c0_0 = arith.constant 0 : index
    %5 = vector.load %arg2[%c0, %4, %c0_0] : memref<1x80x256xbf16, #tpu.memory_space<vmem>>, vector<1x64x256xbf16>
    %6 = vector.shape_cast %5 : vector<1x64x256xbf16> to vector<64x256xbf16>
    %c0_1 = arith.constant 0 : index
    %c0_2 = arith.constant 0 : index
    %c0_3 = arith.constant 0 : index
    %7 = vector.load %arg6[%c0_1, %c0_2, %c0_3] : memref<8x256x128xbf16, #tpu.memory_space<vmem>>, vector<1x256x128xbf16>
    %8 = vector.shape_cast %7 : vector<1x256x128xbf16> to vector<256x128xbf16>
    %cst_4 = arith.constant dense<0.000000e+00> : vector<64x128xf32>
    %9 = tpu.matmul %6, %8, %cst_4 {dimension_numbers = #tpu.dot_dimension_numbers<[1], [0], [0], [1], [0, 0, 1, 1], [], []>} : vector<64x256xbf16>, vector<256x128xbf16>, vector<64x128xf32> -> vector<64x128xf32>
    %10 = arith.addf %1, %9 : vector<64x128xf32>
    %c0_i32_5 = arith.constant 0 : i32
    %11 = arith.addi %0, %c0_i32_5 : i32
    %12 = tpu.assume_multiple %11, 16 : i32
    %c0_6 = arith.constant 0 : index
    %13 = arith.index_cast %12 : i32 to index
    %c0_7 = arith.constant 0 : index
    %14 = vector.load %arg3[%c0_6, %13, %c0_7] : memref<1x80x256xbf16, #tpu.memory_space<vmem>>, vector<1x64x256xbf16>
    %15 = vector.shape_cast %14 : vector<1x64x256xbf16> to vector<64x256xbf16>
    %c1 = arith.constant 1 : index
    %c0_8 = arith.constant 0 : index
    %c0_9 = arith.constant 0 : index
    %16 = vector.load %arg6[%c1, %c0_8, %c0_9] : memref<8x256x128xbf16, #tpu.memory_space<vmem>>, vector<1x256x128xbf16>
    %17 = vector.shape_cast %16 : vector<1x256x128xbf16> to vector<256x128xbf16>
    %cst_10 = arith.constant dense<0.000000e+00> : vector<64x128xf32>
    %18 = tpu.matmul %15, %17, %cst_10 {dimension_numbers = #tpu.dot_dimension_numbers<[1], [0], [0], [1], [0, 0, 1, 1], [], []>} : vector<64x256xbf16>, vector<256x128xbf16>, vector<64x128xf32> -> vector<64x128xf32>
    %19 = arith.addf %10, %18 : vector<64x128xf32>
    %c0_i32_11 = arith.constant 0 : i32
    %20 = arith.addi %0, %c0_i32_11 : i32
    %21 = tpu.assume_multiple %20, 16 : i32
    %c0_12 = arith.constant 0 : index
    %22 = arith.index_cast %21 : i32 to index
    %c0_13 = arith.constant 0 : index
    %23 = vector.load %arg4[%c0_12, %22, %c0_13] : memref<1x80x256xbf16, #tpu.memory_space<vmem>>, vector<1x64x256xbf16>
    %24 = vector.shape_cast %23 : vector<1x64x256xbf16> to vector<64x256xbf16>
    %c2 = arith.constant 2 : index
    %c0_14 = arith.constant 0 : index
    %c0_15 = arith.constant 0 : index
    %25 = vector.load %arg6[%c2, %c0_14, %c0_15] : memref<8x256x128xbf16, #tpu.memory_space<vmem>>, vector<1x256x128xbf16>
    %26 = vector.shape_cast %25 : vector<1x256x128xbf16> to vector<256x128xbf16>
    %cst_16 = arith.constant dense<0.000000e+00> : vector<64x128xf32>
    %27 = tpu.matmul %24, %26, %cst_16 {dimension_numbers = #tpu.dot_dimension_numbers<[1], [0], [0], [1], [0, 0, 1, 1], [], []>} : vector<64x256xbf16>, vector<256x128xbf16>, vector<64x128xf32> -> vector<64x128xf32>
    %28 = arith.addf %19, %27 : vector<64x128xf32>
    %c0_i32_17 = arith.constant 0 : i32
    %29 = arith.addi %0, %c0_i32_17 : i32
    %30 = tpu.assume_multiple %29, 16 : i32
    %c0_18 = arith.constant 0 : index
    %31 = arith.index_cast %30 : i32 to index
    %c0_19 = arith.constant 0 : index
    %32 = vector.load %arg5[%c0_18, %31, %c0_19] : memref<1x80x256xbf16, #tpu.memory_space<vmem>>, vector<1x64x256xbf16>
    %33 = vector.shape_cast %32 : vector<1x64x256xbf16> to vector<64x256xbf16>
    %c3 = arith.constant 3 : index
    %c0_20 = arith.constant 0 : index
    %c0_21 = arith.constant 0 : index
    %34 = vector.load %arg6[%c3, %c0_20, %c0_21] : memref<8x256x128xbf16, #tpu.memory_space<vmem>>, vector<1x256x128xbf16>
    %35 = vector.shape_cast %34 : vector<1x256x128xbf16> to vector<256x128xbf16>
    %cst_22 = arith.constant dense<0.000000e+00> : vector<64x128xf32>
    %36 = tpu.matmul %33, %35, %cst_22 {dimension_numbers = #tpu.dot_dimension_numbers<[1], [0], [0], [1], [0, 0, 1, 1], [], []>} : vector<64x256xbf16>, vector<256x128xbf16>, vector<64x128xf32> -> vector<64x128xf32>
    %37 = arith.addf %28, %36 : vector<64x128xf32>
    %c16_i32 = arith.constant 16 : i32
    %38 = arith.addi %0, %c16_i32 : i32
    %39 = tpu.assume_multiple %38, 16 : i32
    %c0_23 = arith.constant 0 : index
    %40 = arith.index_cast %39 : i32 to index
    %c0_24 = arith.constant 0 : index
    %41 = vector.load %arg2[%c0_23, %40, %c0_24] : memref<1x80x256xbf16, #tpu.memory_space<vmem>>, vector<1x64x256xbf16>
    %42 = vector.shape_cast %41 : vector<1x64x256xbf16> to vector<64x256xbf16>
    %c4 = arith.constant 4 : index
    %c0_25 = arith.constant 0 : index
    %c0_26 = arith.constant 0 : index
    %43 = vector.load %arg6[%c4, %c0_25, %c0_26] : memref<8x256x128xbf16, #tpu.memory_space<vmem>>, vector<1x256x128xbf16>
    %44 = vector.shape_cast %43 : vector<1x256x128xbf16> to vector<256x128xbf16>
    %cst_27 = arith.constant dense<0.000000e+00> : vector<64x128xf32>
    %45 = tpu.matmul %42, %44, %cst_27 {dimension_numbers = #tpu.dot_dimension_numbers<[1], [0], [0], [1], [0, 0, 1, 1], [], []>} : vector<64x256xbf16>, vector<256x128xbf16>, vector<64x128xf32> -> vector<64x128xf32>
    %46 = arith.addf %37, %45 : vector<64x128xf32>
    %c16_i32_28 = arith.constant 16 : i32
    %47 = arith.addi %0, %c16_i32_28 : i32
    %48 = tpu.assume_multiple %47, 16 : i32
    %c0_29 = arith.constant 0 : index
    %49 = arith.index_cast %48 : i32 to index
    %c0_30 = arith.constant 0 : index
    %50 = vector.load %arg3[%c0_29, %49, %c0_30] : memref<1x80x256xbf16, #tpu.memory_space<vmem>>, vector<1x64x256xbf16>
    %51 = vector.shape_cast %50 : vector<1x64x256xbf16> to vector<64x256xbf16>
    %c5 = arith.constant 5 : index
    %c0_31 = arith.constant 0 : index
    %c0_32 = arith.constant 0 : index
    %52 = vector.load %arg6[%c5, %c0_31, %c0_32] : memref<8x256x128xbf16, #tpu.memory_space<vmem>>, vector<1x256x128xbf16>
    %53 = vector.shape_cast %52 : vector<1x256x128xbf16> to vector<256x128xbf16>
    %cst_33 = arith.constant dense<0.000000e+00> : vector<64x128xf32>
    %54 = tpu.matmul %51, %53, %cst_33 {dimension_numbers = #tpu.dot_dimension_numbers<[1], [0], [0], [1], [0, 0, 1, 1], [], []>} : vector<64x256xbf16>, vector<256x128xbf16>, vector<64x128xf32> -> vector<64x128xf32>
    %55 = arith.addf %46, %54 : vector<64x128xf32>
    %c16_i32_34 = arith.constant 16 : i32
    %56 = arith.addi %0, %c16_i32_34 : i32
    %57 = tpu.assume_multiple %56, 16 : i32
    %c0_35 = arith.constant 0 : index
    %58 = arith.index_cast %57 : i32 to index
    %c0_36 = arith.constant 0 : index
    %59 = vector.load %arg4[%c0_35, %58, %c0_36] : memref<1x80x256xbf16, #tpu.memory_space<vmem>>, vector<1x64x256xbf16>
    %60 = vector.shape_cast %59 : vector<1x64x256xbf16> to vector<64x256xbf16>
    %c6 = arith.constant 6 : index
    %c0_37 = arith.constant 0 : index
    %c0_38 = arith.constant 0 : index
    %61 = vector.load %arg6[%c6, %c0_37, %c0_38] : memref<8x256x128xbf16, #tpu.memory_space<vmem>>, vector<1x256x128xbf16>
    %62 = vector.shape_cast %61 : vector<1x256x128xbf16> to vector<256x128xbf16>
    %cst_39 = arith.constant dense<0.000000e+00> : vector<64x128xf32>
    %63 = tpu.matmul %60, %62, %cst_39 {dimension_numbers = #tpu.dot_dimension_numbers<[1], [0], [0], [1], [0, 0, 1, 1], [], []>} : vector<64x256xbf16>, vector<256x128xbf16>, vector<64x128xf32> -> vector<64x128xf32>
    %64 = arith.addf %55, %63 : vector<64x128xf32>
    %c16_i32_40 = arith.constant 16 : i32
    %65 = arith.addi %0, %c16_i32_40 : i32
    %66 = tpu.assume_multiple %65, 16 : i32
    %c0_41 = arith.constant 0 : index
    %67 = arith.index_cast %66 : i32 to index
    %c0_42 = arith.constant 0 : index
    %68 = vector.load %arg5[%c0_41, %67, %c0_42] : memref<1x80x256xbf16, #tpu.memory_space<vmem>>, vector<1x64x256xbf16>
    %69 = vector.shape_cast %68 : vector<1x64x256xbf16> to vector<64x256xbf16>
    %c7 = arith.constant 7 : index
    %c0_43 = arith.constant 0 : index
    %c0_44 = arith.constant 0 : index
    %70 = vector.load %arg6[%c7, %c0_43, %c0_44] : memref<8x256x128xbf16, #tpu.memory_space<vmem>>, vector<1x256x128xbf16>
    %71 = vector.shape_cast %70 : vector<1x256x128xbf16> to vector<256x128xbf16>
    %cst_45 = arith.constant dense<0.000000e+00> : vector<64x128xf32>
    %72 = tpu.matmul %69, %71, %cst_45 {dimension_numbers = #tpu.dot_dimension_numbers<[1], [0], [0], [1], [0, 0, 1, 1], [], []>} : vector<64x256xbf16>, vector<256x128xbf16>, vector<64x128xf32> -> vector<64x128xf32>
    %73 = arith.addf %64, %72 : vector<64x128xf32>
    %c0_46 = arith.constant 0 : index
    %c0_47 = arith.constant 0 : index
    %74 = vector.load %arg7[%c0_46, %c0_47] : memref<1x128xf32, #tpu.memory_space<vmem>>, vector<1x128xf32>
    %75 = vector.broadcast %74 : vector<1x128xf32> to vector<64x128xf32>
    %76 = arith.addf %73, %75 : vector<64x128xf32>
    %cst_48 = arith.constant 0.000000e+00 : f32
    %77 = vector.broadcast %cst_48 : f32 to vector<64x128xf32>
    %78 = arith.cmpf ogt, %76, %77 : vector<64x128xf32>
    %cst_49 = arith.constant 2.000000e-01 : f32
    %79 = vector.broadcast %cst_49 : f32 to vector<64x128xf32>
    %80 = arith.mulf %79, %76 : vector<64x128xf32>
    %81 = arith.select %78, %76, %80 : vector<64x128xi1>, vector<64x128xf32>
    %82 = arith.truncf %81 : vector<64x128xf32> to vector<64x128xbf16>
    %c0_50 = arith.constant 0 : index
    %c0_51 = arith.constant 0 : index
    %c0_52 = arith.constant 0 : index
    %83 = vector.load %arg8[%c0_50, %c0_51, %c0_52] : memref<1x64x128xbf16, #tpu.memory_space<vmem>>, vector<1x64x128xbf16>
    %84 = vector.shape_cast %83 : vector<1x64x128xbf16> to vector<64x128xbf16>
    %85 = vector.shape_cast %82 : vector<64x128xbf16> to vector<1x64x128xbf16>
    tpu.vector_store %arg8[%c0_50, %c0_51, %c0_52], %85 {strides = array<i32>} : memref<1x64x128xbf16, #tpu.memory_space<vmem>>, vector<1x64x128xbf16>,
    return
  }
  func.func @transform_0(%arg0: i32, %arg1: i32) -> (i32, i32, i32) {
    %c0_i32 = arith.constant 0 : i32
    %c0_i32_0 = arith.constant 0 : i32
    %c0_i32_1 = arith.constant 0 : i32
    return %arg0, %c0_i32, %c0_i32_0 : i32, i32, i32
  }
  func.func @transform_1(%arg0: i32, %arg1: i32) -> (i32, i32, i32) {
    %c0_i32 = arith.constant 0 : i32
    %c0_i32_0 = arith.constant 0 : i32
    %c0_i32_1 = arith.constant 0 : i32
    return %arg0, %c0_i32, %c0_i32_0 : i32, i32, i32
  }
  func.func @transform_2(%arg0: i32, %arg1: i32) -> (i32, i32, i32) {
    %c0_i32 = arith.constant 0 : i32
    %c0_i32_0 = arith.constant 0 : i32
    %c0_i32_1 = arith.constant 0 : i32
    return %arg0, %c0_i32, %c0_i32_0 : i32, i32, i32
  }
  func.func @transform_3(%arg0: i32, %arg1: i32) -> (i32, i32, i32) {
    %c0_i32 = arith.constant 0 : i32
    %c0_i32_0 = arith.constant 0 : i32
    %c0_i32_1 = arith.constant 0 : i32
    return %arg0, %c0_i32, %c0_i32_0 : i32, i32, i32
  }
  func.func @transform_4(%arg0: i32, %arg1: i32) -> (i32, i32, i32) {
    %c0_i32 = arith.constant 0 : i32
    %c0_i32_0 = arith.constant 0 : i32
    %c0_i32_1 = arith.constant 0 : i32
    %c0_i32_2 = arith.constant 0 : i32
    return %c0_i32, %c0_i32_0, %c0_i32_1 : i32, i32, i32
  }
  func.func @transform_5(%arg0: i32, %arg1: i32) -> (i32, i32) {
    %c0_i32 = arith.constant 0 : i32
    %c0_i32_0 = arith.constant 0 : i32
    %c0_i32_1 = arith.constant 0 : i32
    return %c0_i32, %c0_i32_0 : i32, i32
  }
  func.func @transform_6(%arg0: i32, %arg1: i32) -> (i32, i32, i32) {
    %c0_i32 = arith.constant 0 : i32
    %c0_i32_0 = arith.constant 0 : i32
    return %arg0, %arg1, %c0_i32 : i32, i32, i32
  }
}

</mosaic_0001>

<bundles_post_ra>
// kernel: discriminator_forward.5
= control target key start
LH: loop header
LB: loop body
LE: loop exit
PB: predicated region body
PF: predicated region fallthrough
CT: control target
= control target key end

     0   :  { %s8409_s21 = smov 0   ;;  %s8411_s22 = smov 0   ;;  %s9787_s0 = inlined_call_operand.vmem [shape: bf16[2,1056,6], index: 0, kind: input, shape index: {}]   ;;  %s9788_s1 = inlined_call_operand.vmem [shape: bf16[2,1056,6], index: 1, kind: input, shape index: {}]   ;;  %s9789_s2 = inlined_call_operand.vmem [shape: bf16[2,1056,6], index: 2, kind: input, shape index: {}]   ;;  %s9790_s3 = inlined_call_operand.vmem [shape: bf16[2,1056,6], index: 3, kind: input, shape index: {}]   ;;  %s9791_s4 = inlined_call_operand.vmem [shape: bf16[8,6,128], index: 4, kind: input, shape index: {}]   ;;  %s9792_s5 = inlined_call_operand.vmem [shape: f32[1,128], index: 5, kind: input, shape index: {}]   ;;  %s9793_s6 = inlined_call_operand.vmem [shape: bf16[2,1024,128], index: 6, kind: output, shape index: {}]  }
   0x1   :  { %s8413_s23 = smov 0   ;;  %s8415_s24 = smov 0  }
   0x2   :  { %s8417_s25 = smov 0  }
   0x3 LB: > { %s25_s26 = sadd.s32 1, %s8364_s23  ;;  %s28_s27 = sadd.s32 1, %s8368_s24  ;;  %s8372_s25 = sphi %s8417_s25, %s16_s25   ;;  %s8368_s24 = sphi %s8415_s24, %s9893_s24   ;;  %s8364_s23 = sphi %s8413_s23, %s9892_s23   ;;  %s8360_s22 = sphi %s8411_s22, %s9891_s22   ;;  %s8356_s21 = sphi %s8409_s21, %s9890_s21  }
   0x4   : > { %p26_p0 = scmp.ge.s32.totalorder %s25_s26, 2  ;;  %p6378_p1 = scmp.ge.s32.totalorder %s8372_s25, 1 }
   0x5   : > { %p256_p2 = scmp.lt.s32.totalorder %s8372_s25, 5 }
   0x6   : > { %s9895_s26 = smov (%p26_p0, %s25_s26), 0  ;;  %s9897_s27 = smov (!%p26_p0, %s28_s27), %s8368_s24 }
   0x7   : > { %p257_p3 = pnand %p6378_p1, %p256_p2  ;;  %p30_p4 = scmp.ge.s32.totalorder %s9897_s27, 2 }
   0x9   : > { %s9899_s27 = smov (%p30_p4, %s9897_s27), 0  ;;  %260 = sbr.rel (%p257_p3) target bundleno = 738 (0x2e2), region = 44 }
   0xe   : > { %v6389_v0 = vld [vmem:[%s9791_s4 + $0x4] sm:$0x7]  ;;  %vm731_vm0 = vcmask 1042432   ;;  %v405_v1 = vld [vmem:[%s9791_s4] sm:$0x7]  ;;  %p305_p5 = scmp.lt.s32.totalorder %s8360_s22, 1 }
   0xf   : > { %8028 = vmatprep.subr.msk.bf16.mxu0 %vm731_vm0, %v6389_v0  ;;  %v733_v2 = vsel %vm731_vm0, %v6389_v0, 0  ;;  %8029 = vmatprep.subr.msk.bf16.mxu1 %vm731_vm0, %v405_v1  ;;  %v1281_v3 = vsel %vm731_vm0, %v405_v1, 0  ;;  %s6386_s8 = sshll.u32 %s8356_s21, 9  ;;  %v6519_v4 = vld [vmem:[%s9791_s4 + $0x8] sm:$0x7]  ;;  %vm634_vm1 = vcmask 48128  }
  0x10   : > { %7501 = vmatpush3.bf16.msra.mxu0 %v733_v2  ;;  %7567 = vmatpush3.bf16.msra.mxu1 %v1281_v3  ;;  %s9901_s22 = smov (!%p305_p5, %s8360_s22), 1  ;;  %v6585_v5 = vld [vmem:[%s9791_s4 + $0xc] sm:$0x7]  ;;  %s337_s13 = sshra.s32 %s6386_s8, 3  ;;  %v8489_v7 = vld [vmem:[%s9791_s4 + $0x10] sm:$0x7] }
  0x11   : > { %8030 = vmatprep.subr.msk.bf16.mxu0 %vm731_vm0, %v6519_v4  ;;  %8031 = vmatprep.subr.msk.bf16.mxu1 %vm731_vm0, %v6585_v5  ;;  %s8465_s14 = smul.u32 528, %s9901_s22  ;;  %s8467_s15 = sshll.u32 %s337_s13, 2  ;;  %v1897_v9 = vsel %vm731_vm0, %v6519_v4, 0  ;;  %v2577_v12 = vsel %vm731_vm0, %v6585_v5, 0  ;;  %v8595_v47 = vld [vmem:[%s9791_s4 + $0x14] sm:$0x7] }
  0x13   : > { %s8473_s18 = scalar_lea.vmem %s9788_s1, %s8465_s14  ;;  %s8484_s29 = scalar_lea.vmem %s9787_s0, %s8465_s14 }
  0x14   : > { %s8477_s19 = scalar_lea.vmem %s8473_s18, %s8467_s15  ;;  %s8493_s9 = scalar_lea.vmem %s8484_s29, %s8467_s15 }
  0x15   : > { %v8077_v6 = vld [vmem:[%s8477_s19] sm:$0xff]   ;;  %v8079_v8 = vld [vmem:[%s8477_s19 + $0x8] sm:$0xff]   ;;  %v8081_v13 = vld [vmem:[%s8477_s19 + $0x10] sm:$0xff]   ;;  %s8568_s12 = scalar_lea.vmem %s9789_s2, %s8465_s14  ;;  %s8575_s17 = scalar_lea.vmem %s9790_s3, %s8465_s14 }
  0x16   : > { %7502 = vmatprep.mubr.msk.bf16.mxu0 %vm634_vm1, %v8077_v6  ;;  %v8078_v10 = vld [vmem:[%s8493_s9] sm:$0xff]   ;;  %v8080_v11 = vld [vmem:[%s8493_s9 + $0x8] sm:$0xff]   ;;  %v8082_v14 = vld [vmem:[%s8493_s9 + $0x10] sm:$0xff]   ;;  %s8581_s20 = scalar_lea.vmem %s8568_s12, %s8467_s15  ;;  %s8586_s28 = scalar_lea.vmem %s8575_s17, %s8467_s15 }
  0x17   : > { %7503 = vmatmul.mubr.msk.bf16.vlgmr.msra.gmra.mxu0 %vm634_vm1, %v8079_v8  ;;  %7568 = vmatprep.mubr.msk.bf16.mxu1 %vm634_vm1, %v8078_v10  ;;  %v8083_v15 = vld [vmem:[%s8477_s19 + $0x18] sm:$0xff]   ;;  %v8085_v16 = vld [vmem:[%s8477_s19 + $0x20] sm:$0xff]   ;;  %v8087_v19 = vld [vmem:[%s8477_s19 + $0x28] sm:$0xff]   ;;  %s2932_s15 = sadd.s32 32, %s6386_s8 }
  0x18   : > { %7633 = vmatpush3.bf16.msra.mxu0 %v1897_v9  ;;  %7569 = vmatmul.mubr.msk.bf16.vlgmr.msra.gmra.mxu1 %vm634_vm1, %v8080_v11  ;;  %v8084_v17 = vld [vmem:[%s8493_s9 + $0x18] sm:$0xff]   ;;  %v8086_v18 = vld [vmem:[%s8493_s9 + $0x20] sm:$0xff]   ;;  %v8089_v20 = vld [vmem:[%s8477_s19 + $0x30] sm:$0xff]   ;;  %s2933_s7 = sshra.s32 %s2932_s15, 3 }
  0x19   : > { %8032 = vmatprep.subr.msk.bf16.mxu0 %vm731_vm0, %v8489_v7  ;;  %7699 = vmatpush3.bf16.msra.mxu1 %v2577_v12  ;;  %v8088_v21 = vld [vmem:[%s8493_s9 + $0x28] sm:$0xff]   ;;  %v8090_v22 = vld [vmem:[%s8493_s9 + $0x30] sm:$0xff]   ;;  %v8091_v23 = vld [vmem:[%s8477_s19 + $0x38] sm:$0xff]   ;;  %s8656_s10 = sshll.u32 %s2933_s7, 2 }
  0x1a   : > { %7506 = vmatprep.mubr.msk.bf16.mxu0 %vm634_vm1, %v8081_v13  ;;  %7572 = vmatprep.mubr.msk.bf16.mxu1 %vm634_vm1, %v8082_v14  ;;  %v8093_v24 = vld [vmem:[%s8477_s19 + $0x40] sm:$0xff]   ;;  %v8092_v25 = vld [vmem:[%s8493_s9 + $0x38] sm:$0xff]   ;;  %v8095_v27 = vld [vmem:[%s8477_s19 + $0x48] sm:$0xff]   ;;  %s8664_s8 = scalar_lea.vmem %s8484_s29, %s8656_s10  ;;  %s8882_s13 = scalar_lea.vmem %s8568_s12, %s8656_s10 }
  0x1b   : > { %v8094_v26 = vld [vmem:[%s8493_s9 + $0x40] sm:$0xff]   ;;  %v8097_v28 = vld [vmem:[%s8477_s19 + $0x50] sm:$0xff]   ;;  %v8096_v29 = vld [vmem:[%s8493_s9 + $0x48] sm:$0xff]   ;;  %8033 = vmatprep.subr.msk.bf16.mxu1 %vm731_vm0, %v8595_v47  ;;  %s8889_s16 = scalar_lea.vmem %s8575_s17, %s8656_s10  ;;  %s6383_s12 = sshll.u32 %s8356_s21, 6 }
  0x1c   : > { %v8098_v30 = vld [vmem:[%s8493_s9 + $0x50] sm:$0xff]   ;;  %v8099_v31 = vld [vmem:[%s8477_s19 + $0x58] sm:$0xff]   ;;  %v8101_v32 = vld [vmem:[%s8477_s19 + $0x60] sm:$0xff]   ;;  %p328_p6 = scmp.lt.s32.totalorder %s6383_s12, 127 }
  0x1d   : > { %v8100_v33 = vld [vmem:[%s8493_s9 + $0x58] sm:$0xff]   ;;  %v8102_v34 = vld [vmem:[%s8493_s9 + $0x60] sm:$0xff]   ;;  %v8103_v35 = vld [vmem:[%s8477_s19 + $0x68] sm:$0xff]  }
  0x1e   : > { %v8105_v36 = vld [vmem:[%s8477_s19 + $0x70] sm:$0xff]   ;;  %v8104_v37 = vld [vmem:[%s8493_s9 + $0x68] sm:$0xff]   ;;  %v8107_v39 = vld [vmem:[%s8477_s19 + $0x78] sm:$0xff]   ;;  %s9903_s12 = smov (!%p328_p6, %s6383_s12), 127 }
  0x1f   : > { %7507 = vmatmul.mubr.msk.bf16.gmra.mxu0 %vm634_vm1, %v8083_v15  ;;  %v8106_v38 = vld [vmem:[%s8493_s9 + $0x70] sm:$0xff]   ;;  %v8109_v40 = vld [vmem:[%s8477_s19 + $0x80] sm:$0xff]   ;;  %v8108_v41 = vld [vmem:[%s8493_s9 + $0x78] sm:$0xff]   ;;  %v3260_v15 = vsel %vm731_vm0, %v8489_v7, 0 }
  0x20   : > { %7510 = vmatprep.mubr.msk.bf16.mxu0 %vm634_vm1, %v8085_v16  ;;  %7573 = vmatmul.mubr.msk.bf16.gmra.mxu1 %vm634_vm1, %v8084_v17  ;;  %v8110_v42 = vld [vmem:[%s8493_s9 + $0x80] sm:$0xff]   ;;  %v8111_v43 = vld [vmem:[%s8477_s19 + $0x88] sm:$0xff]   ;;  %v8113_v44 = vld [vmem:[%s8477_s19 + $0x90] sm:$0xff]  }
  0x21   : > { %7576 = vmatprep.mubr.msk.bf16.mxu1 %vm634_vm1, %v8086_v18  ;;  %v8112_v45 = vld [vmem:[%s8493_s9 + $0x88] sm:$0xff]   ;;  %v8114_v46 = vld [vmem:[%s8493_s9 + $0x90] sm:$0xff]   ;;  %v8115_v48 = vld [vmem:[%s8477_s19 + $0x98] sm:$0xff]   ;;  %v3940_v18 = vsel %vm731_vm0, %v8595_v47, 0 }
  0x22   : > { %v8117_v49 = vld [vmem:[%s8477_s19 + $0xa0] sm:$0xff]   ;;  %v8116_v50 = vld [vmem:[%s8493_s9 + $0x98] sm:$0xff]   ;;  %v8119_v52 = vld [vmem:[%s8477_s19 + $0xa8] sm:$0xff]  }
  0x23   : > { %v8118_v51 = vld [vmem:[%s8493_s9 + $0xa0] sm:$0xff]   ;;  %v8121_v53 = vld [vmem:[%s8477_s19 + $0xb0] sm:$0xff]   ;;  %v8120_v54 = vld [vmem:[%s8493_s9 + $0xa8] sm:$0xff]  }
  0x24   : > { %v8122_v55 = vld [vmem:[%s8493_s9 + $0xb0] sm:$0xff]   ;;  %v8123_v56 = vld [vmem:[%s8477_s19 + $0xb8] sm:$0xff]   ;;  %v8125_v57 = vld [vmem:[%s8477_s19 + $0xc0] sm:$0xff]  }
  0x25   : > { %v8124_v58 = vld [vmem:[%s8493_s9 + $0xb8] sm:$0xff]   ;;  %v8126_v59 = vld [vmem:[%s8493_s9 + $0xc0] sm:$0xff]   ;;  %v8127_v60 = vld [vmem:[%s8477_s19 + $0xc8] sm:$0xff]  }
  0x26   : > { %v8129_v61 = vld [vmem:[%s8477_s19 + $0xd0] sm:$0xff]   ;;  %v8128_v62 = vld [vmem:[%s8493_s9 + $0xc8] sm:$0xff]   ;;  %v8131_v0 = vld [vmem:[%s8477_s19 + $0xd8] sm:$0xff]  }
  0x27   : > { %7511 = vmatmul.mubr.msk.bf16.gmra.mxu0 %vm634_vm1, %v8087_v19  ;;  %v8130_v63 = vld [vmem:[%s8493_s9 + $0xd0] sm:$0xff]   ;;  %v8133_v1 = vld [vmem:[%s8477_s19 + $0xe0] sm:$0xff]   ;;  %v8132_v2 = vld [vmem:[%s8493_s9 + $0xd8] sm:$0xff]  }
  0x28   : > { %7514 = vmatprep.mubr.msk.bf16.mxu0 %vm634_vm1, %v8089_v20  ;;  %7577 = vmatmul.mubr.msk.bf16.gmra.mxu1 %vm634_vm1, %v8088_v21  ;;  %v8134_v3 = vld [vmem:[%s8493_s9 + $0xe0] sm:$0xff]   ;;  %v8135_v4 = vld [vmem:[%s8477_s19 + $0xe8] sm:$0xff]   ;;  %v8137_v5 = vld [vmem:[%s8477_s19 + $0xf0] sm:$0xff]  }
  0x29   : > { %7580 = vmatprep.mubr.msk.bf16.mxu1 %vm634_vm1, %v8090_v22  ;;  %v8136_v6 = vld [vmem:[%s8493_s9 + $0xe8] sm:$0xff]   ;;  %v8138_v8 = vld [vmem:[%s8493_s9 + $0xf0] sm:$0xff]   ;;  %v8139_v9 = vld [vmem:[%s8477_s19 + $0xf8] sm:$0xff]   ;;  %s8669_s19 = scalar_lea.vmem %s8473_s18, %s8656_s10 }
  0x2a   : > { %v8141_v10 = vld [vmem:[%s8581_s20] sm:$0xff]   ;;  %v8140_v11 = vld [vmem:[%s8493_s9 + $0xf8] sm:$0xff]   ;;  %v8143_v13 = vld [vmem:[%s8581_s20 + $0x8] sm:$0xff]  }
  0x2b   : > { %v8142_v12 = vld [vmem:[%s8586_s28] sm:$0xff]   ;;  %v8144_v14 = vld [vmem:[%s8586_s28 + $0x8] sm:$0xff]   ;;  %v8145_v16 = vld [vmem:[%s8581_s20 + $0x10] sm:$0xff]  }
  0x2c   : > { %v8146_v17 = vld [vmem:[%s8586_s28 + $0x10] sm:$0xff]   ;;  %v8682_v19 = vld [vmem:[%s9791_s4 + $0x18] sm:$0x7]  ;;  %v8692_v20 = vld [vmem:[%s9791_s4 + $0x1c] sm:$0x7] }
  0x2d   : > { %v8147_v7 = vld [vmem:[%s8581_s20 + $0x18] sm:$0xff]   ;;  %v8149_v22 = vld [vmem:[%s8581_s20 + $0x20] sm:$0xff]  }
  0x2e   : > { %v8148_v21 = vld [vmem:[%s8586_s28 + $0x18] sm:$0xff]   ;;  %v8174_v47 = vld [vmem:[%s8586_s28 + $0x80] sm:$0xff]  }
  0x2f   : > { %7515 = vmatmul.mubr.msk.bf16.gmra.mxu0 %vm634_vm1, %v8091_v23  ;;  %v8150_v23 = vld [vmem:[%s8586_s28 + $0x20] sm:$0xff]  }
  0x30   : > { %7518 = vmatprep.mubr.msk.bf16.mxu0 %vm634_vm1, %v8093_v24  ;;  %7581 = vmatmul.mubr.msk.bf16.gmra.mxu1 %vm634_vm1, %v8092_v25  ;;  %v8151_v24 = vld [vmem:[%s8581_s20 + $0x28] sm:$0xff]   ;;  %v8153_v25 = vld [vmem:[%s8581_s20 + $0x30] sm:$0xff]  }
  0x31   : > { %7584 = vmatprep.mubr.msk.bf16.mxu1 %vm634_vm1, %v8094_v26  ;;  %v8152_v26 = vld [vmem:[%s8586_s28 + $0x28] sm:$0xff]  }
  0x37   : > { %7519 = vmatmul.mubr.msk.bf16.gmra.mxu0 %vm634_vm1, %v8095_v27  ;;  %v8154_v27 = vld [vmem:[%s8586_s28 + $0x30] sm:$0xff]  }
  0x38   : > { %7522 = vmatprep.mubr.msk.bf16.mxu0 %vm634_vm1, %v8097_v28  ;;  %7585 = vmatmul.mubr.msk.bf16.gmra.mxu1 %vm634_vm1, %v8096_v29  ;;  %v8155_v28 = vld [vmem:[%s8581_s20 + $0x38] sm:$0xff]   ;;  %v8157_v29 = vld [vmem:[%s8581_s20 + $0x40] sm:$0xff]  }
  0x39   : > { %7588 = vmatprep.mubr.msk.bf16.mxu1 %vm634_vm1, %v8098_v30  ;;  %v8156_v30 = vld [vmem:[%s8586_s28 + $0x38] sm:$0xff]  }
  0x3f   : > { %7523 = vmatmul.mubr.msk.bf16.gmra.mxu0 %vm634_vm1, %v8099_v31  ;;  %v8158_v31 = vld [vmem:[%s8586_s28 + $0x40] sm:$0xff]  }
  0x40   : > { %7526 = vmatprep.mubr.msk.bf16.mxu0 %vm634_vm1, %v8101_v32  ;;  %7589 = vmatmul.mubr.msk.bf16.gmra.mxu1 %vm634_vm1, %v8100_v33  ;;  %v8159_v32 = vld [vmem:[%s8581_s20 + $0x48] sm:$0xff]   ;;  %v8161_v33 = vld [vmem:[%s8581_s20 + $0x50] sm:$0xff]  }
  0x41   : > { %7592 = vmatprep.mubr.msk.bf16.mxu1 %vm634_vm1, %v8102_v34  ;;  %v8160_v34 = vld [vmem:[%s8586_s28 + $0x48] sm:$0xff]  }
  0x47   : > { %7527 = vmatmul.mubr.msk.bf16.gmra.mxu0 %vm634_vm1, %v8103_v35  ;;  %v8162_v35 = vld [vmem:[%s8586_s28 + $0x50] sm:$0xff]  }
  0x48   : > { %7530 = vmatprep.mubr.msk.bf16.mxu0 %vm634_vm1, %v8105_v36  ;;  %7593 = vmatmul.mubr.msk.bf16.gmra.mxu1 %vm634_vm1, %v8104_v37  ;;  %v8163_v36 = vld [vmem:[%s8581_s20 + $0x58] sm:$0xff]   ;;  %v8165_v37 = vld [vmem:[%s8581_s20 + $0x60] sm:$0xff]  }
  0x49   : > { %7596 = vmatprep.mubr.msk.bf16.mxu1 %vm634_vm1, %v8106_v38  ;;  %v8164_v38 = vld [vmem:[%s8586_s28 + $0x58] sm:$0xff]  }
  0x4f   : > { %7531 = vmatmul.mubr.msk.bf16.gmra.mxu0 %vm634_vm1, %v8107_v39  ;;  %v8166_v39 = vld [vmem:[%s8586_s28 + $0x60] sm:$0xff]  }
  0x50   : > { %7534 = vmatprep.mubr.msk.bf16.mxu0 %vm634_vm1, %v8109_v40  ;;  %7597 = vmatmul.mubr.msk.bf16.gmra.mxu1 %vm634_vm1, %v8108_v41  ;;  %v8167_v40 = vld [vmem:[%s8581_s20 + $0x68] sm:$0xff]   ;;  %v8169_v41 = vld [vmem:[%s8581_s20 + $0x70] sm:$0xff]  }
  0x51   : > { %7600 = vmatprep.mubr.msk.bf16.mxu1 %vm634_vm1, %v8110_v42  ;;  %v8168_v42 = vld [vmem:[%s8586_s28 + $0x68] sm:$0xff]  }
  0x57   : > { %7535 = vmatmul.mubr.msk.bf16.gmra.mxu0 %vm634_vm1, %v8111_v43  ;;  %v8170_v43 = vld [vmem:[%s8586_s28 + $0x70] sm:$0xff]  }
  0x58   : > { %7538 = vmatprep.mubr.msk.bf16.mxu0 %vm634_vm1, %v8113_v44  ;;  %7601 = vmatmul.mubr.msk.bf16.gmra.mxu1 %vm634_vm1, %v8112_v45  ;;  %v8171_v44 = vld [vmem:[%s8581_s20 + $0x78] sm:$0xff]   ;;  %v8173_v45 = vld [vmem:[%s8581_s20 + $0x80] sm:$0xff]  }
  0x59   : > { %7604 = vmatprep.mubr.msk.bf16.mxu1 %vm634_vm1, %v8114_v46  ;;  %v8172_v46 = vld [vmem:[%s8586_s28 + $0x78] sm:$0xff]  }
  0x5f   : > { %7539 = vmatmul.mubr.msk.bf16.gmra.mxu0 %vm634_vm1, %v8115_v48  ;;  %v8175_v48 = vld [vmem:[%s8581_s20 + $0x88] sm:$0xff]  }
  0x60   : > { %7542 = vmatprep.mubr.msk.bf16.mxu0 %vm634_vm1, %v8117_v49  ;;  %7605 = vmatmul.mubr.msk.bf16.gmra.mxu1 %vm634_vm1, %v8116_v50  ;;  %v8177_v49 = vld [vmem:[%s8581_s20 + $0x90] sm:$0xff]   ;;  %v8176_v50 = vld [vmem:[%s8586_s28 + $0x88] sm:$0xff]  }
  0x61   : > { %7608 = vmatprep.mubr.msk.bf16.mxu1 %vm634_vm1, %v8118_v51  ;;  %v8178_v51 = vld [vmem:[%s8586_s28 + $0x90] sm:$0xff]  }
  0x67   : > { %7543 = vmatmul.mubr.msk.bf16.gmra.mxu0 %vm634_vm1, %v8119_v52 }
  0x68   : > { %7546 = vmatprep.mubr.msk.bf16.mxu0 %vm634_vm1, %v8121_v53  ;;  %7609 = vmatmul.mubr.msk.bf16.gmra.mxu1 %vm634_vm1, %v8120_v54 }
  0x69   : > { %7612 = vmatprep.mubr.msk.bf16.mxu1 %vm634_vm1, %v8122_v55 }
  0x6f   : > { %7547 = vmatmul.mubr.msk.bf16.gmra.mxu0 %vm634_vm1, %v8123_v56 }
  0x70   : > { %7550 = vmatprep.mubr.msk.bf16.mxu0 %vm634_vm1, %v8125_v57  ;;  %7613 = vmatmul.mubr.msk.bf16.gmra.mxu1 %vm634_vm1, %v8124_v58  ;;  %v8179_v58 = vld [vmem:[%s8581_s20 + $0x98] sm:$0xff]  }
  0x71   : > { %7616 = vmatprep.mubr.msk.bf16.mxu1 %vm634_vm1, %v8126_v59 }
  0x77   : > { %7551 = vmatmul.mubr.msk.bf16.gmra.mxu0 %vm634_vm1, %v8127_v60  ;;  %v8181_v60 = vld [vmem:[%s8581_s20 + $0xa0] sm:$0xff]  }
  0x78   : > { %7554 = vmatprep.mubr.msk.bf16.mxu0 %vm634_vm1, %v8129_v61  ;;  %7617 = vmatmul.mubr.msk.bf16.gmra.mxu1 %vm634_vm1, %v8128_v62 }
  0x79   : > { %7620 = vmatprep.mubr.msk.bf16.mxu1 %vm634_vm1, %v8130_v63  ;;  %v8180_v63 = vld [vmem:[%s8586_s28 + $0x98] sm:$0xff]  }
  0x7f   : > { %7555 = vmatmul.mubr.msk.bf16.gmra.mxu0 %vm634_vm1, %v8131_v0 }
  0x80   : > { %7558 = vmatprep.mubr.msk.bf16.mxu0 %vm634_vm1, %v8133_v1  ;;  %7621 = vmatmul.mubr.msk.bf16.gmra.mxu1 %vm634_vm1, %v8132_v2  ;;  %v8182_v1 = vld [vmem:[%s8586_s28 + $0xa0] sm:$0xff]  }
  0x81   : > { %7624 = vmatprep.mubr.msk.bf16.mxu1 %vm634_vm1, %v8134_v3 }
  0x87   : > { %7559 = vmatmul.mubr.msk.bf16.gmra.mxu0 %vm634_vm1, %v8135_v4 }
  0x88   : > { %7562 = vmatprep.mubr.msk.bf16.mxu0 %vm634_vm1, %v8137_v5  ;;  %7625 = vmatmul.mubr.msk.bf16.gmra.mxu1 %vm634_vm1, %v8136_v6 }
  0x89   : > { %7628 = vmatprep.mubr.msk.bf16.mxu1 %vm634_vm1, %v8138_v8 }
  0x8f   : > { %7563 = vmatmul.mubr.msk.bf16.gmra.mxu0 %vm634_vm1, %v8139_v9 }
  0x90   : > { %7634 = vmatprep.mubr.msk.bf16.mxu0 %vm634_vm1, %v8141_v10  ;;  %7629 = vmatmul.mubr.msk.bf16.gmra.mxu1 %vm634_vm1, %v8140_v11  ;;  %v8183_v11 = vld [vmem:[%s8581_s20 + $0xa8] sm:$0xff]  }
  0x91   : > { %7700 = vmatprep.mubr.msk.bf16.mxu1 %vm634_vm1, %v8142_v12 }
  0x97   : > { %7635 = vmatmul.mubr.msk.bf16.vlgmr.msra.gmra.mxu0 %vm634_vm1, %v8143_v13  ;;  %v8185_v13 = vld [vmem:[%s8581_s20 + $0xb0] sm:$0xff]  }
  0x98   : > { %7765 = vmatpush3.bf16.msra.mxu0 %v3260_v15  ;;  %7638 = vmatprep.mubr.msk.bf16.mxu0 %vm634_vm1, %v8145_v16  ;;  %v8184_v16 = vld [vmem:[%s8586_s28 + $0xa8] sm:$0xff]  }
  0x99   : > { %7701 = vmatmul.mubr.msk.bf16.vlgmr.msra.gmra.mxu1 %vm634_vm1, %v8144_v14  ;;  %8034 = vmatprep.subr.msk.bf16.mxu0 %vm731_vm0, %v8682_v19 }
  0x9a   : > { %7831 = vmatpush3.bf16.msra.mxu1 %v3940_v18  ;;  %7704 = vmatprep.mubr.msk.bf16.mxu1 %vm634_vm1, %v8146_v17  ;;  %v8186_v18 = vld [vmem:[%s8586_s28 + $0xb0] sm:$0xff]  }
  0x9b   : > { %8035 = vmatprep.subr.msk.bf16.mxu1 %vm731_vm0, %v8692_v20 }
  0x9f   : > { %7639 = vmatmul.mubr.msk.bf16.gmra.mxu0 %vm634_vm1, %v8147_v7 }
  0xa0   : > { %7642 = vmatprep.mubr.msk.bf16.mxu0 %vm634_vm1, %v8149_v22 }
  0xa1   : > { %7705 = vmatmul.mubr.msk.bf16.gmra.mxu1 %vm634_vm1, %v8148_v21 }
  0xa2   : > { %7708 = vmatprep.mubr.msk.bf16.mxu1 %vm634_vm1, %v8150_v23 }
  0xa7   : > { %7643 = vmatmul.mubr.msk.bf16.gmra.mxu0 %vm634_vm1, %v8151_v24 }
  0xa8   : > { %7646 = vmatprep.mubr.msk.bf16.mxu0 %vm634_vm1, %v8153_v25 }
  0xa9   : > { %7709 = vmatmul.mubr.msk.bf16.gmra.mxu1 %vm634_vm1, %v8152_v26 }
  0xaa   : > { %7712 = vmatprep.mubr.msk.bf16.mxu1 %vm634_vm1, %v8154_v27 }
  0xaf   : > { %7647 = vmatmul.mubr.msk.bf16.gmra.mxu0 %vm634_vm1, %v8155_v28  ;;  %v8187_v28 = vld [vmem:[%s8581_s20 + $0xb8] sm:$0xff]  }
  0xb0   : > { %7650 = vmatprep.mubr.msk.bf16.mxu0 %vm634_vm1, %v8157_v29 }
  0xb1   : > { %7713 = vmatmul.mubr.msk.bf16.gmra.mxu1 %vm634_vm1, %v8156_v30  ;;  %v8189_v30 = vld [vmem:[%s8581_s20 + $0xc0] sm:$0xff]  }
  0xb2   : > { %7716 = vmatprep.mubr.msk.bf16.mxu1 %vm634_vm1, %v8158_v31 }
  0xb7   : > { %7651 = vmatmul.mubr.msk.bf16.gmra.mxu0 %vm634_vm1, %v8159_v32 }
  0xb8   : > { %7654 = vmatprep.mubr.msk.bf16.mxu0 %vm634_vm1, %v8161_v33  ;;  %v8188_v33 = vld [vmem:[%s8586_s28 + $0xb8] sm:$0xff]  }
  0xb9   : > { %7717 = vmatmul.mubr.msk.bf16.gmra.mxu1 %vm634_vm1, %v8160_v34 }
  0xba   : > { %7720 = vmatprep.mubr.msk.bf16.mxu1 %vm634_vm1, %v8162_v35  ;;  %v8190_v35 = vld [vmem:[%s8586_s28 + $0xc0] sm:$0xff]  }
  0xbf   : > { %7655 = vmatmul.mubr.msk.bf16.gmra.mxu0 %vm634_vm1, %v8163_v36 }
  0xc0   : > { %7658 = vmatprep.mubr.msk.bf16.mxu0 %vm634_vm1, %v8165_v37 }
  0xc1   : > { %7721 = vmatmul.mubr.msk.bf16.gmra.mxu1 %vm634_vm1, %v8164_v38 }
  0xc2   : > { %7724 = vmatprep.mubr.msk.bf16.mxu1 %vm634_vm1, %v8166_v39 }
  0xc7   : > { %7659 = vmatmul.mubr.msk.bf16.gmra.mxu0 %vm634_vm1, %v8167_v40 }
  0xc8   : > { %7662 = vmatprep.mubr.msk.bf16.mxu0 %vm634_vm1, %v8169_v41 }
  0xc9   : > { %7725 = vmatmul.mubr.msk.bf16.gmra.mxu1 %vm634_vm1, %v8168_v42 }
  0xca   : > { %7728 = vmatprep.mubr.msk.bf16.mxu1 %vm634_vm1, %v8170_v43 }
  0xcf   : > { %7663 = vmatmul.mubr.msk.bf16.gmra.mxu0 %vm634_vm1, %v8171_v44  ;;  %v8191_v44 = vld [vmem:[%s8581_s20 + $0xc8] sm:$0xff]  }
  0xd0   : > { %7666 = vmatprep.mubr.msk.bf16.mxu0 %vm634_vm1, %v8173_v45 }
  0xd1   : > { %7729 = vmatmul.mubr.msk.bf16.gmra.mxu1 %vm634_vm1, %v8172_v46  ;;  %v8193_v46 = vld [vmem:[%s8581_s20 + $0xd0] sm:$0xff]  }
  0xd2   : > { %7732 = vmatprep.mubr.msk.bf16.mxu1 %vm634_vm1, %v8174_v47 }
  0xd7   : > { %v7504_v52 = vpop.f32.mrf.mxu0  ;;  %7667 = vmatmul.mubr.msk.bf16.gmra.mxu0 %vm634_vm1, %v8175_v48 }
  0xd8   : > { %7670 = vmatprep.mubr.msk.bf16.mxu0 %vm634_vm1, %v8177_v49  ;;  %v7570_v53 = vpop.f32.mrf.mxu1  ;;  %v8192_v49 = vld [vmem:[%s8586_s28 + $0xc8] sm:$0xff]  }
  0xd9   : > { %7733 = vmatmul.mubr.msk.bf16.gmra.mxu1 %vm634_vm1, %v8176_v50  ;;  %v769_v54 = vpop.f32.mrf.mxu0  ;;  %v8758_v55 = vadd.f32 %v7570_v53, %v7504_v52 }
  0xda   : > { %7736 = vmatprep.mubr.msk.bf16.mxu1 %vm634_vm1, %v8178_v51  ;;  %v1317_v56 = vpop.f32.mrf.mxu1  ;;  %v8194_v51 = vld [vmem:[%s8586_s28 + $0xd0] sm:$0xff]  }
  0xdb   : > { %v7505_v57 = vpop.f32.mrf.mxu0  ;;  %v8762_v59 = vadd.f32 %v1317_v56, %v769_v54 }
  0xdc   : > { %v7571_v61 = vpop.f32.mrf.mxu1 }
  0xdd   : > { %v772_v62 = vpop.f32.mrf.mxu0  ;;  %v8766_v0 = vadd.f32 %v7571_v61, %v7505_v57 }
  0xde   : > { %v1320_v2 = vpop.f32.mrf.mxu1 }
  0xdf   : > { %v7508_v3 = vpop.f32.mrf.mxu0  ;;  %7671 = vmatmul.mubr.msk.bf16.gmra.mxu0 %vm634_vm1, %v8179_v58  ;;  %v8770_v4 = vadd.f32 %v1320_v2, %v772_v62  ;;  %v8195_v62 = vld [vmem:[%s8581_s20 + $0xd8] sm:$0xff]  }
  0xe0   : > { %7674 = vmatprep.mubr.msk.bf16.mxu0 %vm634_vm1, %v8181_v60  ;;  %v7574_v5 = vpop.f32.mrf.mxu1 }
  0xe1   : > { %7737 = vmatmul.mubr.msk.bf16.gmra.mxu1 %vm634_vm1, %v8180_v63  ;;  %v785_v6 = vpop.f32.mrf.mxu0  ;;  %v8774_v8 = vadd.f32 %v7574_v5, %v7508_v3  ;;  %v8196_v5 = vld [vmem:[%s8586_s28 + $0xd8] sm:$0xff]  }
  0xe2   : > { %7740 = vmatprep.mubr.msk.bf16.mxu1 %vm634_vm1, %v8182_v1  ;;  %v1333_v9 = vpop.f32.mrf.mxu1  ;;  %v8197_v1 = vld [vmem:[%s8581_s20 + $0xe0] sm:$0xff]  }
  0xe3   : > { %v7509_v10 = vpop.f32.mrf.mxu0  ;;  %v8778_v12 = vadd.f32 %v1333_v9, %v785_v6  ;;  %v8198_v9 = vld [vmem:[%s8586_s28 + $0xe0] sm:$0xff]  }
  0xe4   : > { %v7575_v14 = vpop.f32.mrf.mxu1 }
  0xe5   : > { %v788_v15 = vpop.f32.mrf.mxu0  ;;  %v8782_v17 = vadd.f32 %v7575_v14, %v7509_v10 }
  0xe6   : > { %v1336_v7 = vpop.f32.mrf.mxu1 }
  0xe7   : > { %v7512_v21 = vpop.f32.mrf.mxu0  ;;  %7675 = vmatmul.mubr.msk.bf16.gmra.mxu0 %vm634_vm1, %v8183_v11  ;;  %v8786_v22 = vadd.f32 %v1336_v7, %v788_v15 }
  0xe8   : > { %7678 = vmatprep.mubr.msk.bf16.mxu0 %vm634_vm1, %v8185_v13  ;;  %v7578_v23 = vpop.f32.mrf.mxu1 }
  0xe9   : > { %7741 = vmatmul.mubr.msk.bf16.gmra.mxu1 %vm634_vm1, %v8184_v16  ;;  %v801_v24 = vpop.f32.mrf.mxu0  ;;  %v8790_v25 = vadd.f32 %v7578_v23, %v7512_v21  ;;  %v8199_v21 = vld [vmem:[%s8581_s20 + $0xe8] sm:$0xff]  }
  0xea   : > { %7744 = vmatprep.mubr.msk.bf16.mxu1 %vm634_vm1, %v8186_v18  ;;  %v1349_v26 = vpop.f32.mrf.mxu1 }
  0xeb   : > { %v7513_v27 = vpop.f32.mrf.mxu0  ;;  %v8794_v29 = vadd.f32 %v1349_v26, %v801_v24  ;;  %v8201_v24 = vld [vmem:[%s8581_s20 + $0xf0] sm:$0xff]  }
  0xec   : > { %v7579_v31 = vpop.f32.mrf.mxu1 }
  0xed   : > { %v804_v32 = vpop.f32.mrf.mxu0  ;;  %v8798_v34 = vadd.f32 %v7579_v31, %v7513_v27  ;;  %v8202_v31 = vld [vmem:[%s8586_s28 + $0xf0] sm:$0xff]  }
  0xee   : > { %v1352_v36 = vpop.f32.mrf.mxu1 }
  0xef   : > { %v7516_v37 = vpop.f32.mrf.mxu0  ;;  %7679 = vmatmul.mubr.msk.bf16.gmra.mxu0 %vm634_vm1, %v8187_v28  ;;  %v8802_v38 = vadd.f32 %v1352_v36, %v804_v32  ;;  %v8200_v28 = vld [vmem:[%s8586_s28 + $0xe8] sm:$0xff]  }
  0xf0   : > { %7682 = vmatprep.mubr.msk.bf16.mxu0 %vm634_vm1, %v8189_v30  ;;  %v7582_v39 = vpop.f32.mrf.mxu1 }
  0xf1   : > { %7745 = vmatmul.mubr.msk.bf16.gmra.mxu1 %vm634_vm1, %v8188_v33  ;;  %v817_v40 = vpop.f32.mrf.mxu0  ;;  %v8806_v41 = vadd.f32 %v7582_v39, %v7516_v37 }
  0xf2   : > { %7748 = vmatprep.mubr.msk.bf16.mxu1 %vm634_vm1, %v8190_v35  ;;  %v1365_v42 = vpop.f32.mrf.mxu1 }
  0xf3   : > { %v7517_v43 = vpop.f32.mrf.mxu0  ;;  %v8810_v45 = vadd.f32 %v1365_v42, %v817_v40 }
  0xf4   : > { %v7583_v47 = vpop.f32.mrf.mxu1 }
  0xf5   : > { %v820_v48 = vpop.f32.mrf.mxu0  ;;  %v8814_v50 = vadd.f32 %v7583_v47, %v7517_v43  ;;  %v8203_v43 = vld [vmem:[%s8581_s20 + $0xf8] sm:$0xff]   ;;  %s6384_s20 = sshll.u32 %s9901_s22, 7 }
  0xf6   : > { %v1368_v52 = vpop.f32.mrf.mxu1 }
  0xf7   : > { %v7520_v53 = vpop.f32.mrf.mxu0  ;;  %7683 = vmatmul.mubr.msk.bf16.gmra.mxu0 %vm634_vm1, %v8191_v44  ;;  %v8818_v54 = vadd.f32 %v1368_v52, %v820_v48  ;;  %v8206_v52 = vld [vmem:[%s8669_s19] sm:$0xff]  }
  0xf8   : > { %7686 = vmatprep.mubr.msk.bf16.mxu0 %vm634_vm1, %v8193_v46  ;;  %v7586_v56 = vpop.f32.mrf.mxu1  ;;  %v8205_v46 = vld [vmem:[%s8664_s8] sm:$0xff]  }
  0xf9   : > { %7749 = vmatmul.mubr.msk.bf16.gmra.mxu1 %vm634_vm1, %v8192_v49  ;;  %v833_v57 = vpop.f32.mrf.mxu0  ;;  %v8822_v58 = vadd.f32 %v7586_v56, %v7520_v53  ;;  %v8204_v49 = vld [vmem:[%s8586_s28 + $0xf8] sm:$0xff]   ;;  %s331_s28 = sadd.s32 %s6384_s20, %s9903_s12 }
  0xfa   : > { %7752 = vmatprep.mubr.msk.bf16.mxu1 %vm634_vm1, %v8194_v51  ;;  %v1381_v60 = vpop.f32.mrf.mxu1  ;;  %s6385_s22 = sshll.u32 %s331_s28, 2 }
  0xfb   : > { %v7521_v61 = vpop.f32.mrf.mxu0  ;;  %v8826_v63 = vadd.f32 %v1381_v60, %v833_v57  ;;  %s9611_s15 = scalar_lea.vmem %s9793_s6, %s6385_s22 }
  0xfc   : > { %v7587_v2 = vpop.f32.mrf.mxu1 }
  0xfd   : > { %v836_v3 = vpop.f32.mrf.mxu0  ;;  %v8830_v6 = vadd.f32 %v7587_v2, %v7521_v61 }
  0xfe   : > { %v1384_v10 = vpop.f32.mrf.mxu1 }
  0xff   : > { %v7524_v11 = vpop.f32.mrf.mxu0  ;;  %7687 = vmatmul.mubr.msk.bf16.gmra.mxu0 %vm634_vm1, %v8195_v62  ;;  %v8834_v13 = vadd.f32 %v1384_v10, %v836_v3  ;;  %v8207_v3 = vld [vmem:[%s8664_s8 + $0x8] sm:$0xff]  }
 0x100   : > { %7690 = vmatprep.mubr.msk.bf16.mxu0 %vm634_vm1, %v8197_v1  ;;  %v7590_v14 = vpop.f32.mrf.mxu1 }
 0x101   : > { %7753 = vmatmul.mubr.msk.bf16.gmra.mxu1 %vm634_vm1, %v8196_v5  ;;  %v849_v15 = vpop.f32.mrf.mxu0  ;;  %v8838_v16 = vadd.f32 %v7590_v14, %v7524_v11  ;;  %v8208_v14 = vld [vmem:[%s8669_s19 + $0x8] sm:$0xff]  }
 0x102   : > { %7756 = vmatprep.mubr.msk.bf16.mxu1 %vm634_vm1, %v8198_v9  ;;  %v1397_v18 = vpop.f32.mrf.mxu1  ;;  %v8209_v9 = vld [vmem:[%s8664_s8 + $0x10] sm:$0xff]  }
 0x103   : > { %v7525_v7 = vpop.f32.mrf.mxu0  ;;  %v8842_v23 = vadd.f32 %v1397_v18, %v849_v15  ;;  %v4620_v15 = vsel %vm731_vm0, %v8682_v19, 0 }
 0x104   : > { %v7591_v26 = vpop.f32.mrf.mxu1 }
 0x105   : > { %v852_v27 = vpop.f32.mrf.mxu0  ;;  %v8846_v30 = vadd.f32 %v7591_v26, %v7525_v7  ;;  %v8210_v7 = vld [vmem:[%s8669_s19 + $0x10] sm:$0xff]   ;;  %v5300_v26 = vsel %vm731_vm0, %v8692_v20, 0 }
 0x106   : > { %v1400_v32 = vpop.f32.mrf.mxu1 }
 0x107   : > { %v7528_v33 = vpop.f32.mrf.mxu0  ;;  %7691 = vmatmul.mubr.msk.bf16.gmra.mxu0 %vm634_vm1, %v8199_v21  ;;  %v8850_v35 = vadd.f32 %v1400_v32, %v852_v27 }
 0x108   : > { %7694 = vmatprep.mubr.msk.bf16.mxu0 %vm634_vm1, %v8201_v24  ;;  %v7594_v36 = vpop.f32.mrf.mxu1 }
 0x109   : > { %7757 = vmatmul.mubr.msk.bf16.gmra.mxu1 %vm634_vm1, %v8200_v28  ;;  %v865_v37 = vpop.f32.mrf.mxu0  ;;  %v8854_v39 = vadd.f32 %v7594_v36, %v7528_v33  ;;  %v8213_v33 = vld [vmem:[%s8664_s8 + $0x20] sm:$0xff]  }
 0x10a   : > { %7760 = vmatprep.mubr.msk.bf16.mxu1 %vm634_vm1, %v8202_v31  ;;  %v1413_v40 = vpop.f32.mrf.mxu1  ;;  %v8211_v31 = vld [vmem:[%s8664_s8 + $0x18] sm:$0xff]  }
 0x10b   : > { %v7529_v42 = vpop.f32.mrf.mxu0  ;;  %v8858_v44 = vadd.f32 %v1413_v40, %v865_v37  ;;  %v8212_v37 = vld [vmem:[%s8669_s19 + $0x18] sm:$0xff]  }
 0x10c   : > { %v7595_v47 = vpop.f32.mrf.mxu1 }
 0x10d   : > { %v868_v48 = vpop.f32.mrf.mxu0  ;;  %v8862_v51 = vadd.f32 %v7595_v47, %v7529_v42  ;;  %v8214_v47 = vld [vmem:[%s8669_s19 + $0x20] sm:$0xff]  }
 0x10e   : > { %v1416_v53 = vpop.f32.mrf.mxu1 }
 0x10f   : > { %v7532_v56 = vpop.f32.mrf.mxu0  ;;  %7695 = vmatmul.mubr.msk.bf16.gmra.mxu0 %vm634_vm1, %v8203_v43  ;;  %v8866_v57 = vadd.f32 %v1416_v53, %v868_v48 }
 0x110   : > { %7766 = vmatprep.mubr.msk.bf16.mxu0 %vm634_vm1, %v8205_v46  ;;  %v7598_v60 = vpop.f32.mrf.mxu1 }
 0x111   : > { %7761 = vmatmul.mubr.msk.bf16.gmra.mxu1 %vm634_vm1, %v8204_v49  ;;  %v881_v61 = vpop.f32.mrf.mxu0  ;;  %v8870_v62 = vadd.f32 %v7598_v60, %v7532_v56  ;;  %v8215_v60 = vld [vmem:[%s8664_s8 + $0x28] sm:$0xff]  }
 0x112   : > { %7832 = vmatprep.mubr.msk.bf16.mxu1 %vm634_vm1, %v8206_v52  ;;  %v1429_v1 = vpop.f32.mrf.mxu1 }
 0x113   : > { %v7533_v2 = vpop.f32.mrf.mxu0  ;;  %v8874_v5 = vadd.f32 %v1429_v1, %v881_v61  ;;  %v8217_v1 = vld [vmem:[%s8664_s8 + $0x30] sm:$0xff]  }
 0x114   : > { %v7599_v10 = vpop.f32.mrf.mxu1 }
 0x115   : > { %v884_v11 = vpop.f32.mrf.mxu0  ;;  %v8884_v18 = vadd.f32 %v7599_v10, %v7533_v2 }
 0x116   : > { %v1432_v21 = vpop.f32.mrf.mxu1 }
 0x117   : > { %v7536_v24 = vpop.f32.mrf.mxu0  ;;  %7767 = vmatmul.mubr.msk.bf16.vlgmr.msra.gmra.mxu0 %vm634_vm1, %v8207_v3  ;;  %v8894_v27 = vadd.f32 %v1432_v21, %v884_v11 }
 0x118   : > { %7897 = vmatpush3.bf16.msra.mxu0 %v4620_v15  ;;  %7770 = vmatprep.mubr.msk.bf16.mxu0 %vm634_vm1, %v8209_v9  ;;  %v7602_v19 = vpop.f32.mrf.mxu1  ;;  %v8216_v9 = vld [vmem:[%s8669_s19 + $0x28] sm:$0xff]  }
 0x119   : > { %7833 = vmatmul.mubr.msk.bf16.vlgmr.msra.gmra.mxu1 %vm634_vm1, %v8208_v14  ;;  %v897_v28 = vpop.f32.mrf.mxu0  ;;  %v8899_v32 = vadd.f32 %v7602_v19, %v7536_v24 }
 0x11a   : > { %7963 = vmatpush3.bf16.msra.mxu1 %v5300_v26  ;;  %7836 = vmatprep.mubr.msk.bf16.mxu1 %vm634_vm1, %v8210_v7  ;;  %v1445_v36 = vpop.f32.mrf.mxu1  ;;  %v8218_v7 = vld [vmem:[%s8669_s19 + $0x30] sm:$0xff]  }
 0x11b   : > { %v7537_v20 = vpop.f32.mrf.mxu0  ;;  %v8904_v40 = vadd.f32 %v1445_v36, %v897_v28  ;;  %v8221_v36 = vld [vmem:[%s8664_s8 + $0x40] sm:$0xff]  }
 0x11c   : > { %v7603_v42 = vpop.f32.mrf.mxu1 }
 0x11d   : > { %v900_v43 = vpop.f32.mrf.mxu0  ;;  %v8906_v46 = vadd.f32 %v7603_v42, %v7537_v20  ;;  %v8220_v42 = vld [vmem:[%s8669_s19 + $0x38] sm:$0xff]  }
 0x11e   : > { %v1448_v48 = vpop.f32.mrf.mxu1 }
 0x11f   : > { %v7540_v49 = vpop.f32.mrf.mxu0  ;;  %7771 = vmatmul.mubr.msk.bf16.gmra.mxu0 %vm634_vm1, %v8211_v31  ;;  %v8910_v52 = vadd.f32 %v1448_v48, %v900_v43  ;;  %v8219_v31 = vld [vmem:[%s8664_s8 + $0x38] sm:$0xff]  }
 0x120   : > { %7774 = vmatprep.mubr.msk.bf16.mxu0 %vm634_vm1, %v8213_v33  ;;  %v7606_v53 = vpop.f32.mrf.mxu1 }
 0x121   : > { %7837 = vmatmul.mubr.msk.bf16.gmra.mxu1 %vm634_vm1, %v8212_v37  ;;  %v913_v56 = vpop.f32.mrf.mxu0  ;;  %v8915_v61 = vadd.f32 %v7606_v53, %v7540_v49  ;;  %v8222_v53 = vld [vmem:[%s8669_s19 + $0x40] sm:$0xff]  }
 0x122   : > { %7840 = vmatprep.mubr.msk.bf16.mxu1 %vm634_vm1, %v8214_v47  ;;  %v1461_v2 = vpop.f32.mrf.mxu1 }
 0x123   : > { %v7541_v3 = vpop.f32.mrf.mxu0  ;;  %v8920_v10 = vadd.f32 %v1461_v2, %v913_v56 }
 0x124   : > { %v7607_v11 = vpop.f32.mrf.mxu1 }
 0x125   : > { %v916_v14 = vpop.f32.mrf.mxu0  ;;  %v8922_v15 = vadd.f32 %v7607_v11, %v7541_v3 }
 0x126   : > { %v1464_v21 = vpop.f32.mrf.mxu1 }
 0x127   : > { %v7544_v24 = vpop.f32.mrf.mxu0  ;;  %7775 = vmatmul.mubr.msk.bf16.gmra.mxu0 %vm634_vm1, %v8215_v60  ;;  %v8926_v26 = vadd.f32 %v1464_v21, %v916_v14  ;;  %v8225_v14 = vld [vmem:[%s8664_s8 + $0x50] sm:$0xff]  }
 0x128   : > { %7778 = vmatprep.mubr.msk.bf16.mxu0 %vm634_vm1, %v8217_v1  ;;  %v7610_v19 = vpop.f32.mrf.mxu1 }
 0x129   : > { %7841 = vmatmul.mubr.msk.bf16.gmra.mxu1 %vm634_vm1, %v8216_v9  ;;  %v929_v28 = vpop.f32.mrf.mxu0  ;;  %v8931_v33 = vadd.f32 %v7610_v19, %v7544_v24  ;;  %v8223_v9 = vld [vmem:[%s8664_s8 + $0x48] sm:$0xff]  }
 0x12a   : > { %7844 = vmatprep.mubr.msk.bf16.mxu1 %vm634_vm1, %v8218_v7  ;;  %v1477_v20 = vpop.f32.mrf.mxu1  ;;  %v8224_v24 = vld [vmem:[%s8669_s19 + $0x48] sm:$0xff]  }
 0x12b   : > { %v7545_v37 = vpop.f32.mrf.mxu0  ;;  %v8936_v43 = vadd.f32 %v1477_v20, %v929_v28  ;;  %v8226_v20 = vld [vmem:[%s8669_s19 + $0x50] sm:$0xff]  }
 0x12c   : > { %v7611_v47 = vpop.f32.mrf.mxu1 }
 0x12d   : > { %v932_v48 = vpop.f32.mrf.mxu0  ;;  %v8938_v49 = vadd.f32 %v7611_v47, %v7545_v37 }
 0x12e   : > { %v1480_v56 = vpop.f32.mrf.mxu1 }
 0x12f   : > { %v7548_v60 = vpop.f32.mrf.mxu0  ;;  %7779 = vmatmul.mubr.msk.bf16.gmra.mxu0 %vm634_vm1, %v8219_v31  ;;  %v8942_v1 = vadd.f32 %v1480_v56, %v932_v48  ;;  %v8227_v56 = vld [vmem:[%s8664_s8 + $0x58] sm:$0xff]  }
 0x130   : > { %7782 = vmatprep.mubr.msk.bf16.mxu0 %vm634_vm1, %v8221_v36  ;;  %v7614_v2 = vpop.f32.mrf.mxu1 }
 0x131   : > { %7845 = vmatmul.mubr.msk.bf16.gmra.mxu1 %vm634_vm1, %v8220_v42  ;;  %v945_v3 = vpop.f32.mrf.mxu0  ;;  %v8947_v11 = vadd.f32 %v7614_v2, %v7548_v60  ;;  %v8229_v2 = vld [vmem:[%s8664_s8 + $0x60] sm:$0xff]  }
 0x132   : > { %7848 = vmatprep.mubr.msk.bf16.mxu1 %vm634_vm1, %v8222_v53  ;;  %v1493_v7 = vpop.f32.mrf.mxu1 }
 0x133   : > { %v7549_v21 = vpop.f32.mrf.mxu0  ;;  %v8952_v19 = vadd.f32 %v1493_v7, %v945_v3 }
 0x134   : > { %v7615_v28 = vpop.f32.mrf.mxu1 }
 0x135   : > { %v948_v31 = vpop.f32.mrf.mxu0  ;;  %v8954_v36 = vadd.f32 %v7615_v28, %v7549_v21  ;;  %v8228_v21 = vld [vmem:[%s8669_s19 + $0x58] sm:$0xff]  }
 0x136   : > { %v1496_v37 = vpop.f32.mrf.mxu1 }
 0x137   : > { %v7552_v42 = vpop.f32.mrf.mxu0  ;;  %7783 = vmatmul.mubr.msk.bf16.gmra.mxu0 %vm634_vm1, %v8223_v9  ;;  %v8958_v47 = vadd.f32 %v1496_v37, %v948_v31 }
 0x138   : > { %7786 = vmatprep.mubr.msk.bf16.mxu0 %vm634_vm1, %v8225_v14  ;;  %v7618_v48 = vpop.f32.mrf.mxu1 }
 0x139   : > { %9794 = vst [vmem:[#allocation2_spill] sm:$0xff] %v8958_v47  ;;  %7849 = vmatmul.mubr.msk.bf16.gmra.mxu1 %vm634_vm1, %v8224_v24  ;;  %v961_v53 = vpop.f32.mrf.mxu0  ;;  %v8963_v60 = vadd.f32 %v7618_v48, %v7552_v42  ;;  %v8230_v24 = vld [vmem:[%s8669_s19 + $0x60] sm:$0xff]  }
 0x13a   : > { %7852 = vmatprep.mubr.msk.bf16.mxu1 %vm634_vm1, %v8226_v20  ;;  %v1509_v3 = vpop.f32.mrf.mxu1 }
 0x13b   : > { %9795 = vst [vmem:[#allocation3_spill] sm:$0xff] %v8963_v60  ;;  %v7553_v7 = vpop.f32.mrf.mxu0  ;;  %v8968_v9 = vadd.f32 %v1509_v3, %v961_v53  ;;  %v8231_v53 = vld [vmem:[%s8664_s8 + $0x68] sm:$0xff]  }
 0x13c   : > { %v7619_v28 = vpop.f32.mrf.mxu1 }
 0x13d   : > { %9796 = vst [vmem:[#allocation4_spill] sm:$0xff] %v8968_v9  ;;  %v964_v31 = vpop.f32.mrf.mxu0  ;;  %v8970_v14 = vadd.f32 %v7619_v28, %v7553_v7  ;;  %v8233_v7 = vld [vmem:[%s8664_s8 + $0x70] sm:$0xff]   ;;  %v8232_v9 = vld [vmem:[%s8669_s19 + $0x68] sm:$0xff]  }
 0x13e   : > { %v1512_v37 = vpop.f32.mrf.mxu1 }
 0x13f   : > { %9797 = vst [vmem:[#allocation5_spill] sm:$0xff] %v8970_v14  ;;  %v7556_v47 = vpop.f32.mrf.mxu0  ;;  %7787 = vmatmul.mubr.msk.bf16.gmra.mxu0 %vm634_vm1, %v8227_v56  ;;  %v8974_v42 = vadd.f32 %v1512_v37, %v964_v31 }
 0x140   : > { %7790 = vmatprep.mubr.msk.bf16.mxu0 %vm634_vm1, %v8229_v2  ;;  %v7622_v20 = vpop.f32.mrf.mxu1  ;;  %v8234_v2 = vld [vmem:[%s8669_s19 + $0x70] sm:$0xff]  }
 0x141   : > { %9798 = vst [vmem:[#allocation6_spill] sm:$0xff] %v8974_v42  ;;  %7853 = vmatmul.mubr.msk.bf16.gmra.mxu1 %vm634_vm1, %v8228_v21  ;;  %v977_v48 = vpop.f32.mrf.mxu0  ;;  %v8979_v3 = vadd.f32 %v7622_v20, %v7556_v47 }
 0x142   : > { %7856 = vmatprep.mubr.msk.bf16.mxu1 %vm634_vm1, %v8230_v24  ;;  %v1525_v28 = vpop.f32.mrf.mxu1 }
 0x143   : > { %9799 = vst [vmem:[#allocation7_spill] sm:$0xff] %v8979_v3  ;;  %v7557_v14 = vpop.f32.mrf.mxu0  ;;  %v8984_v60 = vadd.f32 %v1525_v28, %v977_v48 }
 0x144   : > { %v7623_v56 = vpop.f32.mrf.mxu1 }
 0x145   : > { %9800 = vst [vmem:[#allocation8_spill] sm:$0xff] %v8984_v60  ;;  %v980_v31 = vpop.f32.mrf.mxu0  ;;  %v8986_v37 = vadd.f32 %v7623_v56, %v7557_v14  ;;  %v8235_v56 = vld [vmem:[%s8664_s8 + $0x78] sm:$0xff]   ;;  %v8237_v60 = vld [vmem:[%s8664_s8 + $0x80] sm:$0xff]  }
 0x146   : > { %v1528_v21 = vpop.f32.mrf.mxu1 }
 0x147   : > { %9801 = vst [vmem:[#allocation9_spill] sm:$0xff] %v8986_v37  ;;  %v7560_v42 = vpop.f32.mrf.mxu0  ;;  %7791 = vmatmul.mubr.msk.bf16.gmra.mxu0 %vm634_vm1, %v8231_v53  ;;  %v8990_v47 = vadd.f32 %v1528_v21, %v980_v31  ;;  %v8236_v21 = vld [vmem:[%s8669_s19 + $0x78] sm:$0xff]  }
 0x148   : > { %7794 = vmatprep.mubr.msk.bf16.mxu0 %vm634_vm1, %v8233_v7  ;;  %v7626_v24 = vpop.f32.mrf.mxu1  ;;  %v8238_v7 = vld [vmem:[%s8669_s19 + $0x80] sm:$0xff]  }
 0x149   : > { %9802 = vst [vmem:[#allocation10_spill] sm:$0xff] %v8990_v47  ;;  %7857 = vmatmul.mubr.msk.bf16.gmra.mxu1 %vm634_vm1, %v8232_v9  ;;  %v993_v20 = vpop.f32.mrf.mxu0  ;;  %v8994_v48 = vadd.f32 %v7626_v24, %v7560_v42 }
 0x14a   : > { %7860 = vmatprep.mubr.msk.bf16.mxu1 %vm634_vm1, %v8234_v2  ;;  %v1541_v14 = vpop.f32.mrf.mxu1 }
 0x14b   : > { %9803 = vst [vmem:[#allocation11_spill] sm:$0xff] %v8994_v48  ;;  %v7561_v28 = vpop.f32.mrf.mxu0  ;;  %v8998_v37 = vadd.f32 %v1541_v14, %v993_v20 }
 0x14c   : > { %v7627_v53 = vpop.f32.mrf.mxu1 }
 0x14d   : > { %9804 = vst [vmem:[#allocation12_spill] sm:$0xff] %v8998_v37  ;;  %v996_v31 = vpop.f32.mrf.mxu0  ;;  %v9002_v47 = vadd.f32 %v7627_v53, %v7561_v28  ;;  %v8239_v53 = vld [vmem:[%s8664_s8 + $0x88] sm:$0xff]   ;;  %v8241_v37 = vld [vmem:[%s8664_s8 + $0x90] sm:$0xff]  }
 0x14e   : > { %v1544_v9 = vpop.f32.mrf.mxu1 }
 0x14f   : > { %9805 = vst [vmem:[#allocation13_spill] sm:$0xff] %v9002_v47  ;;  %v7564_v3 = vpop.f32.mrf.mxu0  ;;  %7795 = vmatmul.mubr.msk.bf16.gmra.mxu0 %vm634_vm1, %v8235_v56  ;;  %v9006_v42 = vadd.f32 %v1544_v9, %v996_v31  ;;  %v8240_v9 = vld [vmem:[%s8669_s19 + $0x88] sm:$0xff]  }
 0x150   : > { %7798 = vmatprep.mubr.msk.bf16.mxu0 %vm634_vm1, %v8237_v60  ;;  %v7630_v2 = vpop.f32.mrf.mxu1  ;;  %v8242_v60 = vld [vmem:[%s8669_s19 + $0x90] sm:$0xff]  }
 0x151   : > { %9806 = vst [vmem:[#allocation14_spill] sm:$0xff] %v9006_v42  ;;  %7861 = vmatmul.mubr.msk.bf16.gmra.mxu1 %vm634_vm1, %v8236_v21  ;;  %v1009_v24 = vpop.f32.mrf.mxu0  ;;  %v9010_v20 = vadd.f32 %v7630_v2, %v7564_v3 }
 0x152   : > { %7864 = vmatprep.mubr.msk.bf16.mxu1 %vm634_vm1, %v8238_v7  ;;  %v1557_v14 = vpop.f32.mrf.mxu1 }
 0x153   : > { %v7565_v28 = vpop.f32.mrf.mxu0  ;;  %v9014_v47 = vadd.f32 %v1557_v14, %v1009_v24 }
 0x154   : > { %v7631_v56 = vpop.f32.mrf.mxu1 }
 0x155   : > { %v1012_v31 = vpop.f32.mrf.mxu0  ;;  %v9018_v42 = vadd.f32 %v7631_v56, %v7565_v28 }
 0x156   : > { %v1560_v48 = vpop.f32.mrf.mxu1 }
 0x157   : > { %9807 = vst [vmem:[#allocation15_spill] sm:$0xff] %v9018_v42  ;;  %v7636_v21 = vpop.f32.mrf.mxu0  ;;  %7799 = vmatmul.mubr.msk.bf16.gmra.mxu0 %vm634_vm1, %v8239_v53  ;;  %v9022_v3 = vadd.f32 %v1560_v48, %v1012_v31  ;;  %v8243_v48 = vld [vmem:[%s8664_s8 + $0x98] sm:$0xff]  }
 0x158   : > { %v2190_v7 = vadd.f32 %v7636_v21, %v8758_v55  ;;  %7802 = vmatprep.mubr.msk.bf16.mxu0 %vm634_vm1, %v8241_v37  ;;  %v8245_v21 = vld [vmem:[%s8664_s8 + $0xa0] sm:$0xff]   ;;  %v8244_v42 = vld [vmem:[%s8669_s19 + $0x98] sm:$0xff]  }
 0x159   : > { %9808 = vst [vmem:[#allocation16_spill] sm:$0xff] %v9022_v3  ;;  %v7702_v2 = vpop.f32.mrf.mxu1  ;;  %7865 = vmatmul.mubr.msk.bf16.gmra.mxu1 %vm634_vm1, %v8240_v9  ;;  %v1933_v24 = vpop.f32.mrf.mxu0 }
 0x15a   : > { %v9027_v14 = vadd.f32 %v7702_v2, %v2190_v7  ;;  %v2188_v28 = vadd.f32 %v1933_v24, %v8762_v59  ;;  %7868 = vmatprep.mubr.msk.bf16.mxu1 %vm634_vm1, %v8242_v60  ;;  %v8246_v2 = vld [vmem:[%s8669_s19 + $0xa0] sm:$0xff]  }
 0x15b   : > { %v2613_v56 = vpop.f32.mrf.mxu1  ;;  %v7637_v53 = vpop.f32.mrf.mxu0 }
 0x15c   : > { %v9032_v31 = vadd.f32 %v2613_v56, %v2188_v28  ;;  %v2191_v55 = vadd.f32 %v7637_v53, %v8766_v0 }
 0x15d   : > { %v7703_v37 = vpop.f32.mrf.mxu1  ;;  %v1936_v3 = vpop.f32.mrf.mxu0 }
 0x15e   : > { %v9037_v9 = vadd.f32 %v7703_v37, %v2191_v55  ;;  %v2189_v7 = vadd.f32 %v1936_v3, %v8770_v4  ;;  %v8247_v55 = vld [vmem:[%s8664_s8 + $0xa8] sm:$0xff]  }
 0x15f   : > { %v2616_v59 = vpop.f32.mrf.mxu1  ;;  %v7640_v24 = vpop.f32.mrf.mxu0  ;;  %7803 = vmatmul.mubr.msk.bf16.gmra.mxu0 %vm634_vm1, %v8243_v48 }
 0x160   : > { %v9042_v60 = vadd.f32 %v2616_v59, %v2189_v7  ;;  %v2194_v28 = vadd.f32 %v7640_v24, %v8774_v8  ;;  %7806 = vmatprep.mubr.msk.bf16.mxu0 %vm634_vm1, %v8245_v21  ;;  %v8249_v7 = vld [vmem:[%s8664_s8 + $0xb0] sm:$0xff]   ;;  %v8248_v24 = vld [vmem:[%s8669_s19 + $0xa8] sm:$0xff]  }
 0x161   : > { %v7706_v0 = vpop.f32.mrf.mxu1  ;;  %7869 = vmatmul.mubr.msk.bf16.gmra.mxu1 %vm634_vm1, %v8244_v42  ;;  %v1949_v56 = vpop.f32.mrf.mxu0 }
 0x162   : > { %v9047_v4 = vadd.f32 %v7706_v0, %v2194_v28  ;;  %v2192_v3 = vadd.f32 %v1949_v56, %v8778_v12  ;;  %7872 = vmatprep.mubr.msk.bf16.mxu1 %vm634_vm1, %v8246_v2  ;;  %v8250_v0 = vld [vmem:[%s8669_s19 + $0xb0] sm:$0xff]  }
 0x163   : > { %v2629_v53 = vpop.f32.mrf.mxu1  ;;  %v7641_v48 = vpop.f32.mrf.mxu0 }
 0x164   : > { %v9052_v37 = vadd.f32 %v2629_v53, %v2192_v3  ;;  %v2195_v8 = vadd.f32 %v7641_v48, %v8782_v17 }
 0x165   : > { %v7707_v21 = vpop.f32.mrf.mxu1  ;;  %v1952_v59 = vpop.f32.mrf.mxu0 }
 0x166   : > { %v9057_v42 = vadd.f32 %v7707_v21, %v2195_v8  ;;  %v2193_v28 = vadd.f32 %v1952_v59, %v8786_v22  ;;  %v8251_v21 = vld [vmem:[%s8664_s8 + $0xb8] sm:$0xff]  }
 0x167   : > { %v2632_v12 = vpop.f32.mrf.mxu1  ;;  %v7644_v56 = vpop.f32.mrf.mxu0  ;;  %7807 = vmatmul.mubr.msk.bf16.gmra.mxu0 %vm634_vm1, %v8247_v55 }
 0x168   : > { %v9062_v2 = vadd.f32 %v2632_v12, %v2193_v28  ;;  %v2198_v3 = vadd.f32 %v7644_v56, %v8790_v25  ;;  %7810 = vmatprep.mubr.msk.bf16.mxu0 %vm634_vm1, %v8249_v7  ;;  %v8253_v28 = vld [vmem:[%s8664_s8 + $0xc0] sm:$0xff]   ;;  %v8252_v56 = vld [vmem:[%s8669_s19 + $0xb8] sm:$0xff]  }
 0x169   : > { %v7710_v17 = vpop.f32.mrf.mxu1  ;;  %7873 = vmatmul.mubr.msk.bf16.gmra.mxu1 %vm634_vm1, %v8248_v24  ;;  %v1965_v53 = vpop.f32.mrf.mxu0 }
 0x16a   : > { %v9067_v22 = vadd.f32 %v7710_v17, %v2198_v3  ;;  %v2196_v48 = vadd.f32 %v1965_v53, %v8794_v29  ;;  %7876 = vmatprep.mubr.msk.bf16.mxu1 %vm634_vm1, %v8250_v0  ;;  %v8254_v17 = vld [vmem:[%s8669_s19 + $0xc0] sm:$0xff]  }
 0x16b   : > { %v2645_v8 = vpop.f32.mrf.mxu1  ;;  %v7645_v55 = vpop.f32.mrf.mxu0 }
 0x16c   : > { %v9072_v59 = vadd.f32 %v2645_v8, %v2196_v48  ;;  %v2199_v25 = vadd.f32 %v7645_v55, %v8798_v34 }
 0x16d   : > { %v7711_v7 = vpop.f32.mrf.mxu1  ;;  %v1968_v12 = vpop.f32.mrf.mxu0 }
 0x16e   : > { %v9077_v24 = vadd.f32 %v7711_v7, %v2199_v25  ;;  %v2197_v3 = vadd.f32 %v1968_v12, %v8802_v38  ;;  %v8255_v7 = vld [vmem:[%s8664_s8 + $0xc8] sm:$0xff]  }
 0x16f   : > { %v2648_v29 = vpop.f32.mrf.mxu1  ;;  %v7648_v53 = vpop.f32.mrf.mxu0  ;;  %7811 = vmatmul.mubr.msk.bf16.gmra.mxu0 %vm634_vm1, %v8251_v21 }
 0x170   : > { %v9082_v0 = vadd.f32 %v2648_v29, %v2197_v3  ;;  %v2202_v48 = vadd.f32 %v7648_v53, %v8806_v41  ;;  %7814 = vmatprep.mubr.msk.bf16.mxu0 %vm634_vm1, %v8253_v28  ;;  %v8257_v3 = vld [vmem:[%s8664_s8 + $0xd0] sm:$0xff]   ;;  %v8256_v53 = vld [vmem:[%s8669_s19 + $0xc8] sm:$0xff]  }
 0x171   : > { %v7714_v34 = vpop.f32.mrf.mxu1  ;;  %7877 = vmatmul.mubr.msk.bf16.gmra.mxu1 %vm634_vm1, %v8252_v56  ;;  %v1981_v8 = vpop.f32.mrf.mxu0 }
 0x172   : > { %v9087_v38 = vadd.f32 %v7714_v34, %v2202_v48  ;;  %v2200_v55 = vadd.f32 %v1981_v8, %v8810_v45  ;;  %7880 = vmatprep.mubr.msk.bf16.mxu1 %vm634_vm1, %v8254_v17  ;;  %v8258_v34 = vld [vmem:[%s8669_s19 + $0xd0] sm:$0xff]  }
 0x173   : > { %v2661_v25 = vpop.f32.mrf.mxu1  ;;  %v7649_v21 = vpop.f32.mrf.mxu0 }
 0x174   : > { %v9092_v12 = vadd.f32 %v2661_v25, %v2200_v55  ;;  %v2203_v41 = vadd.f32 %v7649_v21, %v8814_v50 }
 0x175   : > { %v7715_v28 = vpop.f32.mrf.mxu1  ;;  %v1984_v29 = vpop.f32.mrf.mxu0 }
 0x176   : > { %v9097_v56 = vadd.f32 %v7715_v28, %v2203_v41  ;;  %v2201_v48 = vadd.f32 %v1984_v29, %v8818_v54  ;;  %v8259_v28 = vld [vmem:[%s8664_s8 + $0xd8] sm:$0xff]  }
 0x177   : > { %v2664_v45 = vpop.f32.mrf.mxu1  ;;  %v7652_v8 = vpop.f32.mrf.mxu0  ;;  %7815 = vmatmul.mubr.msk.bf16.gmra.mxu0 %vm634_vm1, %v8255_v7 }
 0x178   : > { %v9102_v17 = vadd.f32 %v2664_v45, %v2201_v48  ;;  %v2206_v55 = vadd.f32 %v7652_v8, %v8822_v58  ;;  %7818 = vmatprep.mubr.msk.bf16.mxu0 %vm634_vm1, %v8257_v3  ;;  %v8261_v48 = vld [vmem:[%s8664_s8 + $0xe0] sm:$0xff]   ;;  %v8260_v8 = vld [vmem:[%s8669_s19 + $0xd8] sm:$0xff]  }
 0x179   : > { %v7718_v50 = vpop.f32.mrf.mxu1  ;;  %7881 = vmatmul.mubr.msk.bf16.gmra.mxu1 %vm634_vm1, %v8256_v53  ;;  %v1997_v25 = vpop.f32.mrf.mxu0 }
 0x17a   : > { %v9107_v54 = vadd.f32 %v7718_v50, %v2206_v55  ;;  %v2204_v21 = vadd.f32 %v1997_v25, %v8826_v63  ;;  %7884 = vmatprep.mubr.msk.bf16.mxu1 %vm634_vm1, %v8258_v34  ;;  %v8262_v50 = vld [vmem:[%s8669_s19 + $0xe0] sm:$0xff]  }
 0x17b   : > { %v2677_v41 = vpop.f32.mrf.mxu1  ;;  %v7653_v7 = vpop.f32.mrf.mxu0 }
 0x17c   : > { %v9112_v29 = vadd.f32 %v2677_v41, %v2204_v21  ;;  %v2207_v58 = vadd.f32 %v7653_v7, %v8830_v6 }
 0x17d   : > { %v7719_v3 = vpop.f32.mrf.mxu1  ;;  %v2000_v45 = vpop.f32.mrf.mxu0 }
 0x17e   : > { %v9117_v53 = vadd.f32 %v7719_v3, %v2207_v58  ;;  %v2205_v55 = vadd.f32 %v2000_v45, %v8834_v13  ;;  %v8263_v3 = vld [vmem:[%s8664_s8 + $0xe8] sm:$0xff]  }
 0x17f   : > { %v2680_v63 = vpop.f32.mrf.mxu1  ;;  %v7656_v25 = vpop.f32.mrf.mxu0  ;;  %7819 = vmatmul.mubr.msk.bf16.gmra.mxu0 %vm634_vm1, %v8259_v28 }
 0x180   : > { %v9122_v34 = vadd.f32 %v2680_v63, %v2205_v55  ;;  %v2210_v21 = vadd.f32 %v7656_v25, %v8838_v16  ;;  %7822 = vmatprep.mubr.msk.bf16.mxu0 %vm634_vm1, %v8261_v48  ;;  %v8265_v55 = vld [vmem:[%s8664_s8 + $0xf0] sm:$0xff]   ;;  %v8264_v25 = vld [vmem:[%s8669_s19 + $0xe8] sm:$0xff]  }
 0x181   : > { %v7722_v6 = vpop.f32.mrf.mxu1  ;;  %7885 = vmatmul.mubr.msk.bf16.gmra.mxu1 %vm634_vm1, %v8260_v8  ;;  %v2013_v41 = vpop.f32.mrf.mxu0 }
 0x182   : > { %v9127_v13 = vadd.f32 %v7722_v6, %v2210_v21  ;;  %v2208_v7 = vadd.f32 %v2013_v41, %v8842_v23  ;;  %7888 = vmatprep.mubr.msk.bf16.mxu1 %vm634_vm1, %v8262_v50  ;;  %v8266_v6 = vld [vmem:[%s8669_s19 + $0xf0] sm:$0xff]  }
 0x183   : > { %v2693_v58 = vpop.f32.mrf.mxu1  ;;  %v7657_v28 = vpop.f32.mrf.mxu0 }
 0x184   : > { %v9132_v45 = vadd.f32 %v2693_v58, %v2208_v7  ;;  %v2211_v16 = vadd.f32 %v7657_v28, %v8846_v30 }
 0x185   : > { %v7723_v48 = vpop.f32.mrf.mxu1  ;;  %v2016_v63 = vpop.f32.mrf.mxu0 }
 0x186   : > { %v9137_v8 = vadd.f32 %v7723_v48, %v2211_v16  ;;  %v2209_v21 = vadd.f32 %v2016_v63, %v8850_v35  ;;  %v8267_v48 = vld [vmem:[%s8664_s8 + $0xf8] sm:$0xff]  }
 0x187   : > { %v2696_v23 = vpop.f32.mrf.mxu1  ;;  %v7660_v41 = vpop.f32.mrf.mxu0  ;;  %7823 = vmatmul.mubr.msk.bf16.gmra.mxu0 %vm634_vm1, %v8263_v3 }
 0x188   : > { %v9142_v50 = vadd.f32 %v2696_v23, %v2209_v21  ;;  %v2214_v7 = vadd.f32 %v7660_v41, %v8854_v39  ;;  %7826 = vmatprep.mubr.msk.bf16.mxu0 %vm634_vm1, %v8265_v55  ;;  %v8269_v21 = vld [vmem:[%s8882_s13] sm:$0xff]   ;;  %v8268_v41 = vld [vmem:[%s8669_s19 + $0xf8] sm:$0xff]  }
 0x189   : > { %v7726_v30 = vpop.f32.mrf.mxu1  ;;  %7889 = vmatmul.mubr.msk.bf16.gmra.mxu1 %vm634_vm1, %v8264_v25  ;;  %v2029_v58 = vpop.f32.mrf.mxu0 }
 0x18a   : > { %v9147_v35 = vadd.f32 %v7726_v30, %v2214_v7  ;;  %v2212_v28 = vadd.f32 %v2029_v58, %v8858_v44  ;;  %7892 = vmatprep.mubr.msk.bf16.mxu1 %vm634_vm1, %v8266_v6  ;;  %v8270_v30 = vld [vmem:[%s8889_s16] sm:$0xff]  }
 0x18b   : > { %v2709_v16 = vpop.f32.mrf.mxu1  ;;  %v7661_v3 = vpop.f32.mrf.mxu0 }
 0x18c   : > { %v9152_v63 = vadd.f32 %v2709_v16, %v2212_v28  ;;  %v2215_v39 = vadd.f32 %v7661_v3, %v8862_v51 }
 0x18d   : > { %v7727_v55 = vpop.f32.mrf.mxu1  ;;  %v2032_v23 = vpop.f32.mrf.mxu0 }
 0x18e   : > { %v9157_v25 = vadd.f32 %v7727_v55, %v2215_v39  ;;  %v2213_v7 = vadd.f32 %v2032_v23, %v8866_v57  ;;  %v8271_v55 = vld [vmem:[%s8882_s13 + $0x8] sm:$0xff]  }
 0x18f   : > { %v2712_v44 = vpop.f32.mrf.mxu1  ;;  %v7664_v58 = vpop.f32.mrf.mxu0  ;;  %7827 = vmatmul.mubr.msk.bf16.gmra.mxu0 %vm634_vm1, %v8267_v48 }
 0x190   : > { %v9162_v6 = vadd.f32 %v2712_v44, %v2213_v7  ;;  %v2218_v28 = vadd.f32 %v7664_v58, %v8870_v62  ;;  %7898 = vmatprep.mubr.msk.bf16.mxu0 %vm634_vm1, %v8269_v21  ;;  %v8273_v7 = vld [vmem:[%s8882_s13 + $0x10] sm:$0xff]   ;;  %v8272_v58 = vld [vmem:[%s8889_s16 + $0x8] sm:$0xff]  }
 0x191   : > { %v7730_v51 = vpop.f32.mrf.mxu1  ;;  %7893 = vmatmul.mubr.msk.bf16.gmra.mxu1 %vm634_vm1, %v8268_v41  ;;  %v2045_v16 = vpop.f32.mrf.mxu0 }
 0x192   : > { %v9167_v57 = vadd.f32 %v7730_v51, %v2218_v28  ;;  %v2216_v3 = vadd.f32 %v2045_v16, %v8874_v5  ;;  %7964 = vmatprep.mubr.msk.bf16.mxu1 %vm634_vm1, %v8270_v30  ;;  %v8274_v51 = vld [vmem:[%s8889_s16 + $0x10] sm:$0xff]  }
 0x193   : > { %v2725_v39 = vpop.f32.mrf.mxu1  ;;  %v7665_v48 = vpop.f32.mrf.mxu0 }
 0x194   : > { %v9172_v23 = vadd.f32 %v2725_v39, %v2216_v3  ;;  %v2219_v62 = vadd.f32 %v7665_v48, %v8884_v18 }
 0x195   : > { %v7731_v21 = vpop.f32.mrf.mxu1  ;;  %v2048_v44 = vpop.f32.mrf.mxu0 }
 0x196   : > { %v9177_v41 = vadd.f32 %v7731_v21, %v2219_v62  ;;  %v2217_v28 = vadd.f32 %v2048_v44, %v8894_v27  ;;  %v8275_v21 = vld [vmem:[%s8882_s13 + $0x18] sm:$0xff]  }
 0x197   : > { %v2728_v5 = vpop.f32.mrf.mxu1  ;;  %v7668_v16 = vpop.f32.mrf.mxu0  ;;  %7899 = vmatmul.mubr.msk.bf16.vlgmr.msra.gmra.mxu0 %vm634_vm1, %v8271_v55 }
 0x198   : > { %v9182_v30 = vadd.f32 %v2728_v5, %v2217_v28  ;;  %v2222_v3 = vadd.f32 %v7668_v16, %v8899_v32  ;;  %7902 = vmatprep.mubr.msk.bf16.mxu0 %vm634_vm1, %v8273_v7  ;;  %v8277_v28 = vld [vmem:[%s8882_s13 + $0x20] sm:$0xff]   ;;  %v8276_v16 = vld [vmem:[%s8889_s16 + $0x18] sm:$0xff]  }
 0x199   : > { %v7734_v18 = vpop.f32.mrf.mxu1  ;;  %7965 = vmatmul.mubr.msk.bf16.vlgmr.msra.gmra.mxu1 %vm634_vm1, %v8272_v58  ;;  %v2061_v39 = vpop.f32.mrf.mxu0 }
 0x19a   : > { %v9187_v27 = vadd.f32 %v7734_v18, %v2222_v3  ;;  %v2220_v48 = vadd.f32 %v2061_v39, %v8904_v40  ;;  %7968 = vmatprep.mubr.msk.bf16.mxu1 %vm634_vm1, %v8274_v51  ;;  %v8278_v18 = vld [vmem:[%s8889_s16 + $0x20] sm:$0xff]  }
 0x19b   : > { %v2741_v62 = vpop.f32.mrf.mxu1  ;;  %v7669_v55 = vpop.f32.mrf.mxu0 }
 0x19c   : > { %v9192_v44 = vadd.f32 %v2741_v62, %v2220_v48  ;;  %v2223_v32 = vadd.f32 %v7669_v55, %v8906_v46 }
 0x19d   : > { %v7735_v7 = vpop.f32.mrf.mxu1  ;;  %v2064_v5 = vpop.f32.mrf.mxu0 }
 0x19e   : > { %v9197_v58 = vadd.f32 %v7735_v7, %v2223_v32  ;;  %v2221_v3 = vadd.f32 %v2064_v5, %v8910_v52  ;;  %v8279_v7 = vld [vmem:[%s8882_s13 + $0x28] sm:$0xff]  }
 0x19f   : > { %v2744_v40 = vpop.f32.mrf.mxu1  ;;  %v7672_v39 = vpop.f32.mrf.mxu0  ;;  %7903 = vmatmul.mubr.msk.bf16.gmra.mxu0 %vm634_vm1, %v8275_v21 }
 0x1a0   : > { %v9202_v51 = vadd.f32 %v2744_v40, %v2221_v3  ;;  %v2226_v48 = vadd.f32 %v7672_v39, %v8915_v61  ;;  %7906 = vmatprep.mubr.msk.bf16.mxu0 %vm634_vm1, %v8277_v28  ;;  %v8281_v3 = vld [vmem:[%s8882_s13 + $0x30] sm:$0xff]   ;;  %v8280_v39 = vld [vmem:[%s8889_s16 + $0x28] sm:$0xff]  }
 0x1a1   : > { %v7738_v46 = vpop.f32.mrf.mxu1  ;;  %7969 = vmatmul.mubr.msk.bf16.gmra.mxu1 %vm634_vm1, %v8276_v16  ;;  %v2077_v62 = vpop.f32.mrf.mxu0 }
 0x1a2   : > { %v9207_v52 = vadd.f32 %v7738_v46, %v2226_v48  ;;  %v2224_v55 = vadd.f32 %v2077_v62, %v8920_v10  ;;  %7972 = vmatprep.mubr.msk.bf16.mxu1 %vm634_vm1, %v8278_v18  ;;  %v8282_v46 = vld [vmem:[%s8889_s16 + $0x30] sm:$0xff]  }
 0x1a3   : > { %v2757_v32 = vpop.f32.mrf.mxu1  ;;  %v7673_v21 = vpop.f32.mrf.mxu0 }
 0x1a4   : > { %v9212_v5 = vadd.f32 %v2757_v32, %v2224_v55  ;;  %v2227_v61 = vadd.f32 %v7673_v21, %v8922_v15 }
 0x1a5   : > { %v7739_v28 = vpop.f32.mrf.mxu1  ;;  %v2080_v40 = vpop.f32.mrf.mxu0 }
 0x1a6   : > { %v9217_v16 = vadd.f32 %v7739_v28, %v2227_v61  ;;  %v2225_v48 = vadd.f32 %v2080_v40, %v8926_v26  ;;  %v8283_v28 = vld [vmem:[%s8882_s13 + $0x38] sm:$0xff]  }
 0x1a7   : > { %v2760_v10 = vpop.f32.mrf.mxu1  ;;  %v7676_v62 = vpop.f32.mrf.mxu0  ;;  %7907 = vmatmul.mubr.msk.bf16.gmra.mxu0 %vm634_vm1, %v8279_v7 }
 0x1a8   : > { %v9222_v18 = vadd.f32 %v2760_v10, %v2225_v48  ;;  %v2230_v55 = vadd.f32 %v7676_v62, %v8931_v33  ;;  %7910 = vmatprep.mubr.msk.bf16.mxu0 %vm634_vm1, %v8281_v3  ;;  %v8285_v48 = vld [vmem:[%s8882_s13 + $0x40] sm:$0xff]   ;;  %v8284_v62 = vld [vmem:[%s8889_s16 + $0x38] sm:$0xff]  }
 0x1a9   : > { %v7742_v15 = vpop.f32.mrf.mxu1  ;;  %7973 = vmatmul.mubr.msk.bf16.gmra.mxu1 %vm634_vm1, %v8280_v39  ;;  %v2093_v32 = vpop.f32.mrf.mxu0 }
 0x1aa   : > { %v9227_v26 = vadd.f32 %v7742_v15, %v2230_v55  ;;  %v2228_v21 = vadd.f32 %v2093_v32, %v8936_v43  ;;  %7976 = vmatprep.mubr.msk.bf16.mxu1 %vm634_vm1, %v8282_v46  ;;  %v8286_v15 = vld [vmem:[%s8889_s16 + $0x40] sm:$0xff]  }
 0x1ab   : > { %v2773_v61 = vpop.f32.mrf.mxu1  ;;  %v7677_v7 = vpop.f32.mrf.mxu0 }
 0x1ac   : > { %v9232_v40 = vadd.f32 %v2773_v61, %v2228_v21  ;;  %v2231_v33 = vadd.f32 %v7677_v7, %v8938_v49 }
 0x1ad   : > { %v7743_v3 = vpop.f32.mrf.mxu1  ;;  %v2096_v10 = vpop.f32.mrf.mxu0 }
 0x1ae   : > { %v9237_v39 = vadd.f32 %v7743_v3, %v2231_v33  ;;  %v2229_v55 = vadd.f32 %v2096_v10, %v8942_v1  ;;  %v8287_v3 = vld [vmem:[%s8882_s13 + $0x48] sm:$0xff]  }
 0x1af   : > { %v2776_v43 = vpop.f32.mrf.mxu1  ;;  %v7680_v32 = vpop.f32.mrf.mxu0  ;;  %7911 = vmatmul.mubr.msk.bf16.gmra.mxu0 %vm634_vm1, %v8283_v28 }
 0x1b0   : > { %v9242_v46 = vadd.f32 %v2776_v43, %v2229_v55  ;;  %v2234_v21 = vadd.f32 %v7680_v32, %v8947_v11  ;;  %7914 = vmatprep.mubr.msk.bf16.mxu0 %vm634_vm1, %v8285_v48  ;;  %v8289_v55 = vld [vmem:[%s8882_s13 + $0x50] sm:$0xff]   ;;  %v8288_v32 = vld [vmem:[%s8889_s16 + $0x48] sm:$0xff]  }
 0x1b1   : > { %v7746_v49 = vpop.f32.mrf.mxu1  ;;  %7977 = vmatmul.mubr.msk.bf16.gmra.mxu1 %vm634_vm1, %v8284_v62  ;;  %v2109_v61 = vpop.f32.mrf.mxu0 }
 0x1b2   : > { %9809 = vst [vmem:[#allocation17_spill] sm:$0xff] %v9242_v46  ;;  %v9247_v1 = vadd.f32 %v7746_v49, %v2234_v21  ;;  %v2232_v7 = vadd.f32 %v2109_v61, %v8952_v19  ;;  %7980 = vmatprep.mubr.msk.bf16.mxu1 %vm634_vm1, %v8286_v15  ;;  %v9813_v46 = vld [vmem:[#allocation2_spill] sm:$0xff]  ;;  %v8290_v49 = vld [vmem:[%s8889_s16 + $0x50] sm:$0xff]  }
 0x1b3   : > { %v2789_v33 = vpop.f32.mrf.mxu1  ;;  %v7681_v28 = vpop.f32.mrf.mxu0 }
 0x1b4   : > { %9810 = vst [vmem:[#allocation18_spill] sm:$0xff] %v9247_v1  ;;  %v9252_v10 = vadd.f32 %v2789_v33, %v2232_v7  ;;  %v2235_v11 = vadd.f32 %v7681_v28, %v8954_v36  ;;  %v9815_v7 = vld [vmem:[#allocation3_spill] sm:$0xff]  ;;  %v9821_v1 = vld [vmem:[#allocation6_spill] sm:$0xff] }
 0x1b5   : > { %v7747_v48 = vpop.f32.mrf.mxu1  ;;  %v2112_v43 = vpop.f32.mrf.mxu0 }
 0x1b6   : > { %9811 = vst [vmem:[#allocation19_spill] sm:$0xff] %v9252_v10  ;;  %v9257_v62 = vadd.f32 %v7747_v48, %v2235_v11  ;;  %v2233_v21 = vadd.f32 %v2112_v43, %v9813_v46  ;;  %v9817_v11 = vld [vmem:[#allocation4_spill] sm:$0xff]  ;;  %v8292_v10 = vld [vmem:[%s8889_s16 + $0x58] sm:$0xff]  }
 0x1b7   : > { %v2792_v19 = vpop.f32.mrf.mxu1  ;;  %v7684_v61 = vpop.f32.mrf.mxu0  ;;  %7915 = vmatmul.mubr.msk.bf16.gmra.mxu0 %vm634_vm1, %v8287_v3 }
 0x1b8   : > { %9812 = vst [vmem:[#allocation20_spill] sm:$0xff] %v9257_v62  ;;  %v9262_v15 = vadd.f32 %v2792_v19, %v2233_v21  ;;  %v2238_v33 = vadd.f32 %v7684_v61, %v9815_v7  ;;  %7918 = vmatprep.mubr.msk.bf16.mxu0 %vm634_vm1, %v8289_v55  ;;  %v8291_v21 = vld [vmem:[%s8882_s13 + $0x58] sm:$0xff]  }
 0x1b9   : > { %v7750_v36 = vpop.f32.mrf.mxu1  ;;  %7981 = vmatmul.mubr.msk.bf16.gmra.mxu1 %vm634_vm1, %v8288_v32  ;;  %v2125_v28 = vpop.f32.mrf.mxu0  ;;  %v9819_v61 = vld [vmem:[#allocation5_spill] sm:$0xff] }
 0x1ba   : > { %9814 = vst [vmem:[#allocation2_spill] sm:$0xff] %v9262_v15  ;;  %v9267_v46 = vadd.f32 %v7750_v36, %v2238_v33  ;;  %v2236_v48 = vadd.f32 %v2125_v28, %v9817_v11  ;;  %7984 = vmatprep.mubr.msk.bf16.mxu1 %vm634_vm1, %v8290_v49  ;;  %v8293_v15 = vld [vmem:[%s8882_s13 + $0x60] sm:$0xff]  }
 0x1bb   : > { %v2805_v43 = vpop.f32.mrf.mxu1  ;;  %v7685_v3 = vpop.f32.mrf.mxu0  ;;  %v8294_v36 = vld [vmem:[%s8889_s16 + $0x60] sm:$0xff]  }
 0x1bc   : > { %9816 = vst [vmem:[#allocation3_spill] sm:$0xff] %v9267_v46  ;;  %v9272_v19 = vadd.f32 %v2805_v43, %v2236_v48  ;;  %v2239_v7 = vadd.f32 %v7685_v3, %v9819_v61  ;;  %v9823_v48 = vld [vmem:[#allocation7_spill] sm:$0xff]  ;;  %v9829_v46 = vld [vmem:[#allocation10_spill] sm:$0xff] }
 0x1bd   : > { %v7751_v55 = vpop.f32.mrf.mxu1  ;;  %v2128_v62 = vpop.f32.mrf.mxu0 }
 0x1be   : > { %9818 = vst [vmem:[#allocation4_spill] sm:$0xff] %v9272_v19  ;;  %v9277_v32 = vadd.f32 %v7751_v55, %v2239_v7  ;;  %v2237_v33 = vadd.f32 %v2128_v62, %v9821_v1  ;;  %v9825_v62 = vld [vmem:[#allocation8_spill] sm:$0xff]  ;;  %v8296_v19 = vld [vmem:[%s8889_s16 + $0x68] sm:$0xff]  }
 0x1bf   : > { %v2808_v28 = vpop.f32.mrf.mxu1  ;;  %v7688_v11 = vpop.f32.mrf.mxu0  ;;  %7919 = vmatmul.mubr.msk.bf16.gmra.mxu0 %vm634_vm1, %v8291_v21 }
 0x1c0   : > { %9820 = vst [vmem:[#allocation5_spill] sm:$0xff] %v9277_v32  ;;  %v9282_v49 = vadd.f32 %v2808_v28, %v2237_v33  ;;  %v2242_v43 = vadd.f32 %v7688_v11, %v9823_v48  ;;  %7922 = vmatprep.mubr.msk.bf16.mxu0 %vm634_vm1, %v8293_v15  ;;  %v8295_v33 = vld [vmem:[%s8882_s13 + $0x68] sm:$0xff]   ;;  %v9827_v11 = vld [vmem:[#allocation9_spill] sm:$0xff] }
 0x1c1   : > { %v7754_v3 = vpop.f32.mrf.mxu1  ;;  %7985 = vmatmul.mubr.msk.bf16.gmra.mxu1 %vm634_vm1, %v8292_v10  ;;  %v2141_v61 = vpop.f32.mrf.mxu0 }
 0x1c2   : > { %9822 = vst [vmem:[#allocation6_spill] sm:$0xff] %v9282_v49  ;;  %v9287_v1 = vadd.f32 %v7754_v3, %v2242_v43  ;;  %v2240_v7 = vadd.f32 %v2141_v61, %v9825_v62  ;;  %7988 = vmatprep.mubr.msk.bf16.mxu1 %vm634_vm1, %v8294_v36  ;;  %v8297_v49 = vld [vmem:[%s8882_s13 + $0x70] sm:$0xff]  }
 0x1c3   : > { %v2821_v55 = vpop.f32.mrf.mxu1  ;;  %v7689_v21 = vpop.f32.mrf.mxu0  ;;  %v8298_v3 = vld [vmem:[%s8889_s16 + $0x70] sm:$0xff]  }
 0x1c4   : > { %9824 = vst [vmem:[#allocation7_spill] sm:$0xff] %v9287_v1  ;;  %v9292_v28 = vadd.f32 %v2821_v55, %v2240_v7  ;;  %v2243_v48 = vadd.f32 %v7689_v21, %v9827_v11  ;;  %v9831_v7 = vld [vmem:[#allocation11_spill] sm:$0xff]  ;;  %v9835_v1 = vld [vmem:[#allocation14_spill] sm:$0xff] }
 0x1c5   : > { %v7755_v15 = vpop.f32.mrf.mxu1  ;;  %v2144_v32 = vpop.f32.mrf.mxu0 }
 0x1c6   : > { %9826 = vst [vmem:[#allocation8_spill] sm:$0xff] %v9292_v28  ;;  %v9297_v10 = vadd.f32 %v7755_v15, %v2243_v48  ;;  %v2241_v43 = vadd.f32 %v2144_v32, %v9829_v46  ;;  %v9832_v32 = vld [vmem:[#allocation12_spill] sm:$0xff]  ;;  %v8300_v28 = vld [vmem:[%s8889_s16 + $0x78] sm:$0xff]  }
 0x1c7   : > { %v2824_v61 = vpop.f32.mrf.mxu1  ;;  %v7692_v62 = vpop.f32.mrf.mxu0  ;;  %7923 = vmatmul.mubr.msk.bf16.gmra.mxu0 %vm634_vm1, %v8295_v33 }
 0x1c8   : > { %9828 = vst [vmem:[#allocation9_spill] sm:$0xff] %v9297_v10  ;;  %v9302_v36 = vadd.f32 %v2824_v61, %v2241_v43  ;;  %v2246_v55 = vadd.f32 %v7692_v62, %v9831_v7  ;;  %7926 = vmatprep.mubr.msk.bf16.mxu0 %vm634_vm1, %v8297_v49  ;;  %v8299_v43 = vld [vmem:[%s8882_s13 + $0x78] sm:$0xff]  }
 0x1c9   : > { %v7758_v21 = vpop.f32.mrf.mxu1  ;;  %7989 = vmatmul.mubr.msk.bf16.gmra.mxu1 %vm634_vm1, %v8296_v19  ;;  %v2157_v11 = vpop.f32.mrf.mxu0  ;;  %v9833_v62 = vld [vmem:[#allocation13_spill] sm:$0xff] }
 0x1ca   : > { %9830 = vst [vmem:[#allocation10_spill] sm:$0xff] %v9302_v36  ;;  %v9307_v46 = vadd.f32 %v7758_v21, %v2246_v55  ;;  %v2244_v48 = vadd.f32 %v2157_v11, %v9832_v32  ;;  %7992 = vmatprep.mubr.msk.bf16.mxu1 %vm634_vm1, %v8298_v3  ;;  %v8301_v36 = vld [vmem:[%s8882_s13 + $0x80] sm:$0xff]  }
 0x1cb   : > { %v2837_v15 = vpop.f32.mrf.mxu1  ;;  %v7693_v33 = vpop.f32.mrf.mxu0  ;;  %v8302_v21 = vld [vmem:[%s8889_s16 + $0x80] sm:$0xff]  }
 0x1cc   : > { %v9312_v61 = vadd.f32 %v2837_v15, %v2244_v48  ;;  %v2247_v7 = vadd.f32 %v7693_v33, %v9833_v62 }
 0x1cd   : > { %v7759_v49 = vpop.f32.mrf.mxu1  ;;  %v2160_v10 = vpop.f32.mrf.mxu0 }
 0x1ce   : > { %v9317_v19 = vadd.f32 %v7759_v49, %v2247_v7  ;;  %v2245_v55 = vadd.f32 %v2160_v10, %v9835_v1  ;;  %v8303_v7 = vld [vmem:[%s8882_s13 + $0x88] sm:$0xff]  }
 0x1cf   : > { %v2840_v11 = vpop.f32.mrf.mxu1  ;;  %v7696_v32 = vpop.f32.mrf.mxu0  ;;  %7927 = vmatmul.mubr.msk.bf16.gmra.mxu0 %vm634_vm1, %v8299_v43 }
 0x1d0   : > { %9834 = vst [vmem:[#allocation11_spill] sm:$0xff] %v9317_v19  ;;  %v9322_v3 = vadd.f32 %v2840_v11, %v2245_v55  ;;  %v2250_v48 = vadd.f32 %v7696_v32, %v9010_v20  ;;  %7930 = vmatprep.mubr.msk.bf16.mxu0 %vm634_vm1, %v8301_v36  ;;  %v9837_v20 = vld [vmem:[#allocation15_spill] sm:$0xff]  ;;  %v8305_v11 = vld [vmem:[%s8882_s13 + $0x90] sm:$0xff]  }
 0x1d1   : > { %v7762_v15 = vpop.f32.mrf.mxu1  ;;  %7993 = vmatmul.mubr.msk.bf16.gmra.mxu1 %vm634_vm1, %v8300_v28  ;;  %v2173_v33 = vpop.f32.mrf.mxu0  ;;  %v9838_v19 = vld [vmem:[#allocation16_spill] sm:$0xff] }
 0x1d2   : > { %9836 = vst [vmem:[#allocation12_spill] sm:$0xff] %v9322_v3  ;;  %v9327_v1 = vadd.f32 %v7762_v15, %v2250_v48  ;;  %v2248_v10 = vadd.f32 %v2173_v33, %v9014_v47  ;;  %7996 = vmatprep.mubr.msk.bf16.mxu1 %vm634_vm1, %v8302_v21  ;;  %v8304_v3 = vld [vmem:[%s8889_s16 + $0x88] sm:$0xff]   ;;  %v8306_v15 = vld [vmem:[%s8889_s16 + $0x90] sm:$0xff]  }
 0x1d3   : > { %v2853_v62 = vpop.f32.mrf.mxu1  ;;  %v7697_v43 = vpop.f32.mrf.mxu0 }
 0x1d4   : > { %v9332_v49 = vadd.f32 %v2853_v62, %v2248_v10  ;;  %v2251_v55 = vadd.f32 %v7697_v43, %v9837_v20 }
 0x1d5   : > { %v7763_v36 = vpop.f32.mrf.mxu1  ;;  %v2176_v32 = vpop.f32.mrf.mxu0 }
 0x1d6   : > { %v9337_v28 = vadd.f32 %v7763_v36, %v2251_v55  ;;  %v2249_v48 = vadd.f32 %v2176_v32, %v9838_v19  ;;  %v8307_v36 = vld [vmem:[%s8882_s13 + $0x98] sm:$0xff]  }
 0x1d7   : > { %v2856_v47 = vpop.f32.mrf.mxu1  ;;  %v7768_v33 = vpop.f32.mrf.mxu0  ;;  %7931 = vmatmul.mubr.msk.bf16.gmra.mxu0 %vm634_vm1, %v8303_v7 }
 0x1d8   : > { %v9342_v21 = vadd.f32 %v2856_v47, %v2249_v48  ;;  %v3553_v10 = vadd.f32 %v7768_v33, %v9027_v14  ;;  %7934 = vmatprep.mubr.msk.bf16.mxu0 %vm634_vm1, %v8305_v11  ;;  %v8309_v48 = vld [vmem:[%s8882_s13 + $0xa0] sm:$0xff]   ;;  %v8308_v33 = vld [vmem:[%s8889_s16 + $0x98] sm:$0xff]  }
 0x1d9   : > { %v7834_v62 = vpop.f32.mrf.mxu1  ;;  %7997 = vmatmul.mubr.msk.bf16.gmra.mxu1 %vm634_vm1, %v8304_v3  ;;  %v3296_v43 = vpop.f32.mrf.mxu0 }
 0x1da   : > { %v9347_v19 = vadd.f32 %v7834_v62, %v3553_v10  ;;  %v3551_v20 = vadd.f32 %v3296_v43, %v9032_v31  ;;  %8000 = vmatprep.mubr.msk.bf16.mxu1 %vm634_vm1, %v8306_v15  ;;  %v8310_v62 = vld [vmem:[%s8889_s16 + $0xa0] sm:$0xff]  }
 0x1db   : > { %v3976_v55 = vpop.f32.mrf.mxu1  ;;  %v7769_v7 = vpop.f32.mrf.mxu0 }
 0x1dc   : > { %v9352_v32 = vadd.f32 %v3976_v55, %v3551_v20  ;;  %v3554_v14 = vadd.f32 %v7769_v7, %v9037_v9 }
 0x1dd   : > { %v7835_v11 = vpop.f32.mrf.mxu1  ;;  %v3299_v47 = vpop.f32.mrf.mxu0 }
 0x1de   : > { %v9357_v3 = vadd.f32 %v7835_v11, %v3554_v14  ;;  %v3552_v10 = vadd.f32 %v3299_v47, %v9042_v60  ;;  %v8311_v11 = vld [vmem:[%s8882_s13 + $0xa8] sm:$0xff]  }
 0x1df   : > { %v3979_v31 = vpop.f32.mrf.mxu1  ;;  %v7772_v43 = vpop.f32.mrf.mxu0  ;;  %7935 = vmatmul.mubr.msk.bf16.gmra.mxu0 %vm634_vm1, %v8307_v36 }
 0x1e0   : > { %v9362_v15 = vadd.f32 %v3979_v31, %v3552_v10  ;;  %v3557_v20 = vadd.f32 %v7772_v43, %v9047_v4  ;;  %7938 = vmatprep.mubr.msk.bf16.mxu0 %vm634_vm1, %v8309_v48  ;;  %v8313_v10 = vld [vmem:[%s8882_s13 + $0xb0] sm:$0xff]   ;;  %v8312_v43 = vld [vmem:[%s8889_s16 + $0xa8] sm:$0xff]  }
 0x1e1   : > { %v7838_v9 = vpop.f32.mrf.mxu1  ;;  %8001 = vmatmul.mubr.msk.bf16.gmra.mxu1 %vm634_vm1, %v8308_v33  ;;  %v3312_v55 = vpop.f32.mrf.mxu0 }
 0x1e2   : > { %v9367_v60 = vadd.f32 %v7838_v9, %v3557_v20  ;;  %v3555_v7 = vadd.f32 %v3312_v55, %v9052_v37  ;;  %8004 = vmatprep.mubr.msk.bf16.mxu1 %vm634_vm1, %v8310_v62  ;;  %v8314_v9 = vld [vmem:[%s8889_s16 + $0xb0] sm:$0xff]  }
 0x1e3   : > { %v3992_v14 = vpop.f32.mrf.mxu1  ;;  %v7773_v36 = vpop.f32.mrf.mxu0 }
 0x1e4   : > { %v9372_v47 = vadd.f32 %v3992_v14, %v3555_v7  ;;  %v3558_v4 = vadd.f32 %v7773_v36, %v9057_v42 }
 0x1e5   : > { %v7839_v48 = vpop.f32.mrf.mxu1  ;;  %v3315_v31 = vpop.f32.mrf.mxu0 }
 0x1e6   : > { %v9377_v33 = vadd.f32 %v7839_v48, %v3558_v4  ;;  %v3556_v20 = vadd.f32 %v3315_v31, %v9062_v2  ;;  %v8315_v48 = vld [vmem:[%s8882_s13 + $0xb8] sm:$0xff]  }
 0x1e7   : > { %v3995_v37 = vpop.f32.mrf.mxu1  ;;  %v7776_v55 = vpop.f32.mrf.mxu0  ;;  %7939 = vmatmul.mubr.msk.bf16.gmra.mxu0 %vm634_vm1, %v8311_v11 }
 0x1e8   : > { %v9382_v62 = vadd.f32 %v3995_v37, %v3556_v20  ;;  %v3561_v7 = vadd.f32 %v7776_v55, %v9067_v22  ;;  %7942 = vmatprep.mubr.msk.bf16.mxu0 %vm634_vm1, %v8313_v10  ;;  %v8317_v20 = vld [vmem:[%s8882_s13 + $0xc0] sm:$0xff]   ;;  %v8316_v55 = vld [vmem:[%s8889_s16 + $0xb8] sm:$0xff]  }
 0x1e9   : > { %v7842_v42 = vpop.f32.mrf.mxu1  ;;  %8005 = vmatmul.mubr.msk.bf16.gmra.mxu1 %vm634_vm1, %v8312_v43  ;;  %v3328_v14 = vpop.f32.mrf.mxu0 }
 0x1ea   : > { %v9387_v2 = vadd.f32 %v7842_v42, %v3561_v7  ;;  %v3559_v36 = vadd.f32 %v3328_v14, %v9072_v59  ;;  %8008 = vmatprep.mubr.msk.bf16.mxu1 %vm634_vm1, %v8314_v9  ;;  %v8318_v42 = vld [vmem:[%s8889_s16 + $0xc0] sm:$0xff]  }
 0x1eb   : > { %v4008_v4 = vpop.f32.mrf.mxu1  ;;  %v7777_v11 = vpop.f32.mrf.mxu0 }
 0x1ec   : > { %v9392_v31 = vadd.f32 %v4008_v4, %v3559_v36  ;;  %v3562_v22 = vadd.f32 %v7777_v11, %v9077_v24 }
 0x1ed   : > { %v7843_v10 = vpop.f32.mrf.mxu1  ;;  %v3331_v37 = vpop.f32.mrf.mxu0 }
 0x1ee   : > { %v9397_v43 = vadd.f32 %v7843_v10, %v3562_v22  ;;  %v3560_v7 = vadd.f32 %v3331_v37, %v9082_v0  ;;  %v8319_v10 = vld [vmem:[%s8882_s13 + $0xc8] sm:$0xff]  }
 0x1ef   : > { %v4011_v59 = vpop.f32.mrf.mxu1  ;;  %v7780_v14 = vpop.f32.mrf.mxu0  ;;  %7943 = vmatmul.mubr.msk.bf16.gmra.mxu0 %vm634_vm1, %v8315_v48 }
 0x1f0   : > { %v9402_v9 = vadd.f32 %v4011_v59, %v3560_v7  ;;  %v3565_v36 = vadd.f32 %v7780_v14, %v9087_v38  ;;  %7946 = vmatprep.mubr.msk.bf16.mxu0 %vm634_vm1, %v8317_v20  ;;  %v8321_v7 = vld [vmem:[%s8882_s13 + $0xd0] sm:$0xff]   ;;  %v8320_v14 = vld [vmem:[%s8889_s16 + $0xc8] sm:$0xff]  }
 0x1f1   : > { %v7846_v24 = vpop.f32.mrf.mxu1  ;;  %8009 = vmatmul.mubr.msk.bf16.gmra.mxu1 %vm634_vm1, %v8316_v55  ;;  %v3344_v4 = vpop.f32.mrf.mxu0 }
 0x1f2   : > { %v9407_v0 = vadd.f32 %v7846_v24, %v3565_v36  ;;  %v3563_v11 = vadd.f32 %v3344_v4, %v9092_v12  ;;  %8012 = vmatprep.mubr.msk.bf16.mxu1 %vm634_vm1, %v8318_v42  ;;  %v8322_v24 = vld [vmem:[%s8889_s16 + $0xd0] sm:$0xff]  }
 0x1f3   : > { %v4024_v22 = vpop.f32.mrf.mxu1  ;;  %v7781_v48 = vpop.f32.mrf.mxu0 }
 0x1f4   : > { %v9412_v37 = vadd.f32 %v4024_v22, %v3563_v11  ;;  %v3566_v38 = vadd.f32 %v7781_v48, %v9097_v56 }
 0x1f5   : > { %v7847_v20 = vpop.f32.mrf.mxu1  ;;  %v3347_v59 = vpop.f32.mrf.mxu0 }
 0x1f6   : > { %v9417_v55 = vadd.f32 %v7847_v20, %v3566_v38  ;;  %v3564_v36 = vadd.f32 %v3347_v59, %v9102_v17  ;;  %v8323_v20 = vld [vmem:[%s8882_s13 + $0xd8] sm:$0xff]  }
 0x1f7   : > { %v4027_v12 = vpop.f32.mrf.mxu1  ;;  %v7784_v4 = vpop.f32.mrf.mxu0  ;;  %7947 = vmatmul.mubr.msk.bf16.gmra.mxu0 %vm634_vm1, %v8319_v10 }
 0x1f8   : > { %v9422_v42 = vadd.f32 %v4027_v12, %v3564_v36  ;;  %v3569_v11 = vadd.f32 %v7784_v4, %v9107_v54  ;;  %7950 = vmatprep.mubr.msk.bf16.mxu0 %vm634_vm1, %v8321_v7  ;;  %v8325_v36 = vld [vmem:[%s8882_s13 + $0xe0] sm:$0xff]   ;;  %v8324_v4 = vld [vmem:[%s8889_s16 + $0xd8] sm:$0xff]  }
 0x1f9   : > { %v7850_v56 = vpop.f32.mrf.mxu1  ;;  %8013 = vmatmul.mubr.msk.bf16.gmra.mxu1 %vm634_vm1, %v8320_v14  ;;  %v3360_v22 = vpop.f32.mrf.mxu0 }
 0x1fa   : > { %v9427_v17 = vadd.f32 %v7850_v56, %v3569_v11  ;;  %v3567_v48 = vadd.f32 %v3360_v22, %v9112_v29  ;;  %8016 = vmatprep.mubr.msk.bf16.mxu1 %vm634_vm1, %v8322_v24  ;;  %v8326_v56 = vld [vmem:[%s8889_s16 + $0xe0] sm:$0xff]  }
 0x1fb   : > { %v4040_v38 = vpop.f32.mrf.mxu1  ;;  %v7785_v10 = vpop.f32.mrf.mxu0 }
 0x1fc   : > { %v9432_v59 = vadd.f32 %v4040_v38, %v3567_v48  ;;  %v3570_v54 = vadd.f32 %v7785_v10, %v9117_v53 }
 0x1fd   : > { %v7851_v7 = vpop.f32.mrf.mxu1  ;;  %v3363_v12 = vpop.f32.mrf.mxu0 }
 0x1fe   : > { %v9437_v14 = vadd.f32 %v7851_v7, %v3570_v54  ;;  %v3568_v11 = vadd.f32 %v3363_v12, %v9122_v34  ;;  %v8327_v7 = vld [vmem:[%s8882_s13 + $0xe8] sm:$0xff]  }
 0x1ff   : > { %v4043_v29 = vpop.f32.mrf.mxu1  ;;  %v7788_v22 = vpop.f32.mrf.mxu0  ;;  %7951 = vmatmul.mubr.msk.bf16.gmra.mxu0 %vm634_vm1, %v8323_v20 }
 0x200   : > { %v9442_v24 = vadd.f32 %v4043_v29, %v3568_v11  ;;  %v3573_v48 = vadd.f32 %v7788_v22, %v9127_v13  ;;  %7954 = vmatprep.mubr.msk.bf16.mxu0 %vm634_vm1, %v8325_v36  ;;  %v8329_v11 = vld [vmem:[%s8882_s13 + $0xf0] sm:$0xff]   ;;  %v8328_v22 = vld [vmem:[%s8889_s16 + $0xe8] sm:$0xff]  }
 0x201   : > { %v7854_v53 = vpop.f32.mrf.mxu1  ;;  %8017 = vmatmul.mubr.msk.bf16.gmra.mxu1 %vm634_vm1, %v8324_v4  ;;  %v3376_v38 = vpop.f32.mrf.mxu0 }
 0x202   : > { %v9447_v34 = vadd.f32 %v7854_v53, %v3573_v48  ;;  %v3571_v10 = vadd.f32 %v3376_v38, %v9132_v45  ;;  %8020 = vmatprep.mubr.msk.bf16.mxu1 %vm634_vm1, %v8326_v56  ;;  %v8330_v53 = vld [vmem:[%s8889_s16 + $0xf0] sm:$0xff]  }
 0x203   : > { %v4056_v54 = vpop.f32.mrf.mxu1  ;;  %v7789_v20 = vpop.f32.mrf.mxu0 }
 0x204   : > { %v9452_v12 = vadd.f32 %v4056_v54, %v3571_v10  ;;  %v3574_v13 = vadd.f32 %v7789_v20, %v9137_v8 }
 0x205   : > { %v7855_v36 = vpop.f32.mrf.mxu1  ;;  %v3379_v29 = vpop.f32.mrf.mxu0 }
 0x206   : > { %v9457_v4 = vadd.f32 %v7855_v36, %v3574_v13  ;;  %v3572_v48 = vadd.f32 %v3379_v29, %v9142_v50 }
 0x207   : > { %v4059_v45 = vpop.f32.mrf.mxu1  ;;  %v7792_v38 = vpop.f32.mrf.mxu0  ;;  %7955 = vmatmul.mubr.msk.bf16.gmra.mxu0 %vm634_vm1, %v8327_v7  ;;  %v8331_v7 = vld [vmem:[%s8882_s13 + $0xf8] sm:$0xff]  }
 0x208   : > { %v9462_v56 = vadd.f32 %v4059_v45, %v3572_v48  ;;  %v3577_v10 = vadd.f32 %v7792_v38, %v9147_v35  ;;  %7958 = vmatprep.mubr.msk.bf16.mxu0 %vm634_vm1, %v8329_v11  ;;  %v8332_v11 = vld [vmem:[%s8889_s16 + $0xf8] sm:$0xff]  }
 0x209   : > { %v7858_v8 = vpop.f32.mrf.mxu1  ;;  %8021 = vmatmul.mubr.msk.bf16.gmra.mxu1 %vm634_vm1, %v8328_v22  ;;  %v3392_v54 = vpop.f32.mrf.mxu0 }
 0x20a   : > { %v9467_v20 = vadd.f32 %v7858_v8, %v3577_v10  ;;  %v3575_v50 = vadd.f32 %v3392_v54, %v9152_v63  ;;  %8024 = vmatprep.mubr.msk.bf16.mxu1 %vm634_vm1, %v8330_v53 }
 0x20b   : > { %v4072_v13 = vpop.f32.mrf.mxu1  ;;  %v7793_v36 = vpop.f32.mrf.mxu0 }
 0x20c   : > { %v9472_v29 = vadd.f32 %v4072_v13, %v3575_v50  ;;  %v3578_v48 = vadd.f32 %v7793_v36, %v9157_v25 }
 0x20d   : > { %v7859_v35 = vpop.f32.mrf.mxu1  ;;  %v3395_v45 = vpop.f32.mrf.mxu0 }
 0x20e   : > { %v9476_v38 = vadd.f32 %v7859_v35, %v3578_v48  ;;  %v3576_v22 = vadd.f32 %v3395_v45, %v9162_v6 }
 0x20f   : > { %v4075_v10 = vpop.f32.mrf.mxu1  ;;  %v7796_v8 = vpop.f32.mrf.mxu0  ;;  %7959 = vmatmul.mubr.msk.bf16.gmra.mxu0 %vm634_vm1, %v8331_v7 }
 0x210   : > { %v9480_v63 = vadd.f32 %v4075_v10, %v3576_v22  ;;  %v3581_v53 = vadd.f32 %v7796_v8, %v9167_v57 }
 0x211   : > { %v7862_v54 = vpop.f32.mrf.mxu1  ;;  %8025 = vmatmul.mubr.msk.bf16.gmra.mxu1 %vm634_vm1, %v8332_v11  ;;  %v3408_v50 = vpop.f32.mrf.mxu0 }
 0x212   : > { %v9484_v25 = vadd.f32 %v7862_v54, %v3581_v53  ;;  %v3579_v13 = vadd.f32 %v3408_v50, %v9172_v23 }
 0x213   : > { %v4088_v36 = vpop.f32.mrf.mxu1  ;;  %v7797_v48 = vpop.f32.mrf.mxu0 }
 0x214   : > { %v9487_v35 = vadd.f32 %v4088_v36, %v3579_v13  ;;  %v3582_v6 = vadd.f32 %v7797_v48, %v9177_v41 }
 0x215   : > { %v7863_v45 = vpop.f32.mrf.mxu1  ;;  %v3411_v7 = vpop.f32.mrf.mxu0 }
 0x216   : > { %v9490_v22 = vadd.f32 %v7863_v45, %v3582_v6  ;;  %v3580_v57 = vadd.f32 %v3411_v7, %v9182_v30 }
 0x217   : > { %v4091_v10 = vpop.f32.mrf.mxu1  ;;  %v7800_v8 = vpop.f32.mrf.mxu0 }
 0x218   : > { %v9493_v11 = vadd.f32 %v4091_v10, %v3580_v57  ;;  %v3585_v53 = vadd.f32 %v7800_v8, %v9187_v27 }
 0x219   : > { %v7866_v54 = vpop.f32.mrf.mxu1  ;;  %v3424_v23 = vpop.f32.mrf.mxu0 }
 0x21a   : > { %v9496_v50 = vadd.f32 %v7866_v54, %v3585_v53  ;;  %v3583_v13 = vadd.f32 %v3424_v23, %v9192_v44 }
 0x21b   : > { %v4104_v36 = vpop.f32.mrf.mxu1  ;;  %v7801_v41 = vpop.f32.mrf.mxu0 }
 0x21c   : > { %v9499_v48 = vadd.f32 %v4104_v36, %v3583_v13  ;;  %v3586_v6 = vadd.f32 %v7801_v41, %v9197_v58 }
 0x21d   : > { %v7867_v45 = vpop.f32.mrf.mxu1  ;;  %v3427_v30 = vpop.f32.mrf.mxu0 }
 0x21e   : > { %v9502_v7 = vadd.f32 %v7867_v45, %v3586_v6  ;;  %v3584_v57 = vadd.f32 %v3427_v30, %v9202_v51 }
 0x21f   : > { %v4107_v10 = vpop.f32.mrf.mxu1  ;;  %v7804_v27 = vpop.f32.mrf.mxu0 }
 0x220   : > { %v9505_v8 = vadd.f32 %v4107_v10, %v3584_v57  ;;  %v3589_v53 = vadd.f32 %v7804_v27, %v9207_v52 }
 0x221   : > { %v7870_v54 = vpop.f32.mrf.mxu1  ;;  %v3440_v44 = vpop.f32.mrf.mxu0 }
 0x222   : > { %v9508_v23 = vadd.f32 %v7870_v54, %v3589_v53  ;;  %v3587_v13 = vadd.f32 %v3440_v44, %v9212_v5 }
 0x223   : > { %v4120_v36 = vpop.f32.mrf.mxu1  ;;  %v7805_v58 = vpop.f32.mrf.mxu0 }
 0x224   : > { %v9511_v41 = vadd.f32 %v4120_v36, %v3587_v13  ;;  %v3590_v6 = vadd.f32 %v7805_v58, %v9217_v16 }
 0x225   : > { %v7871_v45 = vpop.f32.mrf.mxu1  ;;  %v3443_v51 = vpop.f32.mrf.mxu0 }
 0x226   : > { %v9514_v30 = vadd.f32 %v7871_v45, %v3590_v6  ;;  %v3588_v57 = vadd.f32 %v3443_v51, %v9222_v18 }
 0x227   : > { %v4123_v10 = vpop.f32.mrf.mxu1  ;;  %v7808_v52 = vpop.f32.mrf.mxu0 }
 0x228   : > { %v9517_v27 = vadd.f32 %v4123_v10, %v3588_v57  ;;  %v3593_v53 = vadd.f32 %v7808_v52, %v9227_v26  ;;  %v9843_v57 = vld [vmem:[#allocation17_spill] sm:$0xff] }
 0x229   : > { %v7874_v54 = vpop.f32.mrf.mxu1  ;;  %v3456_v5 = vpop.f32.mrf.mxu0 }
 0x22a   : > { %9839 = vst [vmem:[#allocation13_spill] sm:$0xff] %v9517_v27  ;;  %v9520_v44 = vadd.f32 %v7874_v54, %v3593_v53  ;;  %v3591_v13 = vadd.f32 %v3456_v5, %v9232_v40  ;;  %v9845_v53 = vld [vmem:[#allocation18_spill] sm:$0xff] }
 0x22b   : > { %v4136_v36 = vpop.f32.mrf.mxu1  ;;  %v7809_v16 = vpop.f32.mrf.mxu0 }
 0x22c   : > { %9840 = vst [vmem:[#allocation14_spill] sm:$0xff] %v9520_v44  ;;  %v9523_v58 = vadd.f32 %v4136_v36, %v3591_v13  ;;  %v3594_v6 = vadd.f32 %v7809_v16, %v9237_v39  ;;  %v9847_v13 = vld [vmem:[#allocation19_spill] sm:$0xff] }
 0x22d   : > { %v7875_v45 = vpop.f32.mrf.mxu1  ;;  %v3459_v18 = vpop.f32.mrf.mxu0 }
 0x22e   : > { %9841 = vst [vmem:[#allocation15_spill] sm:$0xff] %v9523_v58  ;;  %v9526_v51 = vadd.f32 %v7875_v45, %v3594_v6  ;;  %v3592_v10 = vadd.f32 %v3459_v18, %v9843_v57  ;;  %v9849_v6 = vld [vmem:[#allocation20_spill] sm:$0xff] }
 0x22f   : > { %v4139_v27 = vpop.f32.mrf.mxu1  ;;  %v7812_v26 = vpop.f32.mrf.mxu0 }
 0x230   : > { %9842 = vst [vmem:[#allocation16_spill] sm:$0xff] %v9526_v51  ;;  %v9529_v52 = vadd.f32 %v4139_v27, %v3592_v10  ;;  %v3597_v54 = vadd.f32 %v7812_v26, %v9845_v53  ;;  %v9851_v27 = vld [vmem:[#allocation2_spill] sm:$0xff] }
 0x231   : > { %v7878_v44 = vpop.f32.mrf.mxu1  ;;  %v3472_v40 = vpop.f32.mrf.mxu0 }
 0x232   : > { %9844 = vst [vmem:[#allocation17_spill] sm:$0xff] %v9529_v52  ;;  %v9532_v5 = vadd.f32 %v7878_v44, %v3597_v54  ;;  %v3595_v36 = vadd.f32 %v3472_v40, %v9847_v13  ;;  %v9853_v44 = vld [vmem:[#allocation3_spill] sm:$0xff] }
 0x233   : > { %v4152_v58 = vpop.f32.mrf.mxu1  ;;  %v7813_v39 = vpop.f32.mrf.mxu0 }
 0x234   : > { %9846 = vst [vmem:[#allocation18_spill] sm:$0xff] %v9532_v5  ;;  %v9535_v16 = vadd.f32 %v4152_v58, %v3595_v36  ;;  %v3598_v45 = vadd.f32 %v7813_v39, %v9849_v6  ;;  %v9855_v58 = vld [vmem:[#allocation4_spill] sm:$0xff] }
 0x235   : > { %v7879_v51 = vpop.f32.mrf.mxu1  ;;  %v3475_v18 = vpop.f32.mrf.mxu0 }
 0x236   : > { %9848 = vst [vmem:[#allocation19_spill] sm:$0xff] %v9535_v16  ;;  %v9538_v57 = vadd.f32 %v7879_v51, %v3598_v45  ;;  %v3596_v10 = vadd.f32 %v3475_v18, %v9851_v27  ;;  %v9857_v51 = vld [vmem:[#allocation5_spill] sm:$0xff] }
 0x237   : > { %v4155_v52 = vpop.f32.mrf.mxu1  ;;  %v7816_v26 = vpop.f32.mrf.mxu0 }
 0x238   : > { %9850 = vst [vmem:[#allocation20_spill] sm:$0xff] %v9538_v57  ;;  %v9541_v53 = vadd.f32 %v4155_v52, %v3596_v10  ;;  %v3601_v54 = vadd.f32 %v7816_v26, %v9853_v44  ;;  %v9859_v52 = vld [vmem:[#allocation6_spill] sm:$0xff] }
 0x239   : > { %v7882_v5 = vpop.f32.mrf.mxu1  ;;  %v3488_v40 = vpop.f32.mrf.mxu0 }
 0x23a   : > { %9852 = vst [vmem:[#allocation2_spill] sm:$0xff] %v9541_v53  ;;  %v9544_v13 = vadd.f32 %v7882_v5, %v3601_v54  ;;  %v3599_v36 = vadd.f32 %v3488_v40, %v9855_v58  ;;  %v9861_v5 = vld [vmem:[#allocation7_spill] sm:$0xff] }
 0x23b   : > { %v4168_v16 = vpop.f32.mrf.mxu1  ;;  %v7817_v39 = vpop.f32.mrf.mxu0 }
 0x23c   : > { %9854 = vst [vmem:[#allocation3_spill] sm:$0xff] %v9544_v13  ;;  %v9547_v6 = vadd.f32 %v4168_v16, %v3599_v36  ;;  %v3602_v45 = vadd.f32 %v7817_v39, %v9857_v51  ;;  %v9862_v16 = vld [vmem:[#allocation8_spill] sm:$0xff] }
 0x23d   : > { %v7883_v57 = vpop.f32.mrf.mxu1  ;;  %v3491_v18 = vpop.f32.mrf.mxu0 }
 0x23e   : > { %9856 = vst [vmem:[#allocation4_spill] sm:$0xff] %v9547_v6  ;;  %v9550_v27 = vadd.f32 %v7883_v57, %v3602_v45  ;;  %v3600_v10 = vadd.f32 %v3491_v18, %v9859_v52  ;;  %v9863_v57 = vld [vmem:[#allocation9_spill] sm:$0xff] }
 0x23f   : > { %v4171_v53 = vpop.f32.mrf.mxu1  ;;  %v7820_v26 = vpop.f32.mrf.mxu0 }
 0x240   : > { %9858 = vst [vmem:[#allocation5_spill] sm:$0xff] %v9550_v27  ;;  %v9553_v44 = vadd.f32 %v4171_v53, %v3600_v10  ;;  %v3605_v54 = vadd.f32 %v7820_v26, %v9861_v5  ;;  %v9865_v53 = vld [vmem:[#allocation10_spill] sm:$0xff] }
 0x241   : > { %v7886_v13 = vpop.f32.mrf.mxu1  ;;  %v3504_v40 = vpop.f32.mrf.mxu0 }
 0x242   : > { %9860 = vst [vmem:[#allocation6_spill] sm:$0xff] %v9553_v44  ;;  %v9556_v58 = vadd.f32 %v7886_v13, %v3605_v54  ;;  %v3603_v36 = vadd.f32 %v3504_v40, %v9862_v16 }
 0x243   : > { %v4184_v6 = vpop.f32.mrf.mxu1  ;;  %v7821_v39 = vpop.f32.mrf.mxu0 }
 0x244   : > { %v9559_v51 = vadd.f32 %v4184_v6, %v3603_v36  ;;  %v3606_v45 = vadd.f32 %v7821_v39, %v9863_v57 }
 0x245   : > { %v7887_v27 = vpop.f32.mrf.mxu1  ;;  %v3507_v18 = vpop.f32.mrf.mxu0 }
 0x246   : > { %v9562_v52 = vadd.f32 %v7887_v27, %v3606_v45  ;;  %v3604_v10 = vadd.f32 %v3507_v18, %v9865_v53  ;;  %v9867_v27 = vld [vmem:[#allocation11_spill] sm:$0xff] }
 0x247   : > { %v4187_v44 = vpop.f32.mrf.mxu1  ;;  %v7824_v26 = vpop.f32.mrf.mxu0 }
 0x248   : > { %9864 = vst [vmem:[#allocation7_spill] sm:$0xff] %v9562_v52  ;;  %v9565_v5 = vadd.f32 %v4187_v44, %v3604_v10  ;;  %v3609_v13 = vadd.f32 %v7824_v26, %v9307_v46  ;;  %v9868_v44 = vld [vmem:[#allocation12_spill] sm:$0xff] }
 0x249   : > { %v7890_v54 = vpop.f32.mrf.mxu1  ;;  %v3520_v40 = vpop.f32.mrf.mxu0 }
 0x24a   : > { %9866 = vst [vmem:[#allocation8_spill] sm:$0xff] %v9565_v5  ;;  %v9568_v16 = vadd.f32 %v7890_v54, %v3609_v13  ;;  %v3607_v6 = vadd.f32 %v3520_v40, %v9312_v61 }
 0x24b   : > { %v4200_v36 = vpop.f32.mrf.mxu1  ;;  %v7825_v39 = vpop.f32.mrf.mxu0 }
 0x24c   : > { %v9571_v57 = vadd.f32 %v4200_v36, %v3607_v6  ;;  %v3610_v45 = vadd.f32 %v7825_v39, %v9867_v27 }
 0x24d   : > { %v7891_v18 = vpop.f32.mrf.mxu1  ;;  %v3523_v53 = vpop.f32.mrf.mxu0 }
 0x24e   : > { %v9574_v52 = vadd.f32 %v7891_v18, %v3610_v45  ;;  %v3608_v10 = vadd.f32 %v3523_v53, %v9868_v44 }
 0x24f   : > { %v4203_v46 = vpop.f32.mrf.mxu1  ;;  %v7828_v26 = vpop.f32.mrf.mxu0 }
 0x250   : > { %v9577_v5 = vadd.f32 %v4203_v46, %v3608_v10  ;;  %v3613_v13 = vadd.f32 %v7828_v26, %v9327_v1 }
 0x251   : > { %v7894_v61 = vpop.f32.mrf.mxu1  ;;  %v3536_v54 = vpop.f32.mrf.mxu0 }
 0x252   : > { %v9580_v40 = vadd.f32 %v7894_v61, %v3613_v13  ;;  %v3611_v6 = vadd.f32 %v3536_v54, %v9332_v49  ;;  %v9596_v61 = vld [vmem:[%s9792_s5] ss:$0 sm:$0xff] }
 0x253   : > { %v4216_v36 = vpop.f32.mrf.mxu1  ;;  %v7829_v39 = vpop.f32.mrf.mxu0 }
 0x254   : > { %v9584_v27 = vadd.f32 %v4216_v36, %v3611_v6  ;;  %v3614_v45 = vadd.f32 %v7829_v39, %v9337_v28 }
 0x255   : > { %v7895_v18 = vpop.f32.mrf.mxu1  ;;  %v3539_v53 = vpop.f32.mrf.mxu0 }
 0x256   : > { %9869 = vst [vmem:[#allocation9_spill] sm:$0xff] %v9584_v27  ;;  %v9587_v44 = vadd.f32 %v7895_v18, %v3614_v45  ;;  %v3612_v1 = vadd.f32 %v3539_v53, %v9342_v21 }
 0x257   : > { %v4219_v10 = vpop.f32.mrf.mxu1  ;;  %v7900_v46 = vpop.f32.mrf.mxu0 }
 0x258   : > { %9870 = vst [vmem:[#allocation10_spill] sm:$0xff] %v9587_v44  ;;  %v9590_v26 = vadd.f32 %v4219_v10, %v3612_v1  ;;  %v4913_v49 = vadd.f32 %v7900_v46, %v9347_v19 }
 0x259   : > { %v7966_v13 = vpop.f32.mrf.mxu1  ;;  %v4656_v28 = vpop.f32.mrf.mxu0 }
 0x25a   : > { %9871 = vst [vmem:[#allocation11_spill] sm:$0xff] %v9590_v26  ;;  %v5593_v54 = vadd.f32 %v7966_v13, %v4913_v49  ;;  %v4911_v6 = vadd.f32 %v4656_v28, %v9352_v32 }
 0x25b   : > { %v5336_v36 = vpop.f32.mrf.mxu1  ;;  %v7901_v21 = vpop.f32.mrf.mxu0 }
 0x25c   : > { %v5664_v39 = vadd.f32 %v9596_v61, %v5593_v54  ;;  %v5591_v45 = vadd.f32 %v5336_v36, %v4911_v6  ;;  %v4914_v18 = vadd.f32 %v7901_v21, %v9357_v3 }
 0x25d   : > { %v7967_v19 = vpop.f32.mrf.mxu1  ;;  %v4659_v53 = vpop.f32.mrf.mxu0 }
 0x25e   : > { %v5594_v1 = vadd.f32 %v7967_v19, %v4914_v18  ;;  %v5792_v10 = vmul.f32 0.2, %v5664_v39  ;;  %v5662_v46 = vadd.f32 %v9596_v61, %v5591_v45  ;;  %v4912_v49 = vadd.f32 %v4659_v53, %v9362_v15 }
 0x25f   : > { %v5339_v13 = vpop.f32.mrf.mxu1  ;;  %v7904_v32 = vpop.f32.mrf.mxu0  ;;  %vm5728_vm2 = vcmp.gt.f32.partialorder %v5664_v39, 0.0 }
 0x260   : > { %v5665_v28 = vadd.f32 %v9596_v61, %v5594_v1  ;;  %v5592_v26 = vadd.f32 %v5339_v13, %v4912_v49  ;;  %v4917_v54 = vadd.f32 %v7904_v32, %v9367_v60  ;;  %v5856_v18 = vsel %vm5728_vm2, %v5664_v39, %v5792_v10 }
 0x261   : > { %v7970_v6 = vpop.f32.mrf.mxu1  ;;  %v4672_v3 = vpop.f32.mrf.mxu0  ;;  %v5790_v19 = vmul.f32 0.2, %v5662_v46  ;;  %vm5726_vm4 = vcmp.gt.f32.partialorder %v5662_v46, 0.0 }
 0x262   : > { %vm5729_vm3 = vcmp.gt.f32.partialorder %v5665_v28, 0.0  ;;  %v5793_v36 = vmul.f32 0.2, %v5665_v28  ;;  %v4915_v21 = vadd.f32 %v4672_v3, %v9372_v47  ;;  %v5663_v45 = vadd.f32 %v9596_v61, %v5592_v26 }
 0x263   : > { %v5597_v15 = vadd.f32 %v7970_v6, %v4917_v54  ;;  %v5352_v53 = vpop.f32.mrf.mxu1  ;;  %v7905_v44 = vpop.f32.mrf.mxu0  ;;  %v5854_v6 = vsel %vm5726_vm4, %v5662_v46, %v5790_v19 }
 0x264   : > { %v5857_v60 = vsel %vm5729_vm3, %v5665_v28, %v5793_v36  ;;  %v5595_v1 = vadd.f32 %v5352_v53, %v4915_v21  ;;  %v4918_v49 = vadd.f32 %v7905_v44, %v9377_v33  ;;  %vm5727_vm5 = vcmp.gt.f32.partialorder %v5663_v45, 0.0 }
 0x265   : > { %v7053_v13 = vpack.c.bf16 %v5857_v60, %v5856_v18  ;;  %v5791_v47 = vmul.f32 0.2, %v5663_v45  ;;  %v5668_v39 = vadd.f32 %v9596_v61, %v5597_v15  ;;  %v7971_v26 = vpop.f32.mrf.mxu1  ;;  %v4675_v10 = vpop.f32.mrf.mxu0 }
 0x266   : > { %v5598_v32 = vadd.f32 %v7971_v26, %v4918_v49  ;;  %v4916_v54 = vadd.f32 %v4675_v10, %v9382_v62  ;;  %v5666_v27 = vadd.f32 %v9596_v61, %v5595_v1 }
 0x267   : > { %7205 = vst [vmem:[%s9611_s15 + $0x8] sm:$0xff] %v7053_v13   ;;  %v5855_v3 = vsel %vm5727_vm5, %v5663_v45, %v5791_v47  ;;  %v5355_v28 = vpop.f32.mrf.mxu1  ;;  %v7908_v36 = vpop.f32.mrf.mxu0  ;;  %v5796_v33 = vmul.f32 0.2, %v5668_v39  ;;  %vm5732_vm6 = vcmp.gt.f32.partialorder %v5668_v39, 0.0 }
 0x268   : > { %v7048_v21 = vpack.c.bf16 %v5855_v3, %v5854_v6  ;;  %v5669_v44 = vadd.f32 %v9596_v61, %v5598_v32  ;;  %v5596_v18 = vadd.f32 %v5355_v28, %v4916_v54  ;;  %v4921_v15 = vadd.f32 %v7908_v36, %v9387_v2 }
 0x269   : > { %v7974_v53 = vpop.f32.mrf.mxu1  ;;  %v4688_v60 = vpop.f32.mrf.mxu0  ;;  %vm5730_vm8 = vcmp.gt.f32.partialorder %v5666_v27, 0.0  ;;  %v5794_v19 = vmul.f32 0.2, %v5666_v27  ;;  %v5860_v47 = vsel %vm5732_vm6, %v5668_v39, %v5796_v33 }
 0x26a   : > { %7049 = vst [vmem:[%s9611_s15] sm:$0xff] %v7048_v21   ;;  %vm5733_vm7 = vcmp.gt.f32.partialorder %v5669_v44, 0.0  ;;  %v5797_v62 = vmul.f32 0.2, %v5669_v44  ;;  %v4919_v46 = vadd.f32 %v4688_v60, %v9392_v31  ;;  %v5667_v45 = vadd.f32 %v9596_v61, %v5596_v18 }
 0x26b   : > { %v5601_v1 = vadd.f32 %v7974_v53, %v4921_v15  ;;  %v5368_v49 = vpop.f32.mrf.mxu1  ;;  %v7909_v13 = vpop.f32.mrf.mxu0  ;;  %v5858_v21 = vsel %vm5730_vm8, %v5666_v27, %v5794_v19 }
 0x26c   : > { %v5861_v26 = vsel %vm5733_vm7, %v5669_v44, %v5797_v62  ;;  %v5599_v10 = vadd.f32 %v5368_v49, %v4919_v46  ;;  %v4922_v2 = vadd.f32 %v7909_v13, %v9397_v43  ;;  %vm5731_vm9 = vcmp.gt.f32.partialorder %v5667_v45, 0.0 }
 0x26d   : > { %v7063_v32 = vpack.c.bf16 %v5861_v26, %v5860_v47  ;;  %v5795_v54 = vmul.f32 0.2, %v5667_v45  ;;  %v5672_v6 = vadd.f32 %v9596_v61, %v5601_v1  ;;  %v7975_v3 = vpop.f32.mrf.mxu1  ;;  %v4691_v31 = vpop.f32.mrf.mxu0 }
 0x26e   : > { %v5602_v28 = vadd.f32 %v7975_v3, %v4922_v2  ;;  %v4920_v36 = vadd.f32 %v4691_v31, %v9402_v9  ;;  %v5670_v39 = vadd.f32 %v9596_v61, %v5599_v10 }
 0x26f   : > { %7207 = vst [vmem:[%s9611_s15 + $0x18] sm:$0xff] %v7063_v32   ;;  %v5859_v18 = vsel %vm5731_vm9, %v5667_v45, %v5795_v54  ;;  %v5371_v33 = vpop.f32.mrf.mxu1  ;;  %v7912_v44 = vpop.f32.mrf.mxu0  ;;  %v5800_v15 = vmul.f32 0.2, %v5672_v6  ;;  %vm5736_vm10 = vcmp.gt.f32.partialorder %v5672_v6, 0.0 }
 0x270   : > { %v7058_v43 = vpack.c.bf16 %v5859_v18, %v5858_v21  ;;  %v5673_v53 = vadd.f32 %v9596_v61, %v5602_v28  ;;  %v5600_v60 = vadd.f32 %v5371_v33, %v4920_v36  ;;  %v4925_v62 = vadd.f32 %v7912_v44, %v9407_v0 }
 0x271   : > { %v7978_v46 = vpop.f32.mrf.mxu1  ;;  %v4704_v1 = vpop.f32.mrf.mxu0  ;;  %vm5734_vm12 = vcmp.gt.f32.partialorder %v5670_v39, 0.0  ;;  %v5798_v19 = vmul.f32 0.2, %v5670_v39  ;;  %v5864_v26 = vsel %vm5736_vm10, %v5672_v6, %v5800_v15 }
 0x272   : > { %7206 = vst [vmem:[%s9611_s15 + $0x10] sm:$0xff] %v7058_v43   ;;  %vm5737_vm11 = vcmp.gt.f32.partialorder %v5673_v53, 0.0  ;;  %v5801_v9 = vmul.f32 0.2, %v5673_v53  ;;  %v4923_v27 = vadd.f32 %v4704_v1, %v9412_v37  ;;  %v5671_v45 = vadd.f32 %v9596_v61, %v5600_v60 }
 0x273   : > { %v5605_v49 = vadd.f32 %v7978_v46, %v4925_v62  ;;  %v5384_v13 = vpop.f32.mrf.mxu1  ;;  %v7913_v47 = vpop.f32.mrf.mxu0  ;;  %v5862_v21 = vsel %vm5734_vm12, %v5670_v39, %v5798_v19 }
 0x274   : > { %v5865_v10 = vsel %vm5737_vm11, %v5673_v53, %v5801_v9  ;;  %v5603_v2 = vadd.f32 %v5384_v13, %v4923_v27  ;;  %v4926_v0 = vadd.f32 %v7913_v47, %v9417_v55  ;;  %vm5735_vm13 = vcmp.gt.f32.partialorder %v5671_v45, 0.0 }
 0x275   : > { %v7073_v32 = vpack.c.bf16 %v5865_v10, %v5864_v26  ;;  %v5799_v54 = vmul.f32 0.2, %v5671_v45  ;;  %v5676_v3 = vadd.f32 %v9596_v61, %v5605_v49  ;;  %v7979_v31 = vpop.f32.mrf.mxu1  ;;  %v4707_v37 = vpop.f32.mrf.mxu0 }
 0x276   : > { %v5606_v28 = vadd.f32 %v7979_v31, %v4926_v0  ;;  %v4924_v36 = vadd.f32 %v4707_v37, %v9422_v42  ;;  %v5674_v6 = vadd.f32 %v9596_v61, %v5603_v2 }
 0x277   : > { %7209 = vst [vmem:[%s9611_s15 + $0x28] sm:$0xff] %v7073_v32   ;;  %v5863_v18 = vsel %vm5735_vm13, %v5671_v45, %v5799_v54  ;;  %v5387_v33 = vpop.f32.mrf.mxu1  ;;  %v7916_v44 = vpop.f32.mrf.mxu0  ;;  %v5804_v43 = vmul.f32 0.2, %v5676_v3  ;;  %vm5740_vm14 = vcmp.gt.f32.partialorder %v5676_v3, 0.0 }
 0x278   : > { %v7068_v55 = vpack.c.bf16 %v5863_v18, %v5862_v21  ;;  %v5677_v15 = vadd.f32 %v9596_v61, %v5606_v28  ;;  %v5604_v53 = vadd.f32 %v5387_v33, %v4924_v36  ;;  %v4929_v60 = vadd.f32 %v7916_v44, %v9427_v17 }
 0x279   : > { %v7982_v62 = vpop.f32.mrf.mxu1  ;;  %v4720_v46 = vpop.f32.mrf.mxu0  ;;  %vm5738_vm0 = vcmp.gt.f32.partialorder %v5674_v6, 0.0  ;;  %v5802_v1 = vmul.f32 0.2, %v5674_v6  ;;  %v5868_v49 = vsel %vm5740_vm14, %v5676_v3, %v5804_v43 }
 0x27a   : > { %7208 = vst [vmem:[%s9611_s15 + $0x20] sm:$0xff] %v7068_v55   ;;  %vm5741_vm15 = vcmp.gt.f32.partialorder %v5677_v15, 0.0  ;;  %v5805_v42 = vmul.f32 0.2, %v5677_v15  ;;  %v4927_v39 = vadd.f32 %v4720_v46, %v9432_v59  ;;  %v5675_v9 = vadd.f32 %v9596_v61, %v5604_v53 }
 0x27b   : > { %v5609_v27 = vadd.f32 %v7982_v62, %v4929_v60  ;;  %v5400_v19 = vpop.f32.mrf.mxu1  ;;  %v7917_v45 = vpop.f32.mrf.mxu0  ;;  %v5866_v31 = vsel %vm5738_vm0, %v5674_v6, %v5802_v1 }
 0x27c   : > { %v5869_v13 = vsel %vm5741_vm15, %v5677_v15, %v5805_v42  ;;  %v5607_v47 = vadd.f32 %v5400_v19, %v4927_v39  ;;  %v4930_v17 = vadd.f32 %v7917_v45, %v9437_v14  ;;  %vm5739_vm1 = vcmp.gt.f32.partialorder %v5675_v9, 0.0 }
 0x27d   : > { %v7083_v26 = vpack.c.bf16 %v5869_v13, %v5868_v49  ;;  %v5803_v10 = vmul.f32 0.2, %v5675_v9  ;;  %v5680_v2 = vadd.f32 %v9596_v61, %v5609_v27  ;;  %v7983_v0 = vpop.f32.mrf.mxu1  ;;  %v4723_v59 = vpop.f32.mrf.mxu0 }
 0x27e   : > { %v5610_v32 = vadd.f32 %v7983_v0, %v4930_v17  ;;  %v4928_v54 = vadd.f32 %v4723_v59, %v9442_v24  ;;  %v5678_v3 = vadd.f32 %v9596_v61, %v5607_v47 }
 0x27f   : > { %7211 = vst [vmem:[%s9611_s15 + $0x38] sm:$0xff] %v7083_v26   ;;  %v5867_v37 = vsel %vm5739_vm1, %v5675_v9, %v5803_v10  ;;  %v5403_v28 = vpop.f32.mrf.mxu1  ;;  %v7920_v36 = vpop.f32.mrf.mxu0  ;;  %v5808_v21 = vmul.f32 0.2, %v5680_v2  ;;  %vm5744_vm2 = vcmp.gt.f32.partialorder %v5680_v2, 0.0 }
 0x280   : > { %v7078_v14 = vpack.c.bf16 %v5867_v37, %v5866_v31  ;;  %v5681_v18 = vadd.f32 %v9596_v61, %v5610_v32  ;;  %v5608_v33 = vadd.f32 %v5403_v28, %v4928_v54  ;;  %v4933_v44 = vadd.f32 %v7920_v36, %v9447_v34 }
 0x281   : > { %v7986_v55 = vpop.f32.mrf.mxu1  ;;  %v4736_v43 = vpop.f32.mrf.mxu0  ;;  %vm5742_vm4 = vcmp.gt.f32.partialorder %v5678_v3, 0.0  ;;  %v5806_v15 = vmul.f32 0.2, %v5678_v3  ;;  %v5872_v42 = vsel %vm5744_vm2, %v5680_v2, %v5808_v21 }
 0x282   : > { %7210 = vst [vmem:[%s9611_s15 + $0x30] sm:$0xff] %v7078_v14   ;;  %vm5745_vm3 = vcmp.gt.f32.partialorder %v5681_v18, 0.0  ;;  %v5809_v24 = vmul.f32 0.2, %v5681_v18  ;;  %v4931_v6 = vadd.f32 %v4736_v43, %v9452_v12  ;;  %v5679_v53 = vadd.f32 %v9596_v61, %v5608_v33 }
 0x283   : > { %v5613_v60 = vadd.f32 %v7986_v55, %v4933_v44  ;;  %v5416_v62 = vpop.f32.mrf.mxu1  ;;  %v7921_v46 = vpop.f32.mrf.mxu0  ;;  %v5870_v47 = vsel %vm5742_vm4, %v5678_v3, %v5806_v15 }
 0x284   : > { %v5873_v39 = vsel %vm5745_vm3, %v5681_v18, %v5809_v24  ;;  %v5611_v1 = vadd.f32 %v5416_v62, %v4931_v6  ;;  %v4934_v34 = vadd.f32 %v7921_v46, %v9457_v4  ;;  %vm5743_vm5 = vcmp.gt.f32.partialorder %v5679_v53, 0.0 }
 0x285   : > { %v7093_v9 = vpack.c.bf16 %v5873_v39, %v5872_v42  ;;  %v5807_v27 = vmul.f32 0.2, %v5679_v53  ;;  %v5684_v19 = vadd.f32 %v9596_v61, %v5613_v60  ;;  %v7987_v45 = vpop.f32.mrf.mxu1  ;;  %v4739_v12 = vpop.f32.mrf.mxu0 }
 0x286   : > { %v5614_v49 = vadd.f32 %v7987_v45, %v4934_v34  ;;  %v4932_v13 = vadd.f32 %v4739_v12, %v9462_v56  ;;  %v5682_v26 = vadd.f32 %v9596_v61, %v5611_v1 }
 0x287   : > { %7213 = vst [vmem:[%s9611_s15 + $0x48] sm:$0xff] %v7093_v9   ;;  %v5871_v17 = vsel %vm5743_vm5, %v5679_v53, %v5807_v27  ;;  %v5419_v10 = vpop.f32.mrf.mxu1  ;;  %v7924_v2 = vpop.f32.mrf.mxu0  ;;  %v5812_v0 = vmul.f32 0.2, %v5684_v19  ;;  %vm5748_vm6 = vcmp.gt.f32.partialorder %v5684_v19, 0.0 }
 0x288   : > { %v7088_v4 = vpack.c.bf16 %v5871_v17, %v5870_v47  ;;  %v5685_v59 = vadd.f32 %v9596_v61, %v5614_v49  ;;  %v5612_v32 = vadd.f32 %v5419_v10, %v4932_v13  ;;  %v4937_v54 = vadd.f32 %v7924_v2, %v9467_v20 }
 0x289   : > { %v7990_v31 = vpop.f32.mrf.mxu1  ;;  %v4752_v37 = vpop.f32.mrf.mxu0  ;;  %vm5746_vm8 = vcmp.gt.f32.partialorder %v5682_v26, 0.0  ;;  %v5810_v28 = vmul.f32 0.2, %v5682_v26  ;;  %v5876_v33 = vsel %vm5748_vm6, %v5684_v19, %v5812_v0 }
 0x28a   : > { %7212 = vst [vmem:[%s9611_s15 + $0x40] sm:$0xff] %v7088_v4   ;;  %vm5749_vm7 = vcmp.gt.f32.partialorder %v5685_v59, 0.0  ;;  %v5813_v56 = vmul.f32 0.2, %v5685_v59  ;;  %v4935_v3 = vadd.f32 %v4752_v37, %v9472_v29  ;;  %v5683_v36 = vadd.f32 %v9596_v61, %v5612_v32 }
 0x28b   : > { %v5617_v14 = vadd.f32 %v7990_v31, %v4937_v54  ;;  %v5432_v21 = vpop.f32.mrf.mxu1  ;;  %v7925_v18 = vpop.f32.mrf.mxu0  ;;  %v5874_v62 = vsel %vm5746_vm8, %v5682_v26, %v5810_v28 }
 0x28c   : > { %v5877_v44 = vsel %vm5749_vm7, %v5685_v59, %v5813_v56  ;;  %v5615_v55 = vadd.f32 %v5432_v21, %v4935_v3  ;;  %v4938_v20 = vadd.f32 %v7925_v18, %v9476_v38  ;;  %vm5747_vm9 = vcmp.gt.f32.partialorder %v5683_v36, 0.0 }
 0x28d   : > { %v7103_v43 = vpack.c.bf16 %v5877_v44, %v5876_v33  ;;  %v5811_v24 = vmul.f32 0.2, %v5683_v36  ;;  %v5688_v6 = vadd.f32 %v9596_v61, %v5617_v14  ;;  %v7991_v15 = vpop.f32.mrf.mxu1  ;;  %v4755_v29 = vpop.f32.mrf.mxu0 }
 0x28e   : > { %v5618_v53 = vadd.f32 %v7991_v15, %v4938_v20  ;;  %v4936_v60 = vadd.f32 %v4755_v29, %v9480_v63  ;;  %v5686_v42 = vadd.f32 %v9596_v61, %v5615_v55 }
 0x28f   : > { %7215 = vst [vmem:[%s9611_s15 + $0x58] sm:$0xff] %v7103_v43   ;;  %v5875_v46 = vsel %vm5747_vm9, %v5683_v36, %v5811_v24  ;;  %v5435_v39 = vpop.f32.mrf.mxu1  ;;  %v7928_v1 = vpop.f32.mrf.mxu0  ;;  %v5816_v34 = vmul.f32 0.2, %v5688_v6  ;;  %vm5752_vm10 = vcmp.gt.f32.partialorder %v5688_v6, 0.0 }
 0x290   : > { %v7098_v38 = vpack.c.bf16 %v5875_v46, %v5874_v62  ;;  %v5689_v9 = vadd.f32 %v9596_v61, %v5618_v53  ;;  %v5616_v27 = vadd.f32 %v5435_v39, %v4936_v60  ;;  %v4941_v19 = vadd.f32 %v7928_v1, %v9484_v25 }
 0x291   : > { %v7994_v45 = vpop.f32.mrf.mxu1  ;;  %v4768_v12 = vpop.f32.mrf.mxu0  ;;  %vm5750_vm12 = vcmp.gt.f32.partialorder %v5686_v42, 0.0  ;;  %v5814_v13 = vmul.f32 0.2, %v5686_v42  ;;  %v5880_v2 = vsel %vm5752_vm10, %v5688_v6, %v5816_v34 }
 0x292   : > { %7214 = vst [vmem:[%s9611_s15 + $0x50] sm:$0xff] %v7098_v38   ;;  %vm5753_vm11 = vcmp.gt.f32.partialorder %v5689_v9, 0.0  ;;  %v5817_v63 = vmul.f32 0.2, %v5689_v9  ;;  %v4939_v49 = vadd.f32 %v4768_v12, %v9487_v35  ;;  %v5687_v47 = vadd.f32 %v9596_v61, %v5616_v27 }
 0x293   : > { %v5621_v17 = vadd.f32 %v7994_v45, %v4941_v19  ;;  %v5448_v26 = vpop.f32.mrf.mxu1  ;;  %v7929_v10 = vpop.f32.mrf.mxu0  ;;  %v5878_v3 = vsel %vm5750_vm12, %v5686_v42, %v5814_v13 }
 0x294   : > { %v5881_v4 = vsel %vm5753_vm11, %v5689_v9, %v5817_v63  ;;  %v5619_v0 = vadd.f32 %v5448_v26, %v4939_v49  ;;  %v4942_v25 = vadd.f32 %v7929_v10, %v9490_v22  ;;  %vm5751_vm13 = vcmp.gt.f32.partialorder %v5687_v47, 0.0 }
 0x295   : > { %v7113_v59 = vpack.c.bf16 %v5881_v4, %v5880_v2  ;;  %v5815_v32 = vmul.f32 0.2, %v5687_v47  ;;  %v5692_v54 = vadd.f32 %v9596_v61, %v5621_v17  ;;  %v7995_v31 = vpop.f32.mrf.mxu1  ;;  %v4771_v35 = vpop.f32.mrf.mxu0 }
 0x296   : > { %v5622_v37 = vadd.f32 %v7995_v31, %v4942_v25  ;;  %v4940_v56 = vadd.f32 %v4771_v35, %v9493_v11  ;;  %v5690_v36 = vadd.f32 %v9596_v61, %v5619_v0 }
 0x297   : > { %7217 = vst [vmem:[%s9611_s15 + $0x68] sm:$0xff] %v7113_v59   ;;  %v5879_v28 = vsel %vm5751_vm13, %v5687_v47, %v5815_v32  ;;  %v5451_v14 = vpop.f32.mrf.mxu1  ;;  %v7932_v21 = vpop.f32.mrf.mxu0  ;;  %v5820_v18 = vmul.f32 0.2, %v5692_v54  ;;  %vm5756_vm14 = vcmp.gt.f32.partialorder %v5692_v54, 0.0 }
 0x298   : > { %v7108_v22 = vpack.c.bf16 %v5879_v28, %v5878_v3  ;;  %v5693_v33 = vadd.f32 %v9596_v61, %v5622_v37  ;;  %v5620_v44 = vadd.f32 %v5451_v14, %v4940_v56  ;;  %v4945_v55 = vadd.f32 %v7932_v21, %v9496_v50  ;;  %v9872_v21 = vld [vmem:[#allocation13_spill] sm:$0xff] }
 0x299   : > { %v7998_v20 = vpop.f32.mrf.mxu1  ;;  %v4784_v43 = vpop.f32.mrf.mxu0  ;;  %vm5754_vm0 = vcmp.gt.f32.partialorder %v5690_v36, 0.0  ;;  %v5818_v6 = vmul.f32 0.2, %v5690_v36  ;;  %v5884_v62 = vsel %vm5756_vm14, %v5692_v54, %v5820_v18 }
 0x29a   : > { %7216 = vst [vmem:[%s9611_s15 + $0x60] sm:$0xff] %v7108_v22   ;;  %vm5757_vm15 = vcmp.gt.f32.partialorder %v5693_v33, 0.0  ;;  %v5821_v11 = vmul.f32 0.2, %v5693_v33  ;;  %v4943_v24 = vadd.f32 %v4784_v43, %v9499_v48  ;;  %v5691_v15 = vadd.f32 %v9596_v61, %v5620_v44 }
 0x29b   : > { %v5625_v29 = vadd.f32 %v7998_v20, %v4945_v55  ;;  %v5464_v53 = vpop.f32.mrf.mxu1  ;;  %v7933_v60 = vpop.f32.mrf.mxu0  ;;  %v5882_v19 = vsel %vm5754_vm0, %v5690_v36, %v5818_v6  ;;  %v9873_v6 = vld [vmem:[#allocation14_spill] sm:$0xff] }
 0x29c   : > { %v5885_v46 = vsel %vm5757_vm15, %v5693_v33, %v5821_v11  ;;  %v5623_v42 = vadd.f32 %v5464_v53, %v4943_v24  ;;  %v4946_v50 = vadd.f32 %v7933_v60, %v9502_v7  ;;  %vm5755_vm1 = vcmp.gt.f32.partialorder %v5691_v15, 0.0 }
 0x29d   : > { %v7123_v39 = vpack.c.bf16 %v5885_v46, %v5884_v62  ;;  %v5819_v1 = vmul.f32 0.2, %v5691_v15  ;;  %v5696_v38 = vadd.f32 %v9596_v61, %v5625_v29  ;;  %v7999_v34 = vpop.f32.mrf.mxu1  ;;  %v4787_v48 = vpop.f32.mrf.mxu0  ;;  %v9874_v62 = vld [vmem:[#allocation15_spill] sm:$0xff] }
 0x29e   : > { %v5626_v9 = vadd.f32 %v7999_v34, %v4946_v50  ;;  %v4944_v27 = vadd.f32 %v4787_v48, %v9505_v8  ;;  %v5694_v12 = vadd.f32 %v9596_v61, %v5623_v42 }
 0x29f   : > { %7219 = vst [vmem:[%s9611_s15 + $0x78] sm:$0xff] %v7123_v39   ;;  %v5883_v45 = vsel %vm5755_vm1, %v5691_v15, %v5819_v1  ;;  %v5467_v63 = vpop.f32.mrf.mxu1  ;;  %v7936_v49 = vpop.f32.mrf.mxu0  ;;  %v5824_v13 = vmul.f32 0.2, %v5696_v38  ;;  %vm5760_vm2 = vcmp.gt.f32.partialorder %v5696_v38, 0.0 }
 0x2a0   : > { %v7118_v7 = vpack.c.bf16 %v5883_v45, %v5882_v19  ;;  %v5697_v47 = vadd.f32 %v9596_v61, %v5626_v9  ;;  %v5624_v17 = vadd.f32 %v5467_v63, %v4944_v27  ;;  %v4949_v26 = vadd.f32 %v7936_v49, %v9508_v23  ;;  %v9875_v27 = vld [vmem:[#allocation16_spill] sm:$0xff] }
 0x2a1   : > { %v8002_v10 = vpop.f32.mrf.mxu1  ;;  %v4800_v2 = vpop.f32.mrf.mxu0  ;;  %vm5758_vm4 = vcmp.gt.f32.partialorder %v5694_v12, 0.0  ;;  %v5822_v0 = vmul.f32 0.2, %v5694_v12  ;;  %v5888_v31 = vsel %vm5760_vm2, %v5696_v38, %v5824_v13 }
 0x2a2   : > { %7218 = vst [vmem:[%s9611_s15 + $0x70] sm:$0xff] %v7118_v7   ;;  %vm5761_vm3 = vcmp.gt.f32.partialorder %v5697_v47, 0.0  ;;  %v5825_v8 = vmul.f32 0.2, %v5697_v47  ;;  %v4947_v4 = vadd.f32 %v4800_v2, %v9511_v41  ;;  %v5695_v25 = vadd.f32 %v9596_v61, %v5624_v17 }
 0x2a3   : > { %v5629_v59 = vadd.f32 %v8002_v10, %v4949_v26  ;;  %v5480_v32 = vpop.f32.mrf.mxu1  ;;  %v7937_v54 = vpop.f32.mrf.mxu0  ;;  %v5886_v18 = vsel %vm5758_vm4, %v5694_v12, %v5822_v0 }
 0x2a4   : > { %v5889_v35 = vsel %vm5761_vm3, %v5697_v47, %v5825_v8  ;;  %v5627_v37 = vadd.f32 %v5480_v32, %v4947_v4  ;;  %v4950_v23 = vadd.f32 %v7937_v54, %v9514_v30  ;;  %vm5759_vm5 = vcmp.gt.f32.partialorder %v5695_v25, 0.0  ;;  %v9876_v47 = vld [vmem:[#allocation17_spill] sm:$0xff]  ;;  %v9877_v54 = vld [vmem:[#allocation18_spill] sm:$0xff] }
 0x2a5   : > { %v7133_v56 = vpack.c.bf16 %v5889_v35, %v5888_v31  ;;  %v5823_v3 = vmul.f32 0.2, %v5695_v25  ;;  %v5700_v28 = vadd.f32 %v9596_v61, %v5629_v59  ;;  %v8003_v36 = vpop.f32.mrf.mxu1  ;;  %v4803_v41 = vpop.f32.mrf.mxu0 }
 0x2a6   : > { %v5630_v14 = vadd.f32 %v8003_v36, %v4950_v23  ;;  %v4948_v22 = vadd.f32 %v4803_v41, %v9872_v21  ;;  %v5698_v44 = vadd.f32 %v9596_v61, %v5627_v37 }
 0x2a7   : > { %7221 = vst [vmem:[%s9611_s15 + $0x88] sm:$0xff] %v7133_v56   ;;  %v5887_v33 = vsel %vm5759_vm5, %v5695_v25, %v5823_v3  ;;  %v5483_v55 = vpop.f32.mrf.mxu1  ;;  %v7940_v20 = vpop.f32.mrf.mxu0  ;;  %v5828_v43 = vmul.f32 0.2, %v5700_v28  ;;  %vm5764_vm6 = vcmp.gt.f32.partialorder %v5700_v28, 0.0  ;;  %v9878_v56 = vld [vmem:[#allocation19_spill] sm:$0xff] }
 0x2a8   : > { %v7128_v30 = vpack.c.bf16 %v5887_v33, %v5886_v18  ;;  %v5701_v11 = vadd.f32 %v9596_v61, %v5630_v14  ;;  %v5628_v24 = vadd.f32 %v5483_v55, %v4948_v22  ;;  %v4953_v15 = vadd.f32 %v7940_v20, %v9873_v6 }
 0x2a9   : > { %v8006_v29 = vpop.f32.mrf.mxu1  ;;  %v4816_v53 = vpop.f32.mrf.mxu0  ;;  %vm5762_vm8 = vcmp.gt.f32.partialorder %v5698_v44, 0.0  ;;  %v5826_v42 = vmul.f32 0.2, %v5698_v44  ;;  %v5892_v34 = vsel %vm5764_vm6, %v5700_v28, %v5828_v43 }
 0x2aa   : > { %7220 = vst [vmem:[%s9611_s15 + $0x80] sm:$0xff] %v7128_v30   ;;  %vm5765_vm7 = vcmp.gt.f32.partialorder %v5701_v11, 0.0  ;;  %v5829_v60 = vmul.f32 0.2, %v5701_v11  ;;  %v4951_v46 = vadd.f32 %v4816_v53, %v9874_v62  ;;  %v5699_v50 = vadd.f32 %v9596_v61, %v5628_v24 }
 0x2ab   : > { %v5633_v39 = vadd.f32 %v8006_v29, %v4953_v15  ;;  %v5496_v1 = vpop.f32.mrf.mxu1  ;;  %v7941_v38 = vpop.f32.mrf.mxu0  ;;  %v5890_v26 = vsel %vm5762_vm8, %v5698_v44, %v5826_v42  ;;  %v9879_v44 = vld [vmem:[#allocation20_spill] sm:$0xff]  ;;  %v9880_v15 = vld [vmem:[#allocation2_spill] sm:$0xff] }
 0x2ac   : > { %v5893_v48 = vsel %vm5765_vm7, %v5701_v11, %v5829_v60  ;;  %v5631_v9 = vadd.f32 %v5496_v1, %v4951_v46  ;;  %v4954_v19 = vadd.f32 %v7941_v38, %v9875_v27  ;;  %vm5763_vm9 = vcmp.gt.f32.partialorder %v5699_v50, 0.0 }
 0x2ad   : > { %v7143_v45 = vpack.c.bf16 %v5893_v48, %v5892_v34  ;;  %v5827_v12 = vmul.f32 0.2, %v5699_v50  ;;  %v5704_v63 = vadd.f32 %v9596_v61, %v5633_v39  ;;  %v8007_v49 = vpop.f32.mrf.mxu1  ;;  %v4819_v7 = vpop.f32.mrf.mxu0  ;;  %v9881_v34 = vld [vmem:[#allocation3_spill] sm:$0xff] }
 0x2ae   : > { %v5634_v13 = vadd.f32 %v8007_v49, %v4954_v19  ;;  %v4952_v17 = vadd.f32 %v4819_v7, %v9876_v47  ;;  %v5702_v2 = vadd.f32 %v9596_v61, %v5631_v9 }
 0x2af   : > { %7223 = vst [vmem:[%s9611_s15 + $0x98] sm:$0xff] %v7143_v45   ;;  %v5891_v10 = vsel %vm5763_vm9, %v5699_v50, %v5827_v12  ;;  %v5499_v8 = vpop.f32.mrf.mxu1  ;;  %v7944_v4 = vpop.f32.mrf.mxu0  ;;  %v5832_v25 = vmul.f32 0.2, %v5704_v63  ;;  %vm5768_vm10 = vcmp.gt.f32.partialorder %v5704_v63, 0.0  ;;  %v9882_v45 = vld [vmem:[#allocation4_spill] sm:$0xff] }
 0x2b0   : > { %v7138_v0 = vpack.c.bf16 %v5891_v10, %v5890_v26  ;;  %v5705_v59 = vadd.f32 %v9596_v61, %v5634_v13  ;;  %v5632_v32 = vadd.f32 %v5499_v8, %v4952_v17  ;;  %v4957_v31 = vadd.f32 %v7944_v4, %v9877_v54 }
 0x2b1   : > { %v8010_v35 = vpop.f32.mrf.mxu1  ;;  %v4832_v37 = vpop.f32.mrf.mxu0  ;;  %vm5766_vm12 = vcmp.gt.f32.partialorder %v5702_v2, 0.0  ;;  %v5830_v28 = vmul.f32 0.2, %v5702_v2  ;;  %v5896_v22 = vsel %vm5768_vm10, %v5704_v63, %v5832_v25 }
 0x2b2   : > { %7222 = vst [vmem:[%s9611_s15 + $0x90] sm:$0xff] %v7138_v0   ;;  %vm5769_vm11 = vcmp.gt.f32.partialorder %v5705_v59, 0.0  ;;  %v5833_v23 = vmul.f32 0.2, %v5705_v59  ;;  %v4955_v3 = vadd.f32 %v4832_v37, %v9878_v56  ;;  %v5703_v36 = vadd.f32 %v9596_v61, %v5632_v32 }
 0x2b3   : > { %v5637_v41 = vadd.f32 %v8010_v35, %v4957_v31  ;;  %v5512_v14 = vpop.f32.mrf.mxu1  ;;  %v7945_v21 = vpop.f32.mrf.mxu0  ;;  %v5894_v53 = vsel %vm5766_vm12, %v5702_v2, %v5830_v28  ;;  %v9883_v2 = vld [vmem:[#allocation5_spill] sm:$0xff]  ;;  %v9884_v31 = vld [vmem:[#allocation6_spill] sm:$0xff] }
 0x2b4   : > { %v5897_v18 = vsel %vm5769_vm11, %v5705_v59, %v5833_v23  ;;  %v5635_v33 = vadd.f32 %v5512_v14, %v4955_v3  ;;  %v4958_v55 = vadd.f32 %v7945_v21, %v9879_v44  ;;  %vm5767_vm13 = vcmp.gt.f32.partialorder %v5703_v36, 0.0 }
 0x2b5   : > { %v7153_v20 = vpack.c.bf16 %v5897_v18, %v5896_v22  ;;  %v5831_v30 = vmul.f32 0.2, %v5703_v36  ;;  %v5708_v43 = vadd.f32 %v9596_v61, %v5637_v41  ;;  %v8011_v11 = vpop.f32.mrf.mxu1  ;;  %v4835_v24 = vpop.f32.mrf.mxu0 }
 0x2b6   : > { %v5638_v6 = vadd.f32 %v8011_v11, %v4958_v55  ;;  %v4956_v29 = vadd.f32 %v4835_v24, %v9880_v15  ;;  %v5706_v62 = vadd.f32 %v9596_v61, %v5635_v33 }
 0x2b7   : > { %7225 = vst [vmem:[%s9611_s15 + $0xa8] sm:$0xff] %v7153_v20   ;;  %v5895_v60 = vsel %vm5767_vm13, %v5703_v36, %v5831_v30  ;;  %v5515_v46 = vpop.f32.mrf.mxu1  ;;  %v7948_v42 = vpop.f32.mrf.mxu0  ;;  %v5836_v39 = vmul.f32 0.2, %v5708_v43  ;;  %vm5772_vm14 = vcmp.gt.f32.partialorder %v5708_v43, 0.0 }
 0x2b8   : > { %v7148_v50 = vpack.c.bf16 %v5895_v60, %v5894_v53  ;;  %v5709_v1 = vadd.f32 %v9596_v61, %v5638_v6  ;;  %v5636_v38 = vadd.f32 %v5515_v46, %v4956_v29  ;;  %v4961_v48 = vadd.f32 %v7948_v42, %v9881_v34  ;;  %v9885_v53 = vld [vmem:[#allocation7_spill] sm:$0xff] }
 0x2b9   : > { %v8014_v9 = vpop.f32.mrf.mxu1  ;;  %v4848_v27 = vpop.f32.mrf.mxu0  ;;  %vm5770_vm0 = vcmp.gt.f32.partialorder %v5706_v62, 0.0  ;;  %v5834_v63 = vmul.f32 0.2, %v5706_v62  ;;  %v5900_v17 = vsel %vm5772_vm14, %v5708_v43, %v5836_v39  ;;  %v9886_v39 = vld [vmem:[#allocation8_spill] sm:$0xff] }
 0x2ba   : > { %7224 = vst [vmem:[%s9611_s15 + $0xa0] sm:$0xff] %v7148_v50   ;;  %vm5773_vm15 = vcmp.gt.f32.partialorder %v5709_v1, 0.0  ;;  %v5837_v19 = vmul.f32 0.2, %v5709_v1  ;;  %v4959_v12 = vadd.f32 %v4848_v27, %v9882_v45  ;;  %v5707_v49 = vadd.f32 %v9596_v61, %v5636_v38 }
 0x2bb   : > { %v5641_v7 = vadd.f32 %v8014_v9, %v4961_v48  ;;  %v5528_v13 = vpop.f32.mrf.mxu1  ;;  %v7949_v47 = vpop.f32.mrf.mxu0  ;;  %v5898_v37 = vsel %vm5770_vm0, %v5706_v62, %v5834_v63 }
 0x2bc   : > { %v5901_v26 = vsel %vm5773_vm15, %v5709_v1, %v5837_v19  ;;  %v5639_v10 = vadd.f32 %v5528_v13, %v4959_v12  ;;  %v4962_v8 = vadd.f32 %v7949_v47, %v9883_v2  ;;  %vm5771_vm1 = vcmp.gt.f32.partialorder %v5707_v49, 0.0 }
 0x2bd   : > { %v7163_v4 = vpack.c.bf16 %v5901_v26, %v5900_v17  ;;  %v5835_v0 = vmul.f32 0.2, %v5707_v49  ;;  %v5712_v25 = vadd.f32 %v9596_v61, %v5641_v7  ;;  %v8015_v59 = vpop.f32.mrf.mxu1  ;;  %v4851_v32 = vpop.f32.mrf.mxu0 }
 0x2be   : > { %v5642_v54 = vadd.f32 %v8015_v59, %v4962_v8  ;;  %v4960_v35 = vadd.f32 %v4851_v32, %v9884_v31  ;;  %v5710_v56 = vadd.f32 %v9596_v61, %v5639_v10 }
 0x2bf   : > { %7227 = vst [vmem:[%s9611_s15 + $0xb8] sm:$0xff] %v7163_v4   ;;  %v5899_v23 = vsel %vm5771_vm1, %v5707_v49, %v5835_v0  ;;  %v5531_v3 = vpop.f32.mrf.mxu1  ;;  %v7952_v28 = vpop.f32.mrf.mxu0  ;;  %v5840_v41 = vmul.f32 0.2, %v5712_v25  ;;  %vm5776_vm2 = vcmp.gt.f32.partialorder %v5712_v25, 0.0 }
 0x2c0   : > { %v7158_v36 = vpack.c.bf16 %v5899_v23, %v5898_v37  ;;  %v5713_v14 = vadd.f32 %v9596_v61, %v5642_v54  ;;  %v5640_v21 = vadd.f32 %v5531_v3, %v4960_v35  ;;  %v4965_v22 = vadd.f32 %v7952_v28, %v9556_v58 }
 0x2c1   : > { %v8018_v18 = vpop.f32.mrf.mxu1  ;;  %v4864_v33 = vpop.f32.mrf.mxu0  ;;  %vm5774_vm4 = vcmp.gt.f32.partialorder %v5710_v56, 0.0  ;;  %v5838_v20 = vmul.f32 0.2, %v5710_v56  ;;  %v5904_v6 = vsel %vm5776_vm2, %v5712_v25, %v5840_v41 }
 0x2c2   : > { %7226 = vst [vmem:[%s9611_s15 + $0xb0] sm:$0xff] %v7158_v36   ;;  %vm5777_vm3 = vcmp.gt.f32.partialorder %v5713_v14, 0.0  ;;  %v5841_v44 = vmul.f32 0.2, %v5713_v14  ;;  %v4963_v55 = vadd.f32 %v4864_v33, %v9559_v51  ;;  %v5711_v30 = vadd.f32 %v9596_v61, %v5640_v21 }
 0x2c3   : > { %v5645_v43 = vadd.f32 %v8018_v18, %v4965_v22  ;;  %v5544_v11 = vpop.f32.mrf.mxu1  ;;  %v7953_v24 = vpop.f32.mrf.mxu0  ;;  %v5902_v38 = vsel %vm5774_vm4, %v5710_v56, %v5838_v20 }
 0x2c4   : > { %v5905_v15 = vsel %vm5777_vm3, %v5713_v14, %v5841_v44  ;;  %v5643_v29 = vadd.f32 %v5544_v11, %v4963_v55  ;;  %v4966_v58 = vadd.f32 %v7953_v24, %v9885_v53  ;;  %vm5775_vm5 = vcmp.gt.f32.partialorder %v5711_v30, 0.0 }
 0x2c5   : > { %v7173_v60 = vpack.c.bf16 %v5905_v15, %v5904_v6  ;;  %v5839_v62 = vmul.f32 0.2, %v5711_v30  ;;  %v5716_v46 = vadd.f32 %v9596_v61, %v5645_v43  ;;  %v8019_v42 = vpop.f32.mrf.mxu1  ;;  %v4867_v51 = vpop.f32.mrf.mxu0 }
 0x2c6   : > { %v5646_v50 = vadd.f32 %v8019_v42, %v4966_v58  ;;  %v4964_v1 = vadd.f32 %v4867_v51, %v9886_v39  ;;  %v5714_v48 = vadd.f32 %v9596_v61, %v5643_v29  ;;  %v9888_v58 = vld [vmem:[#allocation10_spill] sm:$0xff]  ;;  %v9889_v39 = vld [vmem:[#allocation11_spill] sm:$0xff] }
 0x2c7   : > { %7229 = vst [vmem:[%s9611_s15 + $0xc8] sm:$0xff] %v7173_v60   ;;  %v5903_v34 = vsel %vm5775_vm5, %v5711_v30, %v5839_v62  ;;  %v5547_v9 = vpop.f32.mrf.mxu1  ;;  %v7956_v27 = vpop.f32.mrf.mxu0  ;;  %v5844_v45 = vmul.f32 0.2, %v5716_v46  ;;  %vm5780_vm6 = vcmp.gt.f32.partialorder %v5716_v46, 0.0 }
 0x2c8   : > { %v7168_v19 = vpack.c.bf16 %v5903_v34, %v5902_v38  ;;  %v5717_v12 = vadd.f32 %v9596_v61, %v5646_v50  ;;  %v5644_v63 = vadd.f32 %v5547_v9, %v4964_v1  ;;  %v4969_v49 = vadd.f32 %v7956_v27, %v9568_v16 }
 0x2c9   : > { %v8022_v7 = vpop.f32.mrf.mxu1  ;;  %v4880_v13 = vpop.f32.mrf.mxu0  ;;  %vm5778_vm8 = vcmp.gt.f32.partialorder %v5714_v48, 0.0  ;;  %v5842_v26 = vmul.f32 0.2, %v5714_v48  ;;  %v5908_v0 = vsel %vm5780_vm6, %v5716_v46, %v5844_v45 }
 0x2ca   : > { %7228 = vst [vmem:[%s9611_s15 + $0xc0] sm:$0xff] %v7168_v19   ;;  %vm5781_vm7 = vcmp.gt.f32.partialorder %v5717_v12, 0.0  ;;  %v5845_v47 = vmul.f32 0.2, %v5717_v12  ;;  %v4967_v17 = vadd.f32 %v4880_v13, %v9571_v57  ;;  %v5715_v10 = vadd.f32 %v9596_v61, %v5644_v63  ;;  %v8333_v57 = vld [vmem:[%s9792_s5] ss:$0 sm:$0xff] }
 0x2cb   : > { %v5649_v2 = vadd.f32 %v8022_v7, %v4969_v49  ;;  %v5560_v8 = vpop.f32.mrf.mxu1  ;;  %v7957_v4 = vpop.f32.mrf.mxu0  ;;  %v5906_v56 = vsel %vm5778_vm8, %v5714_v48, %v5842_v26 }
 0x2cc   : > { %v5909_v25 = vsel %vm5781_vm7, %v5717_v12, %v5845_v47  ;;  %v5647_v59 = vadd.f32 %v5560_v8, %v4967_v17  ;;  %v4970_v16 = vadd.f32 %v7957_v4, %v9574_v52  ;;  %vm5779_vm9 = vcmp.gt.f32.partialorder %v5715_v10, 0.0 }
 0x2cd   : > { %v7183_v32 = vpack.c.bf16 %v5909_v25, %v5908_v0  ;;  %v5843_v54 = vmul.f32 0.2, %v5715_v10  ;;  %v5720_v31 = vadd.f32 %v8333_v57, %v5649_v2  ;;  %v8023_v35 = vpop.f32.mrf.mxu1  ;;  %v4883_v37 = vpop.f32.mrf.mxu0 }
 0x2ce   : > { %v5650_v61 = vadd.f32 %v8023_v35, %v4970_v16  ;;  %v4968_v23 = vadd.f32 %v4883_v37, %v9577_v5  ;;  %v5718_v28 = vadd.f32 %v8333_v57, %v5647_v59  ;;  %v9887_v5 = vld [vmem:[#allocation9_spill] sm:$0xff] }
 0x2cf   : > { %7231 = vst [vmem:[%s9611_s15 + $0xd8] sm:$0xff] %v7183_v32   ;;  %v5907_v3 = vsel %vm5779_vm9, %v5715_v10, %v5843_v54  ;;  %v5563_v52 = vpop.f32.mrf.mxu1  ;;  %v7960_v36 = vpop.f32.mrf.mxu0  ;;  %v5848_v14 = vmul.f32 0.2, %v5720_v31  ;;  %vm5784_vm10 = vcmp.gt.f32.partialorder %v5720_v31, 0.0 }
 0x2d0   : > { %v7178_v41 = vpack.c.bf16 %v5907_v3, %v5906_v56  ;;  %v5721_v21 = vadd.f32 %v8333_v57, %v5650_v61  ;;  %v5648_v22 = vadd.f32 %v5563_v52, %v4968_v23  ;;  %v4973_v18 = vadd.f32 %v7960_v36, %v9580_v40 }
 0x2d1   : > { %v8026_v33 = vpop.f32.mrf.mxu1  ;;  %v4896_v44 = vpop.f32.mrf.mxu0  ;;  %vm5782_vm12 = vcmp.gt.f32.partialorder %v5718_v28, 0.0  ;;  %v5846_v30 = vmul.f32 0.2, %v5718_v28  ;;  %v5912_v15 = vsel %vm5784_vm10, %v5720_v31, %v5848_v14 }
 0x2d2   : > { %7230 = vst [vmem:[%s9611_s15 + $0xd0] sm:$0xff] %v7178_v41   ;;  %vm5785_vm11 = vcmp.gt.f32.partialorder %v5721_v21, 0.0  ;;  %v5849_v55 = vmul.f32 0.2, %v5721_v21  ;;  %v4971_v20 = vadd.f32 %v4896_v44, %v9887_v5  ;;  %v5719_v43 = vadd.f32 %v8333_v57, %v5648_v22 }
 0x2d3   : > { %v5653_v11 = vadd.f32 %v8026_v33, %v4973_v18  ;;  %v5576_v24 = vpop.f32.mrf.mxu1  ;;  %v7961_v6 = vpop.f32.mrf.mxu0  ;;  %v5910_v38 = vsel %vm5782_vm12, %v5718_v28, %v5846_v30 }
 0x2d4   : > { %v5913_v29 = vsel %vm5785_vm11, %v5721_v21, %v5849_v55  ;;  %v5651_v53 = vadd.f32 %v5576_v24, %v4971_v20  ;;  %v4974_v60 = vadd.f32 %v7961_v6, %v9888_v58  ;;  %vm5783_vm13 = vcmp.gt.f32.partialorder %v5719_v43, 0.0 }
 0x2d5   : > { %v7193_v40 = vpack.c.bf16 %v5913_v29, %v5912_v15  ;;  %v5847_v62 = vmul.f32 0.2, %v5719_v43  ;;  %v5724_v46 = vadd.f32 %v8333_v57, %v5653_v11  ;;  %v8027_v42 = vpop.f32.mrf.mxu1  ;;  %v4899_v51 = vpop.f32.mrf.mxu0 }
 0x2d6   : > { %v5654_v50 = vadd.f32 %v8027_v42, %v4974_v60  ;;  %v4972_v1 = vadd.f32 %v4899_v51, %v9889_v39  ;;  %v5722_v48 = vadd.f32 %v8333_v57, %v5651_v53 }
 0x2d7   : > { %7233 = vst [vmem:[%s9611_s15 + $0xe8] sm:$0xff] %v7193_v40   ;;  %v5911_v34 = vsel %vm5783_vm13, %v5719_v43, %v5847_v62  ;;  %v5852_v27 = vmul.f32 0.2, %v5724_v46  ;;  %v5579_v45 = vpop.f32.mrf.mxu1  ;;  %vm5788_vm14 = vcmp.gt.f32.partialorder %v5724_v46, 0.0 }
 0x2d8   : > { %v7188_v9 = vpack.c.bf16 %v5911_v34, %v5910_v38  ;;  %v5725_v19 = vadd.f32 %v8333_v57, %v5654_v50  ;;  %v5652_v12 = vadd.f32 %v5579_v45, %v4972_v1  ;;  %v5850_v49 = vmul.f32 0.2, %v5722_v48 }
 0x2d9   : > { %v5916_v13 = vsel %vm5788_vm14, %v5724_v46, %v5852_v27  ;;  %vm5786_vm0 = vcmp.gt.f32.partialorder %v5722_v48, 0.0 }
 0x2da   : > { %7232 = vst [vmem:[%s9611_s15 + $0xe0] sm:$0xff] %v7188_v9   ;;  %vm5789_vm15 = vcmp.gt.f32.partialorder %v5725_v19, 0.0  ;;  %v5853_v63 = vmul.f32 0.2, %v5725_v19  ;;  %v5723_v7 = vadd.f32 %v8333_v57, %v5652_v12  ;;  %v5914_v10 = vsel %vm5786_vm0, %v5722_v48, %v5850_v49 }
 0x2dc   : > { %v5917_v47 = vsel %vm5789_vm15, %v5725_v19, %v5853_v63  ;;  %vm5787_vm1 = vcmp.gt.f32.partialorder %v5723_v7, 0.0  ;;  %v5851_v26 = vmul.f32 0.2, %v5723_v7 }
 0x2dd   : > { %v7203_v17 = vpack.c.bf16 %v5917_v47, %v5916_v13 }
 0x2de   : > { %v5915_v2 = vsel %vm5787_vm1, %v5723_v7, %v5851_v26 }
 0x2df   : > { %7235 = vst [vmem:[%s9611_s15 + $0xf8] sm:$0xff] %v7203_v17   ;;  %v7198_v8 = vpack.c.bf16 %v5915_v2, %v5914_v10 }
 0x2e1   : > { %7234 = vst [vmem:[%s9611_s15 + $0xf0] sm:$0xff] %v7198_v8  }
 0x2e2 PF: > { %s16_s25 = sadd.s32 1, %s8372_s25   ;;  %s9890_s21 = smov %s8364_s23 }
 0x2e3   : > { %p13_p7 = scmp.ge.s32.totalorder %s16_s25, 6   ;;  %s9891_s22 = smov %s8368_s24 }
 0x2e4   : > { %s9892_s23 = smov %s9895_s26  ;;  %s9893_s24 = smov %s9899_s27 }
 0x2e5   :  { %15 = sbr.rel (!%p13_p7) target bundleno = 3 (0x3), region = 98 }

// kernel: discriminator_forward.6
= control target key start
LH: loop header
LB: loop body
LE: loop exit
PB: predicated region body
PF: predicated region fallthrough
CT: control target
= control target key end

     0   :  { %s7237_s21 = smov 0   ;;  %s7239_s22 = smov 0   ;;  %s8284_s0 = inlined_call_operand.vmem [shape: bf16[2,272,256], index: 0, kind: input, shape index: {}]   ;;  %s8285_s1 = inlined_call_operand.vmem [shape: bf16[2,272,256], index: 1, kind: input, shape index: {}]   ;;  %s8286_s2 = inlined_call_operand.vmem [shape: bf16[2,272,256], index: 2, kind: input, shape index: {}]   ;;  %s8287_s3 = inlined_call_operand.vmem [shape: bf16[2,272,256], index: 3, kind: input, shape index: {}]   ;;  %s8288_s4 = inlined_call_operand.vmem [shape: bf16[8,256,128], index: 4, kind: input, shape index: {}]   ;;  %s8289_s5 = inlined_call_operand.vmem [shape: f32[1,128], index: 5, kind: input, shape index: {}]   ;;  %s8290_s6 = inlined_call_operand.vmem [shape: bf16[2,256,128], index: 6, kind: output, shape index: {}]  }
   0x1   :  { %s7241_s23 = smov 0  }
   0x2 LB: > { %s28_s24 = sadd.s32 1, %s7196_s22  ;;  %p4839_p0 = scmp.ge.s32.totalorder %s7200_s23, 1  ;;  %s7200_s23 = sphi %s7241_s23, %s16_s23   ;;  %s7196_s22 = sphi %s7239_s22, %s8292_s22   ;;  %s7192_s21 = sphi %s7237_s21, %s8291_s21  }
   0x3   : > { %p30_p1 = scmp.ge.s32.totalorder %s28_s24, 2  ;;  %p256_p2 = scmp.lt.s32.totalorder %s7200_s23, 3 }
   0x5   : > { %s8294_s24 = smov (%p30_p1, %s28_s24), 0  ;;  %p257_p3 = pnand %p4839_p0, %p256_p2 }
   0x6   : > { %p305_p4 = scmp.lt.s32.totalorder (!%p257_p3), %s7192_s21, 1 }
   0x7   : > { %260 = sbr.rel (%p257_p3) target bundleno = 763 (0x2fb), region = 44 }
   0xc   : > { %v6666_v0 = vld [vmem:[%s8288_s4 + $0xf8] sm:$0xff]   ;;  %v6670_v4 = vld [vmem:[%s8288_s4 + $0xf0] sm:$0xff]   ;;  %v6674_v8 = vld [vmem:[%s8288_s4 + $0xe8] sm:$0xff]   ;;  %s8296_s21 = smov (!%p305_p4, %s7192_s21), 1 }
   0xd   : > { %v6667_v1 = vld [vmem:[%s8288_s4 + $0x78] sm:$0xff]   ;;  %5745 = vmatprep.subr.bf16.mxu0 %v6666_v0  ;;  %v6671_v5 = vld [vmem:[%s8288_s4 + $0x70] sm:$0xff]   ;;  %v6675_v9 = vld [vmem:[%s8288_s4 + $0x68] sm:$0xff]   ;;  %s7340_s13 = smul.u32 272, %s8296_s21 }
   0xe   : > { %v6668_v2 = vld [vmem:[%s8288_s4 + $0xb8] sm:$0xff]   ;;  %5857 = vmatprep.subr.bf16.mxu1 %v6667_v1  ;;  %v6672_v6 = vld [vmem:[%s8288_s4 + $0xb0] sm:$0xff]   ;;  %v6676_v10 = vld [vmem:[%s8288_s4 + $0xa8] sm:$0xff]  }
   0xf   : > { %v6669_v3 = vld [vmem:[%s8288_s4 + $0x38] sm:$0xff]   ;;  %5746 = vmatpush3.bf16.msra.mxu0 %v6668_v2  ;;  %v6673_v7 = vld [vmem:[%s8288_s4 + $0x30] sm:$0xff]   ;;  %v6677_v11 = vld [vmem:[%s8288_s4 + $0x28] sm:$0xff]   ;;  %s7358_s28 = scalar_lea.vmem %s8285_s1, %s7340_s13  ;;  %s7370_s11 = scalar_lea.vmem %s8284_s0, %s7340_s13 }
  0x10   : > { %5858 = vmatpush3.bf16.msra.mxu1 %v6669_v3  ;;  %5747 = vmatprep.subr.bf16.mxu0 %v6670_v4  ;;  %v6678_v12 = vld [vmem:[%s8288_s4 + $0xe0] sm:$0xff]   ;;  %v6682_v16 = vld [vmem:[%s8288_s4 + $0xd8] sm:$0xff]   ;;  %v6686_v20 = vld [vmem:[%s8288_s4 + $0xd0] sm:$0xff]   ;;  %s7513_s9 = scalar_lea.vmem %s8286_s2, %s7340_s13  ;;  %s7520_s14 = scalar_lea.vmem %s8287_s3, %s7340_s13 }
  0x11   : > { %5859 = vmatprep.subr.bf16.mxu1 %v6671_v5  ;;  %v6679_v13 = vld [vmem:[%s8288_s4 + $0x60] sm:$0xff]   ;;  %v6683_v17 = vld [vmem:[%s8288_s4 + $0x58] sm:$0xff]   ;;  %v6687_v21 = vld [vmem:[%s8288_s4 + $0x50] sm:$0xff]  }
  0x12   : > { %v6680_v14 = vld [vmem:[%s8288_s4 + $0xa0] sm:$0xff]   ;;  %v6684_v18 = vld [vmem:[%s8288_s4 + $0x98] sm:$0xff]   ;;  %v6688_v22 = vld [vmem:[%s8288_s4 + $0x90] sm:$0xff]  }
  0x13   : > { %5748 = vmatpush3.bf16.msra.mxu0 %v6672_v6  ;;  %v6681_v15 = vld [vmem:[%s8288_s4 + $0x20] sm:$0xff]   ;;  %v6685_v19 = vld [vmem:[%s8288_s4 + $0x18] sm:$0xff]   ;;  %v6689_v23 = vld [vmem:[%s8288_s4 + $0x10] sm:$0xff]  }
  0x14   : > { %5860 = vmatpush3.bf16.msra.mxu1 %v6673_v7  ;;  %5749 = vmatprep.subr.bf16.mxu0 %v6674_v8  ;;  %v6690_v24 = vld [vmem:[%s8288_s4 + $0xc8] sm:$0xff]   ;;  %v6694_v28 = vld [vmem:[%s8288_s4 + $0xc0] sm:$0xff]   ;;  %v6704_v36 = vld [vmem:[%s8288_s4 + $0x178] sm:$0xff]  }
  0x15   : > { %5861 = vmatprep.subr.bf16.mxu1 %v6675_v9  ;;  %v6691_v25 = vld [vmem:[%s8288_s4 + $0x48] sm:$0xff]   ;;  %v6695_v29 = vld [vmem:[%s8288_s4 + $0x40] sm:$0xff]   ;;  %v6705_v37 = vld [vmem:[%s8288_s4 + $0x138] sm:$0xff]  }
  0x16   : > { %v6692_v26 = vld [vmem:[%s8288_s4 + $0x88] sm:$0xff]   ;;  %v6696_v30 = vld [vmem:[%s8288_s4 + $0x80] sm:$0xff]   ;;  %v6706_v38 = vld [vmem:[%s8288_s4 + $0x1f8] sm:$0xff]  }
  0x17   : > { %5750 = vmatpush3.bf16.msra.mxu0 %v6676_v10  ;;  %v6693_v27 = vld [vmem:[%s8288_s4 + $0x8] sm:$0xff]   ;;  %v6697_v31 = vld [vmem:[%s8288_s4] sm:$0xff]   ;;  %v6707_v39 = vld [vmem:[%s8288_s4 + $0x1b8] sm:$0xff]  }
  0x18   : > { %5862 = vmatpush3.bf16.msra.mxu1 %v6677_v11  ;;  %5751 = vmatprep.subr.bf16.mxu0 %v6678_v12  ;;  %v6698_v32 = vld [vmem:[%s7358_s28] ss:$8 sps:$4 sm:$0xff]   ;;  %v6700_v33 = vld [vmem:[%s7358_s28 + $0x4] ss:$8 sps:$4 sm:$0xff]   ;;  %v6708_v40 = vld [vmem:[%s7358_s28 + $0x14] ss:$8 sps:$4 sm:$0xff]  }
  0x19   : > { %5863 = vmatprep.subr.bf16.mxu1 %v6679_v13  ;;  %v6701_v34 = vld [vmem:[%s7370_s11] ss:$8 sps:$4 sm:$0xff]   ;;  %v6703_v35 = vld [vmem:[%s7370_s11 + $0x4] ss:$8 sps:$4 sm:$0xff]   ;;  %761 = vmatprep.mubr.bf16.mxu0 %v6700_v33  ;;  %v6710_v41 = vld [vmem:[%s7370_s11 + $0x14] ss:$8 sps:$4 sm:$0xff]  }
  0x1a   : > { %1178 = vmatprep.mubr.bf16.mxu1 %v6703_v35  ;;  %v6712_v42 = vld [vmem:[%s7358_s28 + $0x10] ss:$8 sps:$4 sm:$0xff]   ;;  %v6714_v44 = vld [vmem:[%s7358_s28 + $0x24] ss:$8 sps:$4 sm:$0xff]   ;;  %v6718_v48 = vld [vmem:[%s7358_s28 + $0x20] ss:$8 sps:$4 sm:$0xff]  }
  0x1b   : > { %5752 = vmatpush3.bf16.msra.mxu0 %v6680_v14  ;;  %v6713_v43 = vld [vmem:[%s7370_s11 + $0x10] ss:$8 sps:$4 sm:$0xff]   ;;  %v6716_v45 = vld [vmem:[%s7370_s11 + $0x24] ss:$8 sps:$4 sm:$0xff]   ;;  %v6719_v51 = vld [vmem:[%s7370_s11 + $0x20] ss:$8 sps:$4 sm:$0xff]  }
  0x1c   : > { %5864 = vmatpush3.bf16.msra.mxu1 %v6681_v15  ;;  %5753 = vmatprep.subr.bf16.mxu0 %v6682_v16  ;;  %v6720_v46 = vld [vmem:[%s8288_s4 + $0x170] sm:$0xff]   ;;  %v6736_v55 = vld [vmem:[%s8288_s4 + $0x168] sm:$0xff]   ;;  %v6752_v1 = vld [vmem:[%s8288_s4 + $0x160] sm:$0xff]  }
  0x1d   : > { %5865 = vmatprep.subr.bf16.mxu1 %v6683_v17  ;;  %v6721_v47 = vld [vmem:[%s8288_s4 + $0x130] sm:$0xff]   ;;  %v6730_v57 = vld [vmem:[%s7358_s28 + $0x44] ss:$8 sps:$4 sm:$0xff]   ;;  %v6734_v62 = vld [vmem:[%s7358_s28 + $0x40] ss:$8 sps:$4 sm:$0xff]  }
  0x1e   : > { %v6722_v49 = vld [vmem:[%s8288_s4 + $0x1f0] sm:$0xff]   ;;  %v6737_v58 = vld [vmem:[%s8288_s4 + $0x128] sm:$0xff]   ;;  %v6753_v3 = vld [vmem:[%s8288_s4 + $0x120] sm:$0xff]  }
  0x1f   : > { %5754 = vmatpush3.bf16.msra.mxu0 %v6684_v18  ;;  %v6723_v50 = vld [vmem:[%s8288_s4 + $0x1b0] sm:$0xff]   ;;  %v6738_v59 = vld [vmem:[%s8288_s4 + $0x1e8] sm:$0xff]   ;;  %v6754_v4 = vld [vmem:[%s8288_s4 + $0x1e0] sm:$0xff]  }
  0x20   : > { %5866 = vmatpush3.bf16.msra.mxu1 %v6685_v19  ;;  %5755 = vmatprep.subr.bf16.mxu0 %v6686_v20  ;;  %v6724_v52 = vld [vmem:[%s7358_s28 + $0x34] ss:$8 sps:$4 sm:$0xff]   ;;  %v6728_v54 = vld [vmem:[%s7358_s28 + $0x30] ss:$8 sps:$4 sm:$0xff]   ;;  %v6739_v60 = vld [vmem:[%s8288_s4 + $0x1a8] sm:$0xff]  }
  0x21   : > { %5867 = vmatprep.subr.bf16.mxu1 %v6687_v21  ;;  %v6726_v53 = vld [vmem:[%s7370_s11 + $0x34] ss:$8 sps:$4 sm:$0xff]   ;;  %v6729_v56 = vld [vmem:[%s7370_s11 + $0x30] ss:$8 sps:$4 sm:$0xff]   ;;  %v6732_v61 = vld [vmem:[%s7370_s11 + $0x44] ss:$8 sps:$4 sm:$0xff]  }
  0x22   : > { %v6735_v63 = vld [vmem:[%s7370_s11 + $0x40] ss:$8 sps:$4 sm:$0xff]   ;;  %v6740_v0 = vld [vmem:[%s7358_s28 + $0x54] ss:$8 sps:$4 sm:$0xff]   ;;  %v6744_v6 = vld [vmem:[%s7358_s28 + $0x50] ss:$8 sps:$4 sm:$0xff]  }
  0x23   : > { %5756 = vmatpush3.bf16.msra.mxu0 %v6688_v22  ;;  %v6742_v2 = vld [vmem:[%s7370_s11 + $0x54] ss:$8 sps:$4 sm:$0xff]   ;;  %v6755_v5 = vld [vmem:[%s8288_s4 + $0x1a0] sm:$0xff]   ;;  %v6745_v7 = vld [vmem:[%s7370_s11 + $0x50] ss:$8 sps:$4 sm:$0xff]  }
  0x24   : > { %5868 = vmatpush3.bf16.msra.mxu1 %v6689_v23  ;;  %5757 = vmatprep.subr.bf16.mxu0 %v6690_v24  ;;  %v6746_v8 = vld [vmem:[%s7358_s28 + $0x64] ss:$8 sps:$4 sm:$0xff]   ;;  %v6768_v10 = vld [vmem:[%s8288_s4 + $0x158] sm:$0xff]   ;;  %v6750_v14 = vld [vmem:[%s7358_s28 + $0x60] ss:$8 sps:$4 sm:$0xff]  }
  0x25   : > { %5869 = vmatprep.subr.bf16.mxu1 %v6691_v25  ;;  %v6748_v9 = vld [vmem:[%s7370_s11 + $0x64] ss:$8 sps:$4 sm:$0xff]   ;;  %v6769_v11 = vld [vmem:[%s8288_s4 + $0x118] sm:$0xff]   ;;  %v6751_v15 = vld [vmem:[%s7370_s11 + $0x60] ss:$8 sps:$4 sm:$0xff]  }
  0x26   : > { %v6770_v12 = vld [vmem:[%s8288_s4 + $0x1d8] sm:$0xff]   ;;  %v6784_v18 = vld [vmem:[%s8288_s4 + $0x150] sm:$0xff]   ;;  %v6762_v24 = vld [vmem:[%s7358_s28 + $0x84] ss:$8 sps:$4 sm:$0xff]  }
  0x27   : > { %5758 = vmatpush3.bf16.msra.mxu0 %v6692_v26  ;;  %v6771_v13 = vld [vmem:[%s8288_s4 + $0x198] sm:$0xff]   ;;  %v6785_v19 = vld [vmem:[%s8288_s4 + $0x110] sm:$0xff]   ;;  %v6764_v25 = vld [vmem:[%s7370_s11 + $0x84] ss:$8 sps:$4 sm:$0xff]  }
  0x28   : > { %5870 = vmatpush3.bf16.msra.mxu1 %v6693_v27  ;;  %5759 = vmatprep.subr.bf16.mxu0 %v6694_v28  ;;  %v6756_v16 = vld [vmem:[%s7358_s28 + $0x74] ss:$8 sps:$4 sm:$0xff]   ;;  %v6760_v22 = vld [vmem:[%s7358_s28 + $0x70] ss:$8 sps:$4 sm:$0xff]   ;;  %v6800_v26 = vld [vmem:[%s8288_s4 + $0x148] sm:$0xff]  }
  0x29   : > { %5871 = vmatprep.subr.bf16.mxu1 %v6695_v29  ;;  %v6758_v17 = vld [vmem:[%s7370_s11 + $0x74] ss:$8 sps:$4 sm:$0xff]   ;;  %v6761_v23 = vld [vmem:[%s7370_s11 + $0x70] ss:$8 sps:$4 sm:$0xff]   ;;  %v6801_v27 = vld [vmem:[%s8288_s4 + $0x108] sm:$0xff]  }
  0x2a   : > { %v6786_v20 = vld [vmem:[%s8288_s4 + $0x1d0] sm:$0xff]   ;;  %v6802_v28 = vld [vmem:[%s8288_s4 + $0x1c8] sm:$0xff]   ;;  %v6817_v35 = vld [vmem:[%s8288_s4 + $0x100] sm:$0xff]  }
  0x2b   : > { %5760 = vmatpush3.bf16.msra.mxu0 %v6696_v30  ;;  %v6787_v21 = vld [vmem:[%s8288_s4 + $0x190] sm:$0xff]   ;;  %v6803_v29 = vld [vmem:[%s8288_s4 + $0x188] sm:$0xff]  }
  0x2c   : > { %5872 = vmatpush3.bf16.msra.mxu1 %v6697_v31  ;;  %5969 = vmatprep.subr.bf16.mxu0 %v6704_v36  ;;  %v6766_v30 = vld [vmem:[%s7358_s28 + $0x80] ss:$8 sps:$4 sm:$0xff]   ;;  %v6774_v33 = vld [vmem:[%s7370_s11 + $0x94] ss:$8 sps:$4 sm:$0xff]   ;;  %v6776_v36 = vld [vmem:[%s7358_s28 + $0x90] ss:$8 sps:$4 sm:$0xff]  }
  0x2d   : > { %6081 = vmatprep.subr.bf16.mxu1 %v6706_v38  ;;  %v6767_v31 = vld [vmem:[%s7370_s11 + $0x80] ss:$8 sps:$4 sm:$0xff]  }
  0x2e   : > { %762 = vmatmul.mubr.bf16.vlgmr.msra.gmra.mxu0 %v6698_v32  ;;  %v6772_v32 = vld [vmem:[%s7358_s28 + $0x94] ss:$8 sps:$4 sm:$0xff]   ;;  %v6819_v38 = vld [vmem:[%s8288_s4 + $0x180] sm:$0xff]  }
  0x2f   : > { %1179 = vmatmul.mubr.bf16.vlgmr.msra.gmra.mxu1 %v6701_v34  ;;  %5970 = vmatpush3.bf16.msra.mxu0 %v6705_v37  ;;  %v6816_v34 = vld [vmem:[%s8288_s4 + $0x140] sm:$0xff]  }
  0x30   : > { %6082 = vmatpush3.bf16.msra.mxu1 %v6707_v39  ;;  %769 = vmatprep.mubr.bf16.mxu0 %v6708_v40  ;;  %v6818_v37 = vld [vmem:[%s8288_s4 + $0x1c0] sm:$0xff]   ;;  %v6777_v39 = vld [vmem:[%s7370_s11 + $0x90] ss:$8 sps:$4 sm:$0xff]  }
  0x31   : > { %1186 = vmatprep.mubr.bf16.mxu1 %v6710_v41  ;;  %5971 = vmatprep.subr.bf16.mxu0 %v6720_v46  ;;  %v6778_v40 = vld [vmem:[%s7358_s28 + $0xa4] ss:$8 sps:$4 sm:$0xff]   ;;  %v6788_v46 = vld [vmem:[%s7358_s28 + $0xb4] ss:$8 sps:$4 sm:$0xff]  }
  0x32   : > { %6083 = vmatprep.subr.bf16.mxu1 %v6722_v49  ;;  %v6780_v41 = vld [vmem:[%s7370_s11 + $0xa4] ss:$8 sps:$4 sm:$0xff]   ;;  %v6793_v49 = vld [vmem:[%s7370_s11 + $0xb0] ss:$8 sps:$4 sm:$0xff]  }
  0x33   : > { %5972 = vmatpush3.bf16.msra.mxu0 %v6721_v47  ;;  %v6790_v47 = vld [vmem:[%s7370_s11 + $0xb4] ss:$8 sps:$4 sm:$0xff]  }
  0x34   : > { %6084 = vmatpush3.bf16.msra.mxu1 %v6723_v50  ;;  %5973 = vmatprep.subr.bf16.mxu0 %v6736_v55  ;;  %v6794_v50 = vld [vmem:[%s7358_s28 + $0xc4] ss:$8 sps:$4 sm:$0xff]   ;;  %v6806_v55 = vld [vmem:[%s7370_s11 + $0xd4] ss:$8 sps:$4 sm:$0xff]  }
  0x35   : > { %6085 = vmatprep.subr.bf16.mxu1 %v6738_v59  ;;  %v6812_v59 = vld [vmem:[%s7370_s11 + $0xe4] ss:$8 sps:$4 sm:$0xff]  }
  0x36   : > { %770 = vmatmul.mubr.bf16.gmra.mxu0 %v6712_v42  ;;  %v6782_v42 = vld [vmem:[%s7358_s28 + $0xa0] ss:$8 sps:$4 sm:$0xff]  }
  0x37   : > { %1187 = vmatmul.mubr.bf16.gmra.mxu1 %v6713_v43  ;;  %777 = vmatprep.mubr.bf16.mxu0 %v6714_v44  ;;  %v6832_v43 = vld [vmem:[%s8288_s4 + $0x278] sm:$0xff]   ;;  %v6783_v44 = vld [vmem:[%s7370_s11 + $0xa0] ss:$8 sps:$4 sm:$0xff]  }
  0x38   : > { %1194 = vmatprep.mubr.bf16.mxu1 %v6716_v45  ;;  %5974 = vmatpush3.bf16.msra.mxu0 %v6737_v58  ;;  %v6834_v45 = vld [vmem:[%s8288_s4 + $0x2f8] sm:$0xff]   ;;  %v6810_v58 = vld [vmem:[%s7358_s28 + $0xe4] ss:$8 sps:$4 sm:$0xff]  }
  0x39   : > { %6086 = vmatpush3.bf16.msra.mxu1 %v6739_v60  ;;  %5975 = vmatprep.subr.bf16.mxu0 %v6752_v1  ;;  %v6814_v60 = vld [vmem:[%s7358_s28 + $0xe0] ss:$8 sps:$4 sm:$0xff]   ;;  %v6825_v1 = vld [vmem:[%s7370_s11 + $0xf0] ss:$8 sps:$4 sm:$0xff]  }
  0x3a   : > { %6087 = vmatprep.subr.bf16.mxu1 %v6754_v4  ;;  %v6826_v4 = vld [vmem:[%s7513_s9] ss:$8 sps:$4 sm:$0xff]  }
  0x3c   : > { %5976 = vmatpush3.bf16.msra.mxu0 %v6753_v3  ;;  %v6831_v3 = vld [vmem:[%s7520_s14 + $0x4] ss:$8 sps:$4 sm:$0xff]  }
  0x3d   : > { %6088 = vmatpush3.bf16.msra.mxu1 %v6755_v5  ;;  %5977 = vmatprep.subr.bf16.mxu0 %v6768_v10  ;;  %v6829_v5 = vld [vmem:[%s7520_s14] ss:$8 sps:$4 sm:$0xff]   ;;  %v6848_v10 = vld [vmem:[%s8288_s4 + $0x270] sm:$0xff]  }
  0x3e   : > { %778 = vmatmul.mubr.bf16.gmra.mxu0 %v6718_v48  ;;  %6089 = vmatprep.subr.bf16.mxu1 %v6770_v12  ;;  %v6792_v48 = vld [vmem:[%s7358_s28 + $0xb0] ss:$8 sps:$4 sm:$0xff]  }
  0x3f   : > { %1195 = vmatmul.mubr.bf16.gmra.mxu1 %v6719_v51  ;;  %785 = vmatprep.mubr.bf16.mxu0 %v6724_v52  ;;  %v6796_v51 = vld [vmem:[%s7370_s11 + $0xc4] ss:$8 sps:$4 sm:$0xff]   ;;  %v6798_v52 = vld [vmem:[%s7358_s28 + $0xc0] ss:$8 sps:$4 sm:$0xff]   ;;  %v6850_v12 = vld [vmem:[%s8288_s4 + $0x2f0] sm:$0xff]  }
  0x40   : > { %1202 = vmatprep.mubr.bf16.mxu1 %v6726_v53  ;;  %5978 = vmatpush3.bf16.msra.mxu0 %v6769_v11  ;;  %v6799_v53 = vld [vmem:[%s7370_s11 + $0xc0] ss:$8 sps:$4 sm:$0xff]   ;;  %v6849_v11 = vld [vmem:[%s8288_s4 + $0x230] sm:$0xff]  }
  0x41   : > { %6090 = vmatpush3.bf16.msra.mxu1 %v6771_v13  ;;  %5979 = vmatprep.subr.bf16.mxu0 %v6784_v18  ;;  %v6851_v13 = vld [vmem:[%s8288_s4 + $0x2b0] sm:$0xff]   ;;  %v6842_v18 = vld [vmem:[%s7513_s9 + $0x24] ss:$8 sps:$4 sm:$0xff]  }
  0x42   : > { %6091 = vmatprep.subr.bf16.mxu1 %v6786_v20  ;;  %v6865_v20 = vld [vmem:[%s8288_s4 + $0x228] sm:$0xff]  }
  0x44   : > { %5980 = vmatpush3.bf16.msra.mxu0 %v6785_v19  ;;  %v6844_v19 = vld [vmem:[%s7520_s14 + $0x24] ss:$8 sps:$4 sm:$0xff]  }
  0x45   : > { %6092 = vmatpush3.bf16.msra.mxu1 %v6787_v21  ;;  %5981 = vmatprep.subr.bf16.mxu0 %v6800_v26  ;;  %v6867_v21 = vld [vmem:[%s8288_s4 + $0x2a8] sm:$0xff]   ;;  %v6883_v26 = vld [vmem:[%s8288_s4 + $0x2a0] sm:$0xff]  }
  0x46   : > { %786 = vmatmul.mubr.bf16.gmra.mxu0 %v6728_v54  ;;  %6093 = vmatprep.subr.bf16.mxu1 %v6802_v28  ;;  %v6804_v54 = vld [vmem:[%s7358_s28 + $0xd4] ss:$8 sps:$4 sm:$0xff]  }
  0x47   : > { %1203 = vmatmul.mubr.bf16.gmra.mxu1 %v6729_v56  ;;  %793 = vmatprep.mubr.bf16.mxu0 %v6730_v57  ;;  %v6808_v56 = vld [vmem:[%s7358_s28 + $0xd0] ss:$8 sps:$4 sm:$0xff]   ;;  %v6852_v28 = vld [vmem:[%s7513_s9 + $0x34] ss:$8 sps:$4 sm:$0xff]  }
  0x48   : > { %1210 = vmatprep.mubr.bf16.mxu1 %v6732_v61  ;;  %5982 = vmatpush3.bf16.msra.mxu0 %v6801_v27  ;;  %v6809_v57 = vld [vmem:[%s7370_s11 + $0xd0] ss:$8 sps:$4 sm:$0xff]   ;;  %v6815_v61 = vld [vmem:[%s7370_s11 + $0xe0] ss:$8 sps:$4 sm:$0xff]  }
  0x49   : > { %6094 = vmatpush3.bf16.msra.mxu1 %v6803_v29  ;;  %5983 = vmatprep.subr.bf16.mxu0 %v6816_v34  ;;  %v6847_v27 = vld [vmem:[%s7520_s14 + $0x20] ss:$8 sps:$4 sm:$0xff]   ;;  %v6896_v29 = vld [vmem:[%s8288_s4 + $0x258] sm:$0xff]   ;;  %v6912_v34 = vld [vmem:[%s8288_s4 + $0x250] sm:$0xff]  }
  0x4a   : > { %6095 = vmatprep.subr.bf16.mxu1 %v6818_v37  ;;  %v6913_v37 = vld [vmem:[%s8288_s4 + $0x210] sm:$0xff]  }
  0x4c   : > { %5984 = vmatpush3.bf16.msra.mxu0 %v6817_v35  ;;  %v6914_v35 = vld [vmem:[%s8288_s4 + $0x2d0] sm:$0xff]  }
  0x4d   : > { %6096 = vmatpush3.bf16.msra.mxu1 %v6819_v38  ;;  %6193 = vmatprep.subr.bf16.mxu0 %v6832_v43  ;;  %v6857_v38 = vld [vmem:[%s7520_s14 + $0x30] ss:$8 sps:$4 sm:$0xff]   ;;  %v6930_v43 = vld [vmem:[%s8288_s4 + $0x2c8] sm:$0xff]  }
  0x4e   : > { %794 = vmatmul.mubr.bf16.gmra.mxu0 %v6734_v62  ;;  %6305 = vmatprep.subr.bf16.mxu1 %v6834_v45  ;;  %v6820_v62 = vld [vmem:[%s7358_s28 + $0xf4] ss:$8 sps:$4 sm:$0xff]   ;;  %v6931_v45 = vld [vmem:[%s8288_s4 + $0x288] sm:$0xff]  }
  0x4f   : > { %1211 = vmatmul.mubr.bf16.gmra.mxu1 %v6735_v63  ;;  %801 = vmatprep.mubr.bf16.mxu0 %v6740_v0  ;;  %v6822_v63 = vld [vmem:[%s7370_s11 + $0xf4] ss:$8 sps:$4 sm:$0xff]   ;;  %v6824_v0 = vld [vmem:[%s7358_s28 + $0xf0] ss:$8 sps:$4 sm:$0xff]  }
  0x50   : > { %1218 = vmatprep.mubr.bf16.mxu1 %v6742_v2  ;;  %v6828_v2 = vld [vmem:[%s7513_s9 + $0x4] ss:$8 sps:$4 sm:$0xff]  }
  0x56   : > { %802 = vmatmul.mubr.bf16.gmra.mxu0 %v6744_v6  ;;  %v6833_v6 = vld [vmem:[%s8288_s4 + $0x238] sm:$0xff]  }
  0x57   : > { %1219 = vmatmul.mubr.bf16.gmra.mxu1 %v6745_v7  ;;  %809 = vmatprep.mubr.bf16.mxu0 %v6746_v8  ;;  %v6835_v7 = vld [vmem:[%s8288_s4 + $0x2b8] sm:$0xff]  }
  0x58   : > { %1226 = vmatprep.mubr.bf16.mxu1 %v6748_v9  ;;  %v6836_v8 = vld [vmem:[%s7513_s9 + $0x14] ss:$8 sps:$4 sm:$0xff]  }
  0x59   : > { %v6838_v9 = vld [vmem:[%s7520_s14 + $0x14] ss:$8 sps:$4 sm:$0xff]  }
  0x5e   : > { %810 = vmatmul.mubr.bf16.gmra.mxu0 %v6750_v14  ;;  %v6840_v14 = vld [vmem:[%s7513_s9 + $0x10] ss:$8 sps:$4 sm:$0xff]  }
  0x5f   : > { %1227 = vmatmul.mubr.bf16.gmra.mxu1 %v6751_v15  ;;  %817 = vmatprep.mubr.bf16.mxu0 %v6756_v16  ;;  %v6864_v15 = vld [vmem:[%s8288_s4 + $0x268] sm:$0xff]  }
  0x60   : > { %1234 = vmatprep.mubr.bf16.mxu1 %v6758_v17  ;;  %v6866_v16 = vld [vmem:[%s8288_s4 + $0x2e8] sm:$0xff]   ;;  %v6841_v17 = vld [vmem:[%s7520_s14 + $0x10] ss:$8 sps:$4 sm:$0xff]  }
  0x66   : > { %818 = vmatmul.mubr.bf16.gmra.mxu0 %v6760_v22  ;;  %v6880_v22 = vld [vmem:[%s8288_s4 + $0x260] sm:$0xff]  }
  0x67   : > { %1235 = vmatmul.mubr.bf16.gmra.mxu1 %v6761_v23  ;;  %825 = vmatprep.mubr.bf16.mxu0 %v6762_v24  ;;  %v6882_v23 = vld [vmem:[%s8288_s4 + $0x2e0] sm:$0xff]  }
  0x68   : > { %1242 = vmatprep.mubr.bf16.mxu1 %v6764_v25  ;;  %v6846_v24 = vld [vmem:[%s7513_s9 + $0x20] ss:$8 sps:$4 sm:$0xff]  }
  0x69   : > { %v6881_v25 = vld [vmem:[%s8288_s4 + $0x220] sm:$0xff]  }
  0x6e   : > { %826 = vmatmul.mubr.bf16.gmra.mxu0 %v6766_v30  ;;  %v6898_v30 = vld [vmem:[%s8288_s4 + $0x2d8] sm:$0xff]  }
  0x6f   : > { %1243 = vmatmul.mubr.bf16.gmra.mxu1 %v6767_v31  ;;  %833 = vmatprep.mubr.bf16.mxu0 %v6772_v32  ;;  %v6854_v31 = vld [vmem:[%s7520_s14 + $0x34] ss:$8 sps:$4 sm:$0xff]  }
  0x70   : > { %1250 = vmatprep.mubr.bf16.mxu1 %v6774_v33  ;;  %v6897_v32 = vld [vmem:[%s8288_s4 + $0x218] sm:$0xff]  }
  0x71   : > { %v6899_v33 = vld [vmem:[%s8288_s4 + $0x298] sm:$0xff]  }
  0x76   : > { %834 = vmatmul.mubr.bf16.gmra.mxu0 %v6776_v36  ;;  %v6856_v36 = vld [vmem:[%s7513_s9 + $0x30] ss:$8 sps:$4 sm:$0xff]  }
  0x77   : > { %1251 = vmatmul.mubr.bf16.gmra.mxu1 %v6777_v39  ;;  %841 = vmatprep.mubr.bf16.mxu0 %v6778_v40  ;;  %v6858_v39 = vld [vmem:[%s7513_s9 + $0x44] ss:$8 sps:$4 sm:$0xff]   ;;  %v6915_v40 = vld [vmem:[%s8288_s4 + $0x290] sm:$0xff]  }
  0x78   : > { %1258 = vmatprep.mubr.bf16.mxu1 %v6780_v41  ;;  %v6928_v41 = vld [vmem:[%s8288_s4 + $0x248] sm:$0xff]  }
  0x7e   : > { %842 = vmatmul.mubr.bf16.gmra.mxu0 %v6782_v42  ;;  %v6860_v42 = vld [vmem:[%s7520_s14 + $0x44] ss:$8 sps:$4 sm:$0xff]  }
  0x7f   : > { %1259 = vmatmul.mubr.bf16.gmra.mxu1 %v6783_v44  ;;  %849 = vmatprep.mubr.bf16.mxu0 %v6788_v46  ;;  %v6929_v44 = vld [vmem:[%s8288_s4 + $0x208] sm:$0xff]   ;;  %v6944_v46 = vld [vmem:[%s8288_s4 + $0x240] sm:$0xff]  }
  0x80   : > { %1266 = vmatprep.mubr.bf16.mxu1 %v6790_v47  ;;  %v6946_v47 = vld [vmem:[%s8288_s4 + $0x2c0] sm:$0xff]  }
  0x86   : > { %850 = vmatmul.mubr.bf16.gmra.mxu0 %v6792_v48  ;;  %v6862_v48 = vld [vmem:[%s7513_s9 + $0x40] ss:$8 sps:$4 sm:$0xff]  }
  0x87   : > { %1267 = vmatmul.mubr.bf16.gmra.mxu1 %v6793_v49  ;;  %857 = vmatprep.mubr.bf16.mxu0 %v6794_v50  ;;  %v6945_v49 = vld [vmem:[%s8288_s4 + $0x200] sm:$0xff]  }
  0x88   : > { %1274 = vmatprep.mubr.bf16.mxu1 %v6796_v51  ;;  %v6863_v50 = vld [vmem:[%s7520_s14 + $0x40] ss:$8 sps:$4 sm:$0xff]  }
  0x89   : > { %v6947_v51 = vld [vmem:[%s8288_s4 + $0x280] sm:$0xff]  }
  0x8e   : > { %858 = vmatmul.mubr.bf16.gmra.mxu0 %v6798_v52  ;;  %v6960_v52 = vld [vmem:[%s8288_s4 + $0x378] sm:$0xff]  }
  0x8f   : > { %1275 = vmatmul.mubr.bf16.gmra.mxu1 %v6799_v53  ;;  %865 = vmatprep.mubr.bf16.mxu0 %v6804_v54  ;;  %v6962_v53 = vld [vmem:[%s8288_s4 + $0x3f8] sm:$0xff]  }
  0x90   : > { %1282 = vmatprep.mubr.bf16.mxu1 %v6806_v55  ;;  %v6868_v54 = vld [vmem:[%s7513_s9 + $0x54] ss:$8 sps:$4 sm:$0xff]  }
  0x91   : > { %v6870_v55 = vld [vmem:[%s7520_s14 + $0x54] ss:$8 sps:$4 sm:$0xff]  }
  0x96   : > { %866 = vmatmul.mubr.bf16.gmra.mxu0 %v6808_v56  ;;  %v6872_v56 = vld [vmem:[%s7513_s9 + $0x50] ss:$8 sps:$4 sm:$0xff]  }
  0x97   : > { %1283 = vmatmul.mubr.bf16.gmra.mxu1 %v6809_v57  ;;  %873 = vmatprep.mubr.bf16.mxu0 %v6810_v58  ;;  %v6873_v57 = vld [vmem:[%s7520_s14 + $0x50] ss:$8 sps:$4 sm:$0xff]   ;;  %v6874_v58 = vld [vmem:[%s7513_s9 + $0x64] ss:$8 sps:$4 sm:$0xff]  }
  0x98   : > { %1290 = vmatprep.mubr.bf16.mxu1 %v6812_v59  ;;  %v6876_v59 = vld [vmem:[%s7520_s14 + $0x64] ss:$8 sps:$4 sm:$0xff]  }
  0x9e   : > { %874 = vmatmul.mubr.bf16.gmra.mxu0 %v6814_v60  ;;  %v6878_v60 = vld [vmem:[%s7513_s9 + $0x60] ss:$8 sps:$4 sm:$0xff]  }
  0x9f   : > { %1291 = vmatmul.mubr.bf16.gmra.mxu1 %v6815_v61  ;;  %881 = vmatprep.mubr.bf16.mxu0 %v6820_v62  ;;  %v6879_v61 = vld [vmem:[%s7520_s14 + $0x60] ss:$8 sps:$4 sm:$0xff]   ;;  %v6884_v62 = vld [vmem:[%s7513_s9 + $0x74] ss:$8 sps:$4 sm:$0xff]  }
  0xa0   : > { %1298 = vmatprep.mubr.bf16.mxu1 %v6822_v63  ;;  %v6886_v63 = vld [vmem:[%s7520_s14 + $0x74] ss:$8 sps:$4 sm:$0xff]  }
  0xa6   : > { %882 = vmatmul.mubr.bf16.gmra.mxu0 %v6824_v0  ;;  %v6888_v0 = vld [vmem:[%s7513_s9 + $0x70] ss:$8 sps:$4 sm:$0xff]  }
  0xa7   : > { %1299 = vmatmul.mubr.bf16.gmra.mxu1 %v6825_v1  ;;  %1662 = vmatprep.mubr.bf16.mxu0 %v6828_v2  ;;  %v6889_v1 = vld [vmem:[%s7520_s14 + $0x70] ss:$8 sps:$4 sm:$0xff]   ;;  %v6890_v2 = vld [vmem:[%s7513_s9 + $0x84] ss:$8 sps:$4 sm:$0xff]  }
  0xa8   : > { %2178 = vmatprep.mubr.bf16.mxu1 %v6831_v3  ;;  %v6892_v3 = vld [vmem:[%s7520_s14 + $0x84] ss:$8 sps:$4 sm:$0xff]  }
  0xae   : > { %1663 = vmatmul.mubr.bf16.vlgmr.msra.gmra.mxu0 %v6826_v4  ;;  %v6894_v4 = vld [vmem:[%s7513_s9 + $0x80] ss:$8 sps:$4 sm:$0xff]  }
  0xaf   : > { %2179 = vmatmul.mubr.bf16.vlgmr.msra.gmra.mxu1 %v6829_v5  ;;  %6194 = vmatpush3.bf16.msra.mxu0 %v6833_v6  ;;  %v6895_v5 = vld [vmem:[%s7520_s14 + $0x80] ss:$8 sps:$4 sm:$0xff]   ;;  %v6900_v6 = vld [vmem:[%s7513_s9 + $0x94] ss:$8 sps:$4 sm:$0xff]  }
  0xb0   : > { %6306 = vmatpush3.bf16.msra.mxu1 %v6835_v7  ;;  %1670 = vmatprep.mubr.bf16.mxu0 %v6836_v8  ;;  %v6902_v7 = vld [vmem:[%s7520_s14 + $0x94] ss:$8 sps:$4 sm:$0xff]  }
  0xb1   : > { %2186 = vmatprep.mubr.bf16.mxu1 %v6838_v9  ;;  %6195 = vmatprep.subr.bf16.mxu0 %v6848_v10 }
  0xb2   : > { %6307 = vmatprep.subr.bf16.mxu1 %v6850_v12 }
  0xb3   : > { %6196 = vmatpush3.bf16.msra.mxu0 %v6849_v11  ;;  %v6904_v11 = vld [vmem:[%s7513_s9 + $0x90] ss:$8 sps:$4 sm:$0xff]  }
  0xb4   : > { %6308 = vmatpush3.bf16.msra.mxu1 %v6851_v13  ;;  %6197 = vmatprep.subr.bf16.mxu0 %v6864_v15  ;;  %v6906_v15 = vld [vmem:[%s7513_s9 + $0xa4] ss:$8 sps:$4 sm:$0xff]  }
  0xb5   : > { %6309 = vmatprep.subr.bf16.mxu1 %v6866_v16 }
  0xb6   : > { %1671 = vmatmul.mubr.bf16.gmra.mxu0 %v6840_v14  ;;  %v6905_v14 = vld [vmem:[%s7520_s14 + $0x90] ss:$8 sps:$4 sm:$0xff]  }
  0xb7   : > { %2187 = vmatmul.mubr.bf16.gmra.mxu1 %v6841_v17  ;;  %1678 = vmatprep.mubr.bf16.mxu0 %v6842_v18 }
  0xb8   : > { %2194 = vmatprep.mubr.bf16.mxu1 %v6844_v19  ;;  %6198 = vmatpush3.bf16.msra.mxu0 %v6865_v20 }
  0xb9   : > { %6310 = vmatpush3.bf16.msra.mxu1 %v6867_v21  ;;  %6199 = vmatprep.subr.bf16.mxu0 %v6880_v22  ;;  %v6908_v21 = vld [vmem:[%s7520_s14 + $0xa4] ss:$8 sps:$4 sm:$0xff]  }
  0xba   : > { %6311 = vmatprep.subr.bf16.mxu1 %v6882_v23 }
  0xbc   : > { %6200 = vmatpush3.bf16.msra.mxu0 %v6881_v25 }
  0xbd   : > { %6312 = vmatpush3.bf16.msra.mxu1 %v6883_v26  ;;  %6201 = vmatprep.subr.bf16.mxu0 %v6896_v29  ;;  %v6910_v29 = vld [vmem:[%s7513_s9 + $0xa0] ss:$8 sps:$4 sm:$0xff]  }
  0xbe   : > { %1679 = vmatmul.mubr.bf16.gmra.mxu0 %v6846_v24  ;;  %6313 = vmatprep.subr.bf16.mxu1 %v6898_v30 }
  0xbf   : > { %2195 = vmatmul.mubr.bf16.gmra.mxu1 %v6847_v27  ;;  %1686 = vmatprep.mubr.bf16.mxu0 %v6852_v28 }
  0xc0   : > { %2202 = vmatprep.mubr.bf16.mxu1 %v6854_v31  ;;  %6202 = vmatpush3.bf16.msra.mxu0 %v6897_v32  ;;  %v6911_v32 = vld [vmem:[%s7520_s14 + $0xa0] ss:$8 sps:$4 sm:$0xff]  }
  0xc1   : > { %6314 = vmatpush3.bf16.msra.mxu1 %v6899_v33  ;;  %6203 = vmatprep.subr.bf16.mxu0 %v6912_v34  ;;  %v6916_v33 = vld [vmem:[%s7513_s9 + $0xb4] ss:$8 sps:$4 sm:$0xff]  }
  0xc2   : > { %6315 = vmatprep.subr.bf16.mxu1 %v6914_v35 }
  0xc4   : > { %6204 = vmatpush3.bf16.msra.mxu0 %v6913_v37 }
  0xc5   : > { %6316 = vmatpush3.bf16.msra.mxu1 %v6915_v40  ;;  %6205 = vmatprep.subr.bf16.mxu0 %v6928_v41 }
  0xc6   : > { %1687 = vmatmul.mubr.bf16.gmra.mxu0 %v6856_v36  ;;  %6317 = vmatprep.subr.bf16.mxu1 %v6930_v43 }
  0xc7   : > { %2203 = vmatmul.mubr.bf16.gmra.mxu1 %v6857_v38  ;;  %1694 = vmatprep.mubr.bf16.mxu0 %v6858_v39  ;;  %v6918_v39 = vld [vmem:[%s7520_s14 + $0xb4] ss:$8 sps:$4 sm:$0xff]  }
  0xc8   : > { %2210 = vmatprep.mubr.bf16.mxu1 %v6860_v42  ;;  %6206 = vmatpush3.bf16.msra.mxu0 %v6929_v44 }
  0xc9   : > { %6318 = vmatpush3.bf16.msra.mxu1 %v6931_v45  ;;  %6207 = vmatprep.subr.bf16.mxu0 %v6944_v46 }
  0xca   : > { %6319 = vmatprep.subr.bf16.mxu1 %v6946_v47  ;;  %v6920_v47 = vld [vmem:[%s7513_s9 + $0xb0] ss:$8 sps:$4 sm:$0xff]  }
  0xcc   : > { %6208 = vmatpush3.bf16.msra.mxu0 %v6945_v49 }
  0xcd   : > { %6320 = vmatpush3.bf16.msra.mxu1 %v6947_v51  ;;  %6417 = vmatprep.subr.bf16.mxu0 %v6960_v52  ;;  %v6924_v51 = vld [vmem:[%s7513_s9 + $0xc4] ss:$8 sps:$4 sm:$0xff]  }
  0xce   : > { %1695 = vmatmul.mubr.bf16.gmra.mxu0 %v6862_v48  ;;  %6529 = vmatprep.subr.bf16.mxu1 %v6962_v53 }
  0xcf   : > { %2211 = vmatmul.mubr.bf16.gmra.mxu1 %v6863_v50  ;;  %1702 = vmatprep.mubr.bf16.mxu0 %v6868_v54  ;;  %v6921_v50 = vld [vmem:[%s7520_s14 + $0xb0] ss:$8 sps:$4 sm:$0xff]  }
  0xd0   : > { %2218 = vmatprep.mubr.bf16.mxu1 %v6870_v55 }
  0xd6   : > { %1703 = vmatmul.mubr.bf16.gmra.mxu0 %v6872_v56 }
  0xd7   : > { %2219 = vmatmul.mubr.bf16.gmra.mxu1 %v6873_v57  ;;  %1710 = vmatprep.mubr.bf16.mxu0 %v6874_v58  ;;  %v6927_v57 = vld [vmem:[%s7520_s14 + $0xc4] ss:$8 sps:$4 sm:$0xff]  }
  0xd8   : > { %2226 = vmatprep.mubr.bf16.mxu1 %v6876_v59 }
  0xde   : > { %1711 = vmatmul.mubr.bf16.gmra.mxu0 %v6878_v60 }
  0xdf   : > { %2227 = vmatmul.mubr.bf16.gmra.mxu1 %v6879_v61  ;;  %1718 = vmatprep.mubr.bf16.mxu0 %v6884_v62 }
  0xe0   : > { %2234 = vmatprep.mubr.bf16.mxu1 %v6886_v63 }
  0xe6   : > { %1719 = vmatmul.mubr.bf16.gmra.mxu0 %v6888_v0 }
  0xe7   : > { %2235 = vmatmul.mubr.bf16.gmra.mxu1 %v6889_v1  ;;  %1726 = vmatprep.mubr.bf16.mxu0 %v6890_v2  ;;  %v6922_v1 = vld [vmem:[%s7513_s9 + $0xc0] ss:$8 sps:$4 sm:$0xff]  }
  0xe8   : > { %2242 = vmatprep.mubr.bf16.mxu1 %v6892_v3 }
  0xee   : > { %v5761_v8 = vpop.f32.mrf.mxu0  ;;  %1727 = vmatmul.mubr.bf16.gmra.mxu0 %v6894_v4  ;;  %v6925_v4 = vld [vmem:[%s7520_s14 + $0xc0] ss:$8 sps:$4 sm:$0xff]  }
  0xef   : > { %v5873_v9 = vpop.f32.mrf.mxu1  ;;  %2243 = vmatmul.mubr.bf16.gmra.mxu1 %v6895_v5  ;;  %1734 = vmatprep.mubr.bf16.mxu0 %v6900_v6  ;;  %v6934_v5 = vld [vmem:[%s7513_s9 + $0xd4] ss:$8 sps:$4 sm:$0xff]  }
  0xf0   : > { %v5762_v10 = vpop.f32.mrf.mxu0  ;;  %2250 = vmatprep.mubr.bf16.mxu1 %v6902_v7 }
  0xf1   : > { %v5763_v12 = vadd.f32 %v5762_v10, %v5761_v8  ;;  %v5874_v13 = vpop.f32.mrf.mxu1 }
  0xf2   : > { %v5875_v16 = vadd.f32 %v5874_v13, %v5873_v9  ;;  %v5764_v17 = vpop.f32.mrf.mxu0 }
  0xf3   : > { %v5876_v18 = vpop.f32.mrf.mxu1 }
  0xf4   : > { %v7687_v19 = vadd.f32 %v5875_v16, %v5763_v12  ;;  %v5765_v20 = vpop.f32.mrf.mxu0 }
  0xf5   : > { %v5766_v22 = vadd.f32 %v5765_v20, %v5764_v17  ;;  %v5877_v23 = vpop.f32.mrf.mxu1  ;;  %v6932_v20 = vld [vmem:[%s7513_s9 + $0xd0] ss:$8 sps:$4 sm:$0xff]  }
  0xf6   : > { %v5878_v24 = vadd.f32 %v5877_v23, %v5876_v18  ;;  %v5767_v25 = vpop.f32.mrf.mxu0  ;;  %1735 = vmatmul.mubr.bf16.gmra.mxu0 %v6904_v11  ;;  %v6937_v11 = vld [vmem:[%s7520_s14 + $0xd4] ss:$8 sps:$4 sm:$0xff]   ;;  %v6935_v23 = vld [vmem:[%s7520_s14 + $0xd0] ss:$8 sps:$4 sm:$0xff]  }
  0xf7   : > { %v5879_v26 = vpop.f32.mrf.mxu1  ;;  %2251 = vmatmul.mubr.bf16.gmra.mxu1 %v6905_v14  ;;  %1742 = vmatprep.mubr.bf16.mxu0 %v6906_v15 }
  0xf8   : > { %v7690_v27 = vadd.f32 %v5878_v24, %v5766_v22  ;;  %v5768_v28 = vpop.f32.mrf.mxu0  ;;  %2258 = vmatprep.mubr.bf16.mxu1 %v6908_v21  ;;  %v6940_v24 = vld [vmem:[%s7513_s9 + $0xe4] ss:$8 sps:$4 sm:$0xff]  }
  0xf9   : > { %v5769_v30 = vadd.f32 %v5768_v28, %v5767_v25  ;;  %v5880_v31 = vpop.f32.mrf.mxu1 }
  0xfa   : > { %v5881_v34 = vadd.f32 %v5880_v31, %v5879_v26  ;;  %v5770_v35 = vpop.f32.mrf.mxu0  ;;  %v6943_v31 = vld [vmem:[%s7520_s14 + $0xe4] ss:$8 sps:$4 sm:$0xff]  }
  0xfb   : > { %v5882_v36 = vpop.f32.mrf.mxu1 }
  0xfc   : > { %v7695_v37 = vadd.f32 %v5881_v34, %v5769_v30  ;;  %v5771_v38 = vpop.f32.mrf.mxu0 }
  0xfd   : > { %v5772_v40 = vadd.f32 %v5771_v38, %v5770_v35  ;;  %v5883_v41 = vpop.f32.mrf.mxu1 }
  0xfe   : > { %v5884_v42 = vadd.f32 %v5883_v41, %v5882_v36  ;;  %v5773_v43 = vpop.f32.mrf.mxu0  ;;  %1743 = vmatmul.mubr.bf16.gmra.mxu0 %v6910_v29 }
  0xff   : > { %v5885_v44 = vpop.f32.mrf.mxu1  ;;  %2259 = vmatmul.mubr.bf16.gmra.mxu1 %v6911_v32  ;;  %1750 = vmatprep.mubr.bf16.mxu0 %v6916_v33 }
 0x100   : > { %v7698_v45 = vadd.f32 %v5884_v42, %v5772_v40  ;;  %v5774_v46 = vpop.f32.mrf.mxu0  ;;  %2266 = vmatprep.mubr.bf16.mxu1 %v6918_v39  ;;  %v6938_v40 = vld [vmem:[%s7513_s9 + $0xe0] ss:$8 sps:$4 sm:$0xff]  }
 0x101   : > { %v5775_v48 = vadd.f32 %v5774_v46, %v5773_v43  ;;  %v5886_v49 = vpop.f32.mrf.mxu1 }
 0x102   : > { %v5887_v52 = vadd.f32 %v5886_v49, %v5885_v44  ;;  %v5776_v53 = vpop.f32.mrf.mxu0 }
 0x103   : > { %v5888_v54 = vpop.f32.mrf.mxu1 }
 0x104   : > { %v7703_v55 = vadd.f32 %v5887_v52, %v5775_v48  ;;  %v5777_v56 = vpop.f32.mrf.mxu0  ;;  %v6950_v48 = vld [vmem:[%s7513_s9 + $0xf4] ss:$8 sps:$4 sm:$0xff]  }
 0x105   : > { %v5778_v58 = vadd.f32 %v5777_v56, %v5776_v53  ;;  %v5889_v59 = vpop.f32.mrf.mxu1 }
 0x106   : > { %v5890_v60 = vadd.f32 %v5889_v59, %v5888_v54  ;;  %v5779_v61 = vpop.f32.mrf.mxu0  ;;  %1751 = vmatmul.mubr.bf16.gmra.mxu0 %v6920_v47  ;;  %v6941_v47 = vld [vmem:[%s7520_s14 + $0xe0] ss:$8 sps:$4 sm:$0xff]  }
 0x107   : > { %v5891_v62 = vpop.f32.mrf.mxu1  ;;  %2267 = vmatmul.mubr.bf16.gmra.mxu1 %v6921_v50  ;;  %1758 = vmatprep.mubr.bf16.mxu0 %v6924_v51  ;;  %v6953_v51 = vld [vmem:[%s7520_s14 + $0xf4] ss:$8 sps:$4 sm:$0xff]  }
 0x108   : > { %v7706_v63 = vadd.f32 %v5890_v60, %v5778_v58  ;;  %v5780_v0 = vpop.f32.mrf.mxu0  ;;  %2274 = vmatprep.mubr.bf16.mxu1 %v6927_v57 }
 0x109   : > { %v5781_v2 = vadd.f32 %v5780_v0, %v5779_v61  ;;  %v5892_v3 = vpop.f32.mrf.mxu1 }
 0x10a   : > { %v5893_v6 = vadd.f32 %v5892_v3, %v5891_v62  ;;  %v5782_v7 = vpop.f32.mrf.mxu0  ;;  %v6951_v3 = vld [vmem:[%s7520_s14 + $0xf0] ss:$8 sps:$4 sm:$0xff]  }
 0x10b   : > { %v5894_v8 = vpop.f32.mrf.mxu1 }
 0x10c   : > { %v7711_v9 = vadd.f32 %v5893_v6, %v5781_v2  ;;  %v5783_v10 = vpop.f32.mrf.mxu0 }
 0x10d   : > { %v5784_v12 = vadd.f32 %v5783_v10, %v5782_v7  ;;  %v5895_v13 = vpop.f32.mrf.mxu1  ;;  %v6959_v7 = vld [vmem:[%s7358_s28 + $0x14] ss:$8 sps:$4 sm:$0xff]  }
 0x10e   : > { %v5896_v14 = vadd.f32 %v5895_v13, %v5894_v8  ;;  %v5785_v15 = vpop.f32.mrf.mxu0  ;;  %1759 = vmatmul.mubr.bf16.gmra.mxu0 %v6922_v1  ;;  %v6948_v1 = vld [vmem:[%s7513_s9 + $0xf0] ss:$8 sps:$4 sm:$0xff]  }
 0x10f   : > { %v5897_v16 = vpop.f32.mrf.mxu1  ;;  %2275 = vmatmul.mubr.bf16.gmra.mxu1 %v6925_v4  ;;  %1766 = vmatprep.mubr.bf16.mxu0 %v6934_v5  ;;  %v6956_v4 = vld [vmem:[%s7370_s11 + $0x14] ss:$8 sps:$4 sm:$0xff]  }
 0x110   : > { %v7714_v17 = vadd.f32 %v5896_v14, %v5784_v12  ;;  %v5786_v18 = vpop.f32.mrf.mxu0  ;;  %2282 = vmatprep.mubr.bf16.mxu1 %v6937_v11 }
 0x111   : > { %v5787_v21 = vadd.f32 %v5786_v18, %v5785_v15  ;;  %v5898_v22 = vpop.f32.mrf.mxu1 }
 0x112   : > { %v5899_v25 = vadd.f32 %v5898_v22, %v5897_v16  ;;  %v5788_v26 = vpop.f32.mrf.mxu0  ;;  %v6954_v22 = vld [vmem:[%s7370_s11 + $0x10] ss:$8 sps:$4 sm:$0xff]  }
 0x113   : > { %v5900_v28 = vpop.f32.mrf.mxu1 }
 0x114   : > { %v7719_v29 = vadd.f32 %v5899_v25, %v5787_v21  ;;  %v5789_v30 = vpop.f32.mrf.mxu0  ;;  %v6961_v25 = vld [vmem:[%s8288_s4 + $0x338] sm:$0xff]  }
 0x115   : > { %v5790_v32 = vadd.f32 %v5789_v30, %v5788_v26  ;;  %v5901_v33 = vpop.f32.mrf.mxu1  ;;  %v6963_v30 = vld [vmem:[%s8288_s4 + $0x3b8] sm:$0xff]  }
 0x116   : > { %v5902_v34 = vadd.f32 %v5901_v33, %v5900_v28  ;;  %v5791_v35 = vpop.f32.mrf.mxu0  ;;  %1767 = vmatmul.mubr.bf16.gmra.mxu0 %v6932_v20 }
 0x117   : > { %v5903_v36 = vpop.f32.mrf.mxu1  ;;  %2283 = vmatmul.mubr.bf16.gmra.mxu1 %v6935_v23  ;;  %1774 = vmatprep.mubr.bf16.mxu0 %v6940_v24  ;;  %v6957_v24 = vld [vmem:[%s7358_s28 + $0x10] ss:$8 sps:$4 sm:$0xff]  }
 0x118   : > { %v7722_v38 = vadd.f32 %v5902_v34, %v5790_v32  ;;  %v5792_v39 = vpop.f32.mrf.mxu0  ;;  %2290 = vmatprep.mubr.bf16.mxu1 %v6943_v31  ;;  %v6966_v31 = vld [vmem:[%s7370_s11 + $0x24] ss:$8 sps:$4 sm:$0xff]  }
 0x119   : > { %v5793_v41 = vadd.f32 %v5792_v39, %v5791_v35  ;;  %v5904_v42 = vpop.f32.mrf.mxu1  ;;  %v6969_v34 = vld [vmem:[%s7358_s28 + $0x24] ss:$8 sps:$4 sm:$0xff]   ;;  %v6976_v35 = vld [vmem:[%s8288_s4 + $0x370] sm:$0xff]  }
 0x11a   : > { %v5905_v43 = vadd.f32 %v5904_v42, %v5903_v36  ;;  %v5794_v44 = vpop.f32.mrf.mxu0  ;;  %v6977_v42 = vld [vmem:[%s8288_s4 + $0x330] sm:$0xff]  }
 0x11b   : > { %v5906_v46 = vpop.f32.mrf.mxu1 }
 0x11c   : > { %v7727_v49 = vadd.f32 %v5905_v43, %v5793_v41  ;;  %v5795_v50 = vpop.f32.mrf.mxu0 }
 0x11d   : > { %v5796_v52 = vadd.f32 %v5795_v50, %v5794_v44  ;;  %v5907_v53 = vpop.f32.mrf.mxu1 }
 0x11e   : > { %v5908_v54 = vadd.f32 %v5907_v53, %v5906_v46  ;;  %v5797_v56 = vpop.f32.mrf.mxu0  ;;  %1775 = vmatmul.mubr.bf16.gmra.mxu0 %v6938_v40  ;;  %v6978_v40 = vld [vmem:[%s8288_s4 + $0x3f0] sm:$0xff]  }
 0x11f   : > { %v5909_v57 = vpop.f32.mrf.mxu1  ;;  %2291 = vmatmul.mubr.bf16.gmra.mxu1 %v6941_v47  ;;  %1782 = vmatprep.mubr.bf16.mxu0 %v6950_v48  ;;  %v6979_v46 = vld [vmem:[%s8288_s4 + $0x3b0] sm:$0xff]   ;;  %v6992_v47 = vld [vmem:[%s8288_s4 + $0x368] sm:$0xff]  }
 0x120   : > { %v7730_v58 = vadd.f32 %v5908_v54, %v5796_v52  ;;  %v5798_v59 = vpop.f32.mrf.mxu0  ;;  %2298 = vmatprep.mubr.bf16.mxu1 %v6953_v51  ;;  %v6994_v51 = vld [vmem:[%s8288_s4 + $0x3e8] sm:$0xff]  }
 0x121   : > { %v5799_v60 = vadd.f32 %v5798_v59, %v5797_v56  ;;  %v5910_v61 = vpop.f32.mrf.mxu1  ;;  %v6964_v54 = vld [vmem:[%s7370_s11 + $0x20] ss:$8 sps:$4 sm:$0xff]   ;;  %v6972_v59 = vld [vmem:[%s7370_s11 + $0x34] ss:$8 sps:$4 sm:$0xff]  }
 0x122   : > { %v5911_v62 = vadd.f32 %v5910_v61, %v5909_v57  ;;  %v5800_v0 = vpop.f32.mrf.mxu0  ;;  %v6967_v57 = vld [vmem:[%s7358_s28 + $0x20] ss:$8 sps:$4 sm:$0xff]  }
 0x123   : > { %v5912_v2 = vpop.f32.mrf.mxu1 }
 0x124   : > { %v7735_v5 = vadd.f32 %v5911_v62, %v5799_v60  ;;  %v5801_v6 = vpop.f32.mrf.mxu0  ;;  %v6975_v62 = vld [vmem:[%s7358_s28 + $0x34] ss:$8 sps:$4 sm:$0xff]  }
 0x125   : > { %v5802_v8 = vadd.f32 %v5801_v6, %v5800_v0  ;;  %v5913_v10 = vpop.f32.mrf.mxu1  ;;  %v6993_v0 = vld [vmem:[%s8288_s4 + $0x328] sm:$0xff]  }
 0x126   : > { %v5914_v11 = vadd.f32 %v5913_v10, %v5912_v2  ;;  %v5803_v12 = vpop.f32.mrf.mxu0  ;;  %1783 = vmatmul.mubr.bf16.gmra.mxu0 %v6948_v1 }
 0x127   : > { %v5915_v13 = vpop.f32.mrf.mxu1  ;;  %2299 = vmatmul.mubr.bf16.gmra.mxu1 %v6951_v3  ;;  %2698 = vmatprep.mubr.bf16.mxu0 %v6956_v4  ;;  %v6995_v3 = vld [vmem:[%s8288_s4 + $0x3a8] sm:$0xff]   ;;  %v7008_v4 = vld [vmem:[%s8288_s4 + $0x360] sm:$0xff]  }
 0x128   : > { %v7738_v14 = vadd.f32 %v5914_v11, %v5802_v8  ;;  %v5804_v15 = vpop.f32.mrf.mxu0  ;;  %3214 = vmatprep.mubr.bf16.mxu1 %v6959_v7  ;;  %v7010_v8 = vld [vmem:[%s8288_s4 + $0x3e0] sm:$0xff]  }
 0x129   : > { %v5805_v16 = vadd.f32 %v5804_v15, %v5803_v12  ;;  %v5916_v18 = vpop.f32.mrf.mxu1 }
 0x12a   : > { %v5917_v20 = vadd.f32 %v5916_v18, %v5915_v13  ;;  %v5806_v21 = vpop.f32.mrf.mxu0  ;;  %v7009_v13 = vld [vmem:[%s8288_s4 + $0x320] sm:$0xff]  }
 0x12b   : > { %v5918_v23 = vpop.f32.mrf.mxu1  ;;  %v7011_v18 = vld [vmem:[%s8288_s4 + $0x3a0] sm:$0xff]  }
 0x12c   : > { %v7745_v26 = vadd.f32 %v5917_v20, %v5805_v16  ;;  %v5807_v28 = vpop.f32.mrf.mxu0  ;;  %v7024_v20 = vld [vmem:[%s8288_s4 + $0x358] sm:$0xff]  }
 0x12d   : > { %v5808_v32 = vadd.f32 %v5807_v28, %v5806_v21  ;;  %v5919_v33 = vpop.f32.mrf.mxu1  ;;  %v6973_v28 = vld [vmem:[%s7358_s28 + $0x30] ss:$8 sps:$4 sm:$0xff]  }
 0x12e   : > { %v5920_v36 = vadd.f32 %v5919_v33, %v5918_v23  ;;  %v5809_v39 = vpop.f32.mrf.mxu0  ;;  %2699 = vmatmul.mubr.bf16.vlgmr.msra.gmra.mxu0 %v6954_v22  ;;  %v6970_v23 = vld [vmem:[%s7370_s11 + $0x30] ss:$8 sps:$4 sm:$0xff]   ;;  %v6985_v33 = vld [vmem:[%s7358_s28 + $0x44] ss:$8 sps:$4 sm:$0xff]  }
 0x12f   : > { %v5921_v41 = vpop.f32.mrf.mxu1  ;;  %3215 = vmatmul.mubr.bf16.vlgmr.msra.gmra.mxu1 %v6957_v24  ;;  %6418 = vmatpush3.bf16.msra.mxu0 %v6961_v25  ;;  %v7026_v24 = vld [vmem:[%s8288_s4 + $0x3d8] sm:$0xff]  }
 0x130   : > { %v7761_v43 = vadd.f32 %v5920_v36, %v5808_v32  ;;  %v5810_v44 = vpop.f32.mrf.mxu0  ;;  %6530 = vmatpush3.bf16.msra.mxu1 %v6963_v30  ;;  %2706 = vmatprep.mubr.bf16.mxu0 %v6966_v31  ;;  %v6982_v30 = vld [vmem:[%s7370_s11 + $0x44] ss:$8 sps:$4 sm:$0xff]  }
 0x131   : > { %v5811_v48 = vadd.f32 %v5810_v44, %v5809_v39  ;;  %v5922_v50 = vpop.f32.mrf.mxu1  ;;  %3222 = vmatprep.mubr.bf16.mxu1 %v6969_v34  ;;  %6419 = vmatprep.subr.bf16.mxu0 %v6976_v35  ;;  %v7025_v34 = vld [vmem:[%s8288_s4 + $0x318] sm:$0xff]   ;;  %v7042_v44 = vld [vmem:[%s8288_s4 + $0x3d0] sm:$0xff]  }
 0x132   : > { %v5923_v52 = vadd.f32 %v5922_v50, %v5921_v41  ;;  %v5812_v53 = vpop.f32.mrf.mxu0  ;;  %6531 = vmatprep.subr.bf16.mxu1 %v6978_v40  ;;  %v7027_v39 = vld [vmem:[%s8288_s4 + $0x398] sm:$0xff]   ;;  %v7040_v40 = vld [vmem:[%s8288_s4 + $0x350] sm:$0xff]  }
 0x133   : > { %v5924_v56 = vpop.f32.mrf.mxu1  ;;  %6420 = vmatpush3.bf16.msra.mxu0 %v6977_v42  ;;  %v7041_v50 = vld [vmem:[%s8288_s4 + $0x310] sm:$0xff]  }
 0x134   : > { %v7775_v60 = vadd.f32 %v5923_v52, %v5811_v48  ;;  %v5813_v61 = vpop.f32.mrf.mxu0  ;;  %6532 = vmatpush3.bf16.msra.mxu1 %v6979_v46  ;;  %6421 = vmatprep.subr.bf16.mxu0 %v6992_v47 }
 0x135   : > { %v5814_v1 = vadd.f32 %v5813_v61, %v5812_v53  ;;  %v5925_v2 = vpop.f32.mrf.mxu1  ;;  %6533 = vmatprep.subr.bf16.mxu1 %v6994_v51  ;;  %v7043_v53 = vld [vmem:[%s8288_s4 + $0x390] sm:$0xff]   ;;  %v7058_v61 = vld [vmem:[%s8288_s4 + $0x3c8] sm:$0xff]  }
 0x136   : > { %v5926_v6 = vadd.f32 %v5925_v2, %v5924_v56  ;;  %v5815_v7 = vpop.f32.mrf.mxu0  ;;  %2707 = vmatmul.mubr.bf16.gmra.mxu0 %v6964_v54  ;;  %v7056_v54 = vld [vmem:[%s8288_s4 + $0x348] sm:$0xff]  }
 0x137   : > { %v5927_v10 = vpop.f32.mrf.mxu1  ;;  %3223 = vmatmul.mubr.bf16.gmra.mxu1 %v6967_v57  ;;  %2714 = vmatprep.mubr.bf16.mxu0 %v6972_v59  ;;  %v6980_v59 = vld [vmem:[%s7370_s11 + $0x40] ss:$8 sps:$4 sm:$0xff]  }
 0x138   : > { %v7790_v11 = vadd.f32 %v5926_v6, %v5814_v1  ;;  %v5816_v12 = vpop.f32.mrf.mxu0  ;;  %3230 = vmatprep.mubr.bf16.mxu1 %v6975_v62  ;;  %6422 = vmatpush3.bf16.msra.mxu0 %v6993_v0  ;;  %v6983_v0 = vld [vmem:[%s7358_s28 + $0x40] ss:$8 sps:$4 sm:$0xff]   ;;  %v6988_v1 = vld [vmem:[%s7370_s11 + $0x54] ss:$8 sps:$4 sm:$0xff]  }
 0x139   : > { %v5817_v15 = vadd.f32 %v5816_v12, %v5815_v7  ;;  %v5928_v16 = vpop.f32.mrf.mxu1  ;;  %6534 = vmatpush3.bf16.msra.mxu1 %v6995_v3  ;;  %6423 = vmatprep.subr.bf16.mxu0 %v7008_v4  ;;  %v6991_v4 = vld [vmem:[%s7358_s28 + $0x54] ss:$8 sps:$4 sm:$0xff]   ;;  %v7057_v6 = vld [vmem:[%s8288_s4 + $0x308] sm:$0xff]   ;;  %v7072_v12 = vld [vmem:[%s8288_s4 + $0x340] sm:$0xff]  }
 0x13a   : > { %v5929_v21 = vadd.f32 %v5928_v16, %v5927_v10  ;;  %v5818_v22 = vpop.f32.mrf.mxu0  ;;  %6535 = vmatprep.subr.bf16.mxu1 %v7010_v8  ;;  %v7059_v10 = vld [vmem:[%s8288_s4 + $0x388] sm:$0xff]   ;;  %v7074_v16 = vld [vmem:[%s8288_s4 + $0x3c0] sm:$0xff]  }
 0x13b   : > { %v5930_v25 = vpop.f32.mrf.mxu1 }
 0x13c   : > { %v7807_v31 = vadd.f32 %v5929_v21, %v5817_v15  ;;  %v5819_v32 = vpop.f32.mrf.mxu0  ;;  %6424 = vmatpush3.bf16.msra.mxu0 %v7009_v13 }
 0x13d   : > { %v5820_v35 = vadd.f32 %v5819_v32, %v5818_v22  ;;  %v5931_v36 = vpop.f32.mrf.mxu1  ;;  %6536 = vmatpush3.bf16.msra.mxu1 %v7011_v18  ;;  %6425 = vmatprep.subr.bf16.mxu0 %v7024_v20  ;;  %v7073_v22 = vld [vmem:[%s8288_s4 + $0x300] sm:$0xff]   ;;  %v6986_v32 = vld [vmem:[%s7370_s11 + $0x50] ss:$8 sps:$4 sm:$0xff]  }
 0x13e   : > { %v5932_v41 = vadd.f32 %v5931_v36, %v5930_v25  ;;  %v5821_v42 = vpop.f32.mrf.mxu0  ;;  %2715 = vmatmul.mubr.bf16.gmra.mxu0 %v6970_v23  ;;  %6537 = vmatprep.subr.bf16.mxu1 %v7026_v24  ;;  %v7075_v25 = vld [vmem:[%s8288_s4 + $0x380] sm:$0xff]  }
 0x13f   : > { %v5933_v46 = vpop.f32.mrf.mxu1  ;;  %3231 = vmatmul.mubr.bf16.gmra.mxu1 %v6973_v28  ;;  %2722 = vmatprep.mubr.bf16.mxu0 %v6982_v30 }
 0x140   : > { %v7822_v47 = vadd.f32 %v5932_v41, %v5820_v35  ;;  %v5822_v48 = vpop.f32.mrf.mxu0  ;;  %3238 = vmatprep.mubr.bf16.mxu1 %v6985_v33  ;;  %6426 = vmatpush3.bf16.msra.mxu0 %v7025_v34  ;;  %v6989_v34 = vld [vmem:[%s7358_s28 + $0x50] ss:$8 sps:$4 sm:$0xff]   ;;  %v6998_v35 = vld [vmem:[%s7370_s11 + $0x64] ss:$8 sps:$4 sm:$0xff]  }
 0x141   : > { %v5823_v51 = vadd.f32 %v5822_v48, %v5821_v42  ;;  %v5934_v52 = vpop.f32.mrf.mxu1  ;;  %6538 = vmatpush3.bf16.msra.mxu1 %v7027_v39  ;;  %6427 = vmatprep.subr.bf16.mxu0 %v7040_v40  ;;  %v7001_v40 = vld [vmem:[%s7358_s28 + $0x64] ss:$8 sps:$4 sm:$0xff]  }
 0x142   : > { %v5935_v56 = vadd.f32 %v5934_v52, %v5933_v46  ;;  %v5824_v57 = vpop.f32.mrf.mxu0  ;;  %6539 = vmatprep.subr.bf16.mxu1 %v7042_v44 }
 0x143   : > { %v5936_v62 = vpop.f32.mrf.mxu1 }
 0x144   : > { %v7839_v2 = vadd.f32 %v5935_v56, %v5823_v51  ;;  %v5825_v3 = vpop.f32.mrf.mxu0  ;;  %6428 = vmatpush3.bf16.msra.mxu0 %v7041_v50 }
 0x145   : > { %v5826_v7 = vadd.f32 %v5825_v3, %v5824_v57  ;;  %v5937_v8 = vpop.f32.mrf.mxu1  ;;  %6540 = vmatpush3.bf16.msra.mxu1 %v7043_v53  ;;  %6429 = vmatprep.subr.bf16.mxu0 %v7056_v54  ;;  %v6996_v57 = vld [vmem:[%s7370_s11 + $0x60] ss:$8 sps:$4 sm:$0xff]   ;;  %v7007_v3 = vld [vmem:[%s7358_s28 + $0x74] ss:$8 sps:$4 sm:$0xff]  }
 0x146   : > { %v5938_v13 = vadd.f32 %v5937_v8, %v5936_v62  ;;  %v5827_v15 = vpop.f32.mrf.mxu0  ;;  %2723 = vmatmul.mubr.bf16.gmra.mxu0 %v6980_v59  ;;  %6541 = vmatprep.subr.bf16.mxu1 %v7058_v61  ;;  %v6999_v61 = vld [vmem:[%s7358_s28 + $0x60] ss:$8 sps:$4 sm:$0xff]   ;;  %v7004_v62 = vld [vmem:[%s7370_s11 + $0x74] ss:$8 sps:$4 sm:$0xff]  }
 0x147   : > { %v5939_v18 = vpop.f32.mrf.mxu1  ;;  %3239 = vmatmul.mubr.bf16.gmra.mxu1 %v6983_v0  ;;  %2730 = vmatprep.mubr.bf16.mxu0 %v6988_v1 }
 0x148   : > { %v7854_v20 = vadd.f32 %v5938_v13, %v5826_v7  ;;  %v5828_v21 = vpop.f32.mrf.mxu0  ;;  %3246 = vmatprep.mubr.bf16.mxu1 %v6991_v4  ;;  %6430 = vmatpush3.bf16.msra.mxu0 %v7057_v6 }
 0x149   : > { %v5829_v23 = vadd.f32 %v5828_v21, %v5827_v15  ;;  %v5940_v24 = vpop.f32.mrf.mxu1  ;;  %6542 = vmatpush3.bf16.msra.mxu1 %v7059_v10  ;;  %6431 = vmatprep.subr.bf16.mxu0 %v7072_v12 }
 0x14a   : > { %v5941_v28 = vadd.f32 %v5940_v24, %v5939_v18  ;;  %v5830_v30 = vpop.f32.mrf.mxu0  ;;  %6543 = vmatprep.subr.bf16.mxu1 %v7074_v16  ;;  %v7005_v24 = vld [vmem:[%s7358_s28 + $0x70] ss:$8 sps:$4 sm:$0xff]  }
 0x14b   : > { %v5942_v33 = vpop.f32.mrf.mxu1 }
 0x14c   : > { %v7865_v36 = vadd.f32 %v5941_v28, %v5829_v23  ;;  %v5831_v39 = vpop.f32.mrf.mxu0  ;;  %6432 = vmatpush3.bf16.msra.mxu0 %v7073_v22  ;;  %v7002_v22 = vld [vmem:[%s7370_s11 + $0x70] ss:$8 sps:$4 sm:$0xff]  }
 0x14d   : > { %v5832_v41 = vadd.f32 %v5831_v39, %v5830_v30  ;;  %v5943_v42 = vpop.f32.mrf.mxu1  ;;  %6544 = vmatpush3.bf16.msra.mxu1 %v7075_v25  ;;  %v7014_v25 = vld [vmem:[%s7370_s11 + $0x84] ss:$8 sps:$4 sm:$0xff]  }
 0x14e   : > { %v5944_v44 = vadd.f32 %v5943_v42, %v5942_v33  ;;  %v5833_v46 = vpop.f32.mrf.mxu0  ;;  %2731 = vmatmul.mubr.bf16.gmra.mxu0 %v6986_v32  ;;  %v7017_v32 = vld [vmem:[%s7358_s28 + $0x84] ss:$8 sps:$4 sm:$0xff]  }
 0x14f   : > { %v5945_v48 = vpop.f32.mrf.mxu1  ;;  %3247 = vmatmul.mubr.bf16.gmra.mxu1 %v6989_v34  ;;  %2738 = vmatprep.mubr.bf16.mxu0 %v6998_v35 }
 0x150   : > { %v7868_v50 = vadd.f32 %v5944_v44, %v5832_v41  ;;  %v5834_v51 = vpop.f32.mrf.mxu0  ;;  %3254 = vmatprep.mubr.bf16.mxu1 %v7001_v40 }
 0x151   : > { %v5835_v52 = vadd.f32 %v5834_v51, %v5833_v46  ;;  %v5946_v53 = vpop.f32.mrf.mxu1 }
 0x152   : > { %v5947_v54 = vadd.f32 %v5946_v53, %v5945_v48  ;;  %v5836_v56 = vpop.f32.mrf.mxu0 }
 0x153   : > { %v5948_v59 = vpop.f32.mrf.mxu1 }
 0x154   : > { %v7873_v0 = vadd.f32 %v5947_v54, %v5835_v52  ;;  %v5837_v1 = vpop.f32.mrf.mxu0  ;;  %v7012_v52 = vld [vmem:[%s7370_s11 + $0x80] ss:$8 sps:$4 sm:$0xff]  }
 0x155   : > { %v5838_v4 = vadd.f32 %v5837_v1, %v5836_v56  ;;  %v5949_v6 = vpop.f32.mrf.mxu1  ;;  %v7015_v54 = vld [vmem:[%s7358_s28 + $0x80] ss:$8 sps:$4 sm:$0xff]   ;;  %v7020_v56 = vld [vmem:[%s7370_s11 + $0x94] ss:$8 sps:$4 sm:$0xff]  }
 0x156   : > { %v5950_v7 = vadd.f32 %v5949_v6, %v5948_v59  ;;  %v5839_v8 = vpop.f32.mrf.mxu0  ;;  %2739 = vmatmul.mubr.bf16.gmra.mxu0 %v6996_v57 }
 0x157   : > { %v5951_v10 = vpop.f32.mrf.mxu1  ;;  %3255 = vmatmul.mubr.bf16.gmra.mxu1 %v6999_v61  ;;  %2746 = vmatprep.mubr.bf16.mxu0 %v7004_v62  ;;  %v7023_v61 = vld [vmem:[%s7358_s28 + $0x94] ss:$8 sps:$4 sm:$0xff]  }
 0x158   : > { %v7876_v12 = vadd.f32 %v5950_v7, %v5838_v4  ;;  %v5840_v13 = vpop.f32.mrf.mxu0  ;;  %3262 = vmatprep.mubr.bf16.mxu1 %v7007_v3 }
 0x159   : > { %v5841_v15 = vadd.f32 %v5840_v13, %v5839_v8  ;;  %v5952_v16 = vpop.f32.mrf.mxu1 }
 0x15a   : > { %v5953_v18 = vadd.f32 %v5952_v16, %v5951_v10  ;;  %v5842_v21 = vpop.f32.mrf.mxu0 }
 0x15b   : > { %v5954_v23 = vpop.f32.mrf.mxu1 }
 0x15c   : > { %v7881_v28 = vadd.f32 %v5953_v18, %v5841_v15  ;;  %v5843_v30 = vpop.f32.mrf.mxu0  ;;  %v7018_v18 = vld [vmem:[%s7370_s11 + $0x90] ss:$8 sps:$4 sm:$0xff]  }
 0x15d   : > { %v5844_v33 = vadd.f32 %v5843_v30, %v5842_v21  ;;  %v5955_v34 = vpop.f32.mrf.mxu1  ;;  %v7033_v30 = vld [vmem:[%s7358_s28 + $0xa4] ss:$8 sps:$4 sm:$0xff]  }
 0x15e   : > { %v5956_v35 = vadd.f32 %v5955_v34, %v5954_v23  ;;  %v5845_v39 = vpop.f32.mrf.mxu0  ;;  %2747 = vmatmul.mubr.bf16.gmra.mxu0 %v7002_v22  ;;  %v7021_v22 = vld [vmem:[%s7358_s28 + $0x90] ss:$8 sps:$4 sm:$0xff]   ;;  %v7030_v23 = vld [vmem:[%s7370_s11 + $0xa4] ss:$8 sps:$4 sm:$0xff]  }
 0x15f   : > { %v5957_v40 = vpop.f32.mrf.mxu1  ;;  %3263 = vmatmul.mubr.bf16.gmra.mxu1 %v7005_v24  ;;  %2754 = vmatprep.mubr.bf16.mxu0 %v7014_v25 }
 0x160   : > { %v7884_v41 = vadd.f32 %v5956_v35, %v5844_v33  ;;  %v5846_v42 = vpop.f32.mrf.mxu0  ;;  %3270 = vmatprep.mubr.bf16.mxu1 %v7017_v32 }
 0x161   : > { %v5847_v44 = vadd.f32 %v5846_v42, %v5845_v39  ;;  %v5958_v46 = vpop.f32.mrf.mxu1 }
 0x162   : > { %v5959_v48 = vadd.f32 %v5958_v46, %v5957_v40  ;;  %v5848_v51 = vpop.f32.mrf.mxu0 }
 0x163   : > { %v5960_v53 = vpop.f32.mrf.mxu1 }
 0x164   : > { %v7889_v57 = vadd.f32 %v5959_v48, %v5847_v44  ;;  %v5849_v59 = vpop.f32.mrf.mxu0 }
 0x165   : > { %v5850_v62 = vadd.f32 %v5849_v59, %v5848_v51  ;;  %v5961_v1 = vpop.f32.mrf.mxu1  ;;  %v7036_v59 = vld [vmem:[%s7370_s11 + $0xb4] ss:$8 sps:$4 sm:$0xff]  }
 0x166   : > { %v5962_v3 = vadd.f32 %v5961_v1, %v5960_v53  ;;  %v5851_v4 = vpop.f32.mrf.mxu0  ;;  %2755 = vmatmul.mubr.bf16.gmra.mxu0 %v7012_v52  ;;  %v7028_v52 = vld [vmem:[%s7370_s11 + $0xa0] ss:$8 sps:$4 sm:$0xff]  }
 0x167   : > { %v5963_v6 = vpop.f32.mrf.mxu1  ;;  %3271 = vmatmul.mubr.bf16.gmra.mxu1 %v7015_v54  ;;  %2762 = vmatprep.mubr.bf16.mxu0 %v7020_v56  ;;  %v7031_v56 = vld [vmem:[%s7358_s28 + $0xa0] ss:$8 sps:$4 sm:$0xff]  }
 0x168   : > { %v7892_v7 = vadd.f32 %v5962_v3, %v5850_v62  ;;  %v5852_v8 = vpop.f32.mrf.mxu0  ;;  %3278 = vmatprep.mubr.bf16.mxu1 %v7023_v61  ;;  %v7039_v62 = vld [vmem:[%s7358_s28 + $0xb4] ss:$8 sps:$4 sm:$0xff]  }
 0x169   : > { %v5853_v10 = vadd.f32 %v5852_v8, %v5851_v4  ;;  %v5964_v13 = vpop.f32.mrf.mxu1 }
 0x16a   : > { %v5965_v15 = vadd.f32 %v5964_v13, %v5963_v6  ;;  %v5854_v16 = vpop.f32.mrf.mxu0 }
 0x16b   : > { %v5966_v21 = vpop.f32.mrf.mxu1 }
 0x16c   : > { %v7897_v24 = vadd.f32 %v5965_v15, %v5853_v10  ;;  %v5855_v25 = vpop.f32.mrf.mxu0 }
 0x16d   : > { %v5856_v32 = vadd.f32 %v5855_v25, %v5854_v16  ;;  %v5967_v33 = vpop.f32.mrf.mxu1 }
 0x16e   : > { %v5968_v34 = vadd.f32 %v5967_v33, %v5966_v21  ;;  %v5985_v35 = vpop.f32.mrf.mxu0  ;;  %2763 = vmatmul.mubr.bf16.gmra.mxu0 %v7018_v18  ;;  %v7046_v33 = vld [vmem:[%s7370_s11 + $0xc4] ss:$8 sps:$4 sm:$0xff]  }
 0x16f   : > { %v6097_v39 = vpop.f32.mrf.mxu1  ;;  %3279 = vmatmul.mubr.bf16.gmra.mxu1 %v7021_v22  ;;  %2770 = vmatprep.mubr.bf16.mxu0 %v7030_v23  ;;  %v7034_v23 = vld [vmem:[%s7370_s11 + $0xb0] ss:$8 sps:$4 sm:$0xff]  }
 0x170   : > { %v7900_v40 = vadd.f32 %v5968_v34, %v5856_v32  ;;  %v5986_v42 = vpop.f32.mrf.mxu0  ;;  %3286 = vmatprep.mubr.bf16.mxu1 %v7033_v30  ;;  %v7037_v32 = vld [vmem:[%s7358_s28 + $0xb0] ss:$8 sps:$4 sm:$0xff]  }
 0x171   : > { %v5987_v44 = vadd.f32 %v5986_v42, %v5985_v35  ;;  %v6098_v46 = vpop.f32.mrf.mxu1 }
 0x172   : > { %v6099_v48 = vadd.f32 %v6098_v46, %v6097_v39  ;;  %v5988_v51 = vpop.f32.mrf.mxu0 }
 0x173   : > { %v1791_v53 = vadd.f32 %v5987_v44, %v7687_v19  ;;  %v6100_v54 = vpop.f32.mrf.mxu1 }
 0x174   : > { %v5989_v61 = vpop.f32.mrf.mxu0 }
 0x175   : > { %v7907_v1 = vadd.f32 %v6099_v48, %v1791_v53  ;;  %v5990_v3 = vadd.f32 %v5989_v61, %v5988_v51  ;;  %v6101_v4 = vpop.f32.mrf.mxu1  ;;  %v7044_v61 = vld [vmem:[%s7370_s11 + $0xc0] ss:$8 sps:$4 sm:$0xff]  }
 0x176   : > { %v6102_v6 = vadd.f32 %v6101_v4, %v6100_v54  ;;  %v5991_v8 = vpop.f32.mrf.mxu0  ;;  %2771 = vmatmul.mubr.bf16.gmra.mxu0 %v7028_v52  ;;  %v7047_v4 = vld [vmem:[%s7358_s28 + $0xc0] ss:$8 sps:$4 sm:$0xff]  }
 0x177   : > { %v1792_v10 = vadd.f32 %v5990_v3, %v7690_v27  ;;  %v6103_v13 = vpop.f32.mrf.mxu1  ;;  %3287 = vmatmul.mubr.bf16.gmra.mxu1 %v7031_v56  ;;  %2778 = vmatprep.mubr.bf16.mxu0 %v7036_v59  ;;  %v7049_v27 = vld [vmem:[%s7358_s28 + $0xc4] ss:$8 sps:$4 sm:$0xff]  }
 0x178   : > { %v5992_v19 = vpop.f32.mrf.mxu0  ;;  %3294 = vmatprep.mubr.bf16.mxu1 %v7039_v62 }
 0x179   : > { %v7910_v15 = vadd.f32 %v6102_v6, %v1792_v10  ;;  %v5993_v16 = vadd.f32 %v5992_v19, %v5991_v8  ;;  %v6104_v18 = vpop.f32.mrf.mxu1  ;;  %v7052_v6 = vld [vmem:[%s7370_s11 + $0xd4] ss:$8 sps:$4 sm:$0xff]  }
 0x17a   : > { %v6105_v21 = vadd.f32 %v6104_v18, %v6103_v13  ;;  %v5994_v22 = vpop.f32.mrf.mxu0 }
 0x17b   : > { %v1793_v25 = vadd.f32 %v5993_v16, %v7695_v37  ;;  %v6106_v30 = vpop.f32.mrf.mxu1 }
 0x17c   : > { %v5995_v34 = vpop.f32.mrf.mxu0 }
 0x17d   : > { %v7917_v35 = vadd.f32 %v6105_v21, %v1793_v25  ;;  %v5996_v39 = vadd.f32 %v5995_v34, %v5994_v22  ;;  %v6107_v42 = vpop.f32.mrf.mxu1  ;;  %v7050_v34 = vld [vmem:[%s7370_s11 + $0xd0] ss:$8 sps:$4 sm:$0xff]  }
 0x17e   : > { %v6108_v44 = vadd.f32 %v6107_v42, %v6106_v30  ;;  %v5997_v46 = vpop.f32.mrf.mxu0  ;;  %2779 = vmatmul.mubr.bf16.gmra.mxu0 %v7034_v23  ;;  %v7053_v42 = vld [vmem:[%s7358_s28 + $0xd0] ss:$8 sps:$4 sm:$0xff]  }
 0x17f   : > { %v1794_v48 = vadd.f32 %v5996_v39, %v7698_v45  ;;  %v6109_v51 = vpop.f32.mrf.mxu1  ;;  %3295 = vmatmul.mubr.bf16.gmra.mxu1 %v7037_v32  ;;  %2786 = vmatprep.mubr.bf16.mxu0 %v7046_v33  ;;  %v7055_v45 = vld [vmem:[%s7358_s28 + $0xd4] ss:$8 sps:$4 sm:$0xff]  }
 0x180   : > { %v5998_v37 = vpop.f32.mrf.mxu0  ;;  %3302 = vmatprep.mubr.bf16.mxu1 %v7049_v27 }
 0x181   : > { %v7920_v52 = vadd.f32 %v6108_v44, %v1794_v48  ;;  %v5999_v53 = vadd.f32 %v5998_v37, %v5997_v46  ;;  %v6110_v54 = vpop.f32.mrf.mxu1  ;;  %v7062_v44 = vld [vmem:[%s7370_s11 + $0xe4] ss:$8 sps:$4 sm:$0xff]  }
 0x182   : > { %v6111_v56 = vadd.f32 %v6110_v54, %v6109_v51  ;;  %v6000_v59 = vpop.f32.mrf.mxu0 }
 0x183   : > { %v1795_v62 = vadd.f32 %v5999_v53, %v7703_v55  ;;  %v6112_v3 = vpop.f32.mrf.mxu1 }
 0x184   : > { %v6001_v8 = vpop.f32.mrf.mxu0 }
 0x185   : > { %v7927_v10 = vadd.f32 %v6111_v56, %v1795_v62  ;;  %v6002_v13 = vadd.f32 %v6001_v8, %v6000_v59  ;;  %v6113_v19 = vpop.f32.mrf.mxu1  ;;  %v7060_v8 = vld [vmem:[%s7370_s11 + $0xe0] ss:$8 sps:$4 sm:$0xff]  }
 0x186   : > { %v6114_v16 = vadd.f32 %v6113_v19, %v6112_v3  ;;  %v6003_v18 = vpop.f32.mrf.mxu0  ;;  %2787 = vmatmul.mubr.bf16.gmra.mxu0 %v7044_v61  ;;  %v7063_v19 = vld [vmem:[%s7358_s28 + $0xe0] ss:$8 sps:$4 sm:$0xff]  }
 0x187   : > { %v1796_v21 = vadd.f32 %v6002_v13, %v7706_v63  ;;  %v6115_v22 = vpop.f32.mrf.mxu1  ;;  %3303 = vmatmul.mubr.bf16.gmra.mxu1 %v7047_v4  ;;  %2794 = vmatprep.mubr.bf16.mxu0 %v7052_v6  ;;  %v7065_v63 = vld [vmem:[%s7358_s28 + $0xe4] ss:$8 sps:$4 sm:$0xff]  }
 0x188   : > { %v6004_v55 = vpop.f32.mrf.mxu0  ;;  %3310 = vmatprep.mubr.bf16.mxu1 %v7055_v45 }
 0x189   : > { %v7930_v23 = vadd.f32 %v6114_v16, %v1796_v21  ;;  %v6005_v25 = vadd.f32 %v6004_v55, %v6003_v18  ;;  %v6116_v30 = vpop.f32.mrf.mxu1  ;;  %v7068_v16 = vld [vmem:[%s7370_s11 + $0xf4] ss:$8 sps:$4 sm:$0xff]  }
 0x18a   : > { %v6117_v32 = vadd.f32 %v6116_v30, %v6115_v22  ;;  %v6006_v33 = vpop.f32.mrf.mxu0 }
 0x18b   : > { %v1797_v27 = vadd.f32 %v6005_v25, %v7711_v9  ;;  %v6118_v39 = vpop.f32.mrf.mxu1 }
 0x18c   : > { %v6007_v46 = vpop.f32.mrf.mxu0 }
 0x18d   : > { %v7937_v48 = vadd.f32 %v6117_v32, %v1797_v27  ;;  %v6008_v51 = vadd.f32 %v6007_v46, %v6006_v33  ;;  %v6119_v37 = vpop.f32.mrf.mxu1  ;;  %v7066_v46 = vld [vmem:[%s7370_s11 + $0xf0] ss:$8 sps:$4 sm:$0xff]  }
 0x18e   : > { %v6120_v53 = vadd.f32 %v6119_v37, %v6118_v39  ;;  %v6009_v54 = vpop.f32.mrf.mxu0  ;;  %2795 = vmatmul.mubr.bf16.gmra.mxu0 %v7050_v34  ;;  %v7069_v37 = vld [vmem:[%s7358_s28 + $0xf0] ss:$8 sps:$4 sm:$0xff]  }
 0x18f   : > { %v1798_v56 = vadd.f32 %v6008_v51, %v7714_v17  ;;  %v6121_v59 = vpop.f32.mrf.mxu1  ;;  %3311 = vmatmul.mubr.bf16.gmra.mxu1 %v7053_v42  ;;  %2802 = vmatprep.mubr.bf16.mxu0 %v7062_v44  ;;  %v7071_v17 = vld [vmem:[%s7358_s28 + $0xf4] ss:$8 sps:$4 sm:$0xff]  }
 0x190   : > { %v6010_v9 = vpop.f32.mrf.mxu0  ;;  %3318 = vmatprep.mubr.bf16.mxu1 %v7065_v63 }
 0x191   : > { %v7940_v61 = vadd.f32 %v6120_v53, %v1798_v56  ;;  %v6011_v62 = vadd.f32 %v6010_v9, %v6009_v54  ;;  %v6122_v3 = vpop.f32.mrf.mxu1  ;;  %v7078_v53 = vld [vmem:[%s7370_s11 + $0x104] ss:$8 sps:$4 sm:$0xff]  }
 0x192   : > { %v6123_v4 = vadd.f32 %v6122_v3, %v6121_v59  ;;  %v6012_v6 = vpop.f32.mrf.mxu0 }
 0x193   : > { %v1799_v45 = vadd.f32 %v6011_v62, %v7719_v29  ;;  %v6124_v13 = vpop.f32.mrf.mxu1 }
 0x194   : > { %v6013_v18 = vpop.f32.mrf.mxu0 }
 0x195   : > { %v7947_v21 = vadd.f32 %v6123_v4, %v1799_v45  ;;  %v6014_v22 = vadd.f32 %v6013_v18, %v6012_v6  ;;  %v6125_v55 = vpop.f32.mrf.mxu1  ;;  %v7076_v18 = vld [vmem:[%s7370_s11 + $0x100] ss:$8 sps:$4 sm:$0xff]  }
 0x196   : > { %v6126_v25 = vadd.f32 %v6125_v55, %v6124_v13  ;;  %v6015_v30 = vpop.f32.mrf.mxu0  ;;  %2803 = vmatmul.mubr.bf16.gmra.mxu0 %v7060_v8  ;;  %v7079_v55 = vld [vmem:[%s7358_s28 + $0x100] ss:$8 sps:$4 sm:$0xff]  }
 0x197   : > { %v1800_v32 = vadd.f32 %v6014_v22, %v7722_v38  ;;  %v6127_v33 = vpop.f32.mrf.mxu1  ;;  %3319 = vmatmul.mubr.bf16.gmra.mxu1 %v7063_v19  ;;  %2810 = vmatprep.mubr.bf16.mxu0 %v7068_v16  ;;  %v7081_v38 = vld [vmem:[%s7358_s28 + $0x104] ss:$8 sps:$4 sm:$0xff]  }
 0x198   : > { %v6016_v29 = vpop.f32.mrf.mxu0  ;;  %3326 = vmatprep.mubr.bf16.mxu1 %v7071_v17 }
 0x199   : > { %v7950_v34 = vadd.f32 %v6126_v25, %v1800_v32  ;;  %v6017_v27 = vadd.f32 %v6016_v29, %v6015_v30  ;;  %v6128_v39 = vpop.f32.mrf.mxu1  ;;  %v7084_v25 = vld [vmem:[%s7513_s9 + $0x14] ss:$8 sps:$4 sm:$0xff]  }
 0x19a   : > { %v6129_v42 = vadd.f32 %v6128_v39, %v6127_v33  ;;  %v6018_v44 = vpop.f32.mrf.mxu0 }
 0x19b   : > { %v1801_v63 = vadd.f32 %v6017_v27, %v7727_v49  ;;  %v6130_v51 = vpop.f32.mrf.mxu1 }
 0x19c   : > { %v6019_v54 = vpop.f32.mrf.mxu0 }
 0x19d   : > { %v7957_v56 = vadd.f32 %v6129_v42, %v1801_v63  ;;  %v6020_v59 = vadd.f32 %v6019_v54, %v6018_v44  ;;  %v6131_v9 = vpop.f32.mrf.mxu1  ;;  %v7082_v54 = vld [vmem:[%s7513_s9 + $0x10] ss:$8 sps:$4 sm:$0xff]  }
 0x19e   : > { %v6132_v62 = vadd.f32 %v6131_v9, %v6130_v51  ;;  %v6021_v3 = vpop.f32.mrf.mxu0  ;;  %2811 = vmatmul.mubr.bf16.gmra.mxu0 %v7066_v46  ;;  %v7085_v9 = vld [vmem:[%s7520_s14 + $0x10] ss:$8 sps:$4 sm:$0xff]  }
 0x19f   : > { %v1802_v4 = vadd.f32 %v6020_v59, %v7730_v58  ;;  %v6133_v6 = vpop.f32.mrf.mxu1  ;;  %3327 = vmatmul.mubr.bf16.gmra.mxu1 %v7069_v37  ;;  %2818 = vmatprep.mubr.bf16.mxu0 %v7078_v53  ;;  %v7087_v58 = vld [vmem:[%s7520_s14 + $0x14] ss:$8 sps:$4 sm:$0xff]  }
 0x1a0   : > { %v6022_v49 = vpop.f32.mrf.mxu0  ;;  %3334 = vmatprep.mubr.bf16.mxu1 %v7081_v38 }
 0x1a1   : > { %v7960_v8 = vadd.f32 %v6132_v62, %v1802_v4  ;;  %v6023_v45 = vadd.f32 %v6022_v49, %v6021_v3  ;;  %v6134_v13 = vpop.f32.mrf.mxu1  ;;  %v7090_v62 = vld [vmem:[%s7513_s9 + $0x24] ss:$8 sps:$4 sm:$0xff]  }
 0x1a2   : > { %v6135_v19 = vadd.f32 %v6134_v13, %v6133_v6  ;;  %v6024_v16 = vpop.f32.mrf.mxu0 }
 0x1a3   : > { %v1803_v17 = vadd.f32 %v6023_v45, %v7735_v5  ;;  %v6136_v22 = vpop.f32.mrf.mxu1 }
 0x1a4   : > { %v6025_v30 = vpop.f32.mrf.mxu0 }
 0x1a5   : > { %v7967_v32 = vadd.f32 %v6135_v19, %v1803_v17  ;;  %v6026_v33 = vadd.f32 %v6025_v30, %v6024_v16  ;;  %v6137_v29 = vpop.f32.mrf.mxu1  ;;  %v7088_v30 = vld [vmem:[%s7513_s9 + $0x20] ss:$8 sps:$4 sm:$0xff]  }
 0x1a6   : > { %v6138_v27 = vadd.f32 %v6137_v29, %v6136_v22  ;;  %v6027_v39 = vpop.f32.mrf.mxu0  ;;  %2819 = vmatmul.mubr.bf16.gmra.mxu0 %v7076_v18  ;;  %v7091_v29 = vld [vmem:[%s7520_s14 + $0x20] ss:$8 sps:$4 sm:$0xff]  }
 0x1a7   : > { %v1804_v42 = vadd.f32 %v6026_v33, %v7738_v14  ;;  %v6139_v44 = vpop.f32.mrf.mxu1  ;;  %3335 = vmatmul.mubr.bf16.gmra.mxu1 %v7079_v55  ;;  %3730 = vmatprep.mubr.bf16.mxu0 %v7084_v25  ;;  %v7093_v14 = vld [vmem:[%s7520_s14 + $0x24] ss:$8 sps:$4 sm:$0xff]  }
 0x1a8   : > { %v6028_v5 = vpop.f32.mrf.mxu0  ;;  %4246 = vmatprep.mubr.bf16.mxu1 %v7087_v58 }
 0x1a9   : > { %v7970_v46 = vadd.f32 %v6138_v27, %v1804_v42  ;;  %v6029_v63 = vadd.f32 %v6028_v5, %v6027_v39  ;;  %v6140_v51 = vpop.f32.mrf.mxu1  ;;  %v7096_v27 = vld [vmem:[%s7513_s9 + $0x34] ss:$8 sps:$4 sm:$0xff]  }
 0x1aa   : > { %v6141_v37 = vadd.f32 %v6140_v51, %v6139_v44  ;;  %v6030_v53 = vpop.f32.mrf.mxu0 }
 0x1ab   : > { %v1805_v38 = vadd.f32 %v6029_v63, %v7745_v26  ;;  %v6142_v59 = vpop.f32.mrf.mxu1 }
 0x1ac   : > { %v6031_v3 = vpop.f32.mrf.mxu0 }
 0x1ad   : > { %v7977_v4 = vadd.f32 %v6141_v37, %v1805_v38  ;;  %v6032_v6 = vadd.f32 %v6031_v3, %v6030_v53  ;;  %v6143_v49 = vpop.f32.mrf.mxu1  ;;  %v7094_v3 = vld [vmem:[%s7513_s9 + $0x30] ss:$8 sps:$4 sm:$0xff]  }
 0x1ae   : > { %v6144_v45 = vadd.f32 %v6143_v49, %v6142_v59  ;;  %v6033_v13 = vpop.f32.mrf.mxu0  ;;  %3731 = vmatmul.mubr.bf16.vlgmr.msra.gmra.mxu0 %v7082_v54  ;;  %v7097_v49 = vld [vmem:[%s7520_s14 + $0x30] ss:$8 sps:$4 sm:$0xff]  }
 0x1af   : > { %v1806_v19 = vadd.f32 %v6032_v6, %v7761_v43  ;;  %v6145_v16 = vpop.f32.mrf.mxu1  ;;  %4247 = vmatmul.mubr.bf16.vlgmr.msra.gmra.mxu1 %v7085_v9  ;;  %3738 = vmatprep.mubr.bf16.mxu0 %v7090_v62  ;;  %v7099_v43 = vld [vmem:[%s7520_s14 + $0x34] ss:$8 sps:$4 sm:$0xff]  }
 0x1b0   : > { %v6034_v26 = vpop.f32.mrf.mxu0  ;;  %4254 = vmatprep.mubr.bf16.mxu1 %v7093_v14 }
 0x1b1   : > { %v7980_v18 = vadd.f32 %v6144_v45, %v1806_v19  ;;  %v6035_v17 = vadd.f32 %v6034_v26, %v6033_v13  ;;  %v6146_v22 = vpop.f32.mrf.mxu1  ;;  %v7102_v45 = vld [vmem:[%s7513_s9 + $0x44] ss:$8 sps:$4 sm:$0xff]  }
 0x1b2   : > { %v6147_v55 = vadd.f32 %v6146_v22, %v6145_v16  ;;  %v6036_v25 = vpop.f32.mrf.mxu0 }
 0x1b3   : > { %v1807_v58 = vadd.f32 %v6035_v17, %v7775_v60  ;;  %v6148_v33 = vpop.f32.mrf.mxu1 }
 0x1b4   : > { %v6037_v39 = vpop.f32.mrf.mxu0 }
 0x1b5   : > { %v7987_v42 = vadd.f32 %v6147_v55, %v1807_v58  ;;  %v6038_v44 = vadd.f32 %v6037_v39, %v6036_v25  ;;  %v6149_v5 = vpop.f32.mrf.mxu1  ;;  %v7100_v39 = vld [vmem:[%s7513_s9 + $0x40] ss:$8 sps:$4 sm:$0xff]  }
 0x1b6   : > { %v6150_v63 = vadd.f32 %v6149_v5, %v6148_v33  ;;  %v6039_v51 = vpop.f32.mrf.mxu0  ;;  %3739 = vmatmul.mubr.bf16.gmra.mxu0 %v7088_v30  ;;  %v7103_v5 = vld [vmem:[%s7520_s14 + $0x40] ss:$8 sps:$4 sm:$0xff]  }
 0x1b7   : > { %v1808_v37 = vadd.f32 %v6038_v44, %v7790_v11  ;;  %v6151_v53 = vpop.f32.mrf.mxu1  ;;  %4255 = vmatmul.mubr.bf16.gmra.mxu1 %v7091_v29  ;;  %3746 = vmatprep.mubr.bf16.mxu0 %v7096_v27  ;;  %v7105_v11 = vld [vmem:[%s7520_s14 + $0x44] ss:$8 sps:$4 sm:$0xff]  }
 0x1b8   : > { %v6040_v60 = vpop.f32.mrf.mxu0  ;;  %4262 = vmatprep.mubr.bf16.mxu1 %v7099_v43 }
 0x1b9   : > { %v7990_v54 = vadd.f32 %v6150_v63, %v1808_v37  ;;  %v6041_v38 = vadd.f32 %v6040_v60, %v6039_v51  ;;  %v6152_v59 = vpop.f32.mrf.mxu1  ;;  %v7108_v63 = vld [vmem:[%s7513_s9 + $0x54] ss:$8 sps:$4 sm:$0xff]  }
 0x1ba   : > { %v6153_v9 = vadd.f32 %v6152_v59, %v6151_v53  ;;  %v6042_v62 = vpop.f32.mrf.mxu0 }
 0x1bb   : > { %v1809_v14 = vadd.f32 %v6041_v38, %v7807_v31  ;;  %v6154_v6 = vpop.f32.mrf.mxu1 }
 0x1bc   : > { %v6043_v13 = vpop.f32.mrf.mxu0 }
 0x1bd   : > { %v7997_v19 = vadd.f32 %v6153_v9, %v1809_v14  ;;  %v6044_v16 = vadd.f32 %v6043_v13, %v6042_v62  ;;  %v6155_v26 = vpop.f32.mrf.mxu1  ;;  %v7106_v13 = vld [vmem:[%s7513_s9 + $0x50] ss:$8 sps:$4 sm:$0xff]  }
 0x1be   : > { %v6156_v17 = vadd.f32 %v6155_v26, %v6154_v6  ;;  %v6045_v22 = vpop.f32.mrf.mxu0  ;;  %3747 = vmatmul.mubr.bf16.gmra.mxu0 %v7094_v3  ;;  %v7109_v26 = vld [vmem:[%s7520_s14 + $0x50] ss:$8 sps:$4 sm:$0xff]  }
 0x1bf   : > { %v1810_v55 = vadd.f32 %v6044_v16, %v7822_v47  ;;  %v6157_v25 = vpop.f32.mrf.mxu1  ;;  %4263 = vmatmul.mubr.bf16.gmra.mxu1 %v7097_v49  ;;  %3754 = vmatprep.mubr.bf16.mxu0 %v7102_v45  ;;  %v7111_v47 = vld [vmem:[%s7520_s14 + $0x54] ss:$8 sps:$4 sm:$0xff]  }
 0x1c0   : > { %v6046_v31 = vpop.f32.mrf.mxu0  ;;  %4270 = vmatprep.mubr.bf16.mxu1 %v7105_v11 }
 0x1c1   : > { %v8000_v30 = vadd.f32 %v6156_v17, %v1810_v55  ;;  %v6047_v58 = vadd.f32 %v6046_v31, %v6045_v22  ;;  %v6158_v33 = vpop.f32.mrf.mxu1  ;;  %v7114_v17 = vld [vmem:[%s7513_s9 + $0x64] ss:$8 sps:$4 sm:$0xff]  }
 0x1c2   : > { %v6159_v29 = vadd.f32 %v6158_v33, %v6157_v25  ;;  %v6048_v27 = vpop.f32.mrf.mxu0 }
 0x1c3   : > { %v1811_v43 = vadd.f32 %v6047_v58, %v7839_v2  ;;  %v6160_v44 = vpop.f32.mrf.mxu1 }
 0x1c4   : > { %v6049_v51 = vpop.f32.mrf.mxu0 }
 0x1c5   : > { %v8007_v37 = vadd.f32 %v6159_v29, %v1811_v43  ;;  %v6050_v53 = vadd.f32 %v6049_v51, %v6048_v27  ;;  %v6161_v60 = vpop.f32.mrf.mxu1  ;;  %v7112_v51 = vld [vmem:[%s7513_s9 + $0x60] ss:$8 sps:$4 sm:$0xff]  }
 0x1c6   : > { %v6162_v38 = vadd.f32 %v6161_v60, %v6160_v44  ;;  %v6051_v59 = vpop.f32.mrf.mxu0  ;;  %3755 = vmatmul.mubr.bf16.gmra.mxu0 %v7100_v39  ;;  %v7115_v60 = vld [vmem:[%s7520_s14 + $0x60] ss:$8 sps:$4 sm:$0xff]  }
 0x1c7   : > { %v1812_v9 = vadd.f32 %v6050_v53, %v7854_v20  ;;  %v6163_v62 = vpop.f32.mrf.mxu1  ;;  %4271 = vmatmul.mubr.bf16.gmra.mxu1 %v7103_v5  ;;  %3762 = vmatprep.mubr.bf16.mxu0 %v7108_v63  ;;  %v7117_v20 = vld [vmem:[%s7520_s14 + $0x64] ss:$8 sps:$4 sm:$0xff]  }
 0x1c8   : > { %v6052_v2 = vpop.f32.mrf.mxu0  ;;  %4278 = vmatprep.mubr.bf16.mxu1 %v7111_v47 }
 0x1c9   : > { %v8010_v3 = vadd.f32 %v6162_v38, %v1812_v9  ;;  %v6053_v14 = vadd.f32 %v6052_v2, %v6051_v59  ;;  %v6164_v6 = vpop.f32.mrf.mxu1  ;;  %v7120_v38 = vld [vmem:[%s7513_s9 + $0x74] ss:$8 sps:$4 sm:$0xff]  }
 0x1ca   : > { %v6165_v49 = vadd.f32 %v6164_v6, %v6163_v62  ;;  %v6054_v45 = vpop.f32.mrf.mxu0 }
 0x1cb   : > { %v1813_v11 = vadd.f32 %v6053_v14, %v7865_v36  ;;  %v6166_v16 = vpop.f32.mrf.mxu1 }
 0x1cc   : > { %v6055_v22 = vpop.f32.mrf.mxu0 }
 0x1cd   : > { %v8017_v55 = vadd.f32 %v6165_v49, %v1813_v11  ;;  %v6056_v25 = vadd.f32 %v6055_v22, %v6054_v45  ;;  %v6167_v31 = vpop.f32.mrf.mxu1  ;;  %v7118_v22 = vld [vmem:[%s7513_s9 + $0x70] ss:$8 sps:$4 sm:$0xff]  }
 0x1ce   : > { %v6168_v58 = vadd.f32 %v6167_v31, %v6166_v16  ;;  %v6057_v33 = vpop.f32.mrf.mxu0  ;;  %3763 = vmatmul.mubr.bf16.gmra.mxu0 %v7106_v13  ;;  %v7121_v31 = vld [vmem:[%s7520_s14 + $0x70] ss:$8 sps:$4 sm:$0xff]  }
 0x1cf   : > { %v1814_v29 = vadd.f32 %v6056_v25, %v7868_v50  ;;  %v6169_v27 = vpop.f32.mrf.mxu1  ;;  %4279 = vmatmul.mubr.bf16.gmra.mxu1 %v7109_v26  ;;  %3770 = vmatprep.mubr.bf16.mxu0 %v7114_v17  ;;  %v7123_v50 = vld [vmem:[%s7520_s14 + $0x74] ss:$8 sps:$4 sm:$0xff]  }
 0x1d0   : > { %v6058_v36 = vpop.f32.mrf.mxu0  ;;  %4286 = vmatprep.mubr.bf16.mxu1 %v7117_v20 }
 0x1d1   : > { %v8020_v39 = vadd.f32 %v6168_v58, %v1814_v29  ;;  %v6059_v43 = vadd.f32 %v6058_v36, %v6057_v33  ;;  %v6170_v44 = vpop.f32.mrf.mxu1  ;;  %v7126_v58 = vld [vmem:[%s7513_s9 + $0x84] ss:$8 sps:$4 sm:$0xff]  }
 0x1d2   : > { %v6171_v5 = vadd.f32 %v6170_v44, %v6169_v27  ;;  %v6060_v63 = vpop.f32.mrf.mxu0 }
 0x1d3   : > { %v1815_v47 = vadd.f32 %v6059_v43, %v7873_v0  ;;  %v6172_v53 = vpop.f32.mrf.mxu1 }
 0x1d4   : > { %v6061_v59 = vpop.f32.mrf.mxu0 }
 0x1d5   : > { %v8027_v9 = vadd.f32 %v6171_v5, %v1815_v47  ;;  %v6062_v62 = vadd.f32 %v6061_v59, %v6060_v63  ;;  %v6173_v2 = vpop.f32.mrf.mxu1  ;;  %v7124_v59 = vld [vmem:[%s7513_s9 + $0x80] ss:$8 sps:$4 sm:$0xff]  }
 0x1d6   : > { %v6174_v14 = vadd.f32 %v6173_v2, %v6172_v53  ;;  %v6063_v6 = vpop.f32.mrf.mxu0  ;;  %3771 = vmatmul.mubr.bf16.gmra.mxu0 %v7112_v51  ;;  %v7127_v2 = vld [vmem:[%s7520_s14 + $0x80] ss:$8 sps:$4 sm:$0xff]  }
 0x1d7   : > { %v1816_v49 = vadd.f32 %v6062_v62, %v7876_v12  ;;  %v6175_v45 = vpop.f32.mrf.mxu1  ;;  %4287 = vmatmul.mubr.bf16.gmra.mxu1 %v7115_v60  ;;  %3778 = vmatprep.mubr.bf16.mxu0 %v7120_v38  ;;  %v7129_v12 = vld [vmem:[%s7520_s14 + $0x84] ss:$8 sps:$4 sm:$0xff]  }
 0x1d8   : > { %v6064_v0 = vpop.f32.mrf.mxu0  ;;  %4294 = vmatprep.mubr.bf16.mxu1 %v7123_v50 }
 0x1d9   : > { %v8030_v13 = vadd.f32 %v6174_v14, %v1816_v49  ;;  %v6065_v11 = vadd.f32 %v6064_v0, %v6063_v6  ;;  %v6176_v16 = vpop.f32.mrf.mxu1  ;;  %v7132_v14 = vld [vmem:[%s7513_s9 + $0x94] ss:$8 sps:$4 sm:$0xff]  }
 0x1da   : > { %v6177_v26 = vadd.f32 %v6176_v16, %v6175_v45  ;;  %v6066_v17 = vpop.f32.mrf.mxu0 }
 0x1db   : > { %v1817_v20 = vadd.f32 %v6065_v11, %v7881_v28  ;;  %v6178_v25 = vpop.f32.mrf.mxu1 }
 0x1dc   : > { %v6067_v33 = vpop.f32.mrf.mxu0 }
 0x1dd   : > { %v8037_v29 = vadd.f32 %v6177_v26, %v1817_v20  ;;  %v6068_v27 = vadd.f32 %v6067_v33, %v6066_v17  ;;  %v6179_v36 = vpop.f32.mrf.mxu1  ;;  %v7130_v33 = vld [vmem:[%s7513_s9 + $0x90] ss:$8 sps:$4 sm:$0xff]  }
 0x1de   : > { %v6180_v43 = vadd.f32 %v6179_v36, %v6178_v25  ;;  %v6069_v44 = vpop.f32.mrf.mxu0  ;;  %3779 = vmatmul.mubr.bf16.gmra.mxu0 %v7118_v22  ;;  %v7133_v36 = vld [vmem:[%s7520_s14 + $0x90] ss:$8 sps:$4 sm:$0xff]  }
 0x1df   : > { %v1818_v5 = vadd.f32 %v6068_v27, %v7884_v41  ;;  %v6181_v63 = vpop.f32.mrf.mxu1  ;;  %4295 = vmatmul.mubr.bf16.gmra.mxu1 %v7121_v31  ;;  %3786 = vmatprep.mubr.bf16.mxu0 %v7126_v58  ;;  %v7135_v41 = vld [vmem:[%s7520_s14 + $0x94] ss:$8 sps:$4 sm:$0xff]  }
 0x1e0   : > { %v6070_v28 = vpop.f32.mrf.mxu0  ;;  %4302 = vmatprep.mubr.bf16.mxu1 %v7129_v12 }
 0x1e1   : > { %v8040_v51 = vadd.f32 %v6180_v43, %v1818_v5  ;;  %v6071_v47 = vadd.f32 %v6070_v28, %v6069_v44  ;;  %v6182_v53 = vpop.f32.mrf.mxu1  ;;  %v7138_v43 = vld [vmem:[%s7513_s9 + $0xa4] ss:$8 sps:$4 sm:$0xff]  }
 0x1e2   : > { %v6183_v60 = vadd.f32 %v6182_v53, %v6181_v63  ;;  %v6072_v38 = vpop.f32.mrf.mxu0 }
 0x1e3   : > { %v1819_v50 = vadd.f32 %v6071_v47, %v7889_v57  ;;  %v6184_v62 = vpop.f32.mrf.mxu1 }
 0x1e4   : > { %v6073_v6 = vpop.f32.mrf.mxu0 }
 0x1e5   : > { %v8047_v49 = vadd.f32 %v6183_v60, %v1819_v50  ;;  %v6074_v45 = vadd.f32 %v6073_v6, %v6072_v38  ;;  %v6185_v0 = vpop.f32.mrf.mxu1  ;;  %v7136_v6 = vld [vmem:[%s7513_s9 + $0xa0] ss:$8 sps:$4 sm:$0xff]  }
 0x1e6   : > { %v6186_v11 = vadd.f32 %v6185_v0, %v6184_v62  ;;  %v6075_v16 = vpop.f32.mrf.mxu0  ;;  %3787 = vmatmul.mubr.bf16.gmra.mxu0 %v7124_v59  ;;  %v7139_v0 = vld [vmem:[%s7520_s14 + $0xa0] ss:$8 sps:$4 sm:$0xff]  }
 0x1e7   : > { %v1820_v26 = vadd.f32 %v6074_v45, %v7892_v7  ;;  %v6187_v17 = vpop.f32.mrf.mxu1  ;;  %4303 = vmatmul.mubr.bf16.gmra.mxu1 %v7127_v2  ;;  %3794 = vmatprep.mubr.bf16.mxu0 %v7132_v14  ;;  %v7141_v7 = vld [vmem:[%s7520_s14 + $0xa4] ss:$8 sps:$4 sm:$0xff]  }
 0x1e8   : > { %v6076_v57 = vpop.f32.mrf.mxu0  ;;  %4310 = vmatprep.mubr.bf16.mxu1 %v7135_v41 }
 0x1e9   : > { %v8050_v22 = vadd.f32 %v6186_v11, %v1820_v26  ;;  %v6077_v20 = vadd.f32 %v6076_v57, %v6075_v16  ;;  %v6188_v25 = vpop.f32.mrf.mxu1  ;;  %v7144_v11 = vld [vmem:[%s7513_s9 + $0xb4] ss:$8 sps:$4 sm:$0xff]  }
 0x1ea   : > { %v6189_v31 = vadd.f32 %v6188_v25, %v6187_v17  ;;  %v6078_v58 = vpop.f32.mrf.mxu0 }
 0x1eb   : > { %v1821_v12 = vadd.f32 %v6077_v20, %v7897_v24  ;;  %v6190_v27 = vpop.f32.mrf.mxu1 }
 0x1ec   : > { %v6079_v44 = vpop.f32.mrf.mxu0 }
 0x1ed   : > { %v8057_v5 = vadd.f32 %v6189_v31, %v1821_v12  ;;  %v6080_v63 = vadd.f32 %v6079_v44, %v6078_v58  ;;  %v6191_v28 = vpop.f32.mrf.mxu1  ;;  %v7142_v44 = vld [vmem:[%s7513_s9 + $0xb0] ss:$8 sps:$4 sm:$0xff]  }
 0x1ee   : > { %v6192_v47 = vadd.f32 %v6191_v28, %v6190_v27  ;;  %v6209_v53 = vpop.f32.mrf.mxu0  ;;  %3795 = vmatmul.mubr.bf16.gmra.mxu0 %v7130_v33  ;;  %v7145_v28 = vld [vmem:[%s7520_s14 + $0xb0] ss:$8 sps:$4 sm:$0xff]  }
 0x1ef   : > { %v1822_v60 = vadd.f32 %v6080_v63, %v7900_v40  ;;  %v6321_v38 = vpop.f32.mrf.mxu1  ;;  %4311 = vmatmul.mubr.bf16.gmra.mxu1 %v7133_v36  ;;  %3802 = vmatprep.mubr.bf16.mxu0 %v7138_v43  ;;  %v7147_v40 = vld [vmem:[%s7520_s14 + $0xb4] ss:$8 sps:$4 sm:$0xff]  }
 0x1f0   : > { %v6210_v24 = vpop.f32.mrf.mxu0  ;;  %4318 = vmatprep.mubr.bf16.mxu1 %v7141_v7 }
 0x1f1   : > { %v8060_v59 = vadd.f32 %v6192_v47, %v1822_v60  ;;  %v6211_v50 = vadd.f32 %v6210_v24, %v6209_v53  ;;  %v6322_v62 = vpop.f32.mrf.mxu1  ;;  %v7150_v47 = vld [vmem:[%s7513_s9 + $0xc4] ss:$8 sps:$4 sm:$0xff]  }
 0x1f2   : > { %v6323_v2 = vadd.f32 %v6322_v62, %v6321_v38  ;;  %v6212_v14 = vpop.f32.mrf.mxu0 }
 0x1f3   : > { %v2827_v41 = vadd.f32 %v6211_v50, %v7907_v1  ;;  %v6324_v45 = vpop.f32.mrf.mxu1 }
 0x1f4   : > { %v6213_v16 = vpop.f32.mrf.mxu0 }
 0x1f5   : > { %v8067_v26 = vadd.f32 %v6323_v2, %v2827_v41  ;;  %v6214_v17 = vadd.f32 %v6213_v16, %v6212_v14  ;;  %v6325_v57 = vpop.f32.mrf.mxu1  ;;  %v7148_v16 = vld [vmem:[%s7513_s9 + $0xc0] ss:$8 sps:$4 sm:$0xff]  }
 0x1f6   : > { %v6326_v20 = vadd.f32 %v6325_v57, %v6324_v45  ;;  %v6215_v25 = vpop.f32.mrf.mxu0  ;;  %3803 = vmatmul.mubr.bf16.gmra.mxu0 %v7136_v6  ;;  %v7151_v57 = vld [vmem:[%s7520_s14 + $0xc0] ss:$8 sps:$4 sm:$0xff]  }
 0x1f7   : > { %v2828_v31 = vadd.f32 %v6214_v17, %v7910_v15  ;;  %v6327_v58 = vpop.f32.mrf.mxu1  ;;  %4319 = vmatmul.mubr.bf16.gmra.mxu1 %v7139_v0  ;;  %3810 = vmatprep.mubr.bf16.mxu0 %v7144_v11  ;;  %v7153_v15 = vld [vmem:[%s7520_s14 + $0xc4] ss:$8 sps:$4 sm:$0xff]  }
 0x1f8   : > { %v6216_v1 = vpop.f32.mrf.mxu0  ;;  %4326 = vmatprep.mubr.bf16.mxu1 %v7147_v40 }
 0x1f9   : > { %v8070_v33 = vadd.f32 %v6326_v20, %v2828_v31  ;;  %v6217_v12 = vadd.f32 %v6216_v1, %v6215_v25  ;;  %v6328_v27 = vpop.f32.mrf.mxu1  ;;  %v7156_v20 = vld [vmem:[%s7513_s9 + $0xd4] ss:$8 sps:$4 sm:$0xff]  }
 0x1fa   : > { %v6329_v36 = vadd.f32 %v6328_v27, %v6327_v58  ;;  %v6218_v43 = vpop.f32.mrf.mxu0 }
 0x1fb   : > { %v2829_v7 = vadd.f32 %v6217_v12, %v7917_v35  ;;  %v6330_v63 = vpop.f32.mrf.mxu1 }
 0x1fc   : > { %v6219_v53 = vpop.f32.mrf.mxu0 }
 0x1fd   : > { %v8077_v60 = vadd.f32 %v6329_v36, %v2829_v7  ;;  %v6220_v38 = vadd.f32 %v6219_v53, %v6218_v43  ;;  %v6331_v24 = vpop.f32.mrf.mxu1  ;;  %v7154_v53 = vld [vmem:[%s7513_s9 + $0xd0] ss:$8 sps:$4 sm:$0xff]  }
 0x1fe   : > { %v6332_v50 = vadd.f32 %v6331_v24, %v6330_v63  ;;  %v6221_v62 = vpop.f32.mrf.mxu0  ;;  %3811 = vmatmul.mubr.bf16.gmra.mxu0 %v7142_v44  ;;  %v7157_v24 = vld [vmem:[%s7520_s14 + $0xd0] ss:$8 sps:$4 sm:$0xff]  }
 0x1ff   : > { %v2830_v2 = vadd.f32 %v6220_v38, %v7920_v52  ;;  %v6333_v14 = vpop.f32.mrf.mxu1  ;;  %4327 = vmatmul.mubr.bf16.gmra.mxu1 %v7145_v28  ;;  %3818 = vmatprep.mubr.bf16.mxu0 %v7150_v47  ;;  %v7159_v52 = vld [vmem:[%s7520_s14 + $0xd4] ss:$8 sps:$4 sm:$0xff]  }
 0x200   : > { %v6222_v35 = vpop.f32.mrf.mxu0  ;;  %4334 = vmatprep.mubr.bf16.mxu1 %v7153_v15 }
 0x201   : > { %v8080_v6 = vadd.f32 %v6332_v50, %v2830_v2  ;;  %v6223_v41 = vadd.f32 %v6222_v35, %v6221_v62  ;;  %v6334_v45 = vpop.f32.mrf.mxu1  ;;  %v7162_v50 = vld [vmem:[%s7513_s9 + $0xe4] ss:$8 sps:$4 sm:$0xff]  }
 0x202   : > { %v6335_v0 = vadd.f32 %v6334_v45, %v6333_v14  ;;  %v6224_v11 = vpop.f32.mrf.mxu0 }
 0x203   : > { %v2831_v40 = vadd.f32 %v6223_v41, %v7927_v10  ;;  %v6336_v17 = vpop.f32.mrf.mxu1 }
 0x204   : > { %v6225_v25 = vpop.f32.mrf.mxu0 }
 0x205   : > { %v8087_v31 = vadd.f32 %v6335_v0, %v2831_v40  ;;  %v6226_v58 = vadd.f32 %v6225_v25, %v6224_v11  ;;  %v6337_v1 = vpop.f32.mrf.mxu1  ;;  %v7160_v25 = vld [vmem:[%s7513_s9 + $0xe0] ss:$8 sps:$4 sm:$0xff]  }
 0x206   : > { %v6338_v12 = vadd.f32 %v6337_v1, %v6336_v17  ;;  %v6227_v27 = vpop.f32.mrf.mxu0  ;;  %3819 = vmatmul.mubr.bf16.gmra.mxu0 %v7148_v16  ;;  %v7163_v1 = vld [vmem:[%s7520_s14 + $0xe0] ss:$8 sps:$4 sm:$0xff]  }
 0x207   : > { %v2832_v36 = vadd.f32 %v6226_v58, %v7930_v23  ;;  %v6339_v43 = vpop.f32.mrf.mxu1  ;;  %4335 = vmatmul.mubr.bf16.gmra.mxu1 %v7151_v57  ;;  %3826 = vmatprep.mubr.bf16.mxu0 %v7156_v20  ;;  %v7165_v23 = vld [vmem:[%s7520_s14 + $0xe4] ss:$8 sps:$4 sm:$0xff]  }
 0x208   : > { %v6228_v10 = vpop.f32.mrf.mxu0  ;;  %4342 = vmatprep.mubr.bf16.mxu1 %v7159_v52 }
 0x209   : > { %v8090_v44 = vadd.f32 %v6338_v12, %v2832_v36  ;;  %v6229_v7 = vadd.f32 %v6228_v10, %v6227_v27  ;;  %v6340_v63 = vpop.f32.mrf.mxu1  ;;  %v7168_v12 = vld [vmem:[%s7513_s9 + $0xf4] ss:$8 sps:$4 sm:$0xff]  }
 0x20a   : > { %v6341_v28 = vadd.f32 %v6340_v63, %v6339_v43  ;;  %v6230_v47 = vpop.f32.mrf.mxu0 }
 0x20b   : > { %v2833_v15 = vadd.f32 %v6229_v7, %v7937_v48  ;;  %v6342_v38 = vpop.f32.mrf.mxu1 }
 0x20c   : > { %v6231_v62 = vpop.f32.mrf.mxu0 }
 0x20d   : > { %v8097_v2 = vadd.f32 %v6341_v28, %v2833_v15  ;;  %v6232_v14 = vadd.f32 %v6231_v62, %v6230_v47  ;;  %v6343_v35 = vpop.f32.mrf.mxu1  ;;  %v7166_v62 = vld [vmem:[%s7513_s9 + $0xf0] ss:$8 sps:$4 sm:$0xff]  }
 0x20e   : > { %v6344_v41 = vadd.f32 %v6343_v35, %v6342_v38  ;;  %v6233_v45 = vpop.f32.mrf.mxu0  ;;  %3827 = vmatmul.mubr.bf16.gmra.mxu0 %v7154_v53  ;;  %v7169_v35 = vld [vmem:[%s7520_s14 + $0xf0] ss:$8 sps:$4 sm:$0xff]  }
 0x20f   : > { %v2834_v0 = vadd.f32 %v6232_v14, %v7940_v61  ;;  %v6345_v11 = vpop.f32.mrf.mxu1  ;;  %4343 = vmatmul.mubr.bf16.gmra.mxu1 %v7157_v24  ;;  %3834 = vmatprep.mubr.bf16.mxu0 %v7162_v50  ;;  %v7171_v61 = vld [vmem:[%s7520_s14 + $0xf4] ss:$8 sps:$4 sm:$0xff]  }
 0x210   : > { %v6234_v48 = vpop.f32.mrf.mxu0  ;;  %4350 = vmatprep.mubr.bf16.mxu1 %v7165_v23 }
 0x211   : > { %v8100_v16 = vadd.f32 %v6344_v41, %v2834_v0  ;;  %v6235_v40 = vadd.f32 %v6234_v48, %v6233_v45  ;;  %v6346_v17 = vpop.f32.mrf.mxu1  ;;  %v7174_v41 = vld [vmem:[%s7513_s9 + $0x104] ss:$8 sps:$4 sm:$0xff]  }
 0x212   : > { %v6347_v57 = vadd.f32 %v6346_v17, %v6345_v11  ;;  %v6236_v20 = vpop.f32.mrf.mxu0 }
 0x213   : > { %v2835_v52 = vadd.f32 %v6235_v40, %v7947_v21  ;;  %v6348_v58 = vpop.f32.mrf.mxu1 }
 0x214   : > { %v6237_v27 = vpop.f32.mrf.mxu0 }
 0x215   : > { %v8107_v36 = vadd.f32 %v6347_v57, %v2835_v52  ;;  %v6238_v43 = vadd.f32 %v6237_v27, %v6236_v20  ;;  %v6349_v10 = vpop.f32.mrf.mxu1  ;;  %v7172_v27 = vld [vmem:[%s7513_s9 + $0x100] ss:$8 sps:$4 sm:$0xff]   ;;  %s5617_s9 = sshll.u32 %s8296_s21, 7 }
 0x216   : > { %v6350_v7 = vadd.f32 %v6349_v10, %v6348_v58  ;;  %v6239_v63 = vpop.f32.mrf.mxu0  ;;  %3835 = vmatmul.mubr.bf16.gmra.mxu0 %v7160_v25  ;;  %v7175_v10 = vld [vmem:[%s7520_s14 + $0x100] ss:$8 sps:$4 sm:$0xff]   ;;  %s8198_s16 = scalar_lea.vmem %s8290_s6, %s5617_s9 }
 0x217   : > { %v2836_v28 = vadd.f32 %v6238_v43, %v7950_v34  ;;  %v6351_v47 = vpop.f32.mrf.mxu1  ;;  %4351 = vmatmul.mubr.bf16.gmra.mxu1 %v7163_v1  ;;  %3842 = vmatprep.mubr.bf16.mxu0 %v7168_v12  ;;  %v7177_v34 = vld [vmem:[%s7520_s14 + $0x104] ss:$8 sps:$4 sm:$0xff]  }
 0x218   : > { %v6240_v21 = vpop.f32.mrf.mxu0  ;;  %4358 = vmatprep.mubr.bf16.mxu1 %v7171_v61 }
 0x219   : > { %v8110_v53 = vadd.f32 %v6350_v7, %v2836_v28  ;;  %v6241_v15 = vadd.f32 %v6240_v21, %v6239_v63  ;;  %v6352_v38 = vpop.f32.mrf.mxu1 }
 0x21a   : > { %v6353_v24 = vadd.f32 %v6352_v38, %v6351_v47  ;;  %v6242_v50 = vpop.f32.mrf.mxu0 }
 0x21b   : > { %v2837_v23 = vadd.f32 %v6241_v15, %v7957_v56  ;;  %v6354_v14 = vpop.f32.mrf.mxu1 }
 0x21c   : > { %v6243_v45 = vpop.f32.mrf.mxu0 }
 0x21d   : > { %v8117_v0 = vadd.f32 %v6353_v24, %v2837_v23  ;;  %v6244_v11 = vadd.f32 %v6243_v45, %v6242_v50  ;;  %v6355_v48 = vpop.f32.mrf.mxu1 }
 0x21e   : > { %v6356_v40 = vadd.f32 %v6355_v48, %v6354_v14  ;;  %v6245_v17 = vpop.f32.mrf.mxu0  ;;  %3843 = vmatmul.mubr.bf16.gmra.mxu0 %v7166_v62 }
 0x21f   : > { %v2838_v57 = vadd.f32 %v6244_v11, %v7960_v8  ;;  %v6357_v20 = vpop.f32.mrf.mxu1  ;;  %4359 = vmatmul.mubr.bf16.gmra.mxu1 %v7169_v35  ;;  %3850 = vmatprep.mubr.bf16.mxu0 %v7174_v41 }
 0x220   : > { %v6246_v56 = vpop.f32.mrf.mxu0  ;;  %4366 = vmatprep.mubr.bf16.mxu1 %v7177_v34 }
 0x221   : > { %v8120_v25 = vadd.f32 %v6356_v40, %v2838_v57  ;;  %v6247_v52 = vadd.f32 %v6246_v56, %v6245_v17  ;;  %v6358_v58 = vpop.f32.mrf.mxu1 }
 0x222   : > { %v6359_v1 = vadd.f32 %v6358_v58, %v6357_v20  ;;  %v6248_v12 = vpop.f32.mrf.mxu0 }
 0x223   : > { %v2839_v61 = vadd.f32 %v6247_v52, %v7967_v32  ;;  %v6360_v43 = vpop.f32.mrf.mxu1 }
 0x224   : > { %v6249_v7 = vpop.f32.mrf.mxu0 }
 0x225   : > { %v8125_v63 = vadd.f32 %v6359_v1, %v2839_v61  ;;  %v6250_v8 = vadd.f32 %v6249_v7, %v6248_v12  ;;  %v6361_v28 = vpop.f32.mrf.mxu1 }
 0x226   : > { %v6362_v47 = vadd.f32 %v6361_v28, %v6360_v43  ;;  %v6251_v21 = vpop.f32.mrf.mxu0  ;;  %3851 = vmatmul.mubr.bf16.gmra.mxu0 %v7172_v27 }
 0x227   : > { %v2840_v15 = vadd.f32 %v6250_v8, %v7970_v46  ;;  %v6363_v38 = vpop.f32.mrf.mxu1  ;;  %4367 = vmatmul.mubr.bf16.gmra.mxu1 %v7175_v10 }
 0x228   : > { %v6252_v24 = vpop.f32.mrf.mxu0 }
 0x229   : > { %v8128_v50 = vadd.f32 %v6362_v47, %v2840_v15  ;;  %v6253_v62 = vadd.f32 %v6252_v24, %v6251_v21  ;;  %v6364_v23 = vpop.f32.mrf.mxu1 }
 0x22a   : > { %v6365_v32 = vadd.f32 %v6364_v23, %v6363_v38  ;;  %v6254_v14 = vpop.f32.mrf.mxu0 }
 0x22b   : > { %v2841_v35 = vadd.f32 %v6253_v62, %v7977_v4  ;;  %v6366_v41 = vpop.f32.mrf.mxu1 }
 0x22c   : > { %v6255_v45 = vpop.f32.mrf.mxu0 }
 0x22d   : > { %v8131_v34 = vadd.f32 %v6365_v32, %v2841_v35  ;;  %v6256_v11 = vadd.f32 %v6255_v45, %v6254_v14  ;;  %v6367_v48 = vpop.f32.mrf.mxu1 }
 0x22e   : > { %v6368_v40 = vadd.f32 %v6367_v48, %v6366_v41  ;;  %v6257_v17 = vpop.f32.mrf.mxu0 }
 0x22f   : > { %v2842_v46 = vadd.f32 %v6256_v11, %v7980_v18  ;;  %v6369_v57 = vpop.f32.mrf.mxu1 }
 0x230   : > { %v6258_v20 = vpop.f32.mrf.mxu0 }
 0x231   : > { %v8134_v56 = vadd.f32 %v6368_v40, %v2842_v46  ;;  %v6259_v52 = vadd.f32 %v6258_v20, %v6257_v17  ;;  %v6370_v58 = vpop.f32.mrf.mxu1 }
 0x232   : > { %v6371_v1 = vadd.f32 %v6370_v58, %v6369_v57  ;;  %v6260_v12 = vpop.f32.mrf.mxu0 }
 0x233   : > { %v2843_v4 = vadd.f32 %v6259_v52, %v7987_v42  ;;  %v6372_v27 = vpop.f32.mrf.mxu1 }
 0x234   : > { %v6261_v61 = vpop.f32.mrf.mxu0 }
 0x235   : > { %v8137_v43 = vadd.f32 %v6371_v1, %v2843_v4  ;;  %v6262_v10 = vadd.f32 %v6261_v61, %v6260_v12  ;;  %v6373_v7 = vpop.f32.mrf.mxu1 }
 0x236   : > { %v6374_v8 = vadd.f32 %v6373_v7, %v6372_v27  ;;  %v6263_v28 = vpop.f32.mrf.mxu0 }
 0x237   : > { %v2844_v18 = vadd.f32 %v6262_v10, %v7990_v54  ;;  %v6375_v47 = vpop.f32.mrf.mxu1 }
 0x238   : > { %v6264_v21 = vpop.f32.mrf.mxu0 }
 0x239   : > { %v8140_v15 = vadd.f32 %v6374_v8, %v2844_v18  ;;  %v6265_v38 = vadd.f32 %v6264_v21, %v6263_v28  ;;  %v6376_v24 = vpop.f32.mrf.mxu1 }
 0x23a   : > { %v6377_v62 = vadd.f32 %v6376_v24, %v6375_v47  ;;  %v6266_v23 = vpop.f32.mrf.mxu0 }
 0x23b   : > { %v2845_v42 = vadd.f32 %v6265_v38, %v7997_v19  ;;  %v6378_v32 = vpop.f32.mrf.mxu1 }
 0x23c   : > { %v6267_v14 = vpop.f32.mrf.mxu0 }
 0x23d   : > { %v8143_v35 = vadd.f32 %v6377_v62, %v2845_v42  ;;  %v6268_v41 = vadd.f32 %v6267_v14, %v6266_v23  ;;  %v6379_v45 = vpop.f32.mrf.mxu1 }
 0x23e   : > { %v6380_v11 = vadd.f32 %v6379_v45, %v6378_v32  ;;  %v6269_v48 = vpop.f32.mrf.mxu0 }
 0x23f   : > { %v2846_v54 = vadd.f32 %v6268_v41, %v8000_v30  ;;  %v6381_v40 = vpop.f32.mrf.mxu1 }
 0x240   : > { %v6270_v17 = vpop.f32.mrf.mxu0 }
 0x241   : > { %v8146_v46 = vadd.f32 %v6380_v11, %v2846_v54  ;;  %v6271_v57 = vadd.f32 %v6270_v17, %v6269_v48  ;;  %v6382_v20 = vpop.f32.mrf.mxu1 }
 0x242   : > { %v6383_v52 = vadd.f32 %v6382_v20, %v6381_v40  ;;  %v6272_v58 = vpop.f32.mrf.mxu0 }
 0x243   : > { %v2847_v19 = vadd.f32 %v6271_v57, %v8007_v37  ;;  %v6384_v1 = vpop.f32.mrf.mxu1 }
 0x244   : > { %v6273_v12 = vpop.f32.mrf.mxu0 }
 0x245   : > { %v8149_v4 = vadd.f32 %v6383_v52, %v2847_v19  ;;  %v6274_v27 = vadd.f32 %v6273_v12, %v6272_v58  ;;  %v6385_v61 = vpop.f32.mrf.mxu1 }
 0x246   : > { %v6386_v10 = vadd.f32 %v6385_v61, %v6384_v1  ;;  %v6275_v7 = vpop.f32.mrf.mxu0 }
 0x247   : > { %v2848_v30 = vadd.f32 %v6274_v27, %v8010_v3  ;;  %v6387_v8 = vpop.f32.mrf.mxu1 }
 0x248   : > { %v6276_v28 = vpop.f32.mrf.mxu0 }
 0x249   : > { %v8152_v18 = vadd.f32 %v6386_v10, %v2848_v30  ;;  %v6277_v47 = vadd.f32 %v6276_v28, %v6275_v7  ;;  %v6388_v21 = vpop.f32.mrf.mxu1 }
 0x24a   : > { %v6389_v38 = vadd.f32 %v6388_v21, %v6387_v8  ;;  %v6278_v24 = vpop.f32.mrf.mxu0 }
 0x24b   : > { %v2849_v37 = vadd.f32 %v6277_v47, %v8017_v55  ;;  %v6390_v62 = vpop.f32.mrf.mxu1 }
 0x24c   : > { %v6279_v23 = vpop.f32.mrf.mxu0 }
 0x24d   : > { %v8155_v42 = vadd.f32 %v6389_v38, %v2849_v37  ;;  %v6280_v32 = vadd.f32 %v6279_v23, %v6278_v24  ;;  %v6391_v14 = vpop.f32.mrf.mxu1 }
 0x24e   : > { %v6392_v41 = vadd.f32 %v6391_v14, %v6390_v62  ;;  %v6281_v45 = vpop.f32.mrf.mxu0 }
 0x24f   : > { %v2850_v3 = vadd.f32 %v6280_v32, %v8020_v39  ;;  %v6393_v11 = vpop.f32.mrf.mxu1 }
 0x250   : > { %v6282_v48 = vpop.f32.mrf.mxu0 }
 0x251   : > { %v8158_v54 = vadd.f32 %v6392_v41, %v2850_v3  ;;  %v6283_v40 = vadd.f32 %v6282_v48, %v6281_v45  ;;  %v6394_v17 = vpop.f32.mrf.mxu1 }
 0x252   : > { %v6395_v57 = vadd.f32 %v6394_v17, %v6393_v11  ;;  %v6284_v20 = vpop.f32.mrf.mxu0 }
 0x253   : > { %v2851_v55 = vadd.f32 %v6283_v40, %v8027_v9  ;;  %v6396_v52 = vpop.f32.mrf.mxu1 }
 0x254   : > { %v6285_v58 = vpop.f32.mrf.mxu0 }
 0x255   : > { %v8161_v19 = vadd.f32 %v6395_v57, %v2851_v55  ;;  %v6286_v1 = vadd.f32 %v6285_v58, %v6284_v20  ;;  %v6397_v12 = vpop.f32.mrf.mxu1 }
 0x256   : > { %v6398_v27 = vadd.f32 %v6397_v12, %v6396_v52  ;;  %v6287_v61 = vpop.f32.mrf.mxu0 }
 0x257   : > { %v2852_v39 = vadd.f32 %v6286_v1, %v8030_v13  ;;  %v6399_v10 = vpop.f32.mrf.mxu1 }
 0x258   : > { %v6288_v7 = vpop.f32.mrf.mxu0 }
 0x259   : > { %v8164_v30 = vadd.f32 %v6398_v27, %v2852_v39  ;;  %v6289_v8 = vadd.f32 %v6288_v7, %v6287_v61  ;;  %v6400_v28 = vpop.f32.mrf.mxu1 }
 0x25a   : > { %v6401_v47 = vadd.f32 %v6400_v28, %v6399_v10  ;;  %v6290_v21 = vpop.f32.mrf.mxu0 }
 0x25b   : > { %v2853_v9 = vadd.f32 %v6289_v8, %v8037_v29  ;;  %v6402_v38 = vpop.f32.mrf.mxu1 }
 0x25c   : > { %v6291_v24 = vpop.f32.mrf.mxu0 }
 0x25d   : > { %v8167_v37 = vadd.f32 %v6401_v47, %v2853_v9  ;;  %v6292_v62 = vadd.f32 %v6291_v24, %v6290_v21  ;;  %v6403_v23 = vpop.f32.mrf.mxu1 }
 0x25e   : > { %v6404_v32 = vadd.f32 %v6403_v23, %v6402_v38  ;;  %v6293_v14 = vpop.f32.mrf.mxu0 }
 0x25f   : > { %v2854_v13 = vadd.f32 %v6292_v62, %v8040_v51  ;;  %v6405_v41 = vpop.f32.mrf.mxu1 }
 0x260   : > { %v6294_v45 = vpop.f32.mrf.mxu0 }
 0x261   : > { %v8170_v3 = vadd.f32 %v6404_v32, %v2854_v13  ;;  %v6295_v11 = vadd.f32 %v6294_v45, %v6293_v14  ;;  %v6406_v48 = vpop.f32.mrf.mxu1 }
 0x262   : > { %v6407_v40 = vadd.f32 %v6406_v48, %v6405_v41  ;;  %v6296_v17 = vpop.f32.mrf.mxu0 }
 0x263   : > { %v2855_v29 = vadd.f32 %v6295_v11, %v8047_v49  ;;  %v6408_v57 = vpop.f32.mrf.mxu1 }
 0x264   : > { %v6297_v20 = vpop.f32.mrf.mxu0 }
 0x265   : > { %v8173_v55 = vadd.f32 %v6407_v40, %v2855_v29  ;;  %v6298_v52 = vadd.f32 %v6297_v20, %v6296_v17  ;;  %v6409_v58 = vpop.f32.mrf.mxu1  ;;  %v8188_v17 = vld [vmem:[%s8289_s5] ss:$0 sm:$0xff] }
 0x266   : > { %v6410_v1 = vadd.f32 %v6409_v58, %v6408_v57  ;;  %v6299_v12 = vpop.f32.mrf.mxu0 }
 0x267   : > { %v2856_v51 = vadd.f32 %v6298_v52, %v8050_v22  ;;  %v6411_v27 = vpop.f32.mrf.mxu1 }
 0x268   : > { %v6300_v61 = vpop.f32.mrf.mxu0 }
 0x269   : > { %v8176_v39 = vadd.f32 %v6410_v1, %v2856_v51  ;;  %v6301_v10 = vadd.f32 %v6300_v61, %v6299_v12  ;;  %v6412_v7 = vpop.f32.mrf.mxu1 }
 0x26a   : > { %v6413_v8 = vadd.f32 %v6412_v7, %v6411_v27  ;;  %v6302_v28 = vpop.f32.mrf.mxu0 }
 0x26b   : > { %v2857_v49 = vadd.f32 %v6301_v10, %v8057_v5  ;;  %v6414_v47 = vpop.f32.mrf.mxu1 }
 0x26c   : > { %v6303_v21 = vpop.f32.mrf.mxu0 }
 0x26d   : > { %v8179_v9 = vadd.f32 %v6413_v8, %v2857_v49  ;;  %v6304_v38 = vadd.f32 %v6303_v21, %v6302_v28  ;;  %v6415_v24 = vpop.f32.mrf.mxu1 }
 0x26e   : > { %v6416_v62 = vadd.f32 %v6415_v24, %v6414_v47  ;;  %v6433_v23 = vpop.f32.mrf.mxu0 }
 0x26f   : > { %v2858_v22 = vadd.f32 %v6304_v38, %v8060_v59  ;;  %v6545_v32 = vpop.f32.mrf.mxu1 }
 0x270   : > { %v6434_v14 = vpop.f32.mrf.mxu0 }
 0x271   : > { %v8182_v13 = vadd.f32 %v6416_v62, %v2858_v22  ;;  %v6435_v41 = vadd.f32 %v6434_v14, %v6433_v23  ;;  %v6546_v45 = vpop.f32.mrf.mxu1 }
 0x272   : > { %v6436_v11 = vpop.f32.mrf.mxu0  ;;  %v6547_v5 = vadd.f32 %v6546_v45, %v6545_v32 }
 0x273   : > { %v3859_v48 = vadd.f32 %v6435_v41, %v8067_v26  ;;  %v6548_v40 = vpop.f32.mrf.mxu1 }
 0x274   : > { %v6437_v29 = vpop.f32.mrf.mxu0 }
 0x275   : > { %v4375_v57 = vadd.f32 %v6547_v5, %v3859_v48  ;;  %v6438_v20 = vadd.f32 %v6437_v29, %v6436_v11  ;;  %v6549_v59 = vpop.f32.mrf.mxu1 }
 0x276   : > { %v6439_v52 = vpop.f32.mrf.mxu0  ;;  %v6550_v12 = vadd.f32 %v6549_v59, %v6548_v40 }
 0x277   : > { %v4414_v58 = vadd.f32 %v8188_v17, %v4375_v57  ;;  %v3860_v1 = vadd.f32 %v6438_v20, %v8070_v33  ;;  %v6551_v51 = vpop.f32.mrf.mxu1 }
 0x278   : > { %v6440_v26 = vpop.f32.mrf.mxu0 }
 0x279   : > { %v4376_v27 = vadd.f32 %v6550_v12, %v3860_v1  ;;  %v6441_v61 = vadd.f32 %v6440_v26, %v6439_v52  ;;  %v6552_v10 = vpop.f32.mrf.mxu1  ;;  %v4478_v7 = vmul.f32 0.2, %v4414_v58  ;;  %vm4446_vm0 = vcmp.gt.f32.partialorder %v4414_v58, 0.0 }
 0x27a   : > { %v6442_v8 = vpop.f32.mrf.mxu0  ;;  %v6553_v47 = vadd.f32 %v6552_v10, %v6551_v51 }
 0x27b   : > { %v4415_v28 = vadd.f32 %v8188_v17, %v4376_v27  ;;  %v3861_v49 = vadd.f32 %v6441_v61, %v8077_v60  ;;  %v6554_v21 = vpop.f32.mrf.mxu1  ;;  %v4510_v22 = vsel %vm4446_vm0, %v4414_v58, %v4478_v7 }
 0x27c   : > { %v6443_v38 = vpop.f32.mrf.mxu0 }
 0x27d   : > { %vm4447_vm1 = vcmp.gt.f32.partialorder %v4415_v28, 0.0  ;;  %v4479_v24 = vmul.f32 0.2, %v4415_v28  ;;  %v4377_v33 = vadd.f32 %v6553_v47, %v3861_v49  ;;  %v6444_v62 = vadd.f32 %v6443_v38, %v6442_v8  ;;  %v6555_v23 = vpop.f32.mrf.mxu1 }
 0x27e   : > { %v6445_v32 = vpop.f32.mrf.mxu0  ;;  %v6556_v45 = vadd.f32 %v6555_v23, %v6554_v21 }
 0x27f   : > { %v4511_v14 = vsel %vm4447_vm1, %v4415_v28, %v4479_v24  ;;  %v4416_v60 = vadd.f32 %v8188_v17, %v4377_v33  ;;  %v3862_v41 = vadd.f32 %v6444_v62, %v8080_v6  ;;  %v6557_v11 = vpop.f32.mrf.mxu1 }
 0x280   : > { %v5653_v48 = vpack.c.bf16 %v4511_v14, %v4510_v22  ;;  %v6446_v5 = vpop.f32.mrf.mxu0 }
 0x281   : > { %v4378_v40 = vadd.f32 %v6556_v45, %v3862_v41  ;;  %v6447_v29 = vadd.f32 %v6446_v5, %v6445_v32  ;;  %v6558_v57 = vpop.f32.mrf.mxu1  ;;  %v4480_v20 = vmul.f32 0.2, %v4416_v60  ;;  %vm4448_vm2 = vcmp.gt.f32.partialorder %v4416_v60, 0.0 }
 0x282   : > { %5654 = vst [vmem:[%s8198_s16] sm:$0xff] %v5653_v48   ;;  %v6448_v59 = vpop.f32.mrf.mxu0  ;;  %v6559_v1 = vadd.f32 %v6558_v57, %v6557_v11 }
 0x283   : > { %v4417_v52 = vadd.f32 %v8188_v17, %v4378_v40  ;;  %v3863_v58 = vadd.f32 %v6447_v29, %v8087_v31  ;;  %v6560_v12 = vpop.f32.mrf.mxu1  ;;  %v4512_v10 = vsel %vm4448_vm2, %v4416_v60, %v4480_v20 }
 0x284   : > { %v6449_v51 = vpop.f32.mrf.mxu0 }
 0x285   : > { %vm4449_vm3 = vcmp.gt.f32.partialorder %v4417_v52, 0.0  ;;  %v4481_v6 = vmul.f32 0.2, %v4417_v52  ;;  %v4379_v26 = vadd.f32 %v6559_v1, %v3863_v58  ;;  %v6450_v27 = vadd.f32 %v6449_v51, %v6448_v59  ;;  %v6561_v61 = vpop.f32.mrf.mxu1 }
 0x286   : > { %v6451_v7 = vpop.f32.mrf.mxu0  ;;  %v6562_v47 = vadd.f32 %v6561_v61, %v6560_v12 }
 0x287   : > { %v4513_v8 = vsel %vm4449_vm3, %v4417_v52, %v4481_v6  ;;  %v4418_v28 = vadd.f32 %v8188_v17, %v4379_v26  ;;  %v3864_v49 = vadd.f32 %v6450_v27, %v8090_v44  ;;  %v6563_v21 = vpop.f32.mrf.mxu1 }
 0x288   : > { %v5658_v38 = vpack.c.bf16 %v4513_v8, %v4512_v10  ;;  %v6452_v31 = vpop.f32.mrf.mxu0 }
 0x289   : > { %v4380_v24 = vadd.f32 %v6562_v47, %v3864_v49  ;;  %v6453_v33 = vadd.f32 %v6452_v31, %v6451_v7  ;;  %v6564_v62 = vpop.f32.mrf.mxu1  ;;  %v4482_v23 = vmul.f32 0.2, %v4418_v28  ;;  %vm4450_vm4 = vcmp.gt.f32.partialorder %v4418_v28, 0.0 }
 0x28a   : > { %5730 = vst [vmem:[%s8198_s16 + $0x8] sm:$0xff] %v5658_v38   ;;  %v6454_v22 = vpop.f32.mrf.mxu0  ;;  %v6565_v60 = vadd.f32 %v6564_v62, %v6563_v21 }
 0x28b   : > { %v4419_v32 = vadd.f32 %v8188_v17, %v4380_v24  ;;  %v3865_v14 = vadd.f32 %v6453_v33, %v8097_v2  ;;  %v6566_v41 = vpop.f32.mrf.mxu1  ;;  %v4514_v40 = vsel %vm4450_vm4, %v4418_v28, %v4482_v23 }
 0x28c   : > { %v6455_v45 = vpop.f32.mrf.mxu0 }
 0x28d   : > { %vm4451_vm5 = vcmp.gt.f32.partialorder %v4419_v32, 0.0  ;;  %v4483_v44 = vmul.f32 0.2, %v4419_v32  ;;  %v4381_v11 = vadd.f32 %v6565_v60, %v3865_v14  ;;  %v6456_v48 = vadd.f32 %v6455_v45, %v6454_v22  ;;  %v6567_v5 = vpop.f32.mrf.mxu1 }
 0x28e   : > { %v6457_v29 = vpop.f32.mrf.mxu0  ;;  %v6568_v52 = vadd.f32 %v6567_v5, %v6566_v41 }
 0x28f   : > { %v4515_v57 = vsel %vm4451_vm5, %v4419_v32, %v4483_v44  ;;  %v4420_v20 = vadd.f32 %v8188_v17, %v4381_v11  ;;  %v3866_v59 = vadd.f32 %v6456_v48, %v8100_v16  ;;  %v6569_v58 = vpop.f32.mrf.mxu1 }
 0x290   : > { %v5663_v1 = vpack.c.bf16 %v4515_v57, %v4514_v40  ;;  %v6458_v2 = vpop.f32.mrf.mxu0 }
 0x291   : > { %v4382_v12 = vadd.f32 %v6568_v52, %v3866_v59  ;;  %v6459_v51 = vadd.f32 %v6458_v2, %v6457_v29  ;;  %v6570_v6 = vpop.f32.mrf.mxu1  ;;  %v4484_v26 = vmul.f32 0.2, %v4420_v20  ;;  %vm4452_vm6 = vcmp.gt.f32.partialorder %v4420_v20, 0.0 }
 0x292   : > { %5731 = vst [vmem:[%s8198_s16 + $0x10] sm:$0xff] %v5663_v1   ;;  %v6460_v27 = vpop.f32.mrf.mxu0  ;;  %v6571_v7 = vadd.f32 %v6570_v6, %v6569_v58 }
 0x293   : > { %v4421_v61 = vadd.f32 %v8188_v17, %v4382_v12  ;;  %v3867_v10 = vadd.f32 %v6459_v51, %v8107_v36  ;;  %v6572_v8 = vpop.f32.mrf.mxu1  ;;  %v4516_v38 = vsel %vm4452_vm6, %v4420_v20, %v4484_v26 }
 0x294   : > { %v6461_v28 = vpop.f32.mrf.mxu0 }
 0x295   : > { %vm4453_vm7 = vcmp.gt.f32.partialorder %v4421_v61, 0.0  ;;  %v4485_v16 = vmul.f32 0.2, %v4421_v61  ;;  %v4383_v49 = vadd.f32 %v6571_v7, %v3867_v10  ;;  %v6462_v47 = vadd.f32 %v6461_v28, %v6460_v27  ;;  %v6573_v21 = vpop.f32.mrf.mxu1 }
 0x296   : > { %v6463_v31 = vpop.f32.mrf.mxu0  ;;  %v6574_v23 = vadd.f32 %v6573_v21, %v6572_v8 }
 0x297   : > { %v4517_v24 = vsel %vm4453_vm7, %v4421_v61, %v4485_v16  ;;  %v4422_v33 = vadd.f32 %v8188_v17, %v4383_v49  ;;  %v3868_v62 = vadd.f32 %v6462_v47, %v8110_v53  ;;  %v6575_v22 = vpop.f32.mrf.mxu1 }
 0x298   : > { %v5668_v32 = vpack.c.bf16 %v4517_v24, %v4516_v38  ;;  %v6464_v36 = vpop.f32.mrf.mxu0 }
 0x299   : > { %v4384_v14 = vadd.f32 %v6574_v23, %v3868_v62  ;;  %v6465_v60 = vadd.f32 %v6464_v36, %v6463_v31  ;;  %v6576_v41 = vpop.f32.mrf.mxu1  ;;  %v4486_v45 = vmul.f32 0.2, %v4422_v33  ;;  %vm4454_vm8 = vcmp.gt.f32.partialorder %v4422_v33, 0.0 }
 0x29a   : > { %5732 = vst [vmem:[%s8198_s16 + $0x18] sm:$0xff] %v5668_v32   ;;  %v6466_v44 = vpop.f32.mrf.mxu0  ;;  %v6577_v5 = vadd.f32 %v6576_v41, %v6575_v22 }
 0x29b   : > { %v4423_v11 = vadd.f32 %v8188_v17, %v4384_v14  ;;  %v3869_v48 = vadd.f32 %v6465_v60, %v8117_v0  ;;  %v6578_v40 = vpop.f32.mrf.mxu1  ;;  %v4518_v52 = vsel %vm4454_vm8, %v4422_v33, %v4486_v45 }
 0x29c   : > { %v6467_v29 = vpop.f32.mrf.mxu0 }
 0x29d   : > { %vm4455_vm9 = vcmp.gt.f32.partialorder %v4423_v11, 0.0  ;;  %v4487_v53 = vmul.f32 0.2, %v4423_v11  ;;  %v4385_v57 = vadd.f32 %v6577_v5, %v3869_v48  ;;  %v6468_v20 = vadd.f32 %v6467_v29, %v6466_v44  ;;  %v6579_v59 = vpop.f32.mrf.mxu1 }
 0x29e   : > { %v6469_v58 = vpop.f32.mrf.mxu0  ;;  %v6580_v51 = vadd.f32 %v6579_v59, %v6578_v40 }
 0x29f   : > { %v4519_v1 = vsel %vm4455_vm9, %v4423_v11, %v4487_v53  ;;  %v4424_v2 = vadd.f32 %v8188_v17, %v4385_v57  ;;  %v3870_v12 = vadd.f32 %v6468_v20, %v8120_v25  ;;  %v6581_v6 = vpop.f32.mrf.mxu1 }
 0x2a0   : > { %v5673_v26 = vpack.c.bf16 %v4519_v1, %v4518_v52  ;;  %v6470_v0 = vpop.f32.mrf.mxu0 }
 0x2a1   : > { %v4386_v27 = vadd.f32 %v6580_v51, %v3870_v12  ;;  %v6471_v61 = vadd.f32 %v6470_v0, %v6469_v58  ;;  %v6582_v10 = vpop.f32.mrf.mxu1  ;;  %v4488_v7 = vmul.f32 0.2, %v4424_v2  ;;  %vm4456_vm10 = vcmp.gt.f32.partialorder %v4424_v2, 0.0 }
 0x2a2   : > { %5733 = vst [vmem:[%s8198_s16 + $0x20] sm:$0xff] %v5673_v26   ;;  %v6472_v8 = vpop.f32.mrf.mxu0  ;;  %v6583_v49 = vadd.f32 %v6582_v10, %v6581_v6 }
 0x2a3   : > { %v4425_v28 = vadd.f32 %v8188_v17, %v4386_v27  ;;  %v3871_v16 = vadd.f32 %v6471_v61, %v8125_v63  ;;  %v6584_v47 = vpop.f32.mrf.mxu1  ;;  %v4520_v33 = vsel %vm4456_vm10, %v4424_v2, %v4488_v7 }
 0x2a4   : > { %v6473_v21 = vpop.f32.mrf.mxu0 }
 0x2a5   : > { %vm4457_vm11 = vcmp.gt.f32.partialorder %v4425_v28, 0.0  ;;  %v4489_v25 = vmul.f32 0.2, %v4425_v28  ;;  %v4387_v38 = vadd.f32 %v6583_v49, %v3871_v16  ;;  %v6474_v31 = vadd.f32 %v6473_v21, %v6472_v8  ;;  %v6585_v24 = vpop.f32.mrf.mxu1 }
 0x2a6   : > { %v6475_v62 = vpop.f32.mrf.mxu0  ;;  %v6586_v36 = vadd.f32 %v6585_v24, %v6584_v47 }
 0x2a7   : > { %v4521_v23 = vsel %vm4457_vm11, %v4425_v28, %v4489_v25  ;;  %v4426_v22 = vadd.f32 %v8188_v17, %v4387_v38  ;;  %v3872_v32 = vadd.f32 %v6474_v31, %v8128_v50  ;;  %v6587_v14 = vpop.f32.mrf.mxu1 }
 0x2a8   : > { %v5678_v60 = vpack.c.bf16 %v4521_v23, %v4520_v33  ;;  %v6476_v63 = vpop.f32.mrf.mxu0 }
 0x2a9   : > { %v4388_v41 = vadd.f32 %v6586_v36, %v3872_v32  ;;  %v6477_v45 = vadd.f32 %v6476_v63, %v6475_v62  ;;  %v6588_v44 = vpop.f32.mrf.mxu1  ;;  %v4490_v11 = vmul.f32 0.2, %v4426_v22  ;;  %vm4458_vm12 = vcmp.gt.f32.partialorder %v4426_v22, 0.0 }
 0x2aa   : > { %5734 = vst [vmem:[%s8198_s16 + $0x28] sm:$0xff] %v5678_v60   ;;  %v6478_v48 = vpop.f32.mrf.mxu0  ;;  %v6589_v29 = vadd.f32 %v6588_v44, %v6587_v14 }
 0x2ab   : > { %v4427_v5 = vadd.f32 %v8188_v17, %v4388_v41  ;;  %v3873_v40 = vadd.f32 %v6477_v45, %v8131_v34  ;;  %v6590_v53 = vpop.f32.mrf.mxu1  ;;  %v4522_v58 = vsel %vm4458_vm12, %v4426_v22, %v4490_v11 }
 0x2ac   : > { %v6479_v57 = vpop.f32.mrf.mxu0 }
 0x2ad   : > { %vm4459_vm13 = vcmp.gt.f32.partialorder %v4427_v5, 0.0  ;;  %v4491_v50 = vmul.f32 0.2, %v4427_v5  ;;  %v4389_v20 = vadd.f32 %v6589_v29, %v3873_v40  ;;  %v6480_v59 = vadd.f32 %v6479_v57, %v6478_v48  ;;  %v6591_v52 = vpop.f32.mrf.mxu1 }
 0x2ae   : > { %v6481_v1 = vpop.f32.mrf.mxu0  ;;  %v6592_v6 = vadd.f32 %v6591_v52, %v6590_v53 }
 0x2af   : > { %v4523_v2 = vsel %vm4459_vm13, %v4427_v5, %v4491_v50  ;;  %v4428_v12 = vadd.f32 %v8188_v17, %v4389_v20  ;;  %v3874_v51 = vadd.f32 %v6480_v59, %v8134_v56  ;;  %v6593_v26 = vpop.f32.mrf.mxu1 }
 0x2b0   : > { %v5683_v0 = vpack.c.bf16 %v4523_v2, %v4522_v58  ;;  %v6482_v34 = vpop.f32.mrf.mxu0 }
 0x2b1   : > { %v4390_v27 = vadd.f32 %v6592_v6, %v3874_v51  ;;  %v6483_v61 = vadd.f32 %v6482_v34, %v6481_v1  ;;  %v6594_v10 = vpop.f32.mrf.mxu1  ;;  %v4492_v7 = vmul.f32 0.2, %v4428_v12  ;;  %vm4460_vm14 = vcmp.gt.f32.partialorder %v4428_v12, 0.0 }
 0x2b2   : > { %5735 = vst [vmem:[%s8198_s16 + $0x30] sm:$0xff] %v5683_v0   ;;  %v6484_v8 = vpop.f32.mrf.mxu0  ;;  %v6595_v49 = vadd.f32 %v6594_v10, %v6593_v26 }
 0x2b3   : > { %v4429_v28 = vadd.f32 %v8188_v17, %v4390_v27  ;;  %v3875_v16 = vadd.f32 %v6483_v61, %v8137_v43  ;;  %v6596_v47 = vpop.f32.mrf.mxu1  ;;  %v4524_v24 = vsel %vm4460_vm14, %v4428_v12, %v4492_v7 }
 0x2b4   : > { %v6485_v21 = vpop.f32.mrf.mxu0 }
 0x2b5   : > { %vm4461_vm15 = vcmp.gt.f32.partialorder %v4429_v28, 0.0  ;;  %v4493_v56 = vmul.f32 0.2, %v4429_v28  ;;  %v4391_v25 = vadd.f32 %v6595_v49, %v3875_v16  ;;  %v6486_v38 = vadd.f32 %v6485_v21, %v6484_v8  ;;  %v6597_v31 = vpop.f32.mrf.mxu1 }
 0x2b6   : > { %v6487_v33 = vpop.f32.mrf.mxu0  ;;  %v6598_v32 = vadd.f32 %v6597_v31, %v6596_v47 }
 0x2b7   : > { %v4525_v62 = vsel %vm4461_vm15, %v4429_v28, %v4493_v56  ;;  %v4430_v23 = vadd.f32 %v8188_v17, %v4391_v25  ;;  %v3876_v22 = vadd.f32 %v6486_v38, %v8140_v15  ;;  %v6599_v36 = vpop.f32.mrf.mxu1 }
 0x2b8   : > { %v5688_v14 = vpack.c.bf16 %v4525_v62, %v4524_v24  ;;  %v6488_v43 = vpop.f32.mrf.mxu0 }
 0x2b9   : > { %v4392_v60 = vadd.f32 %v6598_v32, %v3876_v22  ;;  %v6489_v63 = vadd.f32 %v6488_v43, %v6487_v33  ;;  %v6600_v41 = vpop.f32.mrf.mxu1  ;;  %v4494_v45 = vmul.f32 0.2, %v4430_v23  ;;  %vm4462_vm0 = vcmp.gt.f32.partialorder %v4430_v23, 0.0 }
 0x2ba   : > { %5736 = vst [vmem:[%s8198_s16 + $0x38] sm:$0xff] %v5688_v14   ;;  %v6490_v44 = vpop.f32.mrf.mxu0  ;;  %v6601_v5 = vadd.f32 %v6600_v41, %v6599_v36 }
 0x2bb   : > { %v4431_v11 = vadd.f32 %v8188_v17, %v4392_v60  ;;  %v3877_v48 = vadd.f32 %v6489_v63, %v8143_v35  ;;  %v6602_v40 = vpop.f32.mrf.mxu1  ;;  %v4526_v20 = vsel %vm4462_vm0, %v4430_v23, %v4494_v45 }
 0x2bc   : > { %v6491_v29 = vpop.f32.mrf.mxu0 }
 0x2bd   : > { %vm4463_vm1 = vcmp.gt.f32.partialorder %v4431_v11, 0.0  ;;  %v4495_v15 = vmul.f32 0.2, %v4431_v11  ;;  %v4393_v53 = vadd.f32 %v6601_v5, %v3877_v48  ;;  %v6492_v57 = vadd.f32 %v6491_v29, %v6490_v44  ;;  %v6603_v50 = vpop.f32.mrf.mxu1 }
 0x2be   : > { %v6493_v59 = vpop.f32.mrf.mxu0  ;;  %v6604_v2 = vadd.f32 %v6603_v50, %v6602_v40 }
 0x2bf   : > { %v4527_v52 = vsel %vm4463_vm1, %v4431_v11, %v4495_v15  ;;  %v4432_v58 = vadd.f32 %v8188_v17, %v4393_v53  ;;  %v3878_v1 = vadd.f32 %v6492_v57, %v8146_v46  ;;  %v6605_v12 = vpop.f32.mrf.mxu1 }
 0x2c0   : > { %v5693_v51 = vpack.c.bf16 %v4527_v52, %v4526_v20  ;;  %v6494_v35 = vpop.f32.mrf.mxu0 }
 0x2c1   : > { %v4394_v6 = vadd.f32 %v6604_v2, %v3878_v1  ;;  %v6495_v26 = vadd.f32 %v6494_v35, %v6493_v59  ;;  %v6606_v0 = vpop.f32.mrf.mxu1  ;;  %v4496_v34 = vmul.f32 0.2, %v4432_v58  ;;  %vm4464_vm2 = vcmp.gt.f32.partialorder %v4432_v58, 0.0 }
 0x2c2   : > { %5737 = vst [vmem:[%s8198_s16 + $0x40] sm:$0xff] %v5693_v51   ;;  %v6496_v27 = vpop.f32.mrf.mxu0  ;;  %v6607_v7 = vadd.f32 %v6606_v0, %v6605_v12 }
 0x2c3   : > { %v4433_v61 = vadd.f32 %v8188_v17, %v4394_v6  ;;  %v3879_v10 = vadd.f32 %v6495_v26, %v8149_v4  ;;  %v6608_v8 = vpop.f32.mrf.mxu1  ;;  %v4528_v21 = vsel %vm4464_vm2, %v4432_v58, %v4496_v34 }
 0x2c4   : > { %v6497_v28 = vpop.f32.mrf.mxu0 }
 0x2c5   : > { %vm4465_vm3 = vcmp.gt.f32.partialorder %v4433_v61, 0.0  ;;  %v4497_v46 = vmul.f32 0.2, %v4433_v61  ;;  %v4395_v16 = vadd.f32 %v6607_v7, %v3879_v10  ;;  %v6498_v49 = vadd.f32 %v6497_v28, %v6496_v27  ;;  %v6609_v47 = vpop.f32.mrf.mxu1 }
 0x2c6   : > { %v6499_v56 = vpop.f32.mrf.mxu0  ;;  %v6610_v24 = vadd.f32 %v6609_v47, %v6608_v8 }
 0x2c7   : > { %v4529_v25 = vsel %vm4465_vm3, %v4433_v61, %v4497_v46  ;;  %v4434_v38 = vadd.f32 %v8188_v17, %v4395_v16  ;;  %v3880_v31 = vadd.f32 %v6498_v49, %v8152_v18  ;;  %v6611_v33 = vpop.f32.mrf.mxu1 }
 0x2c8   : > { %v5698_v62 = vpack.c.bf16 %v4529_v25, %v4528_v21  ;;  %v6500_v4 = vpop.f32.mrf.mxu0 }
 0x2c9   : > { %v4396_v23 = vadd.f32 %v6610_v24, %v3880_v31  ;;  %v6501_v22 = vadd.f32 %v6500_v4, %v6499_v56  ;;  %v6612_v32 = vpop.f32.mrf.mxu1  ;;  %v4498_v36 = vmul.f32 0.2, %v4434_v38  ;;  %vm4466_vm4 = vcmp.gt.f32.partialorder %v4434_v38, 0.0 }
 0x2ca   : > { %5738 = vst [vmem:[%s8198_s16 + $0x48] sm:$0xff] %v5698_v62   ;;  %v6502_v14 = vpop.f32.mrf.mxu0  ;;  %v6613_v63 = vadd.f32 %v6612_v32, %v6611_v33 }
 0x2cb   : > { %v4435_v43 = vadd.f32 %v8188_v17, %v4396_v23  ;;  %v3881_v60 = vadd.f32 %v6501_v22, %v8155_v42  ;;  %v6614_v41 = vpop.f32.mrf.mxu1  ;;  %v4530_v5 = vsel %vm4466_vm4, %v4434_v38, %v4498_v36 }
 0x2cc   : > { %v6503_v45 = vpop.f32.mrf.mxu0 }
 0x2cd   : > { %vm4467_vm5 = vcmp.gt.f32.partialorder %v4435_v43, 0.0  ;;  %v4499_v18 = vmul.f32 0.2, %v4435_v43  ;;  %v4397_v44 = vadd.f32 %v6613_v63, %v3881_v60  ;;  %v6504_v11 = vadd.f32 %v6503_v45, %v6502_v14  ;;  %v6615_v48 = vpop.f32.mrf.mxu1 }
 0x2ce   : > { %v6505_v40 = vpop.f32.mrf.mxu0  ;;  %v6616_v57 = vadd.f32 %v6615_v48, %v6614_v41 }
 0x2cf   : > { %v4531_v29 = vsel %vm4467_vm5, %v4435_v43, %v4499_v18  ;;  %v4436_v15 = vadd.f32 %v8188_v17, %v4397_v44  ;;  %v3882_v53 = vadd.f32 %v6504_v11, %v8158_v54  ;;  %v6617_v50 = vpop.f32.mrf.mxu1 }
 0x2d0   : > { %v5703_v20 = vpack.c.bf16 %v4531_v29, %v4530_v5  ;;  %v6506_v42 = vpop.f32.mrf.mxu0 }
 0x2d1   : > { %v4398_v59 = vadd.f32 %v6616_v57, %v3882_v53  ;;  %v6507_v52 = vadd.f32 %v6506_v42, %v6505_v40  ;;  %v6618_v58 = vpop.f32.mrf.mxu1  ;;  %v4500_v1 = vmul.f32 0.2, %v4436_v15  ;;  %vm4468_vm6 = vcmp.gt.f32.partialorder %v4436_v15, 0.0 }
 0x2d2   : > { %5739 = vst [vmem:[%s8198_s16 + $0x50] sm:$0xff] %v5703_v20   ;;  %v6508_v2 = vpop.f32.mrf.mxu0  ;;  %v6619_v35 = vadd.f32 %v6618_v58, %v6617_v50 }
 0x2d3   : > { %v4437_v12 = vadd.f32 %v8188_v17, %v4398_v59  ;;  %v3883_v51 = vadd.f32 %v6507_v52, %v8161_v19  ;;  %v6620_v6 = vpop.f32.mrf.mxu1  ;;  %v4532_v61 = vsel %vm4468_vm6, %v4436_v15, %v4500_v1 }
 0x2d4   : > { %v6509_v26 = vpop.f32.mrf.mxu0 }
 0x2d5   : > { %vm4469_vm7 = vcmp.gt.f32.partialorder %v4437_v12, 0.0  ;;  %v4501_v54 = vmul.f32 0.2, %v4437_v12  ;;  %v4399_v0 = vadd.f32 %v6619_v35, %v3883_v51  ;;  %v6510_v34 = vadd.f32 %v6509_v26, %v6508_v2  ;;  %v6621_v27 = vpop.f32.mrf.mxu1 }
 0x2d6   : > { %v6511_v10 = vpop.f32.mrf.mxu0  ;;  %v6622_v46 = vadd.f32 %v6621_v27, %v6620_v6 }
 0x2d7   : > { %v4533_v7 = vsel %vm4469_vm7, %v4437_v12, %v4501_v54  ;;  %v4438_v8 = vadd.f32 %v8188_v17, %v4399_v0  ;;  %v3884_v28 = vadd.f32 %v6510_v34, %v8164_v30  ;;  %v6623_v16 = vpop.f32.mrf.mxu1 }
 0x2d8   : > { %v5708_v49 = vpack.c.bf16 %v4533_v7, %v4532_v61  ;;  %v6512_v19 = vpop.f32.mrf.mxu0 }
 0x2d9   : > { %v4400_v47 = vadd.f32 %v6622_v46, %v3884_v28  ;;  %v6513_v21 = vadd.f32 %v6512_v19, %v6511_v10  ;;  %v6624_v56 = vpop.f32.mrf.mxu1  ;;  %v4502_v25 = vmul.f32 0.2, %v4438_v8  ;;  %vm4470_vm8 = vcmp.gt.f32.partialorder %v4438_v8, 0.0 }
 0x2da   : > { %5740 = vst [vmem:[%s8198_s16 + $0x58] sm:$0xff] %v5708_v49   ;;  %v6514_v38 = vpop.f32.mrf.mxu0  ;;  %v6625_v33 = vadd.f32 %v6624_v56, %v6623_v16 }
 0x2db   : > { %v4439_v31 = vadd.f32 %v8188_v17, %v4400_v47  ;;  %v3885_v24 = vadd.f32 %v6513_v21, %v8167_v37  ;;  %v6626_v62 = vpop.f32.mrf.mxu1  ;;  %v4534_v36 = vsel %vm4470_vm8, %v4438_v8, %v4502_v25 }
 0x2dc   : > { %v6515_v4 = vpop.f32.mrf.mxu0 }
 0x2dd   : > { %vm4471_vm9 = vcmp.gt.f32.partialorder %v4439_v31, 0.0  ;;  %v4503_v30 = vmul.f32 0.2, %v4439_v31  ;;  %v4401_v23 = vadd.f32 %v6625_v33, %v3885_v24  ;;  %v6516_v22 = vadd.f32 %v6515_v4, %v6514_v38  ;;  %v6627_v32 = vpop.f32.mrf.mxu1 }
 0x2de   : > { %v6517_v14 = vpop.f32.mrf.mxu0  ;;  %v6628_v41 = vadd.f32 %v6627_v32, %v6626_v62 }
 0x2df   : > { %v4535_v43 = vsel %vm4471_vm9, %v4439_v31, %v4503_v30  ;;  %v4440_v60 = vadd.f32 %v8188_v17, %v4401_v23  ;;  %v3886_v63 = vadd.f32 %v6516_v22, %v8170_v3  ;;  %v6629_v45 = vpop.f32.mrf.mxu1 }
 0x2e0   : > { %v5713_v18 = vpack.c.bf16 %v4535_v43, %v4534_v36  ;;  %v6518_v37 = vpop.f32.mrf.mxu0 }
 0x2e1   : > { %v4402_v44 = vadd.f32 %v6628_v41, %v3886_v63  ;;  %v6519_v11 = vadd.f32 %v6518_v37, %v6517_v14  ;;  %v6630_v48 = vpop.f32.mrf.mxu1  ;;  %v4504_v5 = vmul.f32 0.2, %v4440_v60  ;;  %vm4472_vm10 = vcmp.gt.f32.partialorder %v4440_v60, 0.0 }
 0x2e2   : > { %5741 = vst [vmem:[%s8198_s16 + $0x60] sm:$0xff] %v5713_v18   ;;  %v6520_v40 = vpop.f32.mrf.mxu0  ;;  %v6631_v53 = vadd.f32 %v6630_v48, %v6629_v45 }
 0x2e3   : > { %v4441_v29 = vadd.f32 %v8188_v17, %v4402_v44  ;;  %v3887_v15 = vadd.f32 %v6519_v11, %v8173_v55  ;;  %v6632_v57 = vpop.f32.mrf.mxu1  ;;  %v4536_v52 = vsel %vm4472_vm10, %v4440_v60, %v4504_v5 }
 0x2e4   : > { %v6521_v50 = vpop.f32.mrf.mxu0 }
 0x2e5   : > { %vm4473_vm11 = vcmp.gt.f32.partialorder %v4441_v29, 0.0  ;;  %v4505_v3 = vmul.f32 0.2, %v4441_v29  ;;  %v4403_v20 = vadd.f32 %v6631_v53, %v3887_v15  ;;  %v6522_v42 = vadd.f32 %v6521_v50, %v6520_v40  ;;  %v6633_v59 = vpop.f32.mrf.mxu1 }
 0x2e6   : > { %v6523_v58 = vpop.f32.mrf.mxu0  ;;  %v6634_v51 = vadd.f32 %v6633_v59, %v6632_v57 }
 0x2e7   : > { %v4537_v1 = vsel %vm4473_vm11, %v4441_v29, %v4505_v3  ;;  %v4442_v2 = vadd.f32 %v8188_v17, %v4403_v20  ;;  %v3888_v12 = vadd.f32 %v6522_v42, %v8176_v39  ;;  %v6635_v35 = vpop.f32.mrf.mxu1 }
 0x2e8   : > { %v5718_v6 = vpack.c.bf16 %v4537_v1, %v4536_v52  ;;  %v6524_v55 = vpop.f32.mrf.mxu0 }
 0x2e9   : > { %v4404_v26 = vadd.f32 %v6634_v51, %v3888_v12  ;;  %v6525_v54 = vadd.f32 %v6524_v55, %v6523_v58  ;;  %v6636_v0 = vpop.f32.mrf.mxu1  ;;  %v4506_v34 = vmul.f32 0.2, %v4442_v2  ;;  %vm4474_vm12 = vcmp.gt.f32.partialorder %v4442_v2, 0.0 }
 0x2ea   : > { %5742 = vst [vmem:[%s8198_s16 + $0x68] sm:$0xff] %v5718_v6   ;;  %v6526_v27 = vpop.f32.mrf.mxu0  ;;  %v6637_v7 = vadd.f32 %v6636_v0, %v6635_v35 }
 0x2eb   : > { %v4443_v61 = vadd.f32 %v8188_v17, %v4404_v26  ;;  %v3889_v10 = vadd.f32 %v6525_v54, %v8179_v9  ;;  %v6638_v8 = vpop.f32.mrf.mxu1  ;;  %v4538_v19 = vsel %vm4474_vm12, %v4442_v2, %v4506_v34 }
 0x2ec   : > { %v6527_v28 = vpop.f32.mrf.mxu0 }
 0x2ed   : > { %vm4475_vm13 = vcmp.gt.f32.partialorder %v4443_v61, 0.0  ;;  %v4507_v39 = vmul.f32 0.2, %v4443_v61  ;;  %v4405_v46 = vadd.f32 %v6637_v7, %v3889_v10  ;;  %v6528_v16 = vadd.f32 %v6527_v28, %v6526_v27  ;;  %v6639_v49 = vpop.f32.mrf.mxu1 }
 0x2ee   : > { %v6640_v25 = vadd.f32 %v6639_v49, %v6638_v8 }
 0x2ef   : > { %v4539_v47 = vsel %vm4475_vm13, %v4443_v61, %v4507_v39  ;;  %v4444_v21 = vadd.f32 %v8188_v17, %v4405_v46  ;;  %v3890_v56 = vadd.f32 %v6528_v16, %v8182_v13 }
 0x2f0   : > { %v5723_v38 = vpack.c.bf16 %v4539_v47, %v4538_v19 }
 0x2f1   : > { %v4406_v31 = vadd.f32 %v6640_v25, %v3890_v56  ;;  %v4508_v9 = vmul.f32 0.2, %v4444_v21  ;;  %vm4476_vm14 = vcmp.gt.f32.partialorder %v4444_v21, 0.0 }
 0x2f2   : > { %5743 = vst [vmem:[%s8198_s16 + $0x70] sm:$0xff] %v5723_v38  }
 0x2f3   : > { %v4445_v24 = vadd.f32 %v8188_v17, %v4406_v31  ;;  %v4540_v62 = vsel %vm4476_vm14, %v4444_v21, %v4508_v9 }
 0x2f5   : > { %vm4477_vm15 = vcmp.gt.f32.partialorder %v4445_v24, 0.0  ;;  %v4509_v33 = vmul.f32 0.2, %v4445_v24 }
 0x2f7   : > { %v4541_v4 = vsel %vm4477_vm15, %v4445_v24, %v4509_v33 }
 0x2f8   : > { %v5728_v30 = vpack.c.bf16 %v4541_v4, %v4540_v62 }
 0x2fa   : > { %5744 = vst [vmem:[%s8198_s16 + $0x78] sm:$0xff] %v5728_v30  }
 0x2fb PF: > { %s16_s23 = sadd.s32 1, %s7200_s23   ;;  %s8291_s21 = smov %s7196_s22 }
 0x2fc   : > { %p13_p5 = scmp.ge.s32.totalorder %s16_s23, 4   ;;  %s8292_s22 = smov %s8294_s24 }
 0x2fe   :  { %15 = sbr.rel (!%p13_p5) target bundleno = 2 (0x2), region = 98 }

// kernel: discriminator_forward.7
= control target key start
LH: loop header
LB: loop body
LE: loop exit
PB: predicated region body
PF: predicated region fallthrough
CT: control target
= control target key end

     0   :  { %s4785_s21 = smov 0   ;;  %s4787_s22 = smov 0   ;;  %s5776_s0 = inlined_call_operand.vmem [shape: bf16[2,144,256], index: 0, kind: input, shape index: {}]   ;;  %s5777_s1 = inlined_call_operand.vmem [shape: bf16[2,144,256], index: 1, kind: input, shape index: {}]   ;;  %s5778_s2 = inlined_call_operand.vmem [shape: bf16[2,144,256], index: 2, kind: input, shape index: {}]   ;;  %s5779_s3 = inlined_call_operand.vmem [shape: bf16[2,144,256], index: 3, kind: input, shape index: {}]   ;;  %s5780_s4 = inlined_call_operand.vmem [shape: bf16[8,256,128], index: 4, kind: input, shape index: {}]   ;;  %s5781_s5 = inlined_call_operand.vmem [shape: f32[1,128], index: 5, kind: input, shape index: {}]   ;;  %s5782_s6 = inlined_call_operand.vmem [shape: bf16[2,128,128], index: 6, kind: output, shape index: {}]  }
   0x1   :  { %s4789_s23 = smov 0  }
   0x2 LB: > { %s28_s24 = sadd.s32 1, %s4744_s22  ;;  %p3319_p0 = scmp.ge.s32.totalorder %s4748_s23, 1  ;;  %s4748_s23 = sphi %s4789_s23, %s16_s23   ;;  %s4744_s22 = sphi %s4787_s22, %s5784_s22   ;;  %s4740_s21 = sphi %s4785_s21, %s5783_s21  }
   0x3   : > { %p30_p1 = scmp.ge.s32.totalorder %s28_s24, 2  ;;  %p256_p2 = scmp.lt.s32.totalorder %s4748_s23, 3 }
   0x5   : > { %s5786_s24 = smov (%p30_p1, %s28_s24), 0  ;;  %p257_p3 = pnand %p3319_p0, %p256_p2 }
   0x6   : > { %p305_p4 = scmp.lt.s32.totalorder (!%p257_p3), %s4740_s21, 1 }
   0x7   : > { %260 = sbr.rel (%p257_p3) target bundleno = 507 (0x1fb), region = 44 }
   0xc   : > { %v4490_v0 = vld [vmem:[%s5780_s4 + $0xf8] sm:$0xff]   ;;  %v4494_v4 = vld [vmem:[%s5780_s4 + $0xf0] sm:$0xff]   ;;  %v4498_v8 = vld [vmem:[%s5780_s4 + $0xe8] sm:$0xff]   ;;  %s5788_s21 = smov (!%p305_p4, %s4740_s21), 1 }
   0xd   : > { %v4491_v1 = vld [vmem:[%s5780_s4 + $0x78] sm:$0xff]   ;;  %3953 = vmatprep.subr.bf16.mxu0 %v4490_v0  ;;  %v4495_v5 = vld [vmem:[%s5780_s4 + $0x70] sm:$0xff]   ;;  %v4499_v9 = vld [vmem:[%s5780_s4 + $0x68] sm:$0xff]   ;;  %s4888_s13 = smul.u32 144, %s5788_s21 }
   0xe   : > { %v4492_v2 = vld [vmem:[%s5780_s4 + $0xb8] sm:$0xff]   ;;  %4017 = vmatprep.subr.bf16.mxu1 %v4491_v1  ;;  %v4496_v6 = vld [vmem:[%s5780_s4 + $0xb0] sm:$0xff]   ;;  %v4500_v10 = vld [vmem:[%s5780_s4 + $0xa8] sm:$0xff]  }
   0xf   : > { %v4493_v3 = vld [vmem:[%s5780_s4 + $0x38] sm:$0xff]   ;;  %3954 = vmatpush3.bf16.msra.mxu0 %v4492_v2  ;;  %v4497_v7 = vld [vmem:[%s5780_s4 + $0x30] sm:$0xff]   ;;  %v4501_v11 = vld [vmem:[%s5780_s4 + $0x28] sm:$0xff]   ;;  %s4906_s28 = scalar_lea.vmem %s5777_s1, %s4888_s13  ;;  %s4918_s11 = scalar_lea.vmem %s5776_s0, %s4888_s13 }
  0x10   : > { %4018 = vmatpush3.bf16.msra.mxu1 %v4493_v3  ;;  %3955 = vmatprep.subr.bf16.mxu0 %v4494_v4  ;;  %v4502_v12 = vld [vmem:[%s5780_s4 + $0xe0] sm:$0xff]   ;;  %v4506_v16 = vld [vmem:[%s5780_s4 + $0xd8] sm:$0xff]   ;;  %v4510_v20 = vld [vmem:[%s5780_s4 + $0xd0] sm:$0xff]   ;;  %s5122_s7 = scalar_lea.vmem %s5778_s2, %s4888_s13  ;;  %s5133_s14 = scalar_lea.vmem %s5779_s3, %s4888_s13 }
  0x11   : > { %4019 = vmatprep.subr.bf16.mxu1 %v4495_v5  ;;  %v4503_v13 = vld [vmem:[%s5780_s4 + $0x60] sm:$0xff]   ;;  %v4507_v17 = vld [vmem:[%s5780_s4 + $0x58] sm:$0xff]   ;;  %v4511_v21 = vld [vmem:[%s5780_s4 + $0x50] sm:$0xff]  }
  0x12   : > { %v4504_v14 = vld [vmem:[%s5780_s4 + $0xa0] sm:$0xff]   ;;  %v4508_v18 = vld [vmem:[%s5780_s4 + $0x98] sm:$0xff]   ;;  %v4512_v22 = vld [vmem:[%s5780_s4 + $0x90] sm:$0xff]  }
  0x13   : > { %3956 = vmatpush3.bf16.msra.mxu0 %v4496_v6  ;;  %v4505_v15 = vld [vmem:[%s5780_s4 + $0x20] sm:$0xff]   ;;  %v4509_v19 = vld [vmem:[%s5780_s4 + $0x18] sm:$0xff]   ;;  %v4513_v23 = vld [vmem:[%s5780_s4 + $0x10] sm:$0xff]  }
  0x14   : > { %4020 = vmatpush3.bf16.msra.mxu1 %v4497_v7  ;;  %3957 = vmatprep.subr.bf16.mxu0 %v4498_v8  ;;  %v4514_v24 = vld [vmem:[%s5780_s4 + $0xc8] sm:$0xff]   ;;  %v4518_v28 = vld [vmem:[%s5780_s4 + $0xc0] sm:$0xff]   ;;  %v4528_v36 = vld [vmem:[%s5780_s4 + $0x178] sm:$0xff]  }
  0x15   : > { %4021 = vmatprep.subr.bf16.mxu1 %v4499_v9  ;;  %v4515_v25 = vld [vmem:[%s5780_s4 + $0x48] sm:$0xff]   ;;  %v4519_v29 = vld [vmem:[%s5780_s4 + $0x40] sm:$0xff]   ;;  %v4529_v37 = vld [vmem:[%s5780_s4 + $0x138] sm:$0xff]  }
  0x16   : > { %v4516_v26 = vld [vmem:[%s5780_s4 + $0x88] sm:$0xff]   ;;  %v4520_v30 = vld [vmem:[%s5780_s4 + $0x80] sm:$0xff]   ;;  %v4530_v38 = vld [vmem:[%s5780_s4 + $0x1f8] sm:$0xff]  }
  0x17   : > { %3958 = vmatpush3.bf16.msra.mxu0 %v4500_v10  ;;  %v4517_v27 = vld [vmem:[%s5780_s4 + $0x8] sm:$0xff]   ;;  %v4521_v31 = vld [vmem:[%s5780_s4] sm:$0xff]   ;;  %v4531_v39 = vld [vmem:[%s5780_s4 + $0x1b8] sm:$0xff]  }
  0x18   : > { %4022 = vmatpush3.bf16.msra.mxu1 %v4501_v11  ;;  %3959 = vmatprep.subr.bf16.mxu0 %v4502_v12  ;;  %v4522_v32 = vld [vmem:[%s4906_s28] ss:$8 sps:$4 sm:$0xff]   ;;  %v4524_v33 = vld [vmem:[%s4906_s28 + $0x4] ss:$8 sps:$4 sm:$0xff]   ;;  %v4937_v40 = vld [vmem:[%s4906_s28 + $0x14] ss:$8 sps:$4 sm:$0xff]  }
  0x19   : > { %4023 = vmatprep.subr.bf16.mxu1 %v4503_v13  ;;  %v4525_v34 = vld [vmem:[%s4918_s11] ss:$8 sps:$4 sm:$0xff]   ;;  %v4527_v35 = vld [vmem:[%s4918_s11 + $0x4] ss:$8 sps:$4 sm:$0xff]   ;;  %649 = vmatprep.mubr.bf16.mxu0 %v4524_v33  ;;  %v4940_v41 = vld [vmem:[%s4918_s11 + $0x14] ss:$8 sps:$4 sm:$0xff]  }
  0x1a   : > { %922 = vmatprep.mubr.bf16.mxu1 %v4527_v35  ;;  %v4943_v42 = vld [vmem:[%s4906_s28 + $0x10] ss:$8 sps:$4 sm:$0xff]   ;;  %v4965_v48 = vld [vmem:[%s4906_s28 + $0x24] ss:$8 sps:$4 sm:$0xff]   ;;  %v4971_v50 = vld [vmem:[%s4906_s28 + $0x20] ss:$8 sps:$4 sm:$0xff]  }
  0x1b   : > { %3960 = vmatpush3.bf16.msra.mxu0 %v4504_v14  ;;  %v4947_v43 = vld [vmem:[%s4918_s11 + $0x10] ss:$8 sps:$4 sm:$0xff]   ;;  %v4968_v49 = vld [vmem:[%s4918_s11 + $0x24] ss:$8 sps:$4 sm:$0xff]   ;;  %v4974_v51 = vld [vmem:[%s4918_s11 + $0x20] ss:$8 sps:$4 sm:$0xff]  }
  0x1c   : > { %4024 = vmatpush3.bf16.msra.mxu1 %v4505_v15  ;;  %3961 = vmatprep.subr.bf16.mxu0 %v4506_v16  ;;  %v4538_v44 = vld [vmem:[%s5780_s4 + $0x170] sm:$0xff]   ;;  %v4548_v52 = vld [vmem:[%s5780_s4 + $0x168] sm:$0xff]   ;;  %v4558_v60 = vld [vmem:[%s5780_s4 + $0x160] sm:$0xff]  }
  0x1d   : > { %4025 = vmatprep.subr.bf16.mxu1 %v4507_v17  ;;  %v4539_v45 = vld [vmem:[%s5780_s4 + $0x130] sm:$0xff]   ;;  %v4549_v53 = vld [vmem:[%s5780_s4 + $0x128] sm:$0xff]   ;;  %v4559_v61 = vld [vmem:[%s5780_s4 + $0x120] sm:$0xff]  }
  0x1e   : > { %v4540_v46 = vld [vmem:[%s5780_s4 + $0x1f0] sm:$0xff]   ;;  %v4550_v54 = vld [vmem:[%s5780_s4 + $0x1e8] sm:$0xff]   ;;  %v4560_v62 = vld [vmem:[%s5780_s4 + $0x1e0] sm:$0xff]  }
  0x1f   : > { %3962 = vmatpush3.bf16.msra.mxu0 %v4508_v18  ;;  %v4541_v47 = vld [vmem:[%s5780_s4 + $0x1b0] sm:$0xff]   ;;  %v4551_v55 = vld [vmem:[%s5780_s4 + $0x1a8] sm:$0xff]   ;;  %v4561_v63 = vld [vmem:[%s5780_s4 + $0x1a0] sm:$0xff]  }
  0x20   : > { %4026 = vmatpush3.bf16.msra.mxu1 %v4509_v19  ;;  %3963 = vmatprep.subr.bf16.mxu0 %v4510_v20  ;;  %v4992_v56 = vld [vmem:[%s4906_s28 + $0x34] ss:$8 sps:$4 sm:$0xff]   ;;  %v5000_v58 = vld [vmem:[%s4906_s28 + $0x30] ss:$8 sps:$4 sm:$0xff]   ;;  %v5019_v0 = vld [vmem:[%s4906_s28 + $0x44] ss:$8 sps:$4 sm:$0xff]  }
  0x21   : > { %4027 = vmatprep.subr.bf16.mxu1 %v4511_v21  ;;  %v4996_v57 = vld [vmem:[%s4918_s11 + $0x34] ss:$8 sps:$4 sm:$0xff]   ;;  %v5004_v59 = vld [vmem:[%s4918_s11 + $0x30] ss:$8 sps:$4 sm:$0xff]   ;;  %v5023_v1 = vld [vmem:[%s4918_s11 + $0x44] ss:$8 sps:$4 sm:$0xff]  }
  0x22   : > { %v5029_v2 = vld [vmem:[%s4906_s28 + $0x40] ss:$8 sps:$4 sm:$0xff]   ;;  %v4568_v3 = vld [vmem:[%s5780_s4 + $0x158] sm:$0xff]   ;;  %v4578_v10 = vld [vmem:[%s5780_s4 + $0x150] sm:$0xff]  }
  0x23   : > { %3964 = vmatpush3.bf16.msra.mxu0 %v4512_v22  ;;  %v5035_v4 = vld [vmem:[%s4918_s11 + $0x40] ss:$8 sps:$4 sm:$0xff]   ;;  %v4569_v5 = vld [vmem:[%s5780_s4 + $0x118] sm:$0xff]   ;;  %v4579_v11 = vld [vmem:[%s5780_s4 + $0x110] sm:$0xff]  }
  0x24   : > { %4028 = vmatpush3.bf16.msra.mxu1 %v4513_v23  ;;  %3965 = vmatprep.subr.bf16.mxu0 %v4514_v24  ;;  %v4570_v6 = vld [vmem:[%s5780_s4 + $0x1d8] sm:$0xff]   ;;  %v4580_v13 = vld [vmem:[%s5780_s4 + $0x1d0] sm:$0xff]   ;;  %v5075_v16 = vld [vmem:[%s4906_s28 + $0x64] ss:$8 sps:$4 sm:$0xff]  }
  0x25   : > { %4029 = vmatprep.subr.bf16.mxu1 %v4515_v25  ;;  %v4571_v7 = vld [vmem:[%s5780_s4 + $0x198] sm:$0xff]   ;;  %v4581_v14 = vld [vmem:[%s5780_s4 + $0x190] sm:$0xff]   ;;  %v5078_v17 = vld [vmem:[%s4918_s11 + $0x64] ss:$8 sps:$4 sm:$0xff]  }
  0x26   : > { %v5047_v8 = vld [vmem:[%s4906_s28 + $0x54] ss:$8 sps:$4 sm:$0xff]   ;;  %v5063_v12 = vld [vmem:[%s4906_s28 + $0x50] ss:$8 sps:$4 sm:$0xff]   ;;  %v4588_v18 = vld [vmem:[%s5780_s4 + $0x148] sm:$0xff]  }
  0x27   : > { %3966 = vmatpush3.bf16.msra.mxu0 %v4516_v26  ;;  %v5050_v9 = vld [vmem:[%s4918_s11 + $0x54] ss:$8 sps:$4 sm:$0xff]   ;;  %v5072_v15 = vld [vmem:[%s4918_s11 + $0x50] ss:$8 sps:$4 sm:$0xff]   ;;  %v4589_v19 = vld [vmem:[%s5780_s4 + $0x108] sm:$0xff]  }
  0x28   : > { %4030 = vmatpush3.bf16.msra.mxu1 %v4517_v27  ;;  %3967 = vmatprep.subr.bf16.mxu0 %v4518_v28  ;;  %v4590_v20 = vld [vmem:[%s5780_s4 + $0x1c8] sm:$0xff]   ;;  %v5103_v24 = vld [vmem:[%s4906_s28 + $0x74] ss:$8 sps:$4 sm:$0xff]   ;;  %v4598_v26 = vld [vmem:[%s5780_s4 + $0x140] sm:$0xff]  }
  0x29   : > { %4031 = vmatprep.subr.bf16.mxu1 %v4519_v29  ;;  %v4591_v21 = vld [vmem:[%s5780_s4 + $0x188] sm:$0xff]   ;;  %v5106_v25 = vld [vmem:[%s4918_s11 + $0x74] ss:$8 sps:$4 sm:$0xff]   ;;  %v4599_v27 = vld [vmem:[%s5780_s4 + $0x100] sm:$0xff]  }
  0x2a   : > { %v5097_v22 = vld [vmem:[%s4906_s28 + $0x60] ss:$8 sps:$4 sm:$0xff]   ;;  %v4608_v33 = vld [vmem:[%s5780_s4 + $0x278] sm:$0xff]  }
  0x2b   : > { %3968 = vmatpush3.bf16.msra.mxu0 %v4520_v30  ;;  %v5100_v23 = vld [vmem:[%s4918_s11 + $0x60] ss:$8 sps:$4 sm:$0xff]   ;;  %v5137_v30 = vld [vmem:[%s4906_s28 + $0x70] ss:$8 sps:$4 sm:$0xff]  }
  0x2c   : > { %4032 = vmatpush3.bf16.msra.mxu1 %v4521_v31  ;;  %4081 = vmatprep.subr.bf16.mxu0 %v4528_v36  ;;  %v4600_v28 = vld [vmem:[%s5780_s4 + $0x1c0] sm:$0xff]   ;;  %v5140_v31 = vld [vmem:[%s4918_s11 + $0x70] ss:$8 sps:$4 sm:$0xff]  }
  0x2d   : > { %4145 = vmatprep.subr.bf16.mxu1 %v4530_v38  ;;  %v4601_v29 = vld [vmem:[%s5780_s4 + $0x180] sm:$0xff]   ;;  %v4610_v35 = vld [vmem:[%s5780_s4 + $0x2f8] sm:$0xff]  }
  0x2e   : > { %650 = vmatmul.mubr.bf16.vlgmr.msra.gmra.mxu0 %v4522_v32  ;;  %v4604_v32 = vld [vmem:[%s5122_s7 + $0x4] ss:$8 sps:$4 sm:$0xff]   ;;  %v4602_v36 = vld [vmem:[%s5122_s7] ss:$8 sps:$4 sm:$0xff]   ;;  %v4609_v38 = vld [vmem:[%s5780_s4 + $0x238] sm:$0xff]  }
  0x2f   : > { %923 = vmatmul.mubr.bf16.vlgmr.msra.gmra.mxu1 %v4525_v34  ;;  %4082 = vmatpush3.bf16.msra.mxu0 %v4529_v37  ;;  %v4607_v34 = vld [vmem:[%s5133_s14 + $0x4] ss:$8 sps:$4 sm:$0xff]   ;;  %v4605_v37 = vld [vmem:[%s5133_s14] ss:$8 sps:$4 sm:$0xff]  }
  0x30   : > { %4146 = vmatpush3.bf16.msra.mxu1 %v4531_v39  ;;  %657 = vmatprep.mubr.bf16.mxu0 %v4937_v40  ;;  %v4611_v39 = vld [vmem:[%s5780_s4 + $0x2b8] sm:$0xff]  }
  0x31   : > { %930 = vmatprep.mubr.bf16.mxu1 %v4940_v41  ;;  %4083 = vmatprep.subr.bf16.mxu0 %v4538_v44  ;;  %v5161_v44 = vld [vmem:[%s5122_s7 + $0x14] ss:$8 sps:$4 sm:$0xff]  }
  0x32   : > { %4147 = vmatprep.subr.bf16.mxu1 %v4540_v46  ;;  %v4618_v46 = vld [vmem:[%s5780_s4 + $0x270] sm:$0xff]  }
  0x33   : > { %4084 = vmatpush3.bf16.msra.mxu0 %v4539_v45  ;;  %v5164_v45 = vld [vmem:[%s5133_s14 + $0x14] ss:$8 sps:$4 sm:$0xff]  }
  0x34   : > { %4148 = vmatpush3.bf16.msra.mxu1 %v4541_v47  ;;  %4085 = vmatprep.subr.bf16.mxu0 %v4548_v52  ;;  %v4619_v47 = vld [vmem:[%s5780_s4 + $0x230] sm:$0xff]  }
  0x35   : > { %4149 = vmatprep.subr.bf16.mxu1 %v4550_v54  ;;  %v4620_v52 = vld [vmem:[%s5780_s4 + $0x2f0] sm:$0xff]  }
  0x36   : > { %658 = vmatmul.mubr.bf16.gmra.mxu0 %v4943_v42  ;;  %v5180_v54 = vld [vmem:[%s5122_s7 + $0x10] ss:$8 sps:$4 sm:$0xff]  }
  0x37   : > { %931 = vmatmul.mubr.bf16.gmra.mxu1 %v4947_v43  ;;  %665 = vmatprep.mubr.bf16.mxu0 %v4965_v48 }
  0x38   : > { %938 = vmatprep.mubr.bf16.mxu1 %v4968_v49  ;;  %4086 = vmatpush3.bf16.msra.mxu0 %v4549_v53  ;;  %v4621_v53 = vld [vmem:[%s5780_s4 + $0x2b0] sm:$0xff]  }
  0x39   : > { %4150 = vmatpush3.bf16.msra.mxu1 %v4551_v55  ;;  %4087 = vmatprep.subr.bf16.mxu0 %v4558_v60  ;;  %v4628_v55 = vld [vmem:[%s5780_s4 + $0x268] sm:$0xff]   ;;  %v5187_v60 = vld [vmem:[%s5133_s14 + $0x10] ss:$8 sps:$4 sm:$0xff]  }
  0x3a   : > { %4151 = vmatprep.subr.bf16.mxu1 %v4560_v62  ;;  %v4630_v62 = vld [vmem:[%s5780_s4 + $0x2e8] sm:$0xff]  }
  0x3c   : > { %4088 = vmatpush3.bf16.msra.mxu0 %v4559_v61  ;;  %v5190_v61 = vld [vmem:[%s5122_s7 + $0x24] ss:$8 sps:$4 sm:$0xff]  }
  0x3d   : > { %4152 = vmatpush3.bf16.msra.mxu1 %v4561_v63  ;;  %4089 = vmatprep.subr.bf16.mxu0 %v4568_v3  ;;  %v5196_v63 = vld [vmem:[%s5133_s14 + $0x24] ss:$8 sps:$4 sm:$0xff]  }
  0x3e   : > { %666 = vmatmul.mubr.bf16.gmra.mxu0 %v4971_v50  ;;  %4153 = vmatprep.subr.bf16.mxu1 %v4570_v6  ;;  %v4629_v3 = vld [vmem:[%s5780_s4 + $0x228] sm:$0xff]   ;;  %v4638_v6 = vld [vmem:[%s5780_s4 + $0x260] sm:$0xff]  }
  0x3f   : > { %939 = vmatmul.mubr.bf16.gmra.mxu1 %v4974_v51  ;;  %673 = vmatprep.mubr.bf16.mxu0 %v4992_v56 }
  0x40   : > { %946 = vmatprep.mubr.bf16.mxu1 %v4996_v57  ;;  %4090 = vmatpush3.bf16.msra.mxu0 %v4569_v5  ;;  %v4631_v5 = vld [vmem:[%s5780_s4 + $0x2a8] sm:$0xff]  }
  0x41   : > { %4154 = vmatpush3.bf16.msra.mxu1 %v4571_v7  ;;  %4091 = vmatprep.subr.bf16.mxu0 %v4578_v10  ;;  %v4639_v7 = vld [vmem:[%s5780_s4 + $0x220] sm:$0xff]  }
  0x42   : > { %4155 = vmatprep.subr.bf16.mxu1 %v4580_v13  ;;  %v5215_v10 = vld [vmem:[%s5122_s7 + $0x20] ss:$8 sps:$4 sm:$0xff]  }
  0x43   : > { %v4641_v13 = vld [vmem:[%s5780_s4 + $0x2a0] sm:$0xff]  }
  0x44   : > { %4092 = vmatpush3.bf16.msra.mxu0 %v4579_v11  ;;  %v4640_v11 = vld [vmem:[%s5780_s4 + $0x2e0] sm:$0xff]  }
  0x45   : > { %4156 = vmatpush3.bf16.msra.mxu1 %v4581_v14  ;;  %4093 = vmatprep.subr.bf16.mxu0 %v4588_v18  ;;  %v5224_v14 = vld [vmem:[%s5133_s14 + $0x20] ss:$8 sps:$4 sm:$0xff]   ;;  %v5227_v18 = vld [vmem:[%s5122_s7 + $0x34] ss:$8 sps:$4 sm:$0xff]  }
  0x46   : > { %674 = vmatmul.mubr.bf16.gmra.mxu0 %v5000_v58  ;;  %4157 = vmatprep.subr.bf16.mxu1 %v4590_v20  ;;  %v4648_v20 = vld [vmem:[%s5780_s4 + $0x258] sm:$0xff]  }
  0x47   : > { %947 = vmatmul.mubr.bf16.gmra.mxu1 %v5004_v59  ;;  %681 = vmatprep.mubr.bf16.mxu0 %v5019_v0 }
  0x48   : > { %954 = vmatprep.mubr.bf16.mxu1 %v5023_v1  ;;  %4094 = vmatpush3.bf16.msra.mxu0 %v4589_v19  ;;  %v5230_v19 = vld [vmem:[%s5133_s14 + $0x34] ss:$8 sps:$4 sm:$0xff]  }
  0x49   : > { %4158 = vmatpush3.bf16.msra.mxu1 %v4591_v21  ;;  %4095 = vmatprep.subr.bf16.mxu0 %v4598_v26  ;;  %v4649_v21 = vld [vmem:[%s5780_s4 + $0x218] sm:$0xff]  }
  0x4a   : > { %4159 = vmatprep.subr.bf16.mxu1 %v4600_v28  ;;  %v4650_v26 = vld [vmem:[%s5780_s4 + $0x2d8] sm:$0xff]  }
  0x4b   : > { %v5249_v28 = vld [vmem:[%s5122_s7 + $0x30] ss:$8 sps:$4 sm:$0xff]  }
  0x4c   : > { %4096 = vmatpush3.bf16.msra.mxu0 %v4599_v27  ;;  %v4651_v27 = vld [vmem:[%s5780_s4 + $0x298] sm:$0xff]  }
  0x4d   : > { %4160 = vmatpush3.bf16.msra.mxu1 %v4601_v29  ;;  %4209 = vmatprep.subr.bf16.mxu0 %v4608_v33  ;;  %v5252_v29 = vld [vmem:[%s5133_s14 + $0x30] ss:$8 sps:$4 sm:$0xff]   ;;  %v5258_v33 = vld [vmem:[%s5133_s14 + $0x44] ss:$8 sps:$4 sm:$0xff]  }
  0x4e   : > { %682 = vmatmul.mubr.bf16.gmra.mxu0 %v5029_v2  ;;  %4273 = vmatprep.subr.bf16.mxu1 %v4610_v35  ;;  %v4659_v35 = vld [vmem:[%s5780_s4 + $0x210] sm:$0xff]  }
  0x4f   : > { %955 = vmatmul.mubr.bf16.gmra.mxu1 %v5035_v4  ;;  %689 = vmatprep.mubr.bf16.mxu0 %v5047_v8 }
  0x50   : > { %962 = vmatprep.mubr.bf16.mxu1 %v5050_v9 }
  0x56   : > { %690 = vmatmul.mubr.bf16.gmra.mxu0 %v5063_v12 }
  0x57   : > { %963 = vmatmul.mubr.bf16.gmra.mxu1 %v5072_v15  ;;  %697 = vmatprep.mubr.bf16.mxu0 %v5075_v16 }
  0x58   : > { %970 = vmatprep.mubr.bf16.mxu1 %v5078_v17 }
  0x5e   : > { %698 = vmatmul.mubr.bf16.gmra.mxu0 %v5097_v22 }
  0x5f   : > { %971 = vmatmul.mubr.bf16.gmra.mxu1 %v5100_v23  ;;  %705 = vmatprep.mubr.bf16.mxu0 %v5103_v24 }
  0x60   : > { %978 = vmatprep.mubr.bf16.mxu1 %v5106_v25 }
  0x66   : > { %706 = vmatmul.mubr.bf16.gmra.mxu0 %v5137_v30 }
  0x67   : > { %979 = vmatmul.mubr.bf16.gmra.mxu1 %v5140_v31  ;;  %1246 = vmatprep.mubr.bf16.mxu0 %v4604_v32  ;;  %v5255_v32 = vld [vmem:[%s5122_s7 + $0x44] ss:$8 sps:$4 sm:$0xff]  }
  0x68   : > { %1586 = vmatprep.mubr.bf16.mxu1 %v4607_v34  ;;  %v4658_v34 = vld [vmem:[%s5780_s4 + $0x250] sm:$0xff]  }
  0x6e   : > { %1247 = vmatmul.mubr.bf16.vlgmr.msra.gmra.mxu0 %v4602_v36  ;;  %v4660_v36 = vld [vmem:[%s5780_s4 + $0x2d0] sm:$0xff]  }
  0x6f   : > { %1587 = vmatmul.mubr.bf16.vlgmr.msra.gmra.mxu1 %v4605_v37  ;;  %4210 = vmatpush3.bf16.msra.mxu0 %v4609_v38  ;;  %v4661_v37 = vld [vmem:[%s5780_s4 + $0x290] sm:$0xff]   ;;  %v5277_v38 = vld [vmem:[%s5122_s7 + $0x40] ss:$8 sps:$4 sm:$0xff]  }
  0x70   : > { %4274 = vmatpush3.bf16.msra.mxu1 %v4611_v39  ;;  %1254 = vmatprep.mubr.bf16.mxu0 %v5161_v44  ;;  %v5280_v39 = vld [vmem:[%s5133_s14 + $0x40] ss:$8 sps:$4 sm:$0xff]  }
  0x71   : > { %1594 = vmatprep.mubr.bf16.mxu1 %v5164_v45  ;;  %4211 = vmatprep.subr.bf16.mxu0 %v4618_v46  ;;  %v5283_v46 = vld [vmem:[%s5122_s7 + $0x54] ss:$8 sps:$4 sm:$0xff]  }
  0x72   : > { %4275 = vmatprep.subr.bf16.mxu1 %v4620_v52  ;;  %v4668_v52 = vld [vmem:[%s5780_s4 + $0x248] sm:$0xff]  }
  0x73   : > { %4212 = vmatpush3.bf16.msra.mxu0 %v4619_v47  ;;  %v5286_v47 = vld [vmem:[%s5133_s14 + $0x54] ss:$8 sps:$4 sm:$0xff]  }
  0x74   : > { %4276 = vmatpush3.bf16.msra.mxu1 %v4621_v53  ;;  %4213 = vmatprep.subr.bf16.mxu0 %v4628_v55  ;;  %v4669_v53 = vld [vmem:[%s5780_s4 + $0x208] sm:$0xff]  }
  0x75   : > { %4277 = vmatprep.subr.bf16.mxu1 %v4630_v62  ;;  %v4670_v55 = vld [vmem:[%s5780_s4 + $0x2c8] sm:$0xff]  }
  0x76   : > { %1255 = vmatmul.mubr.bf16.gmra.mxu0 %v5180_v54  ;;  %v4671_v62 = vld [vmem:[%s5780_s4 + $0x288] sm:$0xff]  }
  0x77   : > { %1595 = vmatmul.mubr.bf16.gmra.mxu1 %v5187_v60  ;;  %1262 = vmatprep.mubr.bf16.mxu0 %v5190_v61 }
  0x78   : > { %1602 = vmatprep.mubr.bf16.mxu1 %v5196_v63  ;;  %4214 = vmatpush3.bf16.msra.mxu0 %v4629_v3  ;;  %v5305_v3 = vld [vmem:[%s5122_s7 + $0x50] ss:$8 sps:$4 sm:$0xff]  }
  0x79   : > { %4278 = vmatpush3.bf16.msra.mxu1 %v4631_v5  ;;  %4215 = vmatprep.subr.bf16.mxu0 %v4638_v6  ;;  %v5308_v5 = vld [vmem:[%s5133_s14 + $0x50] ss:$8 sps:$4 sm:$0xff]   ;;  %v5311_v6 = vld [vmem:[%s5122_s7 + $0x64] ss:$8 sps:$4 sm:$0xff]  }
  0x7a   : > { %4279 = vmatprep.subr.bf16.mxu1 %v4640_v11  ;;  %v5317_v11 = vld [vmem:[%s5133_s14 + $0x64] ss:$8 sps:$4 sm:$0xff]  }
  0x7c   : > { %4216 = vmatpush3.bf16.msra.mxu0 %v4639_v7  ;;  %v4678_v7 = vld [vmem:[%s5780_s4 + $0x240] sm:$0xff]  }
  0x7d   : > { %4280 = vmatpush3.bf16.msra.mxu1 %v4641_v13  ;;  %4217 = vmatprep.subr.bf16.mxu0 %v4648_v20  ;;  %v4679_v13 = vld [vmem:[%s5780_s4 + $0x200] sm:$0xff]  }
  0x7e   : > { %1263 = vmatmul.mubr.bf16.gmra.mxu0 %v5215_v10  ;;  %4281 = vmatprep.subr.bf16.mxu1 %v4650_v26  ;;  %v4680_v20 = vld [vmem:[%s5780_s4 + $0x2c0] sm:$0xff]   ;;  %v4682_v26 = vld [vmem:[%s5780_s4 + $0x378] sm:$0xff]  }
  0x7f   : > { %1603 = vmatmul.mubr.bf16.gmra.mxu1 %v5224_v14  ;;  %1270 = vmatprep.mubr.bf16.mxu0 %v5227_v18 }
  0x80   : > { %1610 = vmatprep.mubr.bf16.mxu1 %v5230_v19  ;;  %4218 = vmatpush3.bf16.msra.mxu0 %v4649_v21  ;;  %v4681_v21 = vld [vmem:[%s5780_s4 + $0x280] sm:$0xff]  }
  0x81   : > { %4282 = vmatpush3.bf16.msra.mxu1 %v4651_v27  ;;  %4219 = vmatprep.subr.bf16.mxu0 %v4658_v34  ;;  %v4684_v27 = vld [vmem:[%s5780_s4 + $0x3f8] sm:$0xff]   ;;  %v5339_v34 = vld [vmem:[%s5122_s7 + $0x60] ss:$8 sps:$4 sm:$0xff]  }
  0x82   : > { %4283 = vmatprep.subr.bf16.mxu1 %v4660_v36  ;;  %v5345_v36 = vld [vmem:[%s5122_s7 + $0x74] ss:$8 sps:$4 sm:$0xff]  }
  0x84   : > { %4220 = vmatpush3.bf16.msra.mxu0 %v4659_v35  ;;  %v5342_v35 = vld [vmem:[%s5133_s14 + $0x60] ss:$8 sps:$4 sm:$0xff]  }
  0x85   : > { %4284 = vmatpush3.bf16.msra.mxu1 %v4661_v37  ;;  %4221 = vmatprep.subr.bf16.mxu0 %v4668_v52  ;;  %v5348_v37 = vld [vmem:[%s5133_s14 + $0x74] ss:$8 sps:$4 sm:$0xff]   ;;  %v5355_v52 = vld [vmem:[%s5122_s7 + $0x70] ss:$8 sps:$4 sm:$0xff]  }
  0x86   : > { %1271 = vmatmul.mubr.bf16.gmra.mxu0 %v5249_v28  ;;  %4285 = vmatprep.subr.bf16.mxu1 %v4670_v55  ;;  %v4683_v55 = vld [vmem:[%s5780_s4 + $0x338] sm:$0xff]  }
  0x87   : > { %1611 = vmatmul.mubr.bf16.gmra.mxu1 %v5252_v29  ;;  %1278 = vmatprep.mubr.bf16.mxu0 %v5255_v32 }
  0x88   : > { %1618 = vmatprep.mubr.bf16.mxu1 %v5258_v33  ;;  %4222 = vmatpush3.bf16.msra.mxu0 %v4669_v53  ;;  %v5358_v53 = vld [vmem:[%s5133_s14 + $0x70] ss:$8 sps:$4 sm:$0xff]  }
  0x89   : > { %4286 = vmatpush3.bf16.msra.mxu1 %v4671_v62  ;;  %4223 = vmatprep.subr.bf16.mxu0 %v4678_v7  ;;  %v4685_v62 = vld [vmem:[%s5780_s4 + $0x3b8] sm:$0xff]   ;;  %v4686_v7 = vld [vmem:[%s5780_s4 + $0x370] sm:$0xff]  }
  0x8a   : > { %4287 = vmatprep.subr.bf16.mxu1 %v4680_v20  ;;  %v4690_v20 = vld [vmem:[%s5780_s4 + $0x368] sm:$0xff]  }
  0x8c   : > { %4224 = vmatpush3.bf16.msra.mxu0 %v4679_v13  ;;  %v4687_v13 = vld [vmem:[%s5780_s4 + $0x330] sm:$0xff]  }
  0x8d   : > { %4288 = vmatpush3.bf16.msra.mxu1 %v4681_v21  ;;  %4337 = vmatprep.subr.bf16.mxu0 %v4682_v26  ;;  %v4696_v21 = vld [vmem:[%s5780_s4 + $0x3e0] sm:$0xff]  }
  0x8e   : > { %1279 = vmatmul.mubr.bf16.gmra.mxu0 %v5277_v38  ;;  %4401 = vmatprep.subr.bf16.mxu1 %v4684_v27  ;;  %v4695_v26 = vld [vmem:[%s5780_s4 + $0x320] sm:$0xff]   ;;  %v4698_v27 = vld [vmem:[%s5780_s4 + $0x358] sm:$0xff]  }
  0x8f   : > { %1619 = vmatmul.mubr.bf16.gmra.mxu1 %v5280_v39  ;;  %1286 = vmatprep.mubr.bf16.mxu0 %v5283_v46 }
  0x90   : > { %1626 = vmatprep.mubr.bf16.mxu1 %v5286_v47 }
  0x96   : > { %1287 = vmatmul.mubr.bf16.gmra.mxu0 %v5305_v3 }
  0x97   : > { %1627 = vmatmul.mubr.bf16.gmra.mxu1 %v5308_v5  ;;  %1294 = vmatprep.mubr.bf16.mxu0 %v5311_v6 }
  0x98   : > { %1634 = vmatprep.mubr.bf16.mxu1 %v5317_v11 }
  0x9e   : > { %1295 = vmatmul.mubr.bf16.gmra.mxu0 %v5339_v34 }
  0x9f   : > { %1635 = vmatmul.mubr.bf16.gmra.mxu1 %v5342_v35  ;;  %1302 = vmatprep.mubr.bf16.mxu0 %v5345_v36 }
  0xa0   : > { %1642 = vmatprep.mubr.bf16.mxu1 %v5348_v37 }
  0xa6   : > { %1303 = vmatmul.mubr.bf16.gmra.mxu0 %v5355_v52 }
  0xa7   : > { %1643 = vmatmul.mubr.bf16.gmra.mxu1 %v5358_v53  ;;  %1930 = vmatprep.mubr.bf16.mxu0 %v4940_v41  ;;  %v4689_v41 = vld [vmem:[%s5780_s4 + $0x3b0] sm:$0xff]  }
  0xa8   : > { %2270 = vmatprep.mubr.bf16.mxu1 %v4937_v40  ;;  %v4688_v40 = vld [vmem:[%s5780_s4 + $0x3f0] sm:$0xff]  }
  0xae   : > { %1931 = vmatmul.mubr.bf16.vlgmr.msra.gmra.mxu0 %v4947_v43  ;;  %v4692_v43 = vld [vmem:[%s5780_s4 + $0x3e8] sm:$0xff]  }
  0xaf   : > { %2271 = vmatmul.mubr.bf16.vlgmr.msra.gmra.mxu1 %v4943_v42  ;;  %4338 = vmatpush3.bf16.msra.mxu0 %v4683_v55  ;;  %v4691_v42 = vld [vmem:[%s5780_s4 + $0x328] sm:$0xff]   ;;  %v4702_v55 = vld [vmem:[%s5780_s4 + $0x350] sm:$0xff]  }
  0xb0   : > { %4402 = vmatpush3.bf16.msra.mxu1 %v4685_v62  ;;  %1938 = vmatprep.mubr.bf16.mxu0 %v4968_v49  ;;  %v4693_v49 = vld [vmem:[%s5780_s4 + $0x3a8] sm:$0xff]   ;;  %v4704_v62 = vld [vmem:[%s5780_s4 + $0x3d0] sm:$0xff]  }
  0xb1   : > { %2278 = vmatprep.mubr.bf16.mxu1 %v4965_v48  ;;  %4339 = vmatprep.subr.bf16.mxu0 %v4686_v7  ;;  %v4694_v48 = vld [vmem:[%s5780_s4 + $0x360] sm:$0xff]   ;;  %v4703_v7 = vld [vmem:[%s5780_s4 + $0x310] sm:$0xff]  }
  0xb2   : > { %4403 = vmatprep.subr.bf16.mxu1 %v4688_v40  ;;  %v4716_v40 = vld [vmem:[%s5780_s4 + $0x340] sm:$0xff]  }
  0xb3   : > { %4340 = vmatpush3.bf16.msra.mxu0 %v4687_v13  ;;  %v4706_v13 = vld [vmem:[%s5780_s4 + $0x348] sm:$0xff]  }
  0xb4   : > { %4404 = vmatpush3.bf16.msra.mxu1 %v4689_v41  ;;  %4341 = vmatprep.subr.bf16.mxu0 %v4690_v20  ;;  %v4718_v41 = vld [vmem:[%s5780_s4 + $0x3c0] sm:$0xff]  }
  0xb5   : > { %4405 = vmatprep.subr.bf16.mxu1 %v4692_v43  ;;  %v4717_v20 = vld [vmem:[%s5780_s4 + $0x300] sm:$0xff]  }
  0xb6   : > { %1939 = vmatmul.mubr.bf16.gmra.mxu0 %v4974_v51  ;;  %v4697_v51 = vld [vmem:[%s5780_s4 + $0x3a0] sm:$0xff]  }
  0xb7   : > { %2279 = vmatmul.mubr.bf16.gmra.mxu1 %v4971_v50  ;;  %1946 = vmatprep.mubr.bf16.mxu0 %v4996_v57  ;;  %v4700_v50 = vld [vmem:[%s5780_s4 + $0x3d8] sm:$0xff]  }
  0xb8   : > { %2286 = vmatprep.mubr.bf16.mxu1 %v4992_v56  ;;  %4342 = vmatpush3.bf16.msra.mxu0 %v4691_v42  ;;  %v4699_v56 = vld [vmem:[%s5780_s4 + $0x318] sm:$0xff]  }
  0xb9   : > { %4406 = vmatpush3.bf16.msra.mxu1 %v4693_v49  ;;  %4343 = vmatprep.subr.bf16.mxu0 %v4694_v48  ;;  %v4701_v57 = vld [vmem:[%s5780_s4 + $0x398] sm:$0xff]  }
  0xba   : > { %4407 = vmatprep.subr.bf16.mxu1 %v4696_v21 }
  0xbc   : > { %4344 = vmatpush3.bf16.msra.mxu0 %v4695_v26 }
  0xbd   : > { %4408 = vmatpush3.bf16.msra.mxu1 %v4697_v51  ;;  %4345 = vmatprep.subr.bf16.mxu0 %v4698_v27 }
  0xbe   : > { %1947 = vmatmul.mubr.bf16.gmra.mxu0 %v5004_v59  ;;  %4409 = vmatprep.subr.bf16.mxu1 %v4700_v50  ;;  %v4705_v59 = vld [vmem:[%s5780_s4 + $0x390] sm:$0xff]  }
  0xbf   : > { %2287 = vmatmul.mubr.bf16.gmra.mxu1 %v5000_v58  ;;  %1954 = vmatprep.mubr.bf16.mxu0 %v5023_v1  ;;  %v4708_v58 = vld [vmem:[%s5780_s4 + $0x3c8] sm:$0xff]  }
  0xc0   : > { %2294 = vmatprep.mubr.bf16.mxu1 %v5019_v0  ;;  %4346 = vmatpush3.bf16.msra.mxu0 %v4699_v56  ;;  %v4707_v0 = vld [vmem:[%s5780_s4 + $0x308] sm:$0xff]  }
  0xc1   : > { %4410 = vmatpush3.bf16.msra.mxu1 %v4701_v57  ;;  %4347 = vmatprep.subr.bf16.mxu0 %v4702_v55  ;;  %v4709_v1 = vld [vmem:[%s5780_s4 + $0x388] sm:$0xff]  }
  0xc2   : > { %4411 = vmatprep.subr.bf16.mxu1 %v4704_v62 }
  0xc4   : > { %4348 = vmatpush3.bf16.msra.mxu0 %v4703_v7 }
  0xc5   : > { %4412 = vmatpush3.bf16.msra.mxu1 %v4705_v59  ;;  %4349 = vmatprep.subr.bf16.mxu0 %v4706_v13 }
  0xc6   : > { %1955 = vmatmul.mubr.bf16.gmra.mxu0 %v5035_v4  ;;  %4413 = vmatprep.subr.bf16.mxu1 %v4708_v58  ;;  %v4719_v4 = vld [vmem:[%s5780_s4 + $0x380] sm:$0xff]  }
  0xc7   : > { %2295 = vmatmul.mubr.bf16.gmra.mxu1 %v5029_v2  ;;  %1962 = vmatprep.mubr.bf16.mxu0 %v5050_v9  ;;  %v4710_v2 = vld [vmem:[%s4918_s11 + $0x84] ss:$8 sps:$4 sm:$0xff]   ;;  %v4714_v9 = vld [vmem:[%s4918_s11 + $0x80] ss:$8 sps:$4 sm:$0xff]  }
  0xc8   : > { %2302 = vmatprep.mubr.bf16.mxu1 %v5047_v8  ;;  %4350 = vmatpush3.bf16.msra.mxu0 %v4707_v0  ;;  %v4712_v8 = vld [vmem:[%s4906_s28 + $0x84] ss:$8 sps:$4 sm:$0xff]  }
  0xc9   : > { %4414 = vmatpush3.bf16.msra.mxu1 %v4709_v1  ;;  %4351 = vmatprep.subr.bf16.mxu0 %v4716_v40 }
  0xca   : > { %4415 = vmatprep.subr.bf16.mxu1 %v4718_v41 }
  0xcc   : > { %4352 = vmatpush3.bf16.msra.mxu0 %v4717_v20 }
  0xcd   : > { %4416 = vmatpush3.bf16.msra.mxu1 %v4719_v4 }
  0xce   : > { %1963 = vmatmul.mubr.bf16.gmra.mxu0 %v5072_v15 }
  0xcf   : > { %2303 = vmatmul.mubr.bf16.gmra.mxu1 %v5063_v12  ;;  %1970 = vmatprep.mubr.bf16.mxu0 %v5078_v17  ;;  %v4715_v12 = vld [vmem:[%s4906_s28 + $0x80] ss:$8 sps:$4 sm:$0xff]  }
  0xd0   : > { %2310 = vmatprep.mubr.bf16.mxu1 %v5075_v16 }
  0xd6   : > { %1971 = vmatmul.mubr.bf16.gmra.mxu0 %v5100_v23 }
  0xd7   : > { %2311 = vmatmul.mubr.bf16.gmra.mxu1 %v5097_v22  ;;  %1978 = vmatprep.mubr.bf16.mxu0 %v5106_v25 }
  0xd8   : > { %2318 = vmatprep.mubr.bf16.mxu1 %v5103_v24 }
  0xde   : > { %1979 = vmatmul.mubr.bf16.gmra.mxu0 %v5140_v31 }
  0xdf   : > { %2319 = vmatmul.mubr.bf16.gmra.mxu1 %v5137_v30  ;;  %1986 = vmatprep.mubr.bf16.mxu0 %v4710_v2 }
  0xe0   : > { %2326 = vmatprep.mubr.bf16.mxu1 %v4712_v8 }
  0xe6   : > { %1987 = vmatmul.mubr.bf16.gmra.mxu0 %v4714_v9 }
  0xe7   : > { %2327 = vmatmul.mubr.bf16.gmra.mxu1 %v4715_v12  ;;  %2610 = vmatprep.mubr.bf16.mxu0 %v5161_v44 }
  0xe8   : > { %2950 = vmatprep.mubr.bf16.mxu1 %v5164_v45 }
  0xee   : > { %v3969_v15 = vpop.f32.mrf.mxu0  ;;  %2611 = vmatmul.mubr.bf16.vlgmr.msra.gmra.mxu0 %v5180_v54 }
  0xef   : > { %v4033_v16 = vpop.f32.mrf.mxu1  ;;  %2951 = vmatmul.mubr.bf16.vlgmr.msra.gmra.mxu1 %v5187_v60  ;;  %2618 = vmatprep.mubr.bf16.mxu0 %v5190_v61 }
  0xf0   : > { %v3970_v17 = vpop.f32.mrf.mxu0  ;;  %2958 = vmatprep.mubr.bf16.mxu1 %v5196_v63 }
  0xf1   : > { %v3971_v22 = vadd.f32 %v3970_v17, %v3969_v15  ;;  %v4034_v23 = vpop.f32.mrf.mxu1 }
  0xf2   : > { %v4035_v24 = vadd.f32 %v4034_v23, %v4033_v16  ;;  %v3972_v25 = vpop.f32.mrf.mxu0 }
  0xf3   : > { %v4036_v30 = vpop.f32.mrf.mxu1 }
  0xf4   : > { %v5490_v31 = vadd.f32 %v4035_v24, %v3971_v22  ;;  %v3973_v44 = vpop.f32.mrf.mxu0 }
  0xf5   : > { %v3974_v45 = vadd.f32 %v3973_v44, %v3972_v25  ;;  %v4037_v43 = vpop.f32.mrf.mxu1 }
  0xf6   : > { %v4038_v42 = vadd.f32 %v4037_v43, %v4036_v30  ;;  %v3975_v54 = vpop.f32.mrf.mxu0  ;;  %2619 = vmatmul.mubr.bf16.gmra.mxu0 %v5215_v10 }
  0xf7   : > { %v4039_v60 = vpop.f32.mrf.mxu1  ;;  %2959 = vmatmul.mubr.bf16.gmra.mxu1 %v5224_v14  ;;  %2626 = vmatprep.mubr.bf16.mxu0 %v5227_v18 }
  0xf8   : > { %v5495_v61 = vadd.f32 %v4038_v42, %v3974_v45  ;;  %v3976_v63 = vpop.f32.mrf.mxu0  ;;  %2966 = vmatprep.mubr.bf16.mxu1 %v5230_v19 }
  0xf9   : > { %v3977_v49 = vadd.f32 %v3976_v63, %v3975_v54  ;;  %v4040_v48 = vpop.f32.mrf.mxu1 }
  0xfa   : > { %v4041_v21 = vadd.f32 %v4040_v48, %v4039_v60  ;;  %v3978_v26 = vpop.f32.mrf.mxu0 }
  0xfb   : > { %v4042_v51 = vpop.f32.mrf.mxu1 }
  0xfc   : > { %v5498_v27 = vadd.f32 %v4041_v21, %v3977_v49  ;;  %v3979_v50 = vpop.f32.mrf.mxu0 }
  0xfd   : > { %v3980_v56 = vadd.f32 %v3979_v50, %v3978_v26  ;;  %v4043_v10 = vpop.f32.mrf.mxu1  ;;  %v4722_v50 = vld [vmem:[%s5122_s7 + $0x84] ss:$8 sps:$4 sm:$0xff]  }
  0xfe   : > { %v4044_v57 = vadd.f32 %v4043_v10, %v4042_v51  ;;  %v3981_v55 = vpop.f32.mrf.mxu0  ;;  %2627 = vmatmul.mubr.bf16.gmra.mxu0 %v5249_v28 }
  0xff   : > { %v4045_v14 = vpop.f32.mrf.mxu1  ;;  %2967 = vmatmul.mubr.bf16.gmra.mxu1 %v5252_v29  ;;  %2634 = vmatprep.mubr.bf16.mxu0 %v5255_v32 }
 0x100   : > { %v5503_v18 = vadd.f32 %v4044_v57, %v3980_v56  ;;  %v3982_v19 = vpop.f32.mrf.mxu0  ;;  %2974 = vmatprep.mubr.bf16.mxu1 %v5258_v33 }
 0x101   : > { %v3983_v62 = vadd.f32 %v3982_v19, %v3981_v55  ;;  %v4046_v7 = vpop.f32.mrf.mxu1 }
 0x102   : > { %v4047_v59 = vadd.f32 %v4046_v7, %v4045_v14  ;;  %v3984_v13 = vpop.f32.mrf.mxu0 }
 0x103   : > { %v4048_v58 = vpop.f32.mrf.mxu1 }
 0x104   : > { %v5506_v0 = vadd.f32 %v4047_v59, %v3983_v62  ;;  %v3985_v1 = vpop.f32.mrf.mxu0 }
 0x105   : > { %v3986_v40 = vadd.f32 %v3985_v1, %v3984_v13  ;;  %v4049_v28 = vpop.f32.mrf.mxu1 }
 0x106   : > { %v4050_v41 = vadd.f32 %v4049_v28, %v4048_v58  ;;  %v3987_v20 = vpop.f32.mrf.mxu0  ;;  %2635 = vmatmul.mubr.bf16.gmra.mxu0 %v5277_v38  ;;  %v4720_v58 = vld [vmem:[%s5122_s7 + $0x80] ss:$8 sps:$4 sm:$0xff]   ;;  %s3889_s7 = sshll.u32 %s5788_s21, 6 }
 0x107   : > { %v4051_v29 = vpop.f32.mrf.mxu1  ;;  %2975 = vmatmul.mubr.bf16.gmra.mxu1 %v5280_v39  ;;  %2642 = vmatprep.mubr.bf16.mxu0 %v5283_v46  ;;  %s5709_s16 = scalar_lea.vmem %s5782_s6, %s3889_s7 }
 0x108   : > { %v5511_v32 = vadd.f32 %v4050_v41, %v3986_v40  ;;  %v3988_v33 = vpop.f32.mrf.mxu0  ;;  %2982 = vmatprep.mubr.bf16.mxu1 %v5286_v47  ;;  %v4723_v40 = vld [vmem:[%s5133_s14 + $0x80] ss:$8 sps:$4 sm:$0xff]  }
 0x109   : > { %v3989_v4 = vadd.f32 %v3988_v33, %v3987_v20  ;;  %v4052_v2 = vpop.f32.mrf.mxu1 }
 0x10a   : > { %v4053_v8 = vadd.f32 %v4052_v2, %v4051_v29  ;;  %v3990_v9 = vpop.f32.mrf.mxu0 }
 0x10b   : > { %v4054_v12 = vpop.f32.mrf.mxu1 }
 0x10c   : > { %v5514_v15 = vadd.f32 %v4053_v8, %v3989_v4  ;;  %v3991_v16 = vpop.f32.mrf.mxu0 }
 0x10d   : > { %v3992_v17 = vadd.f32 %v3991_v16, %v3990_v9  ;;  %v4055_v38 = vpop.f32.mrf.mxu1 }
 0x10e   : > { %v4056_v22 = vadd.f32 %v4055_v38, %v4054_v12  ;;  %v3993_v23 = vpop.f32.mrf.mxu0  ;;  %2643 = vmatmul.mubr.bf16.gmra.mxu0 %v5305_v3 }
 0x10f   : > { %v4057_v39 = vpop.f32.mrf.mxu1  ;;  %2983 = vmatmul.mubr.bf16.gmra.mxu1 %v5308_v5  ;;  %2650 = vmatprep.mubr.bf16.mxu0 %v5311_v6 }
 0x110   : > { %v5519_v46 = vadd.f32 %v4056_v22, %v3992_v17  ;;  %v3994_v47 = vpop.f32.mrf.mxu0  ;;  %2990 = vmatprep.mubr.bf16.mxu1 %v5317_v11 }
 0x111   : > { %v3995_v24 = vadd.f32 %v3994_v47, %v3993_v23  ;;  %v4058_v25 = vpop.f32.mrf.mxu1 }
 0x112   : > { %v4059_v30 = vadd.f32 %v4058_v25, %v4057_v39  ;;  %v3996_v44 = vpop.f32.mrf.mxu0 }
 0x113   : > { %v4060_v45 = vpop.f32.mrf.mxu1 }
 0x114   : > { %v5522_v43 = vadd.f32 %v4059_v30, %v3995_v24  ;;  %v3997_v42 = vpop.f32.mrf.mxu0 }
 0x115   : > { %v3998_v54 = vadd.f32 %v3997_v42, %v3996_v44  ;;  %v4061_v3 = vpop.f32.mrf.mxu1 }
 0x116   : > { %v4062_v60 = vadd.f32 %v4061_v3, %v4060_v45  ;;  %v3999_v5 = vpop.f32.mrf.mxu0  ;;  %2651 = vmatmul.mubr.bf16.gmra.mxu0 %v5339_v34  ;;  %v4725_v34 = vld [vmem:[%s5133_s14 + $0x84] ss:$8 sps:$4 sm:$0xff]  }
 0x117   : > { %v4063_v6 = vpop.f32.mrf.mxu1  ;;  %2991 = vmatmul.mubr.bf16.gmra.mxu1 %v5342_v35  ;;  %2658 = vmatprep.mubr.bf16.mxu0 %v5345_v36 }
 0x118   : > { %v5527_v11 = vadd.f32 %v4062_v60, %v3998_v54  ;;  %v4000_v63 = vpop.f32.mrf.mxu0  ;;  %2998 = vmatprep.mubr.bf16.mxu1 %v5348_v37 }
 0x119   : > { %v4001_v49 = vadd.f32 %v4000_v63, %v3999_v5  ;;  %v4064_v48 = vpop.f32.mrf.mxu1 }
 0x11a   : > { %v4065_v21 = vadd.f32 %v4064_v48, %v4063_v6  ;;  %v4002_v26 = vpop.f32.mrf.mxu0 }
 0x11b   : > { %v4066_v51 = vpop.f32.mrf.mxu1 }
 0x11c   : > { %v5531_v56 = vadd.f32 %v4065_v21, %v4001_v49  ;;  %v4003_v10 = vpop.f32.mrf.mxu0 }
 0x11d   : > { %v4004_v57 = vadd.f32 %v4003_v10, %v4002_v26  ;;  %v4067_v35 = vpop.f32.mrf.mxu1 }
 0x11e   : > { %v4068_v36 = vadd.f32 %v4067_v35, %v4066_v51  ;;  %v4005_v55 = vpop.f32.mrf.mxu0  ;;  %2659 = vmatmul.mubr.bf16.gmra.mxu0 %v5355_v52 }
 0x11f   : > { %v4069_v14 = vpop.f32.mrf.mxu1  ;;  %2999 = vmatmul.mubr.bf16.gmra.mxu1 %v5358_v53  ;;  %2666 = vmatprep.mubr.bf16.mxu0 %v4722_v50 }
 0x120   : > { %v5536_v37 = vadd.f32 %v4068_v36, %v4004_v57  ;;  %v4006_v19 = vpop.f32.mrf.mxu0  ;;  %3006 = vmatprep.mubr.bf16.mxu1 %v4725_v34 }
 0x121   : > { %v4007_v62 = vadd.f32 %v4006_v19, %v4005_v55  ;;  %v4070_v7 = vpop.f32.mrf.mxu1 }
 0x122   : > { %v4071_v59 = vadd.f32 %v4070_v7, %v4069_v14  ;;  %v4008_v13 = vpop.f32.mrf.mxu0 }
 0x123   : > { %v4072_v1 = vpop.f32.mrf.mxu1 }
 0x124   : > { %v5540_v28 = vadd.f32 %v4071_v59, %v4007_v62  ;;  %v4009_v41 = vpop.f32.mrf.mxu0 }
 0x125   : > { %v4010_v20 = vadd.f32 %v4009_v41, %v4008_v13  ;;  %v4073_v52 = vpop.f32.mrf.mxu1 }
 0x126   : > { %v4074_v29 = vadd.f32 %v4073_v52, %v4072_v1  ;;  %v4011_v33 = vpop.f32.mrf.mxu0  ;;  %2667 = vmatmul.mubr.bf16.gmra.mxu0 %v4720_v58 }
 0x127   : > { %v4075_v53 = vpop.f32.mrf.mxu1  ;;  %3007 = vmatmul.mubr.bf16.gmra.mxu1 %v4723_v40 }
 0x128   : > { %v5542_v4 = vadd.f32 %v4074_v29, %v4010_v20  ;;  %v4012_v2 = vpop.f32.mrf.mxu0 }
 0x129   : > { %v4013_v8 = vadd.f32 %v4012_v2, %v4011_v33  ;;  %v4076_v9 = vpop.f32.mrf.mxu1 }
 0x12a   : > { %v4077_v12 = vadd.f32 %v4076_v9, %v4075_v53  ;;  %v4014_v16 = vpop.f32.mrf.mxu0 }
 0x12b   : > { %v4078_v17 = vpop.f32.mrf.mxu1 }
 0x12c   : > { %v5544_v38 = vadd.f32 %v4077_v12, %v4013_v8  ;;  %v4015_v22 = vpop.f32.mrf.mxu0 }
 0x12d   : > { %v4016_v23 = vadd.f32 %v4015_v22, %v4014_v16  ;;  %v4079_v39 = vpop.f32.mrf.mxu1 }
 0x12e   : > { %v4080_v47 = vadd.f32 %v4079_v39, %v4078_v17  ;;  %v4097_v24 = vpop.f32.mrf.mxu0 }
 0x12f   : > { %v4161_v25 = vpop.f32.mrf.mxu1 }
 0x130   : > { %v5546_v30 = vadd.f32 %v4080_v47, %v4016_v23  ;;  %v4098_v44 = vpop.f32.mrf.mxu0 }
 0x131   : > { %v4099_v45 = vadd.f32 %v4098_v44, %v4097_v24  ;;  %v4162_v42 = vpop.f32.mrf.mxu1 }
 0x132   : > { %v4163_v54 = vadd.f32 %v4162_v42, %v4161_v25  ;;  %v4100_v3 = vpop.f32.mrf.mxu0 }
 0x133   : > { %v1311_v60 = vadd.f32 %v4099_v45, %v5490_v31  ;;  %v4164_v5 = vpop.f32.mrf.mxu1 }
 0x134   : > { %v4101_v6 = vpop.f32.mrf.mxu0 }
 0x135   : > { %v5549_v63 = vadd.f32 %v4163_v54, %v1311_v60  ;;  %v4102_v49 = vadd.f32 %v4101_v6, %v4100_v3  ;;  %v4165_v48 = vpop.f32.mrf.mxu1 }
 0x136   : > { %v4166_v21 = vadd.f32 %v4165_v48, %v4164_v5  ;;  %v4103_v26 = vpop.f32.mrf.mxu0 }
 0x137   : > { %v1312_v51 = vadd.f32 %v4102_v49, %v5495_v61  ;;  %v4167_v50 = vpop.f32.mrf.mxu1 }
 0x138   : > { %v4104_v10 = vpop.f32.mrf.mxu0 }
 0x139   : > { %v5552_v34 = vadd.f32 %v4166_v21, %v1312_v51  ;;  %v4105_v57 = vadd.f32 %v4104_v10, %v4103_v26  ;;  %v4168_v35 = vpop.f32.mrf.mxu1 }
 0x13a   : > { %v4169_v36 = vadd.f32 %v4168_v35, %v4167_v50  ;;  %v4106_v55 = vpop.f32.mrf.mxu0 }
 0x13b   : > { %v1313_v31 = vadd.f32 %v4105_v57, %v5498_v27  ;;  %v4170_v14 = vpop.f32.mrf.mxu1 }
 0x13c   : > { %v4107_v19 = vpop.f32.mrf.mxu0 }
 0x13d   : > { %v5555_v62 = vadd.f32 %v4169_v36, %v1313_v31  ;;  %v4108_v7 = vadd.f32 %v4107_v19, %v4106_v55  ;;  %v4171_v59 = vpop.f32.mrf.mxu1 }
 0x13e   : > { %v4172_v13 = vadd.f32 %v4171_v59, %v4170_v14  ;;  %v4109_v58 = vpop.f32.mrf.mxu0 }
 0x13f   : > { %v1314_v61 = vadd.f32 %v4108_v7, %v5503_v18  ;;  %v4173_v1 = vpop.f32.mrf.mxu1 }
 0x140   : > { %v4110_v40 = vpop.f32.mrf.mxu0 }
 0x141   : > { %v5558_v41 = vadd.f32 %v4172_v13, %v1314_v61  ;;  %v4111_v20 = vadd.f32 %v4110_v40, %v4109_v58  ;;  %v4174_v52 = vpop.f32.mrf.mxu1 }
 0x142   : > { %v4175_v29 = vadd.f32 %v4174_v52, %v4173_v1  ;;  %v4112_v33 = vpop.f32.mrf.mxu0 }
 0x143   : > { %v1315_v27 = vadd.f32 %v4111_v20, %v5506_v0  ;;  %v4176_v53 = vpop.f32.mrf.mxu1 }
 0x144   : > { %v4113_v2 = vpop.f32.mrf.mxu0 }
 0x145   : > { %v5561_v8 = vadd.f32 %v4175_v29, %v1315_v27  ;;  %v4114_v9 = vadd.f32 %v4113_v2, %v4112_v33  ;;  %v4177_v12 = vpop.f32.mrf.mxu1 }
 0x146   : > { %v4178_v16 = vadd.f32 %v4177_v12, %v4176_v53  ;;  %v4115_v17 = vpop.f32.mrf.mxu0 }
 0x147   : > { %v1316_v18 = vadd.f32 %v4114_v9, %v5511_v32  ;;  %v4179_v22 = vpop.f32.mrf.mxu1 }
 0x148   : > { %v4116_v23 = vpop.f32.mrf.mxu0 }
 0x149   : > { %v5564_v39 = vadd.f32 %v4178_v16, %v1316_v18  ;;  %v4117_v47 = vadd.f32 %v4116_v23, %v4115_v17  ;;  %v4180_v24 = vpop.f32.mrf.mxu1 }
 0x14a   : > { %v4181_v25 = vadd.f32 %v4180_v24, %v4179_v22  ;;  %v4118_v44 = vpop.f32.mrf.mxu0 }
 0x14b   : > { %v1317_v0 = vadd.f32 %v4117_v47, %v5514_v15  ;;  %v4182_v45 = vpop.f32.mrf.mxu1 }
 0x14c   : > { %v4119_v42 = vpop.f32.mrf.mxu0 }
 0x14d   : > { %v5567_v54 = vadd.f32 %v4181_v25, %v1317_v0  ;;  %v4120_v3 = vadd.f32 %v4119_v42, %v4118_v44  ;;  %v4183_v60 = vpop.f32.mrf.mxu1 }
 0x14e   : > { %v4184_v5 = vadd.f32 %v4183_v60, %v4182_v45  ;;  %v4121_v6 = vpop.f32.mrf.mxu0 }
 0x14f   : > { %v1318_v32 = vadd.f32 %v4120_v3, %v5519_v46  ;;  %v4185_v49 = vpop.f32.mrf.mxu1 }
 0x150   : > { %v4122_v48 = vpop.f32.mrf.mxu0 }
 0x151   : > { %v5570_v21 = vadd.f32 %v4184_v5, %v1318_v32  ;;  %v4123_v26 = vadd.f32 %v4122_v48, %v4121_v6  ;;  %v4186_v51 = vpop.f32.mrf.mxu1 }
 0x152   : > { %v4187_v50 = vadd.f32 %v4186_v51, %v4185_v49  ;;  %v4124_v10 = vpop.f32.mrf.mxu0 }
 0x153   : > { %v1319_v15 = vadd.f32 %v4123_v26, %v5522_v43  ;;  %v4188_v57 = vpop.f32.mrf.mxu1 }
 0x154   : > { %v4125_v35 = vpop.f32.mrf.mxu0 }
 0x155   : > { %v5573_v36 = vadd.f32 %v4187_v50, %v1319_v15  ;;  %v4126_v55 = vadd.f32 %v4125_v35, %v4124_v10  ;;  %v4189_v31 = vpop.f32.mrf.mxu1 }
 0x156   : > { %v4190_v14 = vadd.f32 %v4189_v31, %v4188_v57  ;;  %v4127_v19 = vpop.f32.mrf.mxu0 }
 0x157   : > { %v1320_v46 = vadd.f32 %v4126_v55, %v5527_v11  ;;  %v4191_v7 = vpop.f32.mrf.mxu1 }
 0x158   : > { %v4128_v59 = vpop.f32.mrf.mxu0 }
 0x159   : > { %v5576_v13 = vadd.f32 %v4190_v14, %v1320_v46  ;;  %v4129_v58 = vadd.f32 %v4128_v59, %v4127_v19  ;;  %v4192_v61 = vpop.f32.mrf.mxu1 }
 0x15a   : > { %v4193_v1 = vadd.f32 %v4192_v61, %v4191_v7  ;;  %v4130_v40 = vpop.f32.mrf.mxu0 }
 0x15b   : > { %v1321_v43 = vadd.f32 %v4129_v58, %v5531_v56  ;;  %v4194_v20 = vpop.f32.mrf.mxu1 }
 0x15c   : > { %v4131_v52 = vpop.f32.mrf.mxu0 }
 0x15d   : > { %v5579_v29 = vadd.f32 %v4193_v1, %v1321_v43  ;;  %v4132_v33 = vadd.f32 %v4131_v52, %v4130_v40  ;;  %v4195_v27 = vpop.f32.mrf.mxu1 }
 0x15e   : > { %v4196_v53 = vadd.f32 %v4195_v27, %v4194_v20  ;;  %v4133_v2 = vpop.f32.mrf.mxu0 }
 0x15f   : > { %v1322_v11 = vadd.f32 %v4132_v33, %v5536_v37  ;;  %v4197_v9 = vpop.f32.mrf.mxu1 }
 0x160   : > { %v4134_v12 = vpop.f32.mrf.mxu0 }
 0x161   : > { %v5582_v16 = vadd.f32 %v4196_v53, %v1322_v11  ;;  %v4135_v17 = vadd.f32 %v4134_v12, %v4133_v2  ;;  %v4198_v18 = vpop.f32.mrf.mxu1 }
 0x162   : > { %v4199_v22 = vadd.f32 %v4198_v18, %v4197_v9  ;;  %v4136_v23 = vpop.f32.mrf.mxu0 }
 0x163   : > { %v1323_v56 = vadd.f32 %v4135_v17, %v5540_v28  ;;  %v4200_v47 = vpop.f32.mrf.mxu1 }
 0x164   : > { %v4137_v24 = vpop.f32.mrf.mxu0 }
 0x165   : > { %v5585_v25 = vadd.f32 %v4199_v22, %v1323_v56  ;;  %v4138_v44 = vadd.f32 %v4137_v24, %v4136_v23  ;;  %v4201_v0 = vpop.f32.mrf.mxu1 }
 0x166   : > { %v4202_v45 = vadd.f32 %v4201_v0, %v4200_v47  ;;  %v4139_v42 = vpop.f32.mrf.mxu0 }
 0x167   : > { %v1324_v37 = vadd.f32 %v4138_v44, %v5542_v4  ;;  %v4203_v3 = vpop.f32.mrf.mxu1 }
 0x168   : > { %v4140_v60 = vpop.f32.mrf.mxu0 }
 0x169   : > { %v5588_v5 = vadd.f32 %v4202_v45, %v1324_v37  ;;  %v4141_v6 = vadd.f32 %v4140_v60, %v4139_v42  ;;  %v4204_v32 = vpop.f32.mrf.mxu1 }
 0x16a   : > { %v4205_v49 = vadd.f32 %v4204_v32, %v4203_v3  ;;  %v4142_v48 = vpop.f32.mrf.mxu0 }
 0x16b   : > { %v1325_v28 = vadd.f32 %v4141_v6, %v5544_v38  ;;  %v4206_v26 = vpop.f32.mrf.mxu1 }
 0x16c   : > { %v4143_v51 = vpop.f32.mrf.mxu0 }
 0x16d   : > { %v5591_v50 = vadd.f32 %v4205_v49, %v1325_v28  ;;  %v4144_v10 = vadd.f32 %v4143_v51, %v4142_v48  ;;  %v4207_v15 = vpop.f32.mrf.mxu1 }
 0x16e   : > { %v4208_v57 = vadd.f32 %v4207_v15, %v4206_v26  ;;  %v4225_v35 = vpop.f32.mrf.mxu0 }
 0x16f   : > { %v1326_v4 = vadd.f32 %v4144_v10, %v5546_v30  ;;  %v4289_v55 = vpop.f32.mrf.mxu1 }
 0x170   : > { %v4226_v31 = vpop.f32.mrf.mxu0 }
 0x171   : > { %v5594_v14 = vadd.f32 %v4208_v57, %v1326_v4  ;;  %v4227_v19 = vadd.f32 %v4226_v31, %v4225_v35  ;;  %v4290_v46 = vpop.f32.mrf.mxu1 }
 0x172   : > { %v4291_v7 = vadd.f32 %v4290_v46, %v4289_v55  ;;  %v5596_v59 = vpop.f32.mrf.mxu0 }
 0x173   : > { %v1995_v38 = vadd.f32 %v4227_v19, %v5549_v63  ;;  %v5599_v58 = vpop.f32.mrf.mxu1 }
 0x174   : > { %v5601_v61 = vpop.f32.mrf.mxu0 }
 0x175   : > { %v5603_v1 = vadd.f32 %v4291_v7, %v1995_v38  ;;  %v5605_v40 = vpop.f32.mrf.mxu1 }
 0x176   : > { %v4231_v30 = vpop.f32.mrf.mxu0 }
 0x177   : > { %v4295_v43 = vpop.f32.mrf.mxu1 }
 0x178   : > { %v4232_v20 = vpop.f32.mrf.mxu0 }
 0x179   : > { %v4233_v52 = vadd.f32 %v4232_v20, %v4231_v30  ;;  %v4296_v33 = vpop.f32.mrf.mxu1 }
 0x17a   : > { %v4297_v27 = vadd.f32 %v4296_v33, %v4295_v43  ;;  %v5607_v53 = vpop.f32.mrf.mxu0 }
 0x17b   : > { %v1997_v2 = vadd.f32 %v4233_v52, %v5555_v62  ;;  %v5610_v11 = vpop.f32.mrf.mxu1 }
 0x17c   : > { %v5612_v63 = vpop.f32.mrf.mxu0 }
 0x17d   : > { %v5614_v9 = vadd.f32 %v4297_v27, %v1997_v2  ;;  %v5616_v12 = vpop.f32.mrf.mxu1 }
 0x17e   : > { %v4237_v17 = vpop.f32.mrf.mxu0 }
 0x17f   : > { %v4301_v18 = vpop.f32.mrf.mxu1 }
 0x180   : > { %v4238_v22 = vpop.f32.mrf.mxu0 }
 0x181   : > { %v4239_v23 = vadd.f32 %v4238_v22, %v4237_v17  ;;  %v4302_v56 = vpop.f32.mrf.mxu1 }
 0x182   : > { %v4303_v47 = vadd.f32 %v4302_v56, %v4301_v18  ;;  %v5618_v24 = vpop.f32.mrf.mxu0 }
 0x183   : > { %v1999_v44 = vadd.f32 %v4239_v23, %v5561_v8  ;;  %v5621_v0 = vpop.f32.mrf.mxu1 }
 0x184   : > { %v5623_v62 = vpop.f32.mrf.mxu0 }
 0x185   : > { %v5625_v45 = vadd.f32 %v4303_v47, %v1999_v44  ;;  %v5627_v42 = vpop.f32.mrf.mxu1 }
 0x186   : > { %v4243_v37 = vpop.f32.mrf.mxu0 }
 0x187   : > { %v4307_v3 = vpop.f32.mrf.mxu1 }
 0x188   : > { %v4244_v60 = vpop.f32.mrf.mxu0 }
 0x189   : > { %v4245_v6 = vadd.f32 %v4244_v60, %v4243_v37  ;;  %v4308_v32 = vpop.f32.mrf.mxu1 }
 0x18a   : > { %v4309_v49 = vadd.f32 %v4308_v32, %v4307_v3  ;;  %v5629_v48 = vpop.f32.mrf.mxu0 }
 0x18b   : > { %v2001_v28 = vadd.f32 %v4245_v6, %v5567_v54  ;;  %v5632_v26 = vpop.f32.mrf.mxu1 }
 0x18c   : > { %v5634_v8 = vpop.f32.mrf.mxu0 }
 0x18d   : > { %v5636_v51 = vadd.f32 %v4309_v49, %v2001_v28  ;;  %v5638_v10 = vpop.f32.mrf.mxu1 }
 0x18e   : > { %v4249_v15 = vpop.f32.mrf.mxu0 }
 0x18f   : > { %v4313_v57 = vpop.f32.mrf.mxu1 }
 0x190   : > { %v4250_v35 = vpop.f32.mrf.mxu0 }
 0x191   : > { %v4251_v4 = vadd.f32 %v4250_v35, %v4249_v15  ;;  %v4314_v55 = vpop.f32.mrf.mxu1 }
 0x192   : > { %v4315_v31 = vadd.f32 %v4314_v55, %v4313_v57  ;;  %v5640_v19 = vpop.f32.mrf.mxu0 }
 0x193   : > { %v2003_v46 = vadd.f32 %v4251_v4, %v5573_v36  ;;  %v5643_v7 = vpop.f32.mrf.mxu1 }
 0x194   : > { %v5645_v54 = vpop.f32.mrf.mxu0 }
 0x195   : > { %v5647_v38 = vadd.f32 %v4315_v31, %v2003_v46  ;;  %v5649_v30 = vpop.f32.mrf.mxu1 }
 0x196   : > { %v4255_v43 = vpop.f32.mrf.mxu0 }
 0x197   : > { %v4319_v20 = vpop.f32.mrf.mxu1 }
 0x198   : > { %v4256_v52 = vpop.f32.mrf.mxu0 }
 0x199   : > { %v4257_v33 = vadd.f32 %v4256_v52, %v4255_v43  ;;  %v4320_v27 = vpop.f32.mrf.mxu1 }
 0x19a   : > { %v4321_v2 = vadd.f32 %v4320_v27, %v4319_v20  ;;  %v5651_v17 = vpop.f32.mrf.mxu0  ;;  %v4230_v27 = vadd.f32 %v5601_v61, %v5596_v59  ;;  %v4236_v59 = vadd.f32 %v5612_v63, %v5607_v53  ;;  %v5695_v61 = vld [vmem:[%s5781_s5] ss:$0 sm:$0xff] }
 0x19b   : > { %v2005_v18 = vadd.f32 %v4257_v33, %v5579_v29  ;;  %v5654_v22 = vpop.f32.mrf.mxu1 }
 0x19c   : > { %v5656_v36 = vpop.f32.mrf.mxu0 }
 0x19d   : > { %v5658_v23 = vadd.f32 %v4321_v2, %v2005_v18  ;;  %v5660_v56 = vpop.f32.mrf.mxu1 }
 0x19e   : > { %v4261_v47 = vpop.f32.mrf.mxu0 }
 0x19f   : > { %v4325_v44 = vpop.f32.mrf.mxu1 }
 0x1a0   : > { %v4262_v37 = vpop.f32.mrf.mxu0 }
 0x1a1   : > { %v4263_v3 = vadd.f32 %v4262_v37, %v4261_v47  ;;  %v4326_v60 = vpop.f32.mrf.mxu1 }
 0x1a2   : > { %v4327_v6 = vadd.f32 %v4326_v60, %v4325_v44  ;;  %v5662_v32 = vpop.f32.mrf.mxu0 }
 0x1a3   : > { %v2007_v49 = vadd.f32 %v4263_v3, %v5585_v25  ;;  %v5665_v28 = vpop.f32.mrf.mxu1  ;;  %v1996_v3 = vadd.f32 %v4230_v27, %v5552_v34 }
 0x1a4   : > { %v5667_v29 = vpop.f32.mrf.mxu0 }
 0x1a5   : > { %v5669_v15 = vadd.f32 %v4327_v6, %v2007_v49  ;;  %v5671_v57 = vpop.f32.mrf.mxu1 }
 0x1a6   : > { %v4267_v35 = vpop.f32.mrf.mxu0 }
 0x1a7   : > { %v4331_v4 = vpop.f32.mrf.mxu1 }
 0x1a8   : > { %v4268_v55 = vpop.f32.mrf.mxu0 }
 0x1a9   : > { %v4269_v31 = vadd.f32 %v4268_v55, %v4267_v35  ;;  %v4332_v46 = vpop.f32.mrf.mxu1 }
 0x1aa   : > { %v4333_v43 = vadd.f32 %v4332_v46, %v4331_v4  ;;  %v5673_v20 = vpop.f32.mrf.mxu0 }
 0x1ab   : > { %v2009_v52 = vadd.f32 %v4269_v31, %v5591_v50  ;;  %v5676_v33 = vpop.f32.mrf.mxu1  ;;  %v4294_v50 = vadd.f32 %v5605_v40, %v5599_v58 }
 0x1ac   : > { %v5678_v25 = vpop.f32.mrf.mxu0 }
 0x1ad   : > { %v5682_v2 = vadd.f32 %v4333_v43, %v2009_v52  ;;  %v5684_v18 = vpop.f32.mrf.mxu1  ;;  %v2336_v34 = vadd.f32 %v4294_v50, %v1996_v3 }
 0x1ae   : > { %v4353_v47 = vpop.f32.mrf.mxu0 }
 0x1af   : > { %v4417_v44 = vpop.f32.mrf.mxu1 }
 0x1b0   : > { %v4354_v37 = vpop.f32.mrf.mxu0 }
 0x1b1   : > { %v4355_v60 = vadd.f32 %v4354_v37, %v4353_v47  ;;  %v4418_v6 = vpop.f32.mrf.mxu1 }
 0x1b2   : > { %v4356_v49 = vpop.f32.mrf.mxu0  ;;  %v4419_v4 = vadd.f32 %v4418_v6, %v4417_v44  ;;  %v1998_v44 = vadd.f32 %v4236_v59, %v5558_v41  ;;  %v4300_v6 = vadd.f32 %v5616_v12, %v5610_v11  ;;  %v4242_v41 = vadd.f32 %v5623_v62, %v5618_v24 }
 0x1b3   : > { %v2675_v35 = vadd.f32 %v4355_v60, %v5603_v1  ;;  %v4420_v55 = vpop.f32.mrf.mxu1 }
 0x1b4   : > { %v4357_v31 = vpop.f32.mrf.mxu0 }
 0x1b5   : > { %v3015_v46 = vadd.f32 %v4419_v4, %v2675_v35  ;;  %v4358_v43 = vadd.f32 %v4357_v31, %v4356_v49  ;;  %v4421_v52 = vpop.f32.mrf.mxu1  ;;  %v2338_v31 = vadd.f32 %v4300_v6, %v1998_v44 }
 0x1b6   : > { %v4359_v27 = vpop.f32.mrf.mxu0  ;;  %v4422_v1 = vadd.f32 %v4421_v52, %v4420_v55 }
 0x1b7   : > { %v3038_v58 = vadd.f32 %v5695_v61, %v3015_v46  ;;  %v2676_v40 = vadd.f32 %v4358_v43, %v2336_v34  ;;  %v4423_v47 = vpop.f32.mrf.mxu1 }
 0x1b8   : > { %v4360_v53 = vpop.f32.mrf.mxu0 }
 0x1b9   : > { %v3016_v63 = vadd.f32 %v4422_v1, %v2676_v40  ;;  %v4361_v37 = vadd.f32 %v4360_v53, %v4359_v27  ;;  %v4424_v60 = vpop.f32.mrf.mxu1  ;;  %v3070_v3 = vmul.f32 0.2, %v3038_v58  ;;  %vm3054_vm0 = vcmp.gt.f32.partialorder %v3038_v58, 0.0 }
 0x1ba   : > { %v4362_v50 = vpop.f32.mrf.mxu0  ;;  %v4425_v4 = vadd.f32 %v4424_v60, %v4423_v47  ;;  %v2000_v1 = vadd.f32 %v4242_v41, %v5564_v39  ;;  %v4248_v39 = vadd.f32 %v5634_v8, %v5629_v48 }
 0x1bb   : > { %v3039_v49 = vadd.f32 %v5695_v61, %v3016_v63  ;;  %v2677_v35 = vadd.f32 %v4361_v37, %v5614_v9  ;;  %v4426_v55 = vpop.f32.mrf.mxu1  ;;  %v3086_v12 = vsel %vm3054_vm0, %v3038_v58, %v3070_v3  ;;  %v4306_v37 = vadd.f32 %v5627_v42, %v5621_v0 }
 0x1bc   : > { %v4363_v59 = vpop.f32.mrf.mxu0 }
 0x1bd   : > { %vm3055_vm1 = vcmp.gt.f32.partialorder %v3039_v49, 0.0  ;;  %v3071_v34 = vmul.f32 0.2, %v3039_v49  ;;  %v3017_v46 = vadd.f32 %v4425_v4, %v2677_v35  ;;  %v4364_v43 = vadd.f32 %v4363_v59, %v4362_v50  ;;  %v4427_v11 = vpop.f32.mrf.mxu1 }
 0x1be   : > { %v4365_v52 = vpop.f32.mrf.mxu0  ;;  %v4428_v24 = vadd.f32 %v4427_v11, %v4426_v55  ;;  %v2340_v4 = vadd.f32 %v4306_v37, %v2000_v1 }
 0x1bf   : > { %v3087_v9 = vsel %vm3055_vm1, %v3039_v49, %v3071_v34  ;;  %v3040_v27 = vadd.f32 %v5695_v61, %v3017_v46  ;;  %v2678_v40 = vadd.f32 %v4364_v43, %v2338_v31  ;;  %v4429_v62 = vpop.f32.mrf.mxu1 }
 0x1c0   : > { %v3909_v47 = vpack.c.bf16 %v3087_v9, %v3086_v12  ;;  %v4366_v44 = vpop.f32.mrf.mxu0 }
 0x1c1   : > { %v3018_v53 = vadd.f32 %v4428_v24, %v2678_v40  ;;  %v4367_v63 = vadd.f32 %v4366_v44, %v4365_v52  ;;  %v4430_v58 = vpop.f32.mrf.mxu1  ;;  %v3072_v60 = vmul.f32 0.2, %v3040_v27  ;;  %vm3056_vm2 = vcmp.gt.f32.partialorder %v3040_v27, 0.0 }
 0x1c2   : > { %3910 = vst [vmem:[%s5709_s16] sm:$0xff] %v3909_v47   ;;  %v4368_v6 = vpop.f32.mrf.mxu0  ;;  %v4431_v49 = vadd.f32 %v4430_v58, %v4429_v62  ;;  %v2002_v52 = vadd.f32 %v4248_v39, %v5570_v21  ;;  %v4312_v62 = vadd.f32 %v5638_v10, %v5632_v26  ;;  %v4254_v21 = vadd.f32 %v5645_v54, %v5640_v19 }
 0x1c3   : > { %v3041_v3 = vadd.f32 %v5695_v61, %v3018_v53  ;;  %v2679_v50 = vadd.f32 %v4367_v63, %v5625_v45  ;;  %v4432_v35 = vpop.f32.mrf.mxu1  ;;  %v3088_v42 = vsel %vm3056_vm2, %v3040_v27, %v3072_v60 }
 0x1c4   : > { %v4369_v55 = vpop.f32.mrf.mxu0  ;;  %v2342_v58 = vadd.f32 %v4312_v62, %v2002_v52 }
 0x1c5   : > { %vm3057_vm3 = vcmp.gt.f32.partialorder %v3041_v3, 0.0  ;;  %v3073_v31 = vmul.f32 0.2, %v3041_v3  ;;  %v3019_v41 = vadd.f32 %v4431_v49, %v2679_v50  ;;  %v4370_v59 = vadd.f32 %v4369_v55, %v4368_v6  ;;  %v4433_v0 = vpop.f32.mrf.mxu1 }
 0x1c6   : > { %v4371_v34 = vpop.f32.mrf.mxu0  ;;  %v4434_v45 = vadd.f32 %v4433_v0, %v4432_v35  ;;  %v2004_v55 = vadd.f32 %v4254_v21, %v5576_v13  ;;  %v4318_v0 = vadd.f32 %v5649_v30, %v5643_v7  ;;  %v4260_v13 = vadd.f32 %v5656_v36, %v5651_v17 }
 0x1c7   : > { %v3089_v46 = vsel %vm3057_vm3, %v3041_v3, %v3073_v31  ;;  %v3042_v43 = vadd.f32 %v5695_v61, %v3019_v41  ;;  %v2680_v11 = vadd.f32 %v4370_v59, %v2340_v4  ;;  %v4435_v12 = vpop.f32.mrf.mxu1 }
 0x1c8   : > { %v3914_v9 = vpack.c.bf16 %v3089_v46, %v3088_v42  ;;  %v4372_v40 = vpop.f32.mrf.mxu0 }
 0x1c9   : > { %v3020_v48 = vadd.f32 %v4434_v45, %v2680_v11  ;;  %v4373_v8 = vadd.f32 %v4372_v40, %v4371_v34  ;;  %v4436_v24 = vpop.f32.mrf.mxu1  ;;  %v3074_v1 = vmul.f32 0.2, %v3042_v43  ;;  %vm3058_vm4 = vcmp.gt.f32.partialorder %v3042_v43, 0.0 }
 0x1ca   : > { %3946 = vst [vmem:[%s5709_s16 + $0x8] sm:$0xff] %v3914_v9   ;;  %v4374_v27 = vpop.f32.mrf.mxu0  ;;  %v4437_v53 = vadd.f32 %v4436_v24, %v4435_v12  ;;  %v2344_v12 = vadd.f32 %v4318_v0, %v2004_v55 }
 0x1cb   : > { %v3043_v47 = vadd.f32 %v5695_v61, %v3020_v48  ;;  %v2681_v44 = vadd.f32 %v4373_v8, %v5636_v51  ;;  %v4438_v63 = vpop.f32.mrf.mxu1  ;;  %v3090_v10 = vsel %vm3058_vm4, %v3042_v43, %v3074_v1 }
 0x1cc   : > { %v4375_v37 = vpop.f32.mrf.mxu0 }
 0x1cd   : > { %vm3059_vm5 = vcmp.gt.f32.partialorder %v3043_v47, 0.0  ;;  %v3075_v60 = vmul.f32 0.2, %v3043_v47  ;;  %v3021_v6 = vadd.f32 %v4437_v53, %v2681_v44  ;;  %v4376_v3 = vadd.f32 %v4375_v37, %v4374_v27  ;;  %v4439_v26 = vpop.f32.mrf.mxu1 }
 0x1ce   : > { %v4377_v50 = vpop.f32.mrf.mxu0  ;;  %v4440_v51 = vadd.f32 %v4439_v26, %v4438_v63 }
 0x1cf   : > { %v3091_v49 = vsel %vm3059_vm5, %v3043_v47, %v3075_v60  ;;  %v3044_v35 = vadd.f32 %v5695_v61, %v3021_v6  ;;  %v2682_v4 = vadd.f32 %v4376_v3, %v2342_v58  ;;  %v4441_v39 = vpop.f32.mrf.mxu1  ;;  %v2006_v47 = vadd.f32 %v4260_v13, %v5582_v16 }
 0x1d0   : > { %v3919_v31 = vpack.c.bf16 %v3091_v49, %v3090_v10  ;;  %v4378_v41 = vpop.f32.mrf.mxu0  ;;  %v4324_v58 = vadd.f32 %v5660_v56, %v5654_v22  ;;  %v4266_v16 = vadd.f32 %v5667_v29, %v5662_v32 }
 0x1d1   : > { %v3022_v19 = vadd.f32 %v4440_v51, %v2682_v4  ;;  %v4379_v54 = vadd.f32 %v4378_v41, %v4377_v50  ;;  %v4442_v59 = vpop.f32.mrf.mxu1  ;;  %v3076_v42 = vmul.f32 0.2, %v3044_v35  ;;  %vm3060_vm6 = vcmp.gt.f32.partialorder %v3044_v35, 0.0 }
 0x1d2   : > { %3947 = vst [vmem:[%s5709_s16 + $0x10] sm:$0xff] %v3919_v31   ;;  %v4380_v34 = vpop.f32.mrf.mxu0  ;;  %v4443_v11 = vadd.f32 %v4442_v59, %v4441_v39  ;;  %v2346_v10 = vadd.f32 %v4324_v58, %v2006_v47 }
 0x1d3   : > { %v3045_v46 = vadd.f32 %v5695_v61, %v3022_v19  ;;  %v2683_v43 = vadd.f32 %v4379_v54, %v5647_v38  ;;  %v4444_v45 = vpop.f32.mrf.mxu1  ;;  %v3092_v30 = vsel %vm3060_vm6, %v3044_v35, %v3076_v42  ;;  %v2008_v19 = vadd.f32 %v4266_v16, %v5588_v5 }
 0x1d4   : > { %v4381_v52 = vpop.f32.mrf.mxu0  ;;  %v4330_v42 = vadd.f32 %v5671_v57, %v5665_v28  ;;  %v4272_v5 = vadd.f32 %v5678_v25, %v5673_v20 }
 0x1d5   : > { %vm3061_vm7 = vcmp.gt.f32.partialorder %v3045_v46, 0.0  ;;  %v3077_v9 = vmul.f32 0.2, %v3045_v46  ;;  %v3023_v40 = vadd.f32 %v4443_v11, %v2683_v43  ;;  %v4382_v48 = vadd.f32 %v4381_v52, %v4380_v34  ;;  %v4445_v7 = vpop.f32.mrf.mxu1 }
 0x1d6   : > { %v4383_v8 = vpop.f32.mrf.mxu0  ;;  %v4446_v38 = vadd.f32 %v4445_v7, %v4444_v45  ;;  %v2348_v13 = vadd.f32 %v4330_v42, %v2008_v19 }
 0x1d7   : > { %v3093_v24 = vsel %vm3061_vm7, %v3045_v46, %v3077_v9  ;;  %v3046_v62 = vadd.f32 %v5695_v61, %v3023_v40  ;;  %v2684_v1 = vadd.f32 %v4382_v48, %v2344_v12  ;;  %v4447_v27 = vpop.f32.mrf.mxu1 }
 0x1d8   : > { %v3924_v44 = vpack.c.bf16 %v3093_v24, %v3092_v30  ;;  %v4384_v53 = vpop.f32.mrf.mxu0 }
 0x1d9   : > { %v3024_v17 = vadd.f32 %v4446_v38, %v2684_v1  ;;  %v4385_v36 = vadd.f32 %v4384_v53, %v4383_v8  ;;  %v4448_v63 = vpop.f32.mrf.mxu1  ;;  %v3078_v21 = vmul.f32 0.2, %v3046_v62  ;;  %vm3062_vm8 = vcmp.gt.f32.partialorder %v3046_v62, 0.0 }
 0x1da   : > { %3948 = vst [vmem:[%s5709_s16 + $0x18] sm:$0xff] %v3924_v44   ;;  %v4386_v37 = vpop.f32.mrf.mxu0  ;;  %v4449_v3 = vadd.f32 %v4448_v63, %v4447_v27  ;;  %v2010_v1 = vadd.f32 %v4272_v5, %v5594_v14  ;;  %v4336_v44 = vadd.f32 %v5684_v18, %v5676_v33 }
 0x1db   : > { %v3047_v60 = vadd.f32 %v5695_v61, %v3024_v17  ;;  %v2685_v6 = vadd.f32 %v4385_v36, %v5658_v23  ;;  %v4450_v26 = vpop.f32.mrf.mxu1  ;;  %v3094_v56 = vsel %vm3062_vm8, %v3046_v62, %v3078_v21 }
 0x1dc   : > { %v4387_v50 = vpop.f32.mrf.mxu0  ;;  %v2350_v14 = vadd.f32 %v4336_v44, %v2010_v1 }
 0x1dd   : > { %vm3063_vm9 = vcmp.gt.f32.partialorder %v3047_v60, 0.0  ;;  %v3079_v49 = vmul.f32 0.2, %v3047_v60  ;;  %v3025_v35 = vadd.f32 %v4449_v3, %v2685_v6  ;;  %v4388_v4 = vadd.f32 %v4387_v50, %v4386_v37  ;;  %v4451_v22 = vpop.f32.mrf.mxu1 }
 0x1de   : > { %v4389_v51 = vpop.f32.mrf.mxu0  ;;  %v4452_v23 = vadd.f32 %v4451_v22, %v4450_v26 }
 0x1df   : > { %v3095_v39 = vsel %vm3063_vm9, %v3047_v60, %v3079_v49  ;;  %v3048_v55 = vadd.f32 %v5695_v61, %v3025_v35  ;;  %v2686_v31 = vadd.f32 %v4388_v4, %v2346_v10  ;;  %v4453_v41 = vpop.f32.mrf.mxu1 }
 0x1e0   : > { %v3929_v54 = vpack.c.bf16 %v3095_v39, %v3094_v56  ;;  %v4390_v59 = vpop.f32.mrf.mxu0 }
 0x1e1   : > { %v3026_v32 = vadd.f32 %v4452_v23, %v2686_v31  ;;  %v4391_v29 = vadd.f32 %v4390_v59, %v4389_v51  ;;  %v4454_v0 = vpop.f32.mrf.mxu1  ;;  %v3080_v34 = vmul.f32 0.2, %v3048_v55  ;;  %vm3064_vm10 = vcmp.gt.f32.partialorder %v3048_v55, 0.0 }
 0x1e2   : > { %3949 = vst [vmem:[%s5709_s16 + $0x20] sm:$0xff] %v3929_v54   ;;  %v4392_v46 = vpop.f32.mrf.mxu0  ;;  %v4455_v45 = vadd.f32 %v4454_v0, %v4453_v41 }
 0x1e3   : > { %v3049_v43 = vadd.f32 %v5695_v61, %v3026_v32  ;;  %v2687_v11 = vadd.f32 %v4391_v29, %v5669_v15  ;;  %v4456_v12 = vpop.f32.mrf.mxu1  ;;  %v3096_v57 = vsel %vm3064_vm10, %v3048_v55, %v3080_v34 }
 0x1e4   : > { %v4393_v52 = vpop.f32.mrf.mxu0 }
 0x1e5   : > { %vm3065_vm11 = vcmp.gt.f32.partialorder %v3049_v43, 0.0  ;;  %v3081_v9 = vmul.f32 0.2, %v3049_v43  ;;  %v3027_v40 = vadd.f32 %v4455_v45, %v2687_v11  ;;  %v4394_v48 = vadd.f32 %v4393_v52, %v4392_v46  ;;  %v4457_v28 = vpop.f32.mrf.mxu1 }
 0x1e6   : > { %v4395_v7 = vpop.f32.mrf.mxu0  ;;  %v4458_v15 = vadd.f32 %v4457_v28, %v4456_v12 }
 0x1e7   : > { %v3097_v30 = vsel %vm3065_vm11, %v3049_v43, %v3081_v9  ;;  %v3050_v8 = vadd.f32 %v5695_v61, %v3027_v40  ;;  %v2688_v24 = vadd.f32 %v4394_v48, %v2348_v13  ;;  %v4459_v62 = vpop.f32.mrf.mxu1 }
 0x1e8   : > { %v3934_v38 = vpack.c.bf16 %v3097_v30, %v3096_v57  ;;  %v4396_v27 = vpop.f32.mrf.mxu0 }
 0x1e9   : > { %v3028_v20 = vadd.f32 %v4458_v15, %v2688_v24  ;;  %v4397_v25 = vadd.f32 %v4396_v27, %v4395_v7  ;;  %v4460_v47 = vpop.f32.mrf.mxu1  ;;  %v3082_v53 = vmul.f32 0.2, %v3050_v8  ;;  %vm3066_vm12 = vcmp.gt.f32.partialorder %v3050_v8, 0.0 }
 0x1ea   : > { %3950 = vst [vmem:[%s5709_s16 + $0x28] sm:$0xff] %v3934_v38   ;;  %v4398_v17 = vpop.f32.mrf.mxu0  ;;  %v4461_v58 = vadd.f32 %v4460_v47, %v4459_v62 }
 0x1eb   : > { %v3051_v36 = vadd.f32 %v5695_v61, %v3028_v20  ;;  %v2689_v63 = vadd.f32 %v4397_v25, %v5682_v2  ;;  %v4462_v21 = vpop.f32.mrf.mxu1  ;;  %v3098_v10 = vsel %vm3066_vm12, %v3050_v8, %v3082_v53 }
 0x1ec   : > { %v4399_v37 = vpop.f32.mrf.mxu0 }
 0x1ed   : > { %vm3067_vm13 = vcmp.gt.f32.partialorder %v3051_v36, 0.0  ;;  %v3083_v60 = vmul.f32 0.2, %v3051_v36  ;;  %v3029_v6 = vadd.f32 %v4461_v58, %v2689_v63  ;;  %v4400_v3 = vadd.f32 %v4399_v37, %v4398_v17  ;;  %v4463_v26 = vpop.f32.mrf.mxu1 }
 0x1ee   : > { %v4464_v50 = vadd.f32 %v4463_v26, %v4462_v21 }
 0x1ef   : > { %v3099_v33 = vsel %vm3067_vm13, %v3051_v36, %v3083_v60  ;;  %v3052_v18 = vadd.f32 %v5695_v61, %v3029_v6  ;;  %v2690_v16 = vadd.f32 %v4400_v3, %v2350_v14 }
 0x1f0   : > { %v3939_v49 = vpack.c.bf16 %v3099_v33, %v3098_v10 }
 0x1f1   : > { %v3030_v35 = vadd.f32 %v4464_v50, %v2690_v16  ;;  %v3084_v2 = vmul.f32 0.2, %v3052_v18  ;;  %vm3068_vm14 = vcmp.gt.f32.partialorder %v3052_v18, 0.0 }
 0x1f2   : > { %3951 = vst [vmem:[%s5709_s16 + $0x30] sm:$0xff] %v3939_v49  }
 0x1f3   : > { %v3053_v4 = vadd.f32 %v5695_v61, %v3030_v35  ;;  %v3100_v56 = vsel %vm3068_vm14, %v3052_v18, %v3084_v2 }
 0x1f5   : > { %vm3069_vm15 = vcmp.gt.f32.partialorder %v3053_v4, 0.0  ;;  %v3085_v22 = vmul.f32 0.2, %v3053_v4 }
 0x1f7   : > { %v3101_v51 = vsel %vm3069_vm15, %v3053_v4, %v3085_v22 }
 0x1f8   : > { %v3944_v39 = vpack.c.bf16 %v3101_v51, %v3100_v56 }
 0x1fa   : > { %3952 = vst [vmem:[%s5709_s16 + $0x38] sm:$0xff] %v3944_v39  }
 0x1fb PF: > { %s16_s23 = sadd.s32 1, %s4748_s23   ;;  %s5783_s21 = smov %s4744_s22 }
 0x1fc   : > { %p13_p5 = scmp.ge.s32.totalorder %s16_s23, 4   ;;  %s5784_s22 = smov %s5786_s24 }
 0x1fe   :  { %15 = sbr.rel (!%p13_p5) target bundleno = 2 (0x2), region = 98 }

// kernel: discriminator_forward.9
= control target key start
LH: loop header
LB: loop body
LE: loop exit
PB: predicated region body
PF: predicated region fallthrough
CT: control target
= control target key end

     0   :  { %s4356_s21 = smov 0   ;;  %s4358_s22 = smov 0   ;;  %s5123_s0 = inlined_call_operand.vmem [shape: bf16[2,96,128], index: 0, kind: input, shape index: {}]   ;;  %s5124_s1 = inlined_call_operand.vmem [shape: bf16[2,96,128], index: 1, kind: input, shape index: {}]   ;;  %s5125_s2 = inlined_call_operand.vmem [shape: bf16[2,96,128], index: 2, kind: input, shape index: {}]   ;;  %s5126_s3 = inlined_call_operand.vmem [shape: bf16[2,96,128], index: 3, kind: input, shape index: {}]   ;;  %s5127_s4 = inlined_call_operand.vmem [shape: bf16[16,128,128], index: 4, kind: input, shape index: {}]   ;;  %s5128_s5 = inlined_call_operand.vmem [shape: f32[1,128], index: 5, kind: input, shape index: {}]   ;;  %s5129_s6 = inlined_call_operand.vmem [shape: f32[2,48,128], index: 6, kind: output, shape index: {}]  }
   0x1   :  { %s4360_s23 = smov 0  }
   0x2 LB: > { %s28_s24 = sadd.s32 1, %s4313_s22  ;;  %p2971_p0 = scmp.ge.s32.totalorder %s4317_s23, 1  ;;  %s4317_s23 = sphi %s4360_s23, %s16_s23   ;;  %s4313_s22 = sphi %s4358_s22, %s5131_s22   ;;  %s4309_s21 = sphi %s4356_s21, %s5130_s21  }
   0x3   : > { %p30_p1 = scmp.ge.s32.totalorder %s28_s24, 2  ;;  %p256_p2 = scmp.lt.s32.totalorder %s4317_s23, 3 }
   0x5   : > { %s5133_s24 = smov (%p30_p1, %s28_s24), 0  ;;  %p257_p3 = pnand %p2971_p0, %p256_p2 }
   0x6   : > { %p305_p4 = scmp.lt.s32.totalorder (!%p257_p3), %s4309_s21, 1 }
   0x7   : > { %260 = sbr.rel (%p257_p3) target bundleno = 489 (0x1e9), region = 44 }
   0xc   : > { %v4119_v0 = vld [vmem:[%s5127_s4 + $0x78] sm:$0xff]   ;;  %v4319_v1 = vmov 0.0   ;;  %v4121_v3 = vld [vmem:[%s5127_s4 + $0x70] sm:$0xff]   ;;  %vm4320_vm0 = vmmov 0   ;;  %v4123_v5 = vld [vmem:[%s5127_s4 + $0x68] sm:$0xff]   ;;  %s5135_s21 = smov (!%p305_p4, %s4309_s21), 1 }
   0xd   : > { %3644 = vmatprep.subr.bf16.mxu0 %v4319_v1  ;;  %3672 = vmatprep.subr.bf16.mxu1 %v4319_v1  ;;  %v4120_v2 = vld [vmem:[%s5127_s4 + $0x38] sm:$0xff]   ;;  %v4122_v4 = vld [vmem:[%s5127_s4 + $0x30] sm:$0xff]   ;;  %v4124_v6 = vld [vmem:[%s5127_s4 + $0x28] sm:$0xff]   ;;  %s4413_s17 = smul.u32 48, %s5135_s21 }
   0xe   : > { %3645 = vmatpush3.bf16.msra.mxu0 %v4119_v0  ;;  %3660 = vmatprep.mubr.msk.bf16.mxu0 %vm4320_vm0, %v4319_v1  ;;  %v4125_v7 = vld [vmem:[%s5127_s4 + $0x60] sm:$0xff]   ;;  %v4127_v9 = vld [vmem:[%s5127_s4 + $0x58] sm:$0xff]   ;;  %v4129_v11 = vld [vmem:[%s5127_s4 + $0x50] sm:$0xff]  }
   0xf   : > { %3673 = vmatpush3.bf16.msra.mxu1 %v4120_v2  ;;  %3646 = vmatprep.subr.bf16.mxu0 %v4319_v1  ;;  %v4126_v8 = vld [vmem:[%s5127_s4 + $0x20] sm:$0xff]   ;;  %v4128_v10 = vld [vmem:[%s5127_s4 + $0x18] sm:$0xff]   ;;  %s4427_s21 = scalar_lea.vmem %s5124_s1, %s4413_s17  ;;  %s4434_s30 = scalar_lea.vmem %s5123_s0, %s4413_s17  ;;  %v4130_v12 = vld [vmem:[%s5127_s4 + $0x10] sm:$0xff]  }
  0x10   : > { %3674 = vmatprep.subr.bf16.mxu1 %v4319_v1  ;;  %3688 = vmatprep.mubr.msk.bf16.mxu1 %vm4320_vm0, %v4319_v1  ;;  %v4131_v13 = vld [vmem:[%s5127_s4 + $0x48] sm:$0xff]   ;;  %v4133_v15 = vld [vmem:[%s5127_s4 + $0x40] sm:$0xff]   ;;  %v4137_v19 = vld [vmem:[%s5127_s4 + $0xb8] sm:$0xff]   ;;  %s4490_s13 = scalar_lea.vmem %s5125_s2, %s4413_s17  ;;  %s4497_s16 = scalar_lea.vmem %s5126_s3, %s4413_s17 }
  0x11   : > { %v4132_v14 = vld [vmem:[%s5127_s4 + $0x8] sm:$0xff]   ;;  %v4134_v16 = vld [vmem:[%s5127_s4] sm:$0xff]   ;;  %v4138_v20 = vld [vmem:[%s5127_s4 + $0xf8] sm:$0xff]   ;;  %s5102_s28 = scalar_lea.vmem %s5129_s6, %s4413_s17 }
  0x12   : > { %3647 = vmatpush3.bf16.msra.mxu0 %v4121_v3  ;;  %v4135_v17 = vld [vmem:[%s4427_s21] sm:$0xff]   ;;  %v4139_v21 = vld [vmem:[%s5127_s4 + $0xb0] sm:$0xff]   ;;  %v4141_v23 = vld [vmem:[%s5127_s4 + $0xa8] sm:$0xff]  }
  0x13   : > { %3675 = vmatpush3.bf16.msra.mxu1 %v4122_v4  ;;  %3648 = vmatprep.subr.bf16.mxu0 %v4319_v1  ;;  %v4136_v18 = vld [vmem:[%s4434_s30] sm:$0xff]   ;;  %v4140_v22 = vld [vmem:[%s5127_s4 + $0xf0] sm:$0xff]   ;;  %v4143_v24 = vld [vmem:[%s4427_s21 + $0x8] sm:$0xff]  }
  0x14   : > { %3676 = vmatprep.subr.bf16.mxu1 %v4319_v1  ;;  %v4144_v25 = vld [vmem:[%s4434_s30 + $0x8] sm:$0xff]   ;;  %v4145_v27 = vld [vmem:[%s5127_s4 + $0xa0] sm:$0xff]   ;;  %v4147_v29 = vld [vmem:[%s5127_s4 + $0x98] sm:$0xff]  }
  0x15   : > { %v4142_v26 = vld [vmem:[%s5127_s4 + $0xe8] sm:$0xff]   ;;  %v4146_v28 = vld [vmem:[%s5127_s4 + $0xe0] sm:$0xff]   ;;  %v4149_v30 = vld [vmem:[%s4427_s21 + $0x10] sm:$0xff]  }
  0x16   : > { %3649 = vmatpush3.bf16.msra.mxu0 %v4123_v5  ;;  %v4150_v31 = vld [vmem:[%s4434_s30 + $0x10] sm:$0xff]   ;;  %v4148_v32 = vld [vmem:[%s5127_s4 + $0xd8] sm:$0xff]   ;;  %v4153_v35 = vld [vmem:[%s5127_s4 + $0x88] sm:$0xff]  }
  0x17   : > { %3677 = vmatpush3.bf16.msra.mxu1 %v4124_v6  ;;  %3650 = vmatprep.subr.bf16.mxu0 %v4319_v1  ;;  %v4151_v33 = vld [vmem:[%s5127_s4 + $0x90] sm:$0xff]   ;;  %v4154_v36 = vld [vmem:[%s5127_s4 + $0xc8] sm:$0xff]   ;;  %v4155_v37 = vld [vmem:[%s5127_s4 + $0x80] sm:$0xff]  }
  0x18   : > { %3678 = vmatprep.subr.bf16.mxu1 %v4319_v1  ;;  %v4152_v34 = vld [vmem:[%s5127_s4 + $0xd0] sm:$0xff]   ;;  %v4156_v38 = vld [vmem:[%s5127_s4 + $0xc0] sm:$0xff]   ;;  %v4159_v41 = vld [vmem:[%s5127_s4 + $0x138] sm:$0xff]  }
  0x19   : > { %v4157_v39 = vld [vmem:[%s4490_s13] sm:$0xff]   ;;  %v4160_v42 = vld [vmem:[%s5127_s4 + $0x178] sm:$0xff]   ;;  %v4161_v43 = vld [vmem:[%s5127_s4 + $0x130] sm:$0xff]  }
  0x1a   : > { %3651 = vmatpush3.bf16.msra.mxu0 %v4125_v7  ;;  %v4158_v40 = vld [vmem:[%s4497_s16] sm:$0xff]   ;;  %v4162_v44 = vld [vmem:[%s5127_s4 + $0x170] sm:$0xff]   ;;  %v4163_v45 = vld [vmem:[%s4490_s13 + $0x8] sm:$0xff]  }
  0x1b   : > { %3679 = vmatpush3.bf16.msra.mxu1 %v4126_v8  ;;  %3652 = vmatprep.subr.bf16.mxu0 %v4319_v1  ;;  %v4164_v46 = vld [vmem:[%s5127_s4 + $0x128] sm:$0xff]   ;;  %v4167_v49 = vld [vmem:[%s5127_s4 + $0x120] sm:$0xff]   ;;  %v4169_v51 = vld [vmem:[%s4490_s13 + $0x10] sm:$0xff]  }
  0x1c   : > { %3680 = vmatprep.subr.bf16.mxu1 %v4319_v1  ;;  %v4166_v47 = vld [vmem:[%s4497_s16 + $0x8] sm:$0xff]   ;;  %v4168_v50 = vld [vmem:[%s5127_s4 + $0x160] sm:$0xff]   ;;  %v4170_v52 = vld [vmem:[%s5127_s4 + $0x118] sm:$0xff]  }
  0x1d   : > { %v4165_v48 = vld [vmem:[%s5127_s4 + $0x168] sm:$0xff]   ;;  %v4172_v53 = vld [vmem:[%s4497_s16 + $0x10] sm:$0xff]   ;;  %v4171_v54 = vld [vmem:[%s5127_s4 + $0x158] sm:$0xff]  }
  0x1e   : > { %3653 = vmatpush3.bf16.msra.mxu0 %v4127_v9  ;;  %v4173_v55 = vld [vmem:[%s5127_s4 + $0x110] sm:$0xff]   ;;  %v4175_v57 = vld [vmem:[%s5127_s4 + $0x108] sm:$0xff]   ;;  %v4177_v59 = vld [vmem:[%s5127_s4 + $0x100] sm:$0xff]  }
  0x1f   : > { %3681 = vmatpush3.bf16.msra.mxu1 %v4128_v10  ;;  %3654 = vmatprep.subr.bf16.mxu0 %v4319_v1  ;;  %v4174_v56 = vld [vmem:[%s5127_s4 + $0x150] sm:$0xff]   ;;  %v4176_v58 = vld [vmem:[%s5127_s4 + $0x148] sm:$0xff]   ;;  %v4178_v60 = vld [vmem:[%s5127_s4 + $0x140] sm:$0xff]  }
  0x20   : > { %3682 = vmatprep.subr.bf16.mxu1 %v4319_v1  ;;  %v4179_v61 = vld [vmem:[%s4434_s30 + $0x8] sm:$0xff]   ;;  %v4181_v63 = vld [vmem:[%s5127_s4 + $0x1b8] sm:$0xff]   ;;  %v4183_v2 = vld [vmem:[%s5127_s4 + $0x1b0] sm:$0xff]  }
  0x21   : > { %v4180_v62 = vld [vmem:[%s4427_s21 + $0x8] sm:$0xff]   ;;  %v4182_v0 = vld [vmem:[%s5127_s4 + $0x1f8] sm:$0xff]   ;;  %v4184_v3 = vld [vmem:[%s5127_s4 + $0x1f0] sm:$0xff]  }
  0x22   : > { %3655 = vmatpush3.bf16.msra.mxu0 %v4129_v11  ;;  %v4185_v4 = vld [vmem:[%s4434_s30 + $0x10] sm:$0xff]   ;;  %v4186_v5 = vld [vmem:[%s5127_s4 + $0x1a8] sm:$0xff]   ;;  %v4189_v8 = vld [vmem:[%s5127_s4 + $0x1a0] sm:$0xff]  }
  0x23   : > { %3683 = vmatpush3.bf16.msra.mxu1 %v4130_v12  ;;  %3656 = vmatprep.subr.bf16.mxu0 %v4319_v1  ;;  %v4188_v6 = vld [vmem:[%s4427_s21 + $0x10] sm:$0xff]   ;;  %v4187_v7 = vld [vmem:[%s5127_s4 + $0x1e8] sm:$0xff]   ;;  %v4190_v9 = vld [vmem:[%s5127_s4 + $0x1e0] sm:$0xff]  }
  0x24   : > { %3684 = vmatprep.subr.bf16.mxu1 %v4319_v1  ;;  %v4191_v10 = vld [vmem:[%s4434_s30 + $0x18] sm:$0xff]  }
  0x25   : > { %v4192_v11 = vld [vmem:[%s5127_s4 + $0x198] sm:$0xff]  }
  0x26   : > { %3657 = vmatpush3.bf16.msra.mxu0 %v4131_v13  ;;  %v4194_v12 = vld [vmem:[%s4427_s21 + $0x18] sm:$0xff]  }
  0x27   : > { %3685 = vmatpush3.bf16.msra.mxu1 %v4132_v14  ;;  %3658 = vmatprep.subr.bf16.mxu0 %v4319_v1  ;;  %v4193_v13 = vld [vmem:[%s5127_s4 + $0x1d8] sm:$0xff]   ;;  %v4195_v14 = vld [vmem:[%s5127_s4 + $0x190] sm:$0xff]  }
  0x28   : > { %3686 = vmatprep.subr.bf16.mxu1 %v4319_v1 }
  0x2a   : > { %3659 = vmatpush3.bf16.msra.mxu0 %v4133_v15  ;;  %v4196_v15 = vld [vmem:[%s5127_s4 + $0x1d0] sm:$0xff]  }
  0x2b   : > { %3687 = vmatpush3.bf16.msra.mxu1 %v4134_v16  ;;  %3700 = vmatprep.subr.bf16.mxu0 %v4319_v1  ;;  %v4197_v16 = vld [vmem:[%s5127_s4 + $0x188] sm:$0xff]  }
  0x2c   : > { %3728 = vmatprep.subr.bf16.mxu1 %v4319_v1 }
  0x2d   : > { %3661 = vmatmul.mubr.bf16.vlgmr.msra.gmra.mxu0 %v4135_v17  ;;  %v4198_v17 = vld [vmem:[%s5127_s4 + $0x1c8] sm:$0xff]  }
  0x2e   : > { %3689 = vmatmul.mubr.bf16.vlgmr.msra.gmra.mxu1 %v4136_v18  ;;  %3701 = vmatpush3.bf16.msra.mxu0 %v4137_v19  ;;  %v4199_v18 = vld [vmem:[%s5127_s4 + $0x180] sm:$0xff]  }
  0x2f   : > { %3729 = vmatpush3.bf16.msra.mxu1 %v4138_v20  ;;  %3702 = vmatprep.subr.bf16.mxu0 %v4319_v1  ;;  %v4200_v19 = vld [vmem:[%s5127_s4 + $0x1c0] sm:$0xff]   ;;  %v4201_v20 = vld [vmem:[%s4490_s13 + $0x8] sm:$0xff]  }
  0x30   : > { %3730 = vmatprep.subr.bf16.mxu1 %v4319_v1  ;;  %3664 = vmatprep.mubr.msk.bf16.mxu0 %vm4320_vm0, %v4319_v1 }
  0x31   : > { %3692 = vmatprep.mubr.msk.bf16.mxu1 %vm4320_vm0, %v4319_v1 }
  0x32   : > { %3703 = vmatpush3.bf16.msra.mxu0 %v4139_v21  ;;  %v4202_v21 = vld [vmem:[%s4497_s16 + $0x8] sm:$0xff]  }
  0x33   : > { %3731 = vmatpush3.bf16.msra.mxu1 %v4140_v22  ;;  %3704 = vmatprep.subr.bf16.mxu0 %v4319_v1  ;;  %v4203_v22 = vld [vmem:[%s5127_s4 + $0x238] sm:$0xff]  }
  0x34   : > { %3732 = vmatprep.subr.bf16.mxu1 %v4319_v1 }
  0x35   : > { %3665 = vmatmul.mubr.bf16.gmra.mxu0 %v4143_v24  ;;  %v4205_v24 = vld [vmem:[%s5127_s4 + $0x230] sm:$0xff]  }
  0x36   : > { %3705 = vmatpush3.bf16.msra.mxu0 %v4141_v23  ;;  %3693 = vmatmul.mubr.bf16.gmra.mxu1 %v4144_v25  ;;  %v4204_v23 = vld [vmem:[%s5127_s4 + $0x278] sm:$0xff]   ;;  %v4206_v25 = vld [vmem:[%s5127_s4 + $0x270] sm:$0xff]  }
  0x37   : > { %3733 = vmatpush3.bf16.msra.mxu1 %v4142_v26  ;;  %3706 = vmatprep.subr.bf16.mxu0 %v4319_v1  ;;  %v4207_v26 = vld [vmem:[%s4490_s13 + $0x10] sm:$0xff]  }
  0x38   : > { %3734 = vmatprep.subr.bf16.mxu1 %v4319_v1  ;;  %3668 = vmatprep.mubr.msk.bf16.mxu0 %vm4320_vm0, %v4319_v1 }
  0x39   : > { %3696 = vmatprep.mubr.msk.bf16.mxu1 %vm4320_vm0, %v4319_v1 }
  0x3a   : > { %3707 = vmatpush3.bf16.msra.mxu0 %v4145_v27  ;;  %v4208_v27 = vld [vmem:[%s5127_s4 + $0x228] sm:$0xff]  }
  0x3b   : > { %3735 = vmatpush3.bf16.msra.mxu1 %v4146_v28  ;;  %3708 = vmatprep.subr.bf16.mxu0 %v4319_v1  ;;  %v4210_v28 = vld [vmem:[%s4497_s16 + $0x10] sm:$0xff]  }
  0x3c   : > { %3736 = vmatprep.subr.bf16.mxu1 %v4319_v1 }
  0x3d   : > { %3669 = vmatmul.mubr.bf16.gmra.mxu0 %v4149_v30  ;;  %v4211_v30 = vld [vmem:[%s5127_s4 + $0x220] sm:$0xff]  }
  0x3e   : > { %3709 = vmatpush3.bf16.msra.mxu0 %v4147_v29  ;;  %3697 = vmatmul.mubr.bf16.gmra.mxu1 %v4150_v31  ;;  %v4209_v29 = vld [vmem:[%s5127_s4 + $0x268] sm:$0xff]   ;;  %v4212_v31 = vld [vmem:[%s5127_s4 + $0x260] sm:$0xff]  }
  0x3f   : > { %3737 = vmatpush3.bf16.msra.mxu1 %v4148_v32  ;;  %3710 = vmatprep.subr.bf16.mxu0 %v4319_v1  ;;  %v4213_v32 = vld [vmem:[%s4490_s13 + $0x18] sm:$0xff]  }
  0x40   : > { %3738 = vmatprep.subr.bf16.mxu1 %v4319_v1  ;;  %3716 = vmatprep.mubr.msk.bf16.mxu0 %vm4320_vm0, %v4319_v1 }
  0x41   : > { %3744 = vmatprep.mubr.msk.bf16.mxu1 %vm4320_vm0, %v4319_v1 }
  0x42   : > { %3711 = vmatpush3.bf16.msra.mxu0 %v4151_v33  ;;  %v4214_v33 = vld [vmem:[%s5127_s4 + $0x218] sm:$0xff]  }
  0x43   : > { %3739 = vmatpush3.bf16.msra.mxu1 %v4152_v34  ;;  %3712 = vmatprep.subr.bf16.mxu0 %v4319_v1  ;;  %v4216_v34 = vld [vmem:[%s4497_s16 + $0x18] sm:$0xff]  }
  0x44   : > { %3740 = vmatprep.subr.bf16.mxu1 %v4319_v1 }
  0x46   : > { %3713 = vmatpush3.bf16.msra.mxu0 %v4153_v35  ;;  %v4215_v35 = vld [vmem:[%s5127_s4 + $0x258] sm:$0xff]  }
  0x47   : > { %3741 = vmatpush3.bf16.msra.mxu1 %v4154_v36  ;;  %3714 = vmatprep.subr.bf16.mxu0 %v4319_v1  ;;  %v4217_v36 = vld [vmem:[%s5127_s4 + $0x210] sm:$0xff]  }
  0x48   : > { %3742 = vmatprep.subr.bf16.mxu1 %v4319_v1 }
  0x4a   : > { %3715 = vmatpush3.bf16.msra.mxu0 %v4155_v37  ;;  %v4218_v37 = vld [vmem:[%s5127_s4 + $0x250] sm:$0xff]  }
  0x4b   : > { %3743 = vmatpush3.bf16.msra.mxu1 %v4156_v38  ;;  %3756 = vmatprep.subr.bf16.mxu0 %v4319_v1  ;;  %v4219_v38 = vld [vmem:[%s5127_s4 + $0x208] sm:$0xff]  }
  0x4c   : > { %3784 = vmatprep.subr.bf16.mxu1 %v4319_v1 }
  0x4d   : > { %3717 = vmatmul.mubr.bf16.vlgmr.msra.gmra.mxu0 %v4157_v39  ;;  %v4220_v39 = vld [vmem:[%s5127_s4 + $0x248] sm:$0xff]  }
  0x4e   : > { %3745 = vmatmul.mubr.bf16.vlgmr.msra.gmra.mxu1 %v4158_v40  ;;  %3757 = vmatpush3.bf16.msra.mxu0 %v4159_v41  ;;  %v4221_v40 = vld [vmem:[%s5127_s4 + $0x200] sm:$0xff]  }
  0x4f   : > { %3785 = vmatpush3.bf16.msra.mxu1 %v4160_v42  ;;  %3758 = vmatprep.subr.bf16.mxu0 %v4319_v1  ;;  %v4222_v41 = vld [vmem:[%s5127_s4 + $0x240] sm:$0xff]   ;;  %v4223_v42 = vld [vmem:[%s4434_s30 + $0x10] sm:$0xff]  }
  0x50   : > { %3786 = vmatprep.subr.bf16.mxu1 %v4319_v1  ;;  %3720 = vmatprep.mubr.msk.bf16.mxu0 %vm4320_vm0, %v4319_v1 }
  0x51   : > { %3748 = vmatprep.mubr.msk.bf16.mxu1 %vm4320_vm0, %v4319_v1 }
  0x52   : > { %3759 = vmatpush3.bf16.msra.mxu0 %v4161_v43  ;;  %v4224_v43 = vld [vmem:[%s4427_s21 + $0x10] sm:$0xff]  }
  0x53   : > { %3787 = vmatpush3.bf16.msra.mxu1 %v4162_v44  ;;  %3760 = vmatprep.subr.bf16.mxu0 %v4319_v1  ;;  %v4225_v44 = vld [vmem:[%s5127_s4 + $0x2b8] sm:$0xff]  }
  0x54   : > { %3788 = vmatprep.subr.bf16.mxu1 %v4319_v1 }
  0x55   : > { %3721 = vmatmul.mubr.bf16.gmra.mxu0 %v4163_v45  ;;  %v4226_v45 = vld [vmem:[%s5127_s4 + $0x2f8] sm:$0xff]  }
  0x56   : > { %3761 = vmatpush3.bf16.msra.mxu0 %v4164_v46  ;;  %3749 = vmatmul.mubr.bf16.gmra.mxu1 %v4166_v47  ;;  %v4227_v46 = vld [vmem:[%s5127_s4 + $0x2b0] sm:$0xff]  }
  0x57   : > { %3789 = vmatpush3.bf16.msra.mxu1 %v4165_v48  ;;  %3762 = vmatprep.subr.bf16.mxu0 %v4319_v1  ;;  %v4228_v47 = vld [vmem:[%s5127_s4 + $0x2f0] sm:$0xff]   ;;  %v4229_v48 = vld [vmem:[%s4434_s30 + $0x18] sm:$0xff]  }
  0x58   : > { %3790 = vmatprep.subr.bf16.mxu1 %v4319_v1  ;;  %3724 = vmatprep.mubr.msk.bf16.mxu0 %vm4320_vm0, %v4319_v1 }
  0x59   : > { %3752 = vmatprep.mubr.msk.bf16.mxu1 %vm4320_vm0, %v4319_v1 }
  0x5a   : > { %3763 = vmatpush3.bf16.msra.mxu0 %v4167_v49  ;;  %v4230_v49 = vld [vmem:[%s5127_s4 + $0x2a8] sm:$0xff]  }
  0x5b   : > { %3791 = vmatpush3.bf16.msra.mxu1 %v4168_v50  ;;  %3764 = vmatprep.subr.bf16.mxu0 %v4319_v1  ;;  %v4232_v50 = vld [vmem:[%s4427_s21 + $0x18] sm:$0xff]  }
  0x5c   : > { %3792 = vmatprep.subr.bf16.mxu1 %v4319_v1 }
  0x5d   : > { %3725 = vmatmul.mubr.bf16.gmra.mxu0 %v4169_v51  ;;  %v4231_v51 = vld [vmem:[%s5127_s4 + $0x2e8] sm:$0xff]  }
  0x5e   : > { %3765 = vmatpush3.bf16.msra.mxu0 %v4170_v52  ;;  %3753 = vmatmul.mubr.bf16.gmra.mxu1 %v4172_v53  ;;  %v4233_v52 = vld [vmem:[%s5127_s4 + $0x2a0] sm:$0xff]  }
  0x5f   : > { %3793 = vmatpush3.bf16.msra.mxu1 %v4171_v54  ;;  %3766 = vmatprep.subr.bf16.mxu0 %v4319_v1  ;;  %v4234_v53 = vld [vmem:[%s5127_s4 + $0x2e0] sm:$0xff]  }
  0x60   : > { %3794 = vmatprep.subr.bf16.mxu1 %v4319_v1  ;;  %3772 = vmatprep.mubr.msk.bf16.mxu0 %vm4320_vm0, %v4319_v1  ;;  %v4235_v54 = vld [vmem:[%s4434_s30 + $0x20] sm:$0xff]  }
  0x61   : > { %3800 = vmatprep.mubr.msk.bf16.mxu1 %vm4320_vm0, %v4319_v1 }
  0x62   : > { %3767 = vmatpush3.bf16.msra.mxu0 %v4173_v55  ;;  %v4236_v55 = vld [vmem:[%s5127_s4 + $0x298] sm:$0xff]  }
  0x63   : > { %3795 = vmatpush3.bf16.msra.mxu1 %v4174_v56  ;;  %3768 = vmatprep.subr.bf16.mxu0 %v4319_v1  ;;  %v4238_v56 = vld [vmem:[%s4427_s21 + $0x20] sm:$0xff]  }
  0x64   : > { %3796 = vmatprep.subr.bf16.mxu1 %v4319_v1 }
  0x66   : > { %3769 = vmatpush3.bf16.msra.mxu0 %v4175_v57  ;;  %v4237_v57 = vld [vmem:[%s5127_s4 + $0x2d8] sm:$0xff]  }
  0x67   : > { %3797 = vmatpush3.bf16.msra.mxu1 %v4176_v58  ;;  %3770 = vmatprep.subr.bf16.mxu0 %v4319_v1  ;;  %v4239_v58 = vld [vmem:[%s5127_s4 + $0x290] sm:$0xff]  }
  0x68   : > { %3798 = vmatprep.subr.bf16.mxu1 %v4319_v1 }
  0x6a   : > { %3771 = vmatpush3.bf16.msra.mxu0 %v4177_v59  ;;  %v4240_v59 = vld [vmem:[%s5127_s4 + $0x2d0] sm:$0xff]  }
  0x6b   : > { %3799 = vmatpush3.bf16.msra.mxu1 %v4178_v60  ;;  %3812 = vmatprep.subr.bf16.mxu0 %v4319_v1  ;;  %v4241_v60 = vld [vmem:[%s5127_s4 + $0x288] sm:$0xff]  }
  0x6c   : > { %3840 = vmatprep.subr.bf16.mxu1 %v4319_v1 }
  0x6d   : > { %3773 = vmatmul.mubr.bf16.vlgmr.msra.gmra.mxu0 %v4179_v61  ;;  %v4242_v61 = vld [vmem:[%s5127_s4 + $0x2c8] sm:$0xff]  }
  0x6e   : > { %3801 = vmatmul.mubr.bf16.vlgmr.msra.gmra.mxu1 %v4180_v62  ;;  %3813 = vmatpush3.bf16.msra.mxu0 %v4181_v63  ;;  %v4243_v62 = vld [vmem:[%s5127_s4 + $0x280] sm:$0xff]  }
  0x6f   : > { %3841 = vmatpush3.bf16.msra.mxu1 %v4182_v0  ;;  %3814 = vmatprep.subr.bf16.mxu0 %v4319_v1  ;;  %v4244_v63 = vld [vmem:[%s5127_s4 + $0x2c0] sm:$0xff]   ;;  %v4245_v0 = vld [vmem:[%s4490_s13 + $0x10] sm:$0xff]  }
  0x70   : > { %3842 = vmatprep.subr.bf16.mxu1 %v4319_v1  ;;  %3776 = vmatprep.mubr.msk.bf16.mxu0 %vm4320_vm0, %v4319_v1 }
  0x71   : > { %3804 = vmatprep.mubr.msk.bf16.mxu1 %vm4320_vm0, %v4319_v1 }
  0x72   : > { %3815 = vmatpush3.bf16.msra.mxu0 %v4183_v2  ;;  %v4246_v2 = vld [vmem:[%s4497_s16 + $0x10] sm:$0xff]  }
  0x73   : > { %3843 = vmatpush3.bf16.msra.mxu1 %v4184_v3  ;;  %3816 = vmatprep.subr.bf16.mxu0 %v4319_v1  ;;  %v4247_v3 = vld [vmem:[%s5127_s4 + $0x338] sm:$0xff]  }
  0x74   : > { %3844 = vmatprep.subr.bf16.mxu1 %v4319_v1 }
  0x75   : > { %3777 = vmatmul.mubr.bf16.gmra.mxu0 %v4185_v4  ;;  %v4248_v4 = vld [vmem:[%s5127_s4 + $0x378] sm:$0xff]  }
  0x76   : > { %3817 = vmatpush3.bf16.msra.mxu0 %v4186_v5  ;;  %3805 = vmatmul.mubr.bf16.gmra.mxu1 %v4188_v6  ;;  %v4249_v5 = vld [vmem:[%s5127_s4 + $0x330] sm:$0xff]  }
  0x77   : > { %3845 = vmatpush3.bf16.msra.mxu1 %v4187_v7  ;;  %3818 = vmatprep.subr.bf16.mxu0 %v4319_v1  ;;  %v4250_v6 = vld [vmem:[%s5127_s4 + $0x370] sm:$0xff]   ;;  %v4251_v7 = vld [vmem:[%s4490_s13 + $0x18] sm:$0xff]  }
  0x78   : > { %3846 = vmatprep.subr.bf16.mxu1 %v4319_v1  ;;  %3780 = vmatprep.mubr.msk.bf16.mxu0 %vm4320_vm0, %v4319_v1 }
  0x79   : > { %3808 = vmatprep.mubr.msk.bf16.mxu1 %vm4320_vm0, %v4319_v1 }
  0x7a   : > { %3819 = vmatpush3.bf16.msra.mxu0 %v4189_v8  ;;  %v4252_v8 = vld [vmem:[%s5127_s4 + $0x328] sm:$0xff]  }
  0x7b   : > { %3847 = vmatpush3.bf16.msra.mxu1 %v4190_v9  ;;  %3820 = vmatprep.subr.bf16.mxu0 %v4319_v1  ;;  %v4254_v9 = vld [vmem:[%s4497_s16 + $0x18] sm:$0xff]  }
  0x7c   : > { %3848 = vmatprep.subr.bf16.mxu1 %v4319_v1 }
  0x7d   : > { %3781 = vmatmul.mubr.bf16.gmra.mxu0 %v4191_v10  ;;  %v4253_v10 = vld [vmem:[%s5127_s4 + $0x368] sm:$0xff]  }
  0x7e   : > { %3821 = vmatpush3.bf16.msra.mxu0 %v4192_v11  ;;  %3809 = vmatmul.mubr.bf16.gmra.mxu1 %v4194_v12  ;;  %v4255_v11 = vld [vmem:[%s5127_s4 + $0x320] sm:$0xff]  }
  0x7f   : > { %3849 = vmatpush3.bf16.msra.mxu1 %v4193_v13  ;;  %3822 = vmatprep.subr.bf16.mxu0 %v4319_v1  ;;  %v4256_v12 = vld [vmem:[%s5127_s4 + $0x360] sm:$0xff]  }
  0x80   : > { %3850 = vmatprep.subr.bf16.mxu1 %v4319_v1  ;;  %3828 = vmatprep.mubr.msk.bf16.mxu0 %vm4320_vm0, %v4319_v1  ;;  %v4257_v13 = vld [vmem:[%s4490_s13 + $0x20] sm:$0xff]  }
  0x81   : > { %3856 = vmatprep.mubr.msk.bf16.mxu1 %vm4320_vm0, %v4319_v1 }
  0x82   : > { %3823 = vmatpush3.bf16.msra.mxu0 %v4195_v14  ;;  %v4258_v14 = vld [vmem:[%s5127_s4 + $0x318] sm:$0xff]  }
  0x83   : > { %3851 = vmatpush3.bf16.msra.mxu1 %v4196_v15  ;;  %3824 = vmatprep.subr.bf16.mxu0 %v4319_v1  ;;  %v4260_v15 = vld [vmem:[%s4497_s16 + $0x20] sm:$0xff]  }
  0x84   : > { %3852 = vmatprep.subr.bf16.mxu1 %v4319_v1 }
  0x86   : > { %3825 = vmatpush3.bf16.msra.mxu0 %v4197_v16  ;;  %v4259_v16 = vld [vmem:[%s5127_s4 + $0x358] sm:$0xff]  }
  0x87   : > { %3853 = vmatpush3.bf16.msra.mxu1 %v4198_v17  ;;  %3826 = vmatprep.subr.bf16.mxu0 %v4319_v1  ;;  %v4261_v17 = vld [vmem:[%s5127_s4 + $0x310] sm:$0xff]  }
  0x88   : > { %3854 = vmatprep.subr.bf16.mxu1 %v4319_v1 }
  0x8a   : > { %3827 = vmatpush3.bf16.msra.mxu0 %v4199_v18  ;;  %v4262_v18 = vld [vmem:[%s5127_s4 + $0x350] sm:$0xff]  }
  0x8b   : > { %3855 = vmatpush3.bf16.msra.mxu1 %v4200_v19  ;;  %3868 = vmatprep.subr.bf16.mxu0 %v4319_v1  ;;  %v4263_v19 = vld [vmem:[%s5127_s4 + $0x308] sm:$0xff]  }
  0x8c   : > { %3896 = vmatprep.subr.bf16.mxu1 %v4319_v1 }
  0x8d   : > { %3829 = vmatmul.mubr.bf16.vlgmr.msra.gmra.mxu0 %v4201_v20  ;;  %v4264_v20 = vld [vmem:[%s5127_s4 + $0x348] sm:$0xff]  }
  0x8e   : > { %3857 = vmatmul.mubr.bf16.vlgmr.msra.gmra.mxu1 %v4202_v21  ;;  %3869 = vmatpush3.bf16.msra.mxu0 %v4203_v22  ;;  %v4265_v21 = vld [vmem:[%s5127_s4 + $0x300] sm:$0xff]  }
  0x8f   : > { %3897 = vmatpush3.bf16.msra.mxu1 %v4204_v23  ;;  %3870 = vmatprep.subr.bf16.mxu0 %v4319_v1  ;;  %v4266_v22 = vld [vmem:[%s5127_s4 + $0x340] sm:$0xff]   ;;  %v4267_v23 = vld [vmem:[%s4434_s30 + $0x18] sm:$0xff]  }
  0x90   : > { %3898 = vmatprep.subr.bf16.mxu1 %v4319_v1  ;;  %3832 = vmatprep.mubr.msk.bf16.mxu0 %vm4320_vm0, %v4319_v1 }
  0x91   : > { %3860 = vmatprep.mubr.msk.bf16.mxu1 %vm4320_vm0, %v4319_v1 }
  0x92   : > { %3871 = vmatpush3.bf16.msra.mxu0 %v4205_v24  ;;  %v4268_v24 = vld [vmem:[%s4427_s21 + $0x18] sm:$0xff]  }
  0x93   : > { %3899 = vmatpush3.bf16.msra.mxu1 %v4206_v25  ;;  %3872 = vmatprep.subr.bf16.mxu0 %v4319_v1  ;;  %v4269_v25 = vld [vmem:[%s5127_s4 + $0x3b8] sm:$0xff]  }
  0x94   : > { %3900 = vmatprep.subr.bf16.mxu1 %v4319_v1 }
  0x95   : > { %3833 = vmatmul.mubr.bf16.gmra.mxu0 %v4207_v26  ;;  %v4270_v26 = vld [vmem:[%s5127_s4 + $0x3f8] sm:$0xff]  }
  0x96   : > { %3873 = vmatpush3.bf16.msra.mxu0 %v4208_v27  ;;  %3861 = vmatmul.mubr.bf16.gmra.mxu1 %v4210_v28 }
  0x97   : > { %3901 = vmatpush3.bf16.msra.mxu1 %v4209_v29  ;;  %3874 = vmatprep.subr.bf16.mxu0 %v4319_v1  ;;  %v4271_v29 = vld [vmem:[%s5127_s4 + $0x3b0] sm:$0xff]  }
  0x98   : > { %3902 = vmatprep.subr.bf16.mxu1 %v4319_v1  ;;  %3836 = vmatprep.mubr.msk.bf16.mxu0 %vm4320_vm0, %v4319_v1 }
  0x99   : > { %3864 = vmatprep.mubr.msk.bf16.mxu1 %vm4320_vm0, %v4319_v1 }
  0x9a   : > { %3875 = vmatpush3.bf16.msra.mxu0 %v4211_v30 }
  0x9b   : > { %3903 = vmatpush3.bf16.msra.mxu1 %v4212_v31  ;;  %3876 = vmatprep.subr.bf16.mxu0 %v4319_v1 }
  0x9c   : > { %3904 = vmatprep.subr.bf16.mxu1 %v4319_v1 }
  0x9d   : > { %3837 = vmatmul.mubr.bf16.gmra.mxu0 %v4213_v32  ;;  %v4272_v32 = vld [vmem:[%s5127_s4 + $0x3f0] sm:$0xff]  }
  0x9e   : > { %3877 = vmatpush3.bf16.msra.mxu0 %v4214_v33  ;;  %3865 = vmatmul.mubr.bf16.gmra.mxu1 %v4216_v34 }
  0x9f   : > { %3905 = vmatpush3.bf16.msra.mxu1 %v4215_v35  ;;  %3878 = vmatprep.subr.bf16.mxu0 %v4319_v1  ;;  %v4273_v35 = vld [vmem:[%s4434_s30 + $0x20] sm:$0xff]  }
  0xa0   : > { %3906 = vmatprep.subr.bf16.mxu1 %v4319_v1  ;;  %3884 = vmatprep.mubr.msk.bf16.mxu0 %vm4320_vm0, %v4319_v1 }
  0xa1   : > { %3912 = vmatprep.mubr.msk.bf16.mxu1 %vm4320_vm0, %v4319_v1 }
  0xa2   : > { %3879 = vmatpush3.bf16.msra.mxu0 %v4217_v36 }
  0xa3   : > { %3907 = vmatpush3.bf16.msra.mxu1 %v4218_v37  ;;  %3880 = vmatprep.subr.bf16.mxu0 %v4319_v1  ;;  %v4274_v37 = vld [vmem:[%s5127_s4 + $0x3a8] sm:$0xff]  }
  0xa4   : > { %3908 = vmatprep.subr.bf16.mxu1 %v4319_v1 }
  0xa6   : > { %3881 = vmatpush3.bf16.msra.mxu0 %v4219_v38  ;;  %v4276_v38 = vld [vmem:[%s4427_s21 + $0x20] sm:$0xff]  }
  0xa7   : > { %3909 = vmatpush3.bf16.msra.mxu1 %v4220_v39  ;;  %3882 = vmatprep.subr.bf16.mxu0 %v4319_v1 }
  0xa8   : > { %3910 = vmatprep.subr.bf16.mxu1 %v4319_v1 }
  0xaa   : > { %3883 = vmatpush3.bf16.msra.mxu0 %v4221_v40 }
  0xab   : > { %3911 = vmatpush3.bf16.msra.mxu1 %v4222_v41  ;;  %3924 = vmatprep.subr.bf16.mxu0 %v4319_v1  ;;  %v4275_v41 = vld [vmem:[%s5127_s4 + $0x3e8] sm:$0xff]  }
  0xac   : > { %3952 = vmatprep.subr.bf16.mxu1 %v4319_v1 }
  0xad   : > { %3885 = vmatmul.mubr.bf16.vlgmr.msra.gmra.mxu0 %v4223_v42 }
  0xae   : > { %3913 = vmatmul.mubr.bf16.vlgmr.msra.gmra.mxu1 %v4224_v43  ;;  %3925 = vmatpush3.bf16.msra.mxu0 %v4225_v44 }
  0xaf   : > { %3953 = vmatpush3.bf16.msra.mxu1 %v4226_v45  ;;  %3926 = vmatprep.subr.bf16.mxu0 %v4319_v1  ;;  %v4277_v45 = vld [vmem:[%s5127_s4 + $0x3a0] sm:$0xff]  }
  0xb0   : > { %3954 = vmatprep.subr.bf16.mxu1 %v4319_v1  ;;  %3888 = vmatprep.mubr.msk.bf16.mxu0 %vm4320_vm0, %v4319_v1 }
  0xb1   : > { %3916 = vmatprep.mubr.msk.bf16.mxu1 %vm4320_vm0, %v4319_v1 }
  0xb2   : > { %3927 = vmatpush3.bf16.msra.mxu0 %v4227_v46 }
  0xb3   : > { %3955 = vmatpush3.bf16.msra.mxu1 %v4228_v47  ;;  %3928 = vmatprep.subr.bf16.mxu0 %v4319_v1 }
  0xb4   : > { %3956 = vmatprep.subr.bf16.mxu1 %v4319_v1 }
  0xb5   : > { %3889 = vmatmul.mubr.bf16.gmra.mxu0 %v4229_v48  ;;  %v4278_v48 = vld [vmem:[%s5127_s4 + $0x3e0] sm:$0xff]  }
  0xb6   : > { %3929 = vmatpush3.bf16.msra.mxu0 %v4230_v49  ;;  %3917 = vmatmul.mubr.bf16.gmra.mxu1 %v4232_v50 }
  0xb7   : > { %3957 = vmatpush3.bf16.msra.mxu1 %v4231_v51  ;;  %3930 = vmatprep.subr.bf16.mxu0 %v4319_v1  ;;  %v4279_v51 = vld [vmem:[%s4434_s30 + $0x28] sm:$0xff]  }
  0xb8   : > { %3958 = vmatprep.subr.bf16.mxu1 %v4319_v1  ;;  %3892 = vmatprep.mubr.msk.bf16.mxu0 %vm4320_vm0, %v4319_v1 }
  0xb9   : > { %3920 = vmatprep.mubr.msk.bf16.mxu1 %vm4320_vm0, %v4319_v1 }
  0xba   : > { %3931 = vmatpush3.bf16.msra.mxu0 %v4233_v52 }
  0xbb   : > { %3959 = vmatpush3.bf16.msra.mxu1 %v4234_v53  ;;  %3932 = vmatprep.subr.bf16.mxu0 %v4319_v1  ;;  %v4280_v53 = vld [vmem:[%s5127_s4 + $0x398] sm:$0xff]  }
  0xbc   : > { %3960 = vmatprep.subr.bf16.mxu1 %v4319_v1 }
  0xbd   : > { %3893 = vmatmul.mubr.bf16.gmra.mxu0 %v4235_v54  ;;  %v4282_v54 = vld [vmem:[%s4427_s21 + $0x28] sm:$0xff]  }
  0xbe   : > { %3933 = vmatpush3.bf16.msra.mxu0 %v4236_v55  ;;  %3921 = vmatmul.mubr.bf16.gmra.mxu1 %v4238_v56 }
  0xbf   : > { %3961 = vmatpush3.bf16.msra.mxu1 %v4237_v57  ;;  %3934 = vmatprep.subr.bf16.mxu0 %v4319_v1  ;;  %v4281_v57 = vld [vmem:[%s5127_s4 + $0x3d8] sm:$0xff]  }
  0xc0   : > { %3962 = vmatprep.subr.bf16.mxu1 %v4319_v1  ;;  %3940 = vmatprep.mubr.msk.bf16.mxu0 %vm4320_vm0, %v4319_v1 }
  0xc1   : > { %3968 = vmatprep.mubr.msk.bf16.mxu1 %vm4320_vm0, %v4319_v1 }
  0xc2   : > { %3935 = vmatpush3.bf16.msra.mxu0 %v4239_v58 }
  0xc3   : > { %3963 = vmatpush3.bf16.msra.mxu1 %v4240_v59  ;;  %3936 = vmatprep.subr.bf16.mxu0 %v4319_v1 }
  0xc4   : > { %3964 = vmatprep.subr.bf16.mxu1 %v4319_v1 }
  0xc6   : > { %3937 = vmatpush3.bf16.msra.mxu0 %v4241_v60 }
  0xc7   : > { %3965 = vmatpush3.bf16.msra.mxu1 %v4242_v61  ;;  %3938 = vmatprep.subr.bf16.mxu0 %v4319_v1  ;;  %v4283_v61 = vld [vmem:[%s5127_s4 + $0x390] sm:$0xff]  }
  0xc8   : > { %3966 = vmatprep.subr.bf16.mxu1 %v4319_v1 }
  0xca   : > { %3939 = vmatpush3.bf16.msra.mxu0 %v4243_v62 }
  0xcb   : > { %3967 = vmatpush3.bf16.msra.mxu1 %v4244_v63  ;;  %3980 = vmatprep.subr.bf16.mxu0 %v4319_v1 }
  0xcc   : > { %4008 = vmatprep.subr.bf16.mxu1 %v4319_v1 }
  0xcd   : > { %3941 = vmatmul.mubr.bf16.vlgmr.msra.gmra.mxu0 %v4245_v0  ;;  %v4284_v0 = vld [vmem:[%s5127_s4 + $0x3d0] sm:$0xff]  }
  0xce   : > { %3969 = vmatmul.mubr.bf16.vlgmr.msra.gmra.mxu1 %v4246_v2  ;;  %3981 = vmatpush3.bf16.msra.mxu0 %v4247_v3 }
  0xcf   : > { %4009 = vmatpush3.bf16.msra.mxu1 %v4248_v4  ;;  %3982 = vmatprep.subr.bf16.mxu0 %v4319_v1 }
  0xd0   : > { %4010 = vmatprep.subr.bf16.mxu1 %v4319_v1  ;;  %3944 = vmatprep.mubr.msk.bf16.mxu0 %vm4320_vm0, %v4319_v1 }
  0xd1   : > { %3972 = vmatprep.mubr.msk.bf16.mxu1 %vm4320_vm0, %v4319_v1 }
  0xd2   : > { %3983 = vmatpush3.bf16.msra.mxu0 %v4249_v5  ;;  %v4285_v5 = vld [vmem:[%s5127_s4 + $0x388] sm:$0xff]  }
  0xd3   : > { %4011 = vmatpush3.bf16.msra.mxu1 %v4250_v6  ;;  %3984 = vmatprep.subr.bf16.mxu0 %v4319_v1 }
  0xd4   : > { %4012 = vmatprep.subr.bf16.mxu1 %v4319_v1 }
  0xd5   : > { %3945 = vmatmul.mubr.bf16.gmra.mxu0 %v4251_v7 }
  0xd6   : > { %3985 = vmatpush3.bf16.msra.mxu0 %v4252_v8  ;;  %3973 = vmatmul.mubr.bf16.gmra.mxu1 %v4254_v9  ;;  %v4286_v8 = vld [vmem:[%s5127_s4 + $0x3c8] sm:$0xff]  }
  0xd7   : > { %4013 = vmatpush3.bf16.msra.mxu1 %v4253_v10  ;;  %3986 = vmatprep.subr.bf16.mxu0 %v4319_v1  ;;  %v4287_v10 = vld [vmem:[%s5127_s4 + $0x380] sm:$0xff]  }
  0xd8   : > { %4014 = vmatprep.subr.bf16.mxu1 %v4319_v1  ;;  %3948 = vmatprep.mubr.msk.bf16.mxu0 %vm4320_vm0, %v4319_v1 }
  0xd9   : > { %3976 = vmatprep.mubr.msk.bf16.mxu1 %vm4320_vm0, %v4319_v1 }
  0xda   : > { %3987 = vmatpush3.bf16.msra.mxu0 %v4255_v11  ;;  %v4288_v11 = vld [vmem:[%s5127_s4 + $0x3c0] sm:$0xff]  }
  0xdb   : > { %4015 = vmatpush3.bf16.msra.mxu1 %v4256_v12  ;;  %3988 = vmatprep.subr.bf16.mxu0 %v4319_v1  ;;  %v4289_v12 = vld [vmem:[%s4490_s13 + $0x18] sm:$0xff]  }
  0xdc   : > { %4016 = vmatprep.subr.bf16.mxu1 %v4319_v1 }
  0xdd   : > { %3949 = vmatmul.mubr.bf16.gmra.mxu0 %v4257_v13  ;;  %v4290_v13 = vld [vmem:[%s4497_s16 + $0x18] sm:$0xff]  }
  0xde   : > { %3989 = vmatpush3.bf16.msra.mxu0 %v4258_v14  ;;  %3977 = vmatmul.mubr.bf16.gmra.mxu1 %v4260_v15 }
  0xdf   : > { %4017 = vmatpush3.bf16.msra.mxu1 %v4259_v16  ;;  %3990 = vmatprep.subr.bf16.mxu0 %v4319_v1 }
  0xe0   : > { %4018 = vmatprep.subr.bf16.mxu1 %v4319_v1  ;;  %3996 = vmatprep.mubr.msk.bf16.mxu0 %vm4320_vm0, %v4319_v1 }
  0xe1   : > { %4024 = vmatprep.mubr.msk.bf16.mxu1 %vm4320_vm0, %v4319_v1 }
  0xe2   : > { %3991 = vmatpush3.bf16.msra.mxu0 %v4261_v17 }
  0xe3   : > { %4019 = vmatpush3.bf16.msra.mxu1 %v4262_v18  ;;  %3992 = vmatprep.subr.bf16.mxu0 %v4319_v1 }
  0xe4   : > { %4020 = vmatprep.subr.bf16.mxu1 %v4319_v1 }
  0xe6   : > { %3993 = vmatpush3.bf16.msra.mxu0 %v4263_v19 }
  0xe7   : > { %4021 = vmatpush3.bf16.msra.mxu1 %v4264_v20  ;;  %3994 = vmatprep.subr.bf16.mxu0 %v4319_v1 }
  0xe8   : > { %4022 = vmatprep.subr.bf16.mxu1 %v4319_v1 }
  0xea   : > { %3995 = vmatpush3.bf16.msra.mxu0 %v4265_v21  ;;  %v4291_v21 = vld [vmem:[%s4490_s13 + $0x20] sm:$0xff]  }
  0xeb   : > { %4023 = vmatpush3.bf16.msra.mxu1 %v4266_v22  ;;  %4036 = vmatprep.subr.bf16.mxu0 %v4319_v1 }
  0xec   : > { %4064 = vmatprep.subr.bf16.mxu1 %v4319_v1 }
  0xed   : > { %v488_v27 = vpop.f32.mrf.mxu0  ;;  %3997 = vmatmul.mubr.bf16.vlgmr.msra.gmra.mxu0 %v4267_v23 }
  0xee   : > { %v611_v28 = vpop.f32.mrf.mxu1  ;;  %4025 = vmatmul.mubr.bf16.vlgmr.msra.gmra.mxu1 %v4268_v24  ;;  %4037 = vmatpush3.bf16.msra.mxu0 %v4269_v25  ;;  %v4292_v24 = vld [vmem:[%s4497_s16 + $0x20] sm:$0xff]  }
  0xef   : > { %v4977_v30 = vadd.f32 %v611_v28, %v488_v27  ;;  %4065 = vmatpush3.bf16.msra.mxu1 %v4270_v26  ;;  %v3662_v31 = vpop.f32.mrf.mxu0  ;;  %4038 = vmatprep.subr.bf16.mxu0 %v4319_v1 }
  0xf0   : > { %v3690_v33 = vpop.f32.mrf.mxu1  ;;  %4066 = vmatprep.subr.bf16.mxu1 %v4319_v1  ;;  %4000 = vmatprep.mubr.msk.bf16.mxu0 %vm4320_vm0, %v4319_v1 }
  0xf1   : > { %v491_v34 = vpop.f32.mrf.mxu0  ;;  %4028 = vmatprep.mubr.msk.bf16.mxu1 %vm4320_vm0, %v4319_v1 }
  0xf2   : > { %v614_v36 = vpop.f32.mrf.mxu1  ;;  %4039 = vmatpush3.bf16.msra.mxu0 %v4271_v29 }
  0xf3   : > { %v4993_v39 = vadd.f32 %v614_v36, %v491_v34  ;;  %4067 = vmatpush3.bf16.msra.mxu1 %v4272_v32  ;;  %v3663_v40 = vpop.f32.mrf.mxu0  ;;  %4040 = vmatprep.subr.bf16.mxu0 %v4319_v1 }
  0xf4   : > { %v3691_v42 = vpop.f32.mrf.mxu1  ;;  %4068 = vmatprep.subr.bf16.mxu1 %v4319_v1 }
  0xf5   : > { %4001 = vmatmul.mubr.bf16.gmra.mxu0 %v4273_v35  ;;  %v496_v43 = vpop.f32.mrf.mxu0  ;;  %v4293_v35 = vld [vmem:[%s4490_s13 + $0x28] sm:$0xff]  }
  0xf6   : > { %4041 = vmatpush3.bf16.msra.mxu0 %v4274_v37  ;;  %4029 = vmatmul.mubr.bf16.gmra.mxu1 %v4276_v38  ;;  %v619_v44 = vpop.f32.mrf.mxu1  ;;  %v4294_v38 = vld [vmem:[%s4497_s16 + $0x28] sm:$0xff]  }
  0xf7   : > { %4069 = vmatpush3.bf16.msra.mxu1 %v4275_v41  ;;  %4042 = vmatprep.subr.bf16.mxu0 %v4319_v1  ;;  %v3666_v46 = vpop.f32.mrf.mxu0  ;;  %v5004_v47 = vadd.f32 %v619_v44, %v496_v43 }
  0xf8   : > { %4070 = vmatprep.subr.bf16.mxu1 %v4319_v1  ;;  %v3694_v49 = vpop.f32.mrf.mxu1  ;;  %4004 = vmatprep.mubr.msk.bf16.mxu0 %vm4320_vm0, %v4319_v1 }
  0xf9   : > { %v499_v50 = vpop.f32.mrf.mxu0  ;;  %4032 = vmatprep.mubr.msk.bf16.mxu1 %vm4320_vm0, %v4319_v1 }
  0xfa   : > { %4043 = vmatpush3.bf16.msra.mxu0 %v4277_v45  ;;  %v622_v52 = vpop.f32.mrf.mxu1 }
  0xfb   : > { %4071 = vmatpush3.bf16.msra.mxu1 %v4278_v48  ;;  %4044 = vmatprep.subr.bf16.mxu0 %v4319_v1  ;;  %v3667_v55 = vpop.f32.mrf.mxu0  ;;  %v5020_v56 = vadd.f32 %v622_v52, %v499_v50 }
  0xfc   : > { %4072 = vmatprep.subr.bf16.mxu1 %v4319_v1  ;;  %v3695_v58 = vpop.f32.mrf.mxu1 }
  0xfd   : > { %4005 = vmatmul.mubr.bf16.gmra.mxu0 %v4279_v51  ;;  %v504_v59 = vpop.f32.mrf.mxu0 }
  0xfe   : > { %4045 = vmatpush3.bf16.msra.mxu0 %v4280_v53  ;;  %4033 = vmatmul.mubr.bf16.gmra.mxu1 %v4282_v54  ;;  %v627_v60 = vpop.f32.mrf.mxu1 }
  0xff   : > { %4073 = vmatpush3.bf16.msra.mxu1 %v4281_v57  ;;  %4046 = vmatprep.subr.bf16.mxu0 %v4319_v1  ;;  %v3670_v62 = vpop.f32.mrf.mxu0  ;;  %v5030_v63 = vadd.f32 %v627_v60, %v504_v59 }
 0x100   : > { %4074 = vmatprep.subr.bf16.mxu1 %v4319_v1  ;;  %v3698_v2 = vpop.f32.mrf.mxu1  ;;  %4052 = vmatprep.mubr.msk.bf16.mxu0 %vm4320_vm0, %v4319_v1 }
 0x101   : > { %v507_v3 = vpop.f32.mrf.mxu0  ;;  %4080 = vmatprep.mubr.msk.bf16.mxu1 %vm4320_vm0, %v4319_v1 }
 0x102   : > { %4047 = vmatpush3.bf16.msra.mxu0 %v4283_v61  ;;  %v630_v4 = vpop.f32.mrf.mxu1 }
 0x103   : > { %4075 = vmatpush3.bf16.msra.mxu1 %v4284_v0  ;;  %4048 = vmatprep.subr.bf16.mxu0 %v4319_v1  ;;  %v3671_v6 = vpop.f32.mrf.mxu0  ;;  %v631_v7 = vadd.f32 %v630_v4, %v507_v3 }
 0x104   : > { %4076 = vmatprep.subr.bf16.mxu1 %v4319_v1  ;;  %v3699_v9 = vpop.f32.mrf.mxu1 }
 0x106   : > { %4049 = vmatpush3.bf16.msra.mxu0 %v4285_v5 }
 0x107   : > { %4077 = vmatpush3.bf16.msra.mxu1 %v4286_v8  ;;  %4050 = vmatprep.subr.bf16.mxu0 %v4319_v1 }
 0x108   : > { %4078 = vmatprep.subr.bf16.mxu1 %v4319_v1 }
 0x10a   : > { %4051 = vmatpush3.bf16.msra.mxu0 %v4287_v10 }
 0x10b   : > { %4079 = vmatpush3.bf16.msra.mxu1 %v4288_v11 }
 0x10d   : > { %v759_v14 = vpop.f32.mrf.mxu0  ;;  %4053 = vmatmul.mubr.bf16.vlgmr.msra.gmra.mxu0 %v4289_v12 }
 0x10e   : > { %v782_v15 = vadd.f32 %v759_v14, %v4977_v30  ;;  %v913_v16 = vpop.f32.mrf.mxu1  ;;  %4081 = vmatmul.mubr.bf16.vlgmr.msra.gmra.mxu1 %v4290_v13  ;;  %4056 = vmatprep.mubr.msk.bf16.mxu0 %vm4320_vm0, %v4319_v1 }
 0x10f   : > { %v3718_v17 = vpop.f32.mrf.mxu0  ;;  %4084 = vmatprep.mubr.msk.bf16.mxu1 %vm4320_vm0, %v4319_v1 }
 0x110   : > { %v936_v18 = vadd.f32 %v913_v16, %v782_v15  ;;  %v3746_v19 = vpop.f32.mrf.mxu1 }
 0x111   : > { %v762_v20 = vpop.f32.mrf.mxu0 }
 0x112   : > { %v783_v22 = vadd.f32 %v762_v20, %v4993_v39  ;;  %v916_v23 = vpop.f32.mrf.mxu1 }
 0x113   : > { %v3719_v25 = vpop.f32.mrf.mxu0 }
 0x114   : > { %v937_v26 = vadd.f32 %v916_v23, %v783_v22  ;;  %v3747_v27 = vpop.f32.mrf.mxu1 }
 0x115   : > { %v767_v28 = vpop.f32.mrf.mxu0  ;;  %4057 = vmatmul.mubr.bf16.gmra.mxu0 %v4291_v21 }
 0x116   : > { %v784_v29 = vadd.f32 %v767_v28, %v5004_v47  ;;  %4085 = vmatmul.mubr.bf16.gmra.mxu1 %v4292_v24  ;;  %v921_v30 = vpop.f32.mrf.mxu1  ;;  %4060 = vmatprep.mubr.msk.bf16.mxu0 %vm4320_vm0, %v4319_v1 }
 0x117   : > { %v3722_v31 = vpop.f32.mrf.mxu0  ;;  %4088 = vmatprep.mubr.msk.bf16.mxu1 %vm4320_vm0, %v4319_v1 }
 0x118   : > { %v938_v32 = vadd.f32 %v921_v30, %v784_v29  ;;  %v3750_v33 = vpop.f32.mrf.mxu1 }
 0x119   : > { %v770_v34 = vpop.f32.mrf.mxu0 }
 0x11a   : > { %v785_v36 = vadd.f32 %v770_v34, %v5020_v56  ;;  %v924_v37 = vpop.f32.mrf.mxu1 }
 0x11b   : > { %v3723_v39 = vpop.f32.mrf.mxu0 }
 0x11c   : > { %v939_v40 = vadd.f32 %v924_v37, %v785_v36  ;;  %v3751_v41 = vpop.f32.mrf.mxu1 }
 0x11d   : > { %v775_v42 = vpop.f32.mrf.mxu0  ;;  %4061 = vmatmul.mubr.bf16.gmra.mxu0 %v4293_v35 }
 0x11e   : > { %v786_v43 = vadd.f32 %v775_v42, %v5030_v63  ;;  %4089 = vmatmul.mubr.bf16.gmra.mxu1 %v4294_v38  ;;  %v929_v44 = vpop.f32.mrf.mxu1 }
 0x11f   : > { %v3726_v45 = vpop.f32.mrf.mxu0 }
 0x120   : > { %v940_v46 = vadd.f32 %v929_v44, %v786_v43  ;;  %v3754_v1 = vpop.f32.mrf.mxu1 }
 0x121   : > { %v778_v47 = vpop.f32.mrf.mxu0 }
 0x122   : > { %v787_v48 = vadd.f32 %v778_v47, %v631_v7  ;;  %v932_v49 = vpop.f32.mrf.mxu1 }
 0x123   : > { %v3727_v50 = vpop.f32.mrf.mxu0 }
 0x124   : > { %v941_v51 = vadd.f32 %v932_v49, %v787_v48  ;;  %v3755_v52 = vpop.f32.mrf.mxu1 }
 0x12d   : > { %v1070_v53 = vpop.f32.mrf.mxu0 }
 0x12e   : > { %v1093_v54 = vadd.f32 %v1070_v53, %v936_v18  ;;  %v1224_v55 = vpop.f32.mrf.mxu1 }
 0x12f   : > { %v3774_v56 = vpop.f32.mrf.mxu0 }
 0x130   : > { %v1247_v57 = vadd.f32 %v1224_v55, %v1093_v54  ;;  %v3802_v58 = vpop.f32.mrf.mxu1 }
 0x131   : > { %v1073_v59 = vpop.f32.mrf.mxu0 }
 0x132   : > { %v1094_v60 = vadd.f32 %v1073_v59, %v937_v26  ;;  %v1227_v61 = vpop.f32.mrf.mxu1 }
 0x133   : > { %v3775_v62 = vpop.f32.mrf.mxu0 }
 0x134   : > { %v1248_v63 = vadd.f32 %v1227_v61, %v1094_v60  ;;  %v3803_v0 = vpop.f32.mrf.mxu1 }
 0x135   : > { %v1078_v2 = vpop.f32.mrf.mxu0 }
 0x136   : > { %v1095_v3 = vadd.f32 %v1078_v2, %v938_v32  ;;  %v1232_v4 = vpop.f32.mrf.mxu1 }
 0x137   : > { %v3778_v5 = vpop.f32.mrf.mxu0 }
 0x138   : > { %v1249_v6 = vadd.f32 %v1232_v4, %v1095_v3  ;;  %v3806_v7 = vpop.f32.mrf.mxu1 }
 0x139   : > { %v1081_v8 = vpop.f32.mrf.mxu0 }
 0x13a   : > { %v1096_v9 = vadd.f32 %v1081_v8, %v939_v40  ;;  %v1235_v10 = vpop.f32.mrf.mxu1 }
 0x13b   : > { %v3779_v11 = vpop.f32.mrf.mxu0 }
 0x13c   : > { %v1250_v12 = vadd.f32 %v1235_v10, %v1096_v9  ;;  %v3807_v13 = vpop.f32.mrf.mxu1 }
 0x13d   : > { %v1086_v14 = vpop.f32.mrf.mxu0 }
 0x13e   : > { %v1097_v15 = vadd.f32 %v1086_v14, %v940_v46  ;;  %v1240_v16 = vpop.f32.mrf.mxu1 }
 0x13f   : > { %v3782_v17 = vpop.f32.mrf.mxu0 }
 0x140   : > { %v1251_v18 = vadd.f32 %v1240_v16, %v1097_v15  ;;  %v3810_v19 = vpop.f32.mrf.mxu1 }
 0x141   : > { %v1089_v20 = vpop.f32.mrf.mxu0 }
 0x142   : > { %v1098_v21 = vadd.f32 %v1089_v20, %v941_v51  ;;  %v1243_v22 = vpop.f32.mrf.mxu1 }
 0x143   : > { %v3783_v23 = vpop.f32.mrf.mxu0 }
 0x144   : > { %v1252_v24 = vadd.f32 %v1243_v22, %v1098_v21  ;;  %v3811_v25 = vpop.f32.mrf.mxu1 }
 0x14d   : > { %v1378_v26 = vpop.f32.mrf.mxu0 }
 0x14e   : > { %v1401_v27 = vadd.f32 %v1378_v26, %v1247_v57  ;;  %v1532_v28 = vpop.f32.mrf.mxu1 }
 0x14f   : > { %v3830_v29 = vpop.f32.mrf.mxu0 }
 0x150   : > { %v1555_v30 = vadd.f32 %v1532_v28, %v1401_v27  ;;  %v3858_v31 = vpop.f32.mrf.mxu1 }
 0x151   : > { %v1381_v32 = vpop.f32.mrf.mxu0 }
 0x152   : > { %v1402_v33 = vadd.f32 %v1381_v32, %v1248_v63  ;;  %v1535_v34 = vpop.f32.mrf.mxu1 }
 0x153   : > { %v3831_v35 = vpop.f32.mrf.mxu0 }
 0x154   : > { %v1556_v36 = vadd.f32 %v1535_v34, %v1402_v33  ;;  %v3859_v37 = vpop.f32.mrf.mxu1 }
 0x155   : > { %v1386_v38 = vpop.f32.mrf.mxu0 }
 0x156   : > { %v1403_v39 = vadd.f32 %v1386_v38, %v1249_v6  ;;  %v1540_v40 = vpop.f32.mrf.mxu1 }
 0x157   : > { %v3834_v41 = vpop.f32.mrf.mxu0 }
 0x158   : > { %v1557_v42 = vadd.f32 %v1540_v40, %v1403_v39  ;;  %v3862_v43 = vpop.f32.mrf.mxu1 }
 0x159   : > { %v1389_v44 = vpop.f32.mrf.mxu0 }
 0x15a   : > { %v1404_v45 = vadd.f32 %v1389_v44, %v1250_v12  ;;  %v1543_v46 = vpop.f32.mrf.mxu1 }
 0x15b   : > { %v3835_v1 = vpop.f32.mrf.mxu0 }
 0x15c   : > { %v1558_v47 = vadd.f32 %v1543_v46, %v1404_v45  ;;  %v3863_v48 = vpop.f32.mrf.mxu1 }
 0x15d   : > { %v1394_v49 = vpop.f32.mrf.mxu0 }
 0x15e   : > { %v1405_v50 = vadd.f32 %v1394_v49, %v1251_v18  ;;  %v1548_v51 = vpop.f32.mrf.mxu1 }
 0x15f   : > { %v3838_v52 = vpop.f32.mrf.mxu0 }
 0x160   : > { %v1559_v53 = vadd.f32 %v1548_v51, %v1405_v50  ;;  %v3866_v54 = vpop.f32.mrf.mxu1 }
 0x161   : > { %v1397_v55 = vpop.f32.mrf.mxu0 }
 0x162   : > { %v1406_v56 = vadd.f32 %v1397_v55, %v1252_v24  ;;  %v1551_v57 = vpop.f32.mrf.mxu1 }
 0x163   : > { %v3839_v58 = vpop.f32.mrf.mxu0 }
 0x164   : > { %v1560_v59 = vadd.f32 %v1551_v57, %v1406_v56  ;;  %v3867_v60 = vpop.f32.mrf.mxu1 }
 0x16d   : > { %v1689_v61 = vpop.f32.mrf.mxu0 }
 0x16e   : > { %v1712_v62 = vadd.f32 %v1689_v61, %v1555_v30  ;;  %v1843_v63 = vpop.f32.mrf.mxu1 }
 0x16f   : > { %v3886_v0 = vpop.f32.mrf.mxu0 }
 0x170   : > { %v5075_v2 = vadd.f32 %v1843_v63, %v1712_v62  ;;  %v3914_v3 = vpop.f32.mrf.mxu1 }
 0x171   : > { %v1692_v4 = vpop.f32.mrf.mxu0 }
 0x172   : > { %v1713_v5 = vadd.f32 %v1692_v4, %v1556_v36  ;;  %v1846_v6 = vpop.f32.mrf.mxu1 }
 0x173   : > { %v3887_v7 = vpop.f32.mrf.mxu0 }
 0x174   : > { %v5077_v8 = vadd.f32 %v1846_v6, %v1713_v5  ;;  %v3915_v9 = vpop.f32.mrf.mxu1 }
 0x175   : > { %v1697_v10 = vpop.f32.mrf.mxu0 }
 0x176   : > { %v1714_v11 = vadd.f32 %v1697_v10, %v1557_v42  ;;  %v1851_v12 = vpop.f32.mrf.mxu1 }
 0x177   : > { %v3890_v13 = vpop.f32.mrf.mxu0 }
 0x178   : > { %v5079_v14 = vadd.f32 %v1851_v12, %v1714_v11  ;;  %v3918_v15 = vpop.f32.mrf.mxu1 }
 0x179   : > { %v1700_v16 = vpop.f32.mrf.mxu0 }
 0x17a   : > { %v1715_v17 = vadd.f32 %v1700_v16, %v1558_v47  ;;  %v1854_v18 = vpop.f32.mrf.mxu1 }
 0x17b   : > { %v3891_v19 = vpop.f32.mrf.mxu0 }
 0x17c   : > { %v5081_v20 = vadd.f32 %v1854_v18, %v1715_v17  ;;  %v3919_v21 = vpop.f32.mrf.mxu1 }
 0x17d   : > { %v1705_v22 = vpop.f32.mrf.mxu0 }
 0x17e   : > { %v1716_v23 = vadd.f32 %v1705_v22, %v1559_v53  ;;  %v1859_v24 = vpop.f32.mrf.mxu1 }
 0x17f   : > { %v3894_v25 = vpop.f32.mrf.mxu0 }
 0x180   : > { %v5083_v26 = vadd.f32 %v1859_v24, %v1716_v23  ;;  %v3922_v27 = vpop.f32.mrf.mxu1 }
 0x181   : > { %v1708_v28 = vpop.f32.mrf.mxu0 }
 0x182   : > { %v1717_v29 = vadd.f32 %v1708_v28, %v1560_v59  ;;  %v1862_v30 = vpop.f32.mrf.mxu1 }
 0x183   : > { %v3895_v31 = vpop.f32.mrf.mxu0 }
 0x184   : > { %v5085_v32 = vadd.f32 %v1862_v30, %v1717_v29  ;;  %v3923_v33 = vpop.f32.mrf.mxu1 }
 0x18d   : > { %v1997_v34 = vpop.f32.mrf.mxu0 }
 0x18e   : > { %v2151_v35 = vpop.f32.mrf.mxu1  ;;  %v2020_v18 = vadd.f32 %v1997_v34, %v5075_v2  ;;  %v3465_v2 = vld [vmem:[%s5128_s5] ss:$0 sm:$0xff] }
 0x18f   : > { %v3942_v36 = vpop.f32.mrf.mxu0 }
 0x190   : > { %v3970_v37 = vpop.f32.mrf.mxu1  ;;  %v2174_v23 = vadd.f32 %v2151_v35, %v2020_v18 }
 0x191   : > { %v2000_v38 = vpop.f32.mrf.mxu0 }
 0x192   : > { %v2154_v39 = vpop.f32.mrf.mxu1  ;;  %v2021_v24 = vadd.f32 %v2000_v38, %v5077_v8 }
 0x193   : > { %v3943_v40 = vpop.f32.mrf.mxu0 }
 0x194   : > { %v3971_v41 = vpop.f32.mrf.mxu1  ;;  %v2175_v27 = vadd.f32 %v2154_v39, %v2021_v24 }
 0x195   : > { %v2005_v42 = vpop.f32.mrf.mxu0 }
 0x196   : > { %v2159_v43 = vpop.f32.mrf.mxu1  ;;  %v2022_v28 = vadd.f32 %v2005_v42, %v5079_v14 }
 0x197   : > { %v3946_v44 = vpop.f32.mrf.mxu0 }
 0x198   : > { %v3974_v45 = vpop.f32.mrf.mxu1  ;;  %v2176_v33 = vadd.f32 %v2159_v43, %v2022_v28 }
 0x199   : > { %v2008_v46 = vpop.f32.mrf.mxu0 }
 0x19a   : > { %v2162_v1 = vpop.f32.mrf.mxu1  ;;  %v2023_v36 = vadd.f32 %v2008_v46, %v5081_v20 }
 0x19b   : > { %v3947_v47 = vpop.f32.mrf.mxu0 }
 0x19c   : > { %v3975_v48 = vpop.f32.mrf.mxu1  ;;  %v2177_v39 = vadd.f32 %v2162_v1, %v2023_v36 }
 0x19d   : > { %v2013_v49 = vpop.f32.mrf.mxu0 }
 0x19e   : > { %v5087_v50 = vpop.f32.mrf.mxu1  ;;  %v2024_v20 = vadd.f32 %v2013_v49, %v5083_v26 }
 0x19f   : > { %v3950_v51 = vpop.f32.mrf.mxu0 }
 0x1a0   : > { %v3978_v52 = vpop.f32.mrf.mxu1 }
 0x1a1   : > { %v2016_v53 = vpop.f32.mrf.mxu0 }
 0x1a2   : > { %v5089_v54 = vpop.f32.mrf.mxu1 }
 0x1a3   : > { %v3951_v55 = vpop.f32.mrf.mxu0 }
 0x1a4   : > { %v3979_v56 = vpop.f32.mrf.mxu1  ;;  %v2178_v55 = vadd.f32 %v5087_v50, %v2024_v20 }
 0x1a5   : > { %v2025_v56 = vadd.f32 %v2016_v53, %v5085_v32 }
 0x1ad   : > { %v2308_v57 = vpop.f32.mrf.mxu0 }
 0x1ae   : > { %v2462_v58 = vpop.f32.mrf.mxu1  ;;  %v2331_v25 = vadd.f32 %v2308_v57, %v2174_v23 }
 0x1af   : > { %v3998_v59 = vpop.f32.mrf.mxu0 }
 0x1b0   : > { %v4026_v60 = vpop.f32.mrf.mxu1  ;;  %v2485_v29 = vadd.f32 %v2462_v58, %v2331_v25 }
 0x1b1   : > { %v2311_v61 = vpop.f32.mrf.mxu0 }
 0x1b2   : > { %v2465_v62 = vpop.f32.mrf.mxu1  ;;  %v2332_v30 = vadd.f32 %v2311_v61, %v2175_v27 }
 0x1b3   : > { %v3999_v63 = vpop.f32.mrf.mxu0 }
 0x1b4   : > { %v4027_v0 = vpop.f32.mrf.mxu1  ;;  %v2486_v35 = vadd.f32 %v2465_v62, %v2332_v30  ;;  %v2179_v63 = vadd.f32 %v5089_v54, %v2025_v56 }
 0x1b5   : > { %v2316_v3 = vpop.f32.mrf.mxu0 }
 0x1b6   : > { %v2470_v4 = vpop.f32.mrf.mxu1  ;;  %v2333_v8 = vadd.f32 %v2316_v3, %v2176_v33 }
 0x1b7   : > { %v4002_v5 = vpop.f32.mrf.mxu0 }
 0x1b8   : > { %v4030_v6 = vpop.f32.mrf.mxu1  ;;  %v2487_v46 = vadd.f32 %v2470_v4, %v2333_v8 }
 0x1b9   : > { %v2319_v7 = vpop.f32.mrf.mxu0 }
 0x1ba   : > { %v2473_v9 = vpop.f32.mrf.mxu1  ;;  %v2334_v47 = vadd.f32 %v2319_v7, %v2177_v39 }
 0x1bb   : > { %v4003_v10 = vpop.f32.mrf.mxu0 }
 0x1bc   : > { %v4031_v11 = vpop.f32.mrf.mxu1  ;;  %v2488_v49 = vadd.f32 %v2473_v9, %v2334_v47 }
 0x1bd   : > { %v2324_v12 = vpop.f32.mrf.mxu0 }
 0x1be   : > { %v2478_v13 = vpop.f32.mrf.mxu1  ;;  %v2335_v59 = vadd.f32 %v2324_v12, %v2178_v55 }
 0x1bf   : > { %v4006_v15 = vpop.f32.mrf.mxu0 }
 0x1c0   : > { %v4034_v16 = vpop.f32.mrf.mxu1  ;;  %v2489_v5 = vadd.f32 %v2478_v13, %v2335_v59 }
 0x1c1   : > { %v2327_v17 = vpop.f32.mrf.mxu0 }
 0x1c2   : > { %v2481_v19 = vpop.f32.mrf.mxu1  ;;  %v2336_v32 = vadd.f32 %v2327_v17, %v2179_v63 }
 0x1c3   : > { %v4007_v21 = vpop.f32.mrf.mxu0 }
 0x1c4   : > { %v4035_v22 = vpop.f32.mrf.mxu1  ;;  %v2490_v15 = vadd.f32 %v2481_v19, %v2336_v32 }
 0x1cd   : > { %v2616_v31 = vpop.f32.mrf.mxu0 }
 0x1ce   : > { %v2639_v37 = vadd.f32 %v2616_v31, %v2485_v29  ;;  %v2770_v40 = vpop.f32.mrf.mxu1 }
 0x1cf   : > { %v4054_v34 = vpop.f32.mrf.mxu0 }
 0x1d0   : > { %v2793_v38 = vadd.f32 %v2770_v40, %v2639_v37  ;;  %v4082_v41 = vpop.f32.mrf.mxu1 }
 0x1d1   : > { %v2619_v14 = vpop.f32.mrf.mxu0 }
 0x1d2   : > { %v2806_v42 = vadd.f32 %v3465_v2, %v2793_v38  ;;  %v2640_v43 = vadd.f32 %v2619_v14, %v2486_v35  ;;  %v2773_v44 = vpop.f32.mrf.mxu1 }
 0x1d3   : > { %v4055_v45 = vpop.f32.mrf.mxu0 }
 0x1d4   : > { %2812 = vst [vmem:[%s5102_s28] sm:$0xff] %v2806_v42  ;;  %v2794_v48 = vadd.f32 %v2773_v44, %v2640_v43  ;;  %v4083_v51 = vpop.f32.mrf.mxu1 }
 0x1d5   : > { %v2624_v52 = vpop.f32.mrf.mxu0 }
 0x1d6   : > { %v2807_v57 = vadd.f32 %v3465_v2, %v2794_v48  ;;  %v2641_v58 = vadd.f32 %v2624_v52, %v2487_v46  ;;  %v2778_v1 = vpop.f32.mrf.mxu1 }
 0x1d7   : > { %v4058_v26 = vpop.f32.mrf.mxu0 }
 0x1d8   : > { %2813 = vst [vmem:[%s5102_s28 + $0x8] sm:$0xff] %v2807_v57  ;;  %v2795_v60 = vadd.f32 %v2778_v1, %v2641_v58  ;;  %v4086_v61 = vpop.f32.mrf.mxu1 }
 0x1d9   : > { %v2627_v62 = vpop.f32.mrf.mxu0 }
 0x1da   : > { %v2808_v0 = vadd.f32 %v3465_v2, %v2795_v60  ;;  %v2642_v3 = vadd.f32 %v2627_v62, %v2488_v49  ;;  %v2781_v4 = vpop.f32.mrf.mxu1 }
 0x1db   : > { %v4059_v50 = vpop.f32.mrf.mxu0 }
 0x1dc   : > { %2814 = vst [vmem:[%s5102_s28 + $0x10] sm:$0xff] %v2808_v0  ;;  %v2796_v53 = vadd.f32 %v2781_v4, %v2642_v3  ;;  %v4087_v6 = vpop.f32.mrf.mxu1 }
 0x1dd   : > { %v2632_v7 = vpop.f32.mrf.mxu0 }
 0x1de   : > { %v2809_v9 = vadd.f32 %v3465_v2, %v2796_v53  ;;  %v2643_v10 = vadd.f32 %v2632_v7, %v2489_v5  ;;  %v2786_v11 = vpop.f32.mrf.mxu1 }
 0x1df   : > { %v4062_v12 = vpop.f32.mrf.mxu0 }
 0x1e0   : > { %2815 = vst [vmem:[%s5102_s28 + $0x18] sm:$0xff] %v2809_v9  ;;  %v2797_v54 = vadd.f32 %v2786_v11, %v2643_v10  ;;  %v4090_v16 = vpop.f32.mrf.mxu1 }
 0x1e1   : > { %v2635_v18 = vpop.f32.mrf.mxu0 }
 0x1e2   : > { %v2810_v21 = vadd.f32 %v3465_v2, %v2797_v54  ;;  %v2644_v22 = vadd.f32 %v2635_v18, %v2490_v15  ;;  %v2789_v23 = vpop.f32.mrf.mxu1 }
 0x1e3   : > { %v4063_v13 = vpop.f32.mrf.mxu0 }
 0x1e4   : > { %2816 = vst [vmem:[%s5102_s28 + $0x20] sm:$0xff] %v2810_v21  ;;  %v2798_v17 = vadd.f32 %v2789_v23, %v2644_v22  ;;  %v4091_v24 = vpop.f32.mrf.mxu1 }
 0x1e6   : > { %v2811_v25 = vadd.f32 %v3465_v2, %v2798_v17 }
 0x1e8   : > { %2817 = vst [vmem:[%s5102_s28 + $0x28] sm:$0xff] %v2811_v25 }
 0x1e9 PF: > { %s16_s23 = sadd.s32 1, %s4317_s23   ;;  %s5130_s21 = smov %s4313_s22 }
 0x1ea   : > { %p13_p5 = scmp.ge.s32.totalorder %s16_s23, 4   ;;  %s5131_s22 = smov %s5133_s24 }
 0x1ec   :  { %15 = sbr.rel (!%p13_p5) target bundleno = 2 (0x2), region = 114 }

// kernel: discriminator_forward.8
= control target key start
LH: loop header
LB: loop body
LE: loop exit
PB: predicated region body
PF: predicated region fallthrough
CT: control target
= control target key end

     0   :  { %s3649_s21 = smov 0   ;;  %s3651_s22 = smov 0   ;;  %s4410_s0 = inlined_call_operand.vmem [shape: bf16[2,80,256], index: 0, kind: input, shape index: {}]   ;;  %s4411_s1 = inlined_call_operand.vmem [shape: bf16[2,80,256], index: 1, kind: input, shape index: {}]   ;;  %s4412_s2 = inlined_call_operand.vmem [shape: bf16[2,80,256], index: 2, kind: input, shape index: {}]   ;;  %s4413_s3 = inlined_call_operand.vmem [shape: bf16[2,80,256], index: 3, kind: input, shape index: {}]   ;;  %s4414_s4 = inlined_call_operand.vmem [shape: bf16[8,256,128], index: 4, kind: input, shape index: {}]   ;;  %s4415_s5 = inlined_call_operand.vmem [shape: f32[1,128], index: 5, kind: input, shape index: {}]   ;;  %s4416_s6 = inlined_call_operand.vmem [shape: bf16[2,64,128], index: 6, kind: output, shape index: {}]  }
   0x1   :  { %s3653_s23 = smov 0  }
   0x2 LB: > { %s28_s24 = sadd.s32 1, %s3608_s22  ;;  %p2559_p0 = scmp.ge.s32.totalorder %s3612_s23, 1  ;;  %s3612_s23 = sphi %s3653_s23, %s16_s23   ;;  %s3608_s22 = sphi %s3651_s22, %s4448_s22   ;;  %s3604_s21 = sphi %s3649_s21, %s4447_s21  }
   0x3   : > { %p30_p1 = scmp.ge.s32.totalorder %s28_s24, 2  ;;  %p256_p2 = scmp.lt.s32.totalorder %s3612_s23, 3 }
   0x5   : > { %s4450_s24 = smov (%p30_p1, %s28_s24), 0  ;;  %p257_p3 = pnand %p2559_p0, %p256_p2 }
   0x7   : > { %260 = sbr.rel (%p257_p3) target bundleno = 381 (0x17d), region = 44 }
   0xc   : > { %v3402_v0 = vld [vmem:[%s4414_s4 + $0xf8] sm:$0xff]   ;;  %v3406_v4 = vld [vmem:[%s4414_s4 + $0xf0] sm:$0xff]   ;;  %v3410_v8 = vld [vmem:[%s4414_s4 + $0xe8] sm:$0xff]   ;;  %p305_p4 = scmp.lt.s32.totalorder %s3604_s21, 1 }
   0xd   : > { %v3403_v1 = vld [vmem:[%s4414_s4 + $0x78] sm:$0xff]   ;;  %3057 = vmatprep.subr.bf16.mxu0 %v3402_v0  ;;  %v3407_v5 = vld [vmem:[%s4414_s4 + $0x70] sm:$0xff]   ;;  %v3411_v9 = vld [vmem:[%s4414_s4 + $0x68] sm:$0xff]  }
   0xe   : > { %v3404_v2 = vld [vmem:[%s4414_s4 + $0xb8] sm:$0xff]   ;;  %3097 = vmatprep.subr.bf16.mxu1 %v3403_v1  ;;  %v3408_v6 = vld [vmem:[%s4414_s4 + $0xb0] sm:$0xff]   ;;  %v3412_v10 = vld [vmem:[%s4414_s4 + $0xa8] sm:$0xff]   ;;  %s4452_s21 = smov (!%p305_p4, %s3604_s21), 1 }
   0xf   : > { %v3405_v3 = vld [vmem:[%s4414_s4 + $0x38] sm:$0xff]   ;;  %3058 = vmatpush3.bf16.msra.mxu0 %v3404_v2  ;;  %v3409_v7 = vld [vmem:[%s4414_s4 + $0x30] sm:$0xff]   ;;  %v3413_v11 = vld [vmem:[%s4414_s4 + $0x28] sm:$0xff]   ;;  %s3752_s13 = smul.u32 80, %s4452_s21  ;;  %s3025_s12 = sshll.u32 %s4452_s21, 5 }
  0x10   : > { %3098 = vmatpush3.bf16.msra.mxu1 %v3405_v3  ;;  %3059 = vmatprep.subr.bf16.mxu0 %v3406_v4  ;;  %v3414_v12 = vld [vmem:[%s4414_s4 + $0xe0] sm:$0xff]   ;;  %v3418_v16 = vld [vmem:[%s4414_s4 + $0xd8] sm:$0xff]   ;;  %v3422_v20 = vld [vmem:[%s4414_s4 + $0xd0] sm:$0xff]   ;;  %s4373_s21 = scalar_lea.vmem %s4416_s6, %s3025_s12 }
  0x11   : > { %3099 = vmatprep.subr.bf16.mxu1 %v3407_v5  ;;  %v3415_v13 = vld [vmem:[%s4414_s4 + $0x60] sm:$0xff]   ;;  %v3419_v17 = vld [vmem:[%s4414_s4 + $0x58] sm:$0xff]   ;;  %v3423_v21 = vld [vmem:[%s4414_s4 + $0x50] sm:$0xff]   ;;  %s3770_s28 = scalar_lea.vmem %s4411_s1, %s3752_s13  ;;  %s3782_s11 = scalar_lea.vmem %s4410_s0, %s3752_s13 }
  0x12   : > { %v3416_v14 = vld [vmem:[%s4414_s4 + $0xa0] sm:$0xff]   ;;  %v3420_v18 = vld [vmem:[%s4414_s4 + $0x98] sm:$0xff]   ;;  %v3424_v22 = vld [vmem:[%s4414_s4 + $0x90] sm:$0xff]   ;;  %s3930_s29 = scalar_lea.vmem %s4412_s2, %s3752_s13  ;;  %s3939_s10 = scalar_lea.vmem %s4413_s3, %s3752_s13 }
  0x13   : > { %3060 = vmatpush3.bf16.msra.mxu0 %v3408_v6  ;;  %v3417_v15 = vld [vmem:[%s4414_s4 + $0x20] sm:$0xff]   ;;  %v3421_v19 = vld [vmem:[%s4414_s4 + $0x18] sm:$0xff]   ;;  %v3425_v23 = vld [vmem:[%s4414_s4 + $0x10] sm:$0xff]  }
  0x14   : > { %3100 = vmatpush3.bf16.msra.mxu1 %v3409_v7  ;;  %3061 = vmatprep.subr.bf16.mxu0 %v3410_v8  ;;  %v3426_v24 = vld [vmem:[%s4414_s4 + $0xc8] sm:$0xff]   ;;  %v3430_v28 = vld [vmem:[%s4414_s4 + $0xc0] sm:$0xff]   ;;  %v3440_v36 = vld [vmem:[%s4414_s4 + $0x178] sm:$0xff]  }
  0x15   : > { %3101 = vmatprep.subr.bf16.mxu1 %v3411_v9  ;;  %v3427_v25 = vld [vmem:[%s4414_s4 + $0x48] sm:$0xff]   ;;  %v3431_v29 = vld [vmem:[%s4414_s4 + $0x40] sm:$0xff]   ;;  %v3441_v37 = vld [vmem:[%s4414_s4 + $0x1f8] sm:$0xff]  }
  0x16   : > { %v3428_v26 = vld [vmem:[%s4414_s4 + $0x88] sm:$0xff]   ;;  %v3432_v30 = vld [vmem:[%s4414_s4 + $0x80] sm:$0xff]   ;;  %v3442_v38 = vld [vmem:[%s4414_s4 + $0x138] sm:$0xff]  }
  0x17   : > { %3062 = vmatpush3.bf16.msra.mxu0 %v3412_v10  ;;  %v3429_v27 = vld [vmem:[%s4414_s4 + $0x8] sm:$0xff]   ;;  %v3433_v31 = vld [vmem:[%s4414_s4] sm:$0xff]   ;;  %v3443_v39 = vld [vmem:[%s4414_s4 + $0x1b8] sm:$0xff]  }
  0x18   : > { %3102 = vmatpush3.bf16.msra.mxu1 %v3413_v11  ;;  %3063 = vmatprep.subr.bf16.mxu0 %v3414_v12  ;;  %v3434_v32 = vld [vmem:[%s3770_s28] ss:$8 sps:$4 sm:$0xff]   ;;  %v3436_v33 = vld [vmem:[%s3770_s28 + $0x4] ss:$8 sps:$4 sm:$0xff]   ;;  %v3444_v40 = vld [vmem:[%s4414_s4 + $0x170] sm:$0xff]  }
  0x19   : > { %3103 = vmatprep.subr.bf16.mxu1 %v3415_v13  ;;  %v3437_v34 = vld [vmem:[%s3782_s11] ss:$8 sps:$4 sm:$0xff]   ;;  %v3439_v35 = vld [vmem:[%s3782_s11 + $0x4] ss:$8 sps:$4 sm:$0xff]   ;;  %593 = vmatprep.mubr.bf16.mxu0 %v3436_v33  ;;  %v3445_v41 = vld [vmem:[%s4414_s4 + $0x1f0] sm:$0xff]  }
  0x1a   : > { %794 = vmatprep.mubr.bf16.mxu1 %v3439_v35  ;;  %v3446_v42 = vld [vmem:[%s4414_s4 + $0x130] sm:$0xff]   ;;  %v3454_v48 = vld [vmem:[%s4414_s4 + $0x168] sm:$0xff]   ;;  %v3458_v52 = vld [vmem:[%s4414_s4 + $0x160] sm:$0xff]  }
  0x1b   : > { %3064 = vmatpush3.bf16.msra.mxu0 %v3416_v14  ;;  %v3447_v43 = vld [vmem:[%s4414_s4 + $0x1b0] sm:$0xff]   ;;  %v3455_v49 = vld [vmem:[%s4414_s4 + $0x1e8] sm:$0xff]   ;;  %v3459_v53 = vld [vmem:[%s4414_s4 + $0x1e0] sm:$0xff]  }
  0x1c   : > { %3104 = vmatpush3.bf16.msra.mxu1 %v3417_v15  ;;  %3065 = vmatprep.subr.bf16.mxu0 %v3418_v16  ;;  %v3813_v44 = vld [vmem:[%s3770_s28 + $0x14] ss:$8 sps:$4 sm:$0xff]   ;;  %v3819_v46 = vld [vmem:[%s3770_s28 + $0x10] ss:$8 sps:$4 sm:$0xff]   ;;  %v3456_v50 = vld [vmem:[%s4414_s4 + $0x128] sm:$0xff]  }
  0x1d   : > { %3105 = vmatprep.subr.bf16.mxu1 %v3419_v17  ;;  %v3816_v45 = vld [vmem:[%s3782_s11 + $0x14] ss:$8 sps:$4 sm:$0xff]   ;;  %v3823_v47 = vld [vmem:[%s3782_s11 + $0x10] ss:$8 sps:$4 sm:$0xff]   ;;  %v3457_v51 = vld [vmem:[%s4414_s4 + $0x1a8] sm:$0xff]  }
  0x1e   : > { %v3460_v54 = vld [vmem:[%s4414_s4 + $0x120] sm:$0xff]   ;;  %v3468_v60 = vld [vmem:[%s4414_s4 + $0x158] sm:$0xff]   ;;  %v3472_v0 = vld [vmem:[%s4414_s4 + $0x150] sm:$0xff]  }
  0x1f   : > { %3066 = vmatpush3.bf16.msra.mxu0 %v3420_v18  ;;  %v3461_v55 = vld [vmem:[%s4414_s4 + $0x1a0] sm:$0xff]   ;;  %v3469_v61 = vld [vmem:[%s4414_s4 + $0x1d8] sm:$0xff]   ;;  %v3473_v1 = vld [vmem:[%s4414_s4 + $0x1d0] sm:$0xff]  }
  0x20   : > { %3106 = vmatpush3.bf16.msra.mxu1 %v3421_v19  ;;  %3067 = vmatprep.subr.bf16.mxu0 %v3422_v20  ;;  %v3853_v56 = vld [vmem:[%s3770_s28 + $0x24] ss:$8 sps:$4 sm:$0xff]   ;;  %v3859_v58 = vld [vmem:[%s3770_s28 + $0x20] ss:$8 sps:$4 sm:$0xff]   ;;  %v3470_v62 = vld [vmem:[%s4414_s4 + $0x118] sm:$0xff]  }
  0x21   : > { %3107 = vmatprep.subr.bf16.mxu1 %v3423_v21  ;;  %v3856_v57 = vld [vmem:[%s3782_s11 + $0x24] ss:$8 sps:$4 sm:$0xff]   ;;  %v3862_v59 = vld [vmem:[%s3782_s11 + $0x20] ss:$8 sps:$4 sm:$0xff]   ;;  %v3471_v63 = vld [vmem:[%s4414_s4 + $0x198] sm:$0xff]  }
  0x22   : > { %v3474_v2 = vld [vmem:[%s4414_s4 + $0x110] sm:$0xff]   ;;  %v3482_v8 = vld [vmem:[%s4414_s4 + $0x148] sm:$0xff]   ;;  %v3486_v12 = vld [vmem:[%s4414_s4 + $0x140] sm:$0xff]  }
  0x23   : > { %3068 = vmatpush3.bf16.msra.mxu0 %v3424_v22  ;;  %v3475_v3 = vld [vmem:[%s4414_s4 + $0x190] sm:$0xff]   ;;  %v3483_v9 = vld [vmem:[%s4414_s4 + $0x1c8] sm:$0xff]   ;;  %v3487_v13 = vld [vmem:[%s4414_s4 + $0x1c0] sm:$0xff]  }
  0x24   : > { %3108 = vmatpush3.bf16.msra.mxu1 %v3425_v23  ;;  %3069 = vmatprep.subr.bf16.mxu0 %v3426_v24  ;;  %v3893_v4 = vld [vmem:[%s3770_s28 + $0x34] ss:$8 sps:$4 sm:$0xff]   ;;  %v3900_v6 = vld [vmem:[%s3770_s28 + $0x30] ss:$8 sps:$4 sm:$0xff]   ;;  %v3484_v10 = vld [vmem:[%s4414_s4 + $0x108] sm:$0xff]  }
  0x25   : > { %3109 = vmatprep.subr.bf16.mxu1 %v3427_v25  ;;  %v3896_v5 = vld [vmem:[%s3782_s11 + $0x34] ss:$8 sps:$4 sm:$0xff]   ;;  %v3903_v7 = vld [vmem:[%s3782_s11 + $0x30] ss:$8 sps:$4 sm:$0xff]   ;;  %v3485_v11 = vld [vmem:[%s4414_s4 + $0x188] sm:$0xff]  }
  0x26   : > { %v3488_v14 = vld [vmem:[%s4414_s4 + $0x100] sm:$0xff]   ;;  %v3496_v20 = vld [vmem:[%s4414_s4 + $0x278] sm:$0xff]   ;;  %v3500_v24 = vld [vmem:[%s4414_s4 + $0x270] sm:$0xff]  }
  0x27   : > { %3070 = vmatpush3.bf16.msra.mxu0 %v3428_v26  ;;  %v3489_v15 = vld [vmem:[%s4414_s4 + $0x180] sm:$0xff]   ;;  %v3497_v21 = vld [vmem:[%s4414_s4 + $0x2f8] sm:$0xff]   ;;  %v3501_v25 = vld [vmem:[%s4414_s4 + $0x2f0] sm:$0xff]  }
  0x28   : > { %3110 = vmatpush3.bf16.msra.mxu1 %v3429_v27  ;;  %3071 = vmatprep.subr.bf16.mxu0 %v3430_v28  ;;  %v3490_v16 = vld [vmem:[%s3930_s29] ss:$8 sps:$4 sm:$0xff]   ;;  %v3492_v17 = vld [vmem:[%s3930_s29 + $0x4] ss:$8 sps:$4 sm:$0xff]   ;;  %v3498_v22 = vld [vmem:[%s4414_s4 + $0x238] sm:$0xff]  }
  0x29   : > { %3111 = vmatprep.subr.bf16.mxu1 %v3431_v29  ;;  %v3493_v18 = vld [vmem:[%s3939_s10] ss:$8 sps:$4 sm:$0xff]   ;;  %v3495_v19 = vld [vmem:[%s3939_s10 + $0x4] ss:$8 sps:$4 sm:$0xff]   ;;  %v3499_v23 = vld [vmem:[%s4414_s4 + $0x2b8] sm:$0xff]  }
  0x2a   : > { %v3502_v26 = vld [vmem:[%s4414_s4 + $0x230] sm:$0xff]   ;;  %v3511_v33 = vld [vmem:[%s4414_s4 + $0x2e8] sm:$0xff]  }
  0x2b   : > { %3072 = vmatpush3.bf16.msra.mxu0 %v3432_v30  ;;  %v3503_v27 = vld [vmem:[%s4414_s4 + $0x2b0] sm:$0xff]   ;;  %v3513_v35 = vld [vmem:[%s4414_s4 + $0x2a8] sm:$0xff]  }
  0x2c   : > { %3112 = vmatpush3.bf16.msra.mxu1 %v3433_v31  ;;  %3137 = vmatprep.subr.bf16.mxu0 %v3440_v36  ;;  %v3973_v28 = vld [vmem:[%s3930_s29 + $0x14] ss:$8 sps:$4 sm:$0xff]   ;;  %v3979_v30 = vld [vmem:[%s3930_s29 + $0x10] ss:$8 sps:$4 sm:$0xff]   ;;  %v3514_v36 = vld [vmem:[%s4414_s4 + $0x260] sm:$0xff]  }
  0x2d   : > { %3177 = vmatprep.subr.bf16.mxu1 %v3441_v37  ;;  %v3976_v29 = vld [vmem:[%s3939_s10 + $0x14] ss:$8 sps:$4 sm:$0xff]   ;;  %v3982_v31 = vld [vmem:[%s3939_s10 + $0x10] ss:$8 sps:$4 sm:$0xff]   ;;  %v3515_v37 = vld [vmem:[%s4414_s4 + $0x2e0] sm:$0xff]  }
  0x2e   : > { %594 = vmatmul.mubr.bf16.vlgmr.msra.gmra.mxu0 %v3434_v32  ;;  %v3510_v32 = vld [vmem:[%s4414_s4 + $0x268] sm:$0xff]  }
  0x2f   : > { %795 = vmatmul.mubr.bf16.vlgmr.msra.gmra.mxu1 %v3437_v34  ;;  %3138 = vmatpush3.bf16.msra.mxu0 %v3442_v38  ;;  %v3512_v34 = vld [vmem:[%s4414_s4 + $0x228] sm:$0xff]   ;;  %v3516_v38 = vld [vmem:[%s4414_s4 + $0x220] sm:$0xff]  }
  0x30   : > { %3178 = vmatpush3.bf16.msra.mxu1 %v3443_v39  ;;  %3139 = vmatprep.subr.bf16.mxu0 %v3444_v40  ;;  %v3517_v39 = vld [vmem:[%s4414_s4 + $0x2a0] sm:$0xff]  }
  0x31   : > { %3179 = vmatprep.subr.bf16.mxu1 %v3445_v41  ;;  %601 = vmatprep.mubr.bf16.mxu0 %v3813_v44  ;;  %v4013_v40 = vld [vmem:[%s3930_s29 + $0x24] ss:$8 sps:$4 sm:$0xff]  }
  0x32   : > { %802 = vmatprep.mubr.bf16.mxu1 %v3816_v45  ;;  %v4016_v41 = vld [vmem:[%s3939_s10 + $0x24] ss:$8 sps:$4 sm:$0xff]  }
  0x33   : > { %3140 = vmatpush3.bf16.msra.mxu0 %v3446_v42  ;;  %v4020_v42 = vld [vmem:[%s3930_s29 + $0x20] ss:$8 sps:$4 sm:$0xff]  }
  0x34   : > { %3180 = vmatpush3.bf16.msra.mxu1 %v3447_v43  ;;  %3141 = vmatprep.subr.bf16.mxu0 %v3454_v48  ;;  %v4023_v43 = vld [vmem:[%s3939_s10 + $0x20] ss:$8 sps:$4 sm:$0xff]   ;;  %v3524_v48 = vld [vmem:[%s4414_s4 + $0x258] sm:$0xff]  }
  0x35   : > { %3181 = vmatprep.subr.bf16.mxu1 %v3455_v49  ;;  %v3525_v49 = vld [vmem:[%s4414_s4 + $0x2d8] sm:$0xff]  }
  0x36   : > { %602 = vmatmul.mubr.bf16.gmra.mxu0 %v3819_v46 }
  0x37   : > { %803 = vmatmul.mubr.bf16.gmra.mxu1 %v3823_v47  ;;  %3142 = vmatpush3.bf16.msra.mxu0 %v3456_v50  ;;  %v3526_v50 = vld [vmem:[%s4414_s4 + $0x218] sm:$0xff]  }
  0x38   : > { %3182 = vmatpush3.bf16.msra.mxu1 %v3457_v51  ;;  %3143 = vmatprep.subr.bf16.mxu0 %v3458_v52  ;;  %v3527_v51 = vld [vmem:[%s4414_s4 + $0x298] sm:$0xff]   ;;  %v3528_v52 = vld [vmem:[%s4414_s4 + $0x250] sm:$0xff]  }
  0x39   : > { %3183 = vmatprep.subr.bf16.mxu1 %v3459_v53  ;;  %609 = vmatprep.mubr.bf16.mxu0 %v3853_v56  ;;  %v3529_v53 = vld [vmem:[%s4414_s4 + $0x2d0] sm:$0xff]  }
  0x3a   : > { %810 = vmatprep.mubr.bf16.mxu1 %v3856_v57 }
  0x3b   : > { %3144 = vmatpush3.bf16.msra.mxu0 %v3460_v54  ;;  %v3530_v54 = vld [vmem:[%s4414_s4 + $0x210] sm:$0xff]  }
  0x3c   : > { %3184 = vmatpush3.bf16.msra.mxu1 %v3461_v55  ;;  %3145 = vmatprep.subr.bf16.mxu0 %v3468_v60  ;;  %v3531_v55 = vld [vmem:[%s4414_s4 + $0x290] sm:$0xff]  }
  0x3d   : > { %3185 = vmatprep.subr.bf16.mxu1 %v3469_v61  ;;  %v4053_v60 = vld [vmem:[%s3930_s29 + $0x34] ss:$8 sps:$4 sm:$0xff]  }
  0x3e   : > { %610 = vmatmul.mubr.bf16.gmra.mxu0 %v3859_v58  ;;  %v4056_v61 = vld [vmem:[%s3939_s10 + $0x34] ss:$8 sps:$4 sm:$0xff]  }
  0x3f   : > { %811 = vmatmul.mubr.bf16.gmra.mxu1 %v3862_v59  ;;  %3146 = vmatpush3.bf16.msra.mxu0 %v3470_v62  ;;  %v4059_v62 = vld [vmem:[%s3930_s29 + $0x30] ss:$8 sps:$4 sm:$0xff]  }
  0x40   : > { %3186 = vmatpush3.bf16.msra.mxu1 %v3471_v63  ;;  %3147 = vmatprep.subr.bf16.mxu0 %v3472_v0  ;;  %v4063_v63 = vld [vmem:[%s3939_s10 + $0x30] ss:$8 sps:$4 sm:$0xff]   ;;  %v3538_v0 = vld [vmem:[%s4414_s4 + $0x248] sm:$0xff]  }
  0x41   : > { %3187 = vmatprep.subr.bf16.mxu1 %v3473_v1  ;;  %617 = vmatprep.mubr.bf16.mxu0 %v3893_v4  ;;  %v3539_v1 = vld [vmem:[%s4414_s4 + $0x2c8] sm:$0xff]  }
  0x42   : > { %818 = vmatprep.mubr.bf16.mxu1 %v3896_v5 }
  0x43   : > { %3148 = vmatpush3.bf16.msra.mxu0 %v3474_v2  ;;  %v3540_v2 = vld [vmem:[%s4414_s4 + $0x208] sm:$0xff]  }
  0x44   : > { %3188 = vmatpush3.bf16.msra.mxu1 %v3475_v3  ;;  %3149 = vmatprep.subr.bf16.mxu0 %v3482_v8  ;;  %v3541_v3 = vld [vmem:[%s4414_s4 + $0x288] sm:$0xff]   ;;  %v3542_v8 = vld [vmem:[%s4414_s4 + $0x240] sm:$0xff]  }
  0x45   : > { %3189 = vmatprep.subr.bf16.mxu1 %v3483_v9  ;;  %v3545_v9 = vld [vmem:[%s4414_s4 + $0x280] sm:$0xff]  }
  0x46   : > { %618 = vmatmul.mubr.bf16.gmra.mxu0 %v3900_v6 }
  0x47   : > { %819 = vmatmul.mubr.bf16.gmra.mxu1 %v3903_v7  ;;  %3150 = vmatpush3.bf16.msra.mxu0 %v3484_v10  ;;  %v3546_v10 = vld [vmem:[%s4414_s4 + $0x378] sm:$0xff]  }
  0x48   : > { %3190 = vmatpush3.bf16.msra.mxu1 %v3485_v11  ;;  %3151 = vmatprep.subr.bf16.mxu0 %v3486_v12  ;;  %v3547_v11 = vld [vmem:[%s4414_s4 + $0x3f8] sm:$0xff]  }
  0x49   : > { %3191 = vmatprep.subr.bf16.mxu1 %v3487_v13  ;;  %1038 = vmatprep.mubr.bf16.mxu0 %v3492_v17  ;;  %v3548_v12 = vld [vmem:[%s4414_s4 + $0x338] sm:$0xff]   ;;  %v3557_v17 = vld [vmem:[%s4414_s4 + $0x3a8] sm:$0xff]  }
  0x4a   : > { %1290 = vmatprep.mubr.bf16.mxu1 %v3495_v19  ;;  %v3549_v13 = vld [vmem:[%s4414_s4 + $0x3b8] sm:$0xff]   ;;  %v3559_v19 = vld [vmem:[%s4414_s4 + $0x3e0] sm:$0xff]  }
  0x4b   : > { %3152 = vmatpush3.bf16.msra.mxu0 %v3488_v14  ;;  %v3550_v14 = vld [vmem:[%s4414_s4 + $0x370] sm:$0xff]  }
  0x4c   : > { %3192 = vmatpush3.bf16.msra.mxu1 %v3489_v15  ;;  %3217 = vmatprep.subr.bf16.mxu0 %v3496_v20  ;;  %v3551_v15 = vld [vmem:[%s4414_s4 + $0x3f0] sm:$0xff]   ;;  %v3562_v20 = vld [vmem:[%s4414_s4 + $0x358] sm:$0xff]  }
  0x4d   : > { %3257 = vmatprep.subr.bf16.mxu1 %v3497_v21  ;;  %v3565_v21 = vld [vmem:[%s4414_s4 + $0x398] sm:$0xff]  }
  0x4e   : > { %1039 = vmatmul.mubr.bf16.vlgmr.msra.gmra.mxu0 %v3490_v16  ;;  %v3554_v16 = vld [vmem:[%s4414_s4 + $0x368] sm:$0xff]  }
  0x4f   : > { %1291 = vmatmul.mubr.bf16.vlgmr.msra.gmra.mxu1 %v3493_v18  ;;  %3218 = vmatpush3.bf16.msra.mxu0 %v3498_v22  ;;  %v3558_v18 = vld [vmem:[%s4414_s4 + $0x360] sm:$0xff]   ;;  %v3566_v22 = vld [vmem:[%s4414_s4 + $0x350] sm:$0xff]  }
  0x50   : > { %3258 = vmatpush3.bf16.msra.mxu1 %v3499_v23  ;;  %3219 = vmatprep.subr.bf16.mxu0 %v3500_v24  ;;  %v3567_v23 = vld [vmem:[%s4414_s4 + $0x3d0] sm:$0xff]   ;;  %v3570_v24 = vld [vmem:[%s3782_s11 + $0x44] ss:$8 sps:$4 sm:$0xff]  }
  0x51   : > { %3259 = vmatprep.subr.bf16.mxu1 %v3501_v25  ;;  %1046 = vmatprep.mubr.bf16.mxu0 %v3973_v28  ;;  %v3572_v25 = vld [vmem:[%s3770_s28 + $0x44] ss:$8 sps:$4 sm:$0xff]  }
  0x52   : > { %1298 = vmatprep.mubr.bf16.mxu1 %v3976_v29 }
  0x53   : > { %3220 = vmatpush3.bf16.msra.mxu0 %v3502_v26  ;;  %v3574_v26 = vld [vmem:[%s3782_s11 + $0x40] ss:$8 sps:$4 sm:$0xff]  }
  0x54   : > { %3260 = vmatpush3.bf16.msra.mxu1 %v3503_v27  ;;  %3221 = vmatprep.subr.bf16.mxu0 %v3510_v32  ;;  %v3575_v27 = vld [vmem:[%s3770_s28 + $0x40] ss:$8 sps:$4 sm:$0xff]  }
  0x55   : > { %3261 = vmatprep.subr.bf16.mxu1 %v3511_v33  ;;  %v3576_v32 = vld [vmem:[%s4414_s4 + $0x348] sm:$0xff]  }
  0x56   : > { %1047 = vmatmul.mubr.bf16.gmra.mxu0 %v3979_v30  ;;  %v3577_v33 = vld [vmem:[%s4414_s4 + $0x3c8] sm:$0xff]  }
  0x57   : > { %1299 = vmatmul.mubr.bf16.gmra.mxu1 %v3982_v31  ;;  %3222 = vmatpush3.bf16.msra.mxu0 %v3512_v34  ;;  %v3578_v34 = vld [vmem:[%s4414_s4 + $0x308] sm:$0xff]  }
  0x58   : > { %3262 = vmatpush3.bf16.msra.mxu1 %v3513_v35  ;;  %3223 = vmatprep.subr.bf16.mxu0 %v3514_v36  ;;  %v3579_v35 = vld [vmem:[%s4414_s4 + $0x388] sm:$0xff]   ;;  %v3580_v36 = vld [vmem:[%s4414_s4 + $0x340] sm:$0xff]  }
  0x59   : > { %3263 = vmatprep.subr.bf16.mxu1 %v3515_v37  ;;  %1054 = vmatprep.mubr.bf16.mxu0 %v4013_v40  ;;  %v3581_v37 = vld [vmem:[%s4414_s4 + $0x3c0] sm:$0xff]  }
  0x5a   : > { %1306 = vmatprep.mubr.bf16.mxu1 %v4016_v41 }
  0x5b   : > { %3224 = vmatpush3.bf16.msra.mxu0 %v3516_v38  ;;  %v3582_v38 = vld [vmem:[%s4414_s4 + $0x300] sm:$0xff]  }
  0x5c   : > { %3264 = vmatpush3.bf16.msra.mxu1 %v3517_v39  ;;  %3225 = vmatprep.subr.bf16.mxu0 %v3524_v48  ;;  %v3586_v39 = vld [vmem:[%s3939_s10 + $0x44] ss:$8 sps:$4 sm:$0xff]  }
  0x5d   : > { %3265 = vmatprep.subr.bf16.mxu1 %v3525_v49 }
  0x5e   : > { %1055 = vmatmul.mubr.bf16.gmra.mxu0 %v4020_v42 }
  0x5f   : > { %1307 = vmatmul.mubr.bf16.gmra.mxu1 %v4023_v43  ;;  %3226 = vmatpush3.bf16.msra.mxu0 %v3526_v50 }
  0x60   : > { %3266 = vmatpush3.bf16.msra.mxu1 %v3527_v51  ;;  %3227 = vmatprep.subr.bf16.mxu0 %v3528_v52 }
  0x61   : > { %3267 = vmatprep.subr.bf16.mxu1 %v3529_v53  ;;  %1062 = vmatprep.mubr.bf16.mxu0 %v4053_v60 }
  0x62   : > { %1314 = vmatprep.mubr.bf16.mxu1 %v4056_v61 }
  0x63   : > { %3228 = vmatpush3.bf16.msra.mxu0 %v3530_v54 }
  0x64   : > { %3268 = vmatpush3.bf16.msra.mxu1 %v3531_v55  ;;  %3229 = vmatprep.subr.bf16.mxu0 %v3538_v0 }
  0x65   : > { %3269 = vmatprep.subr.bf16.mxu1 %v3539_v1 }
  0x66   : > { %1063 = vmatmul.mubr.bf16.gmra.mxu0 %v4059_v62 }
  0x67   : > { %1315 = vmatmul.mubr.bf16.gmra.mxu1 %v4063_v63  ;;  %1546 = vmatprep.mubr.bf16.mxu0 %v3816_v45  ;;  %v3543_v45 = vld [vmem:[%s4414_s4 + $0x2c0] sm:$0xff]  }
  0x68   : > { %1798 = vmatprep.mubr.bf16.mxu1 %v3813_v44  ;;  %3230 = vmatpush3.bf16.msra.mxu0 %v3540_v2  ;;  %v3544_v44 = vld [vmem:[%s4414_s4 + $0x200] sm:$0xff]  }
  0x69   : > { %3270 = vmatpush3.bf16.msra.mxu1 %v3541_v3  ;;  %3231 = vmatprep.subr.bf16.mxu0 %v3542_v8 }
  0x6a   : > { %3271 = vmatprep.subr.bf16.mxu1 %v3543_v45 }
  0x6c   : > { %3232 = vmatpush3.bf16.msra.mxu0 %v3544_v44 }
  0x6d   : > { %3272 = vmatpush3.bf16.msra.mxu1 %v3545_v9  ;;  %3297 = vmatprep.subr.bf16.mxu0 %v3546_v10 }
  0x6e   : > { %3337 = vmatprep.subr.bf16.mxu1 %v3547_v11 }
  0x6f   : > { %1547 = vmatmul.mubr.bf16.vlgmr.msra.gmra.mxu0 %v3823_v47  ;;  %v3552_v47 = vld [vmem:[%s4414_s4 + $0x330] sm:$0xff]  }
  0x70   : > { %1799 = vmatmul.mubr.bf16.vlgmr.msra.gmra.mxu1 %v3819_v46  ;;  %3298 = vmatpush3.bf16.msra.mxu0 %v3548_v12  ;;  %v3553_v46 = vld [vmem:[%s4414_s4 + $0x3b0] sm:$0xff]  }
  0x71   : > { %3338 = vmatpush3.bf16.msra.mxu1 %v3549_v13  ;;  %1554 = vmatprep.mubr.bf16.mxu0 %v3856_v57  ;;  %v3555_v57 = vld [vmem:[%s4414_s4 + $0x3e8] sm:$0xff]  }
  0x72   : > { %3299 = vmatprep.subr.bf16.mxu0 %v3550_v14  ;;  %1806 = vmatprep.mubr.bf16.mxu1 %v3853_v56  ;;  %v3556_v56 = vld [vmem:[%s4414_s4 + $0x328] sm:$0xff]  }
  0x73   : > { %3339 = vmatprep.subr.bf16.mxu1 %v3551_v15 }
  0x74   : > { %3300 = vmatpush3.bf16.msra.mxu0 %v3552_v47 }
  0x75   : > { %3340 = vmatpush3.bf16.msra.mxu1 %v3553_v46  ;;  %3301 = vmatprep.subr.bf16.mxu0 %v3554_v16 }
  0x76   : > { %3341 = vmatprep.subr.bf16.mxu1 %v3555_v57 }
  0x77   : > { %1555 = vmatmul.mubr.bf16.gmra.mxu0 %v3862_v59  ;;  %v3560_v59 = vld [vmem:[%s4414_s4 + $0x320] sm:$0xff]  }
  0x78   : > { %1807 = vmatmul.mubr.bf16.gmra.mxu1 %v3859_v58  ;;  %3302 = vmatpush3.bf16.msra.mxu0 %v3556_v56  ;;  %v3561_v58 = vld [vmem:[%s4414_s4 + $0x3a0] sm:$0xff]  }
  0x79   : > { %3342 = vmatpush3.bf16.msra.mxu1 %v3557_v17  ;;  %1562 = vmatprep.mubr.bf16.mxu0 %v3896_v5  ;;  %v3563_v5 = vld [vmem:[%s4414_s4 + $0x3d8] sm:$0xff]  }
  0x7a   : > { %3303 = vmatprep.subr.bf16.mxu0 %v3558_v18  ;;  %1814 = vmatprep.mubr.bf16.mxu1 %v3893_v4  ;;  %v3564_v4 = vld [vmem:[%s4414_s4 + $0x318] sm:$0xff]  }
  0x7b   : > { %3343 = vmatprep.subr.bf16.mxu1 %v3559_v19 }
  0x7c   : > { %3304 = vmatpush3.bf16.msra.mxu0 %v3560_v59 }
  0x7d   : > { %3344 = vmatpush3.bf16.msra.mxu1 %v3561_v58  ;;  %3305 = vmatprep.subr.bf16.mxu0 %v3562_v20 }
  0x7e   : > { %3345 = vmatprep.subr.bf16.mxu1 %v3563_v5 }
  0x7f   : > { %1563 = vmatmul.mubr.bf16.gmra.mxu0 %v3903_v7  ;;  %v3568_v7 = vld [vmem:[%s4414_s4 + $0x310] sm:$0xff]  }
  0x80   : > { %1815 = vmatmul.mubr.bf16.gmra.mxu1 %v3900_v6  ;;  %3306 = vmatpush3.bf16.msra.mxu0 %v3564_v4  ;;  %v3569_v6 = vld [vmem:[%s4414_s4 + $0x390] sm:$0xff]  }
  0x81   : > { %3346 = vmatpush3.bf16.msra.mxu1 %v3565_v21  ;;  %3307 = vmatprep.subr.bf16.mxu0 %v3566_v22 }
  0x82   : > { %3347 = vmatprep.subr.bf16.mxu1 %v3567_v23  ;;  %1570 = vmatprep.mubr.bf16.mxu0 %v3570_v24 }
  0x83   : > { %1822 = vmatprep.mubr.bf16.mxu1 %v3572_v25 }
  0x84   : > { %3308 = vmatpush3.bf16.msra.mxu0 %v3568_v7 }
  0x85   : > { %3348 = vmatpush3.bf16.msra.mxu1 %v3569_v6  ;;  %3309 = vmatprep.subr.bf16.mxu0 %v3576_v32 }
  0x86   : > { %3349 = vmatprep.subr.bf16.mxu1 %v3577_v33 }
  0x87   : > { %1571 = vmatmul.mubr.bf16.gmra.mxu0 %v3574_v26 }
  0x88   : > { %1823 = vmatmul.mubr.bf16.gmra.mxu1 %v3575_v27  ;;  %2050 = vmatprep.mubr.bf16.mxu0 %v3973_v28  ;;  %v3583_v28 = vld [vmem:[%s4414_s4 + $0x380] sm:$0xff]  }
  0x89   : > { %3310 = vmatpush3.bf16.msra.mxu0 %v3578_v34  ;;  %2302 = vmatprep.mubr.bf16.mxu1 %v3976_v29  ;;  %v3584_v29 = vld [vmem:[%s3930_s29 + $0x44] ss:$8 sps:$4 sm:$0xff]  }
  0x8a   : > { %3350 = vmatpush3.bf16.msra.mxu1 %v3579_v35  ;;  %3311 = vmatprep.subr.bf16.mxu0 %v3580_v36 }
  0x8b   : > { %3351 = vmatprep.subr.bf16.mxu1 %v3581_v37 }
  0x8d   : > { %3312 = vmatpush3.bf16.msra.mxu0 %v3582_v38 }
  0x8e   : > { %3352 = vmatpush3.bf16.msra.mxu1 %v3583_v28 }
  0x90   : > { %2051 = vmatmul.mubr.bf16.vlgmr.msra.gmra.mxu0 %v3979_v30  ;;  %v3588_v30 = vld [vmem:[%s3930_s29 + $0x40] ss:$8 sps:$4 sm:$0xff]  }
  0x91   : > { %2303 = vmatmul.mubr.bf16.vlgmr.msra.gmra.mxu1 %v3982_v31  ;;  %2058 = vmatprep.mubr.bf16.mxu0 %v4013_v40  ;;  %v3589_v31 = vld [vmem:[%s3939_s10 + $0x40] ss:$8 sps:$4 sm:$0xff]  }
  0x92   : > { %2310 = vmatprep.mubr.bf16.mxu1 %v4016_v41 }
  0x98   : > { %2059 = vmatmul.mubr.bf16.gmra.mxu0 %v4020_v42 }
  0x99   : > { %2311 = vmatmul.mubr.bf16.gmra.mxu1 %v4023_v43  ;;  %2066 = vmatprep.mubr.bf16.mxu0 %v4053_v60 }
  0x9a   : > { %2318 = vmatprep.mubr.bf16.mxu1 %v4056_v61 }
  0xa0   : > { %2067 = vmatmul.mubr.bf16.gmra.mxu0 %v4059_v62 }
  0xa1   : > { %2319 = vmatmul.mubr.bf16.gmra.mxu1 %v4063_v63  ;;  %2074 = vmatprep.mubr.bf16.mxu0 %v3584_v29 }
  0xa2   : > { %2326 = vmatprep.mubr.bf16.mxu1 %v3586_v39 }
  0xa8   : > { %2075 = vmatmul.mubr.bf16.gmra.mxu0 %v3588_v30 }
  0xa9   : > { %2327 = vmatmul.mubr.bf16.gmra.mxu1 %v3589_v31 }
  0xee   : > { %v3073_v40 = vpop.f32.mrf.mxu0 }
  0xef   : > { %v3113_v41 = vpop.f32.mrf.mxu1 }
  0xf0   : > { %v3074_v42 = vpop.f32.mrf.mxu0 }
  0xf1   : > { %v3075_v43 = vadd.f32 %v3074_v42, %v3073_v40  ;;  %v3114_v48 = vpop.f32.mrf.mxu1 }
  0xf2   : > { %v3115_v49 = vadd.f32 %v3114_v48, %v3113_v41  ;;  %v3076_v50 = vpop.f32.mrf.mxu0 }
  0xf3   : > { %v3116_v51 = vpop.f32.mrf.mxu1 }
  0xf4   : > { %v4220_v52 = vadd.f32 %v3115_v49, %v3075_v43  ;;  %v3077_v53 = vpop.f32.mrf.mxu0 }
  0xf5   : > { %v3078_v54 = vadd.f32 %v3077_v53, %v3076_v50  ;;  %v3117_v55 = vpop.f32.mrf.mxu1 }
  0xf6   : > { %v3118_v60 = vadd.f32 %v3117_v55, %v3116_v51  ;;  %v3079_v62 = vpop.f32.mrf.mxu0 }
  0xf7   : > { %v3119_v63 = vpop.f32.mrf.mxu1 }
  0xf8   : > { %v4222_v61 = vadd.f32 %v3118_v60, %v3078_v54  ;;  %v3080_v0 = vpop.f32.mrf.mxu0 }
  0xf9   : > { %v3081_v1 = vadd.f32 %v3080_v0, %v3079_v62  ;;  %v3120_v2 = vpop.f32.mrf.mxu1 }
  0xfa   : > { %v3121_v3 = vadd.f32 %v3120_v2, %v3119_v63  ;;  %v3082_v8 = vpop.f32.mrf.mxu0 }
  0xfb   : > { %v3122_v45 = vpop.f32.mrf.mxu1 }
  0xfc   : > { %v4224_v44 = vadd.f32 %v3121_v3, %v3081_v1  ;;  %v3083_v9 = vpop.f32.mrf.mxu0 }
  0xfd   : > { %v3084_v10 = vadd.f32 %v3083_v9, %v3082_v8  ;;  %v3123_v11 = vpop.f32.mrf.mxu1 }
  0xfe   : > { %v3124_v12 = vadd.f32 %v3123_v11, %v3122_v45  ;;  %v3085_v14 = vpop.f32.mrf.mxu0 }
  0xff   : > { %v3125_v15 = vpop.f32.mrf.mxu1 }
 0x100   : > { %v4226_v13 = vadd.f32 %v3124_v12, %v3084_v10  ;;  %v3086_v47 = vpop.f32.mrf.mxu0 }
 0x101   : > { %v3087_v46 = vadd.f32 %v3086_v47, %v3085_v14  ;;  %v3126_v16 = vpop.f32.mrf.mxu1 }
 0x102   : > { %v3127_v57 = vadd.f32 %v3126_v16, %v3125_v15  ;;  %v3088_v56 = vpop.f32.mrf.mxu0 }
 0x103   : > { %v3128_v17 = vpop.f32.mrf.mxu1 }
 0x104   : > { %v4228_v18 = vadd.f32 %v3127_v57, %v3087_v46  ;;  %v3089_v19 = vpop.f32.mrf.mxu0 }
 0x105   : > { %v3090_v59 = vadd.f32 %v3089_v19, %v3088_v56  ;;  %v3129_v58 = vpop.f32.mrf.mxu1 }
 0x106   : > { %v3130_v20 = vadd.f32 %v3129_v58, %v3128_v17  ;;  %v3091_v4 = vpop.f32.mrf.mxu0 }
 0x107   : > { %v3131_v21 = vpop.f32.mrf.mxu1 }
 0x108   : > { %v4230_v5 = vadd.f32 %v3130_v20, %v3090_v59  ;;  %v3092_v22 = vpop.f32.mrf.mxu0 }
 0x109   : > { %v3132_v23 = vpop.f32.mrf.mxu1  ;;  %v3093_v7 = vadd.f32 %v3092_v22, %v3091_v4 }
 0x10a   : > { %v3133_v6 = vadd.f32 %v3132_v23, %v3131_v21  ;;  %v3094_v24 = vpop.f32.mrf.mxu0 }
 0x10b   : > { %v3134_v25 = vpop.f32.mrf.mxu1 }
 0x10c   : > { %v4232_v26 = vadd.f32 %v3133_v6, %v3093_v7  ;;  %v3095_v27 = vpop.f32.mrf.mxu0 }
 0x10d   : > { %v3135_v32 = vpop.f32.mrf.mxu1  ;;  %v3096_v33 = vadd.f32 %v3095_v27, %v3094_v24 }
 0x10e   : > { %4417 = vst [vmem:[#allocation2_spill] sm:$0xff] %v4232_v26  ;;  %v3136_v34 = vadd.f32 %v3135_v32, %v3134_v25  ;;  %v3153_v36 = vpop.f32.mrf.mxu0 }
 0x10f   : > { %v4236_v37 = vpop.f32.mrf.mxu1 }
 0x110   : > { %v4234_v35 = vadd.f32 %v3136_v34, %v3096_v33  ;;  %v3154_v38 = vpop.f32.mrf.mxu0 }
 0x111   : > { %v3194_v28 = vpop.f32.mrf.mxu1  ;;  %v3155_v34 = vadd.f32 %v3154_v38, %v3153_v36 }
 0x112   : > { %4418 = vst [vmem:[#allocation3_spill] sm:$0xff] %v4234_v35  ;;  %v3156_v29 = vpop.f32.mrf.mxu0 }
 0x113   : > { %v4238_v39 = vpop.f32.mrf.mxu1 }
 0x114   : > { %v3157_v30 = vpop.f32.mrf.mxu0 }
 0x115   : > { %v4240_v31 = vpop.f32.mrf.mxu1 }
 0x116   : > { %v3159_v40 = vpop.f32.mrf.mxu0 }
 0x117   : > { %v4242_v41 = vpop.f32.mrf.mxu1 }
 0x118   : > { %v3160_v42 = vpop.f32.mrf.mxu0 }
 0x119   : > { %v4244_v43 = vpop.f32.mrf.mxu1 }
 0x11a   : > { %v4246_v48 = vpop.f32.mrf.mxu0 }
 0x11b   : > { %v4248_v49 = vpop.f32.mrf.mxu1 }
 0x11c   : > { %v3163_v50 = vpop.f32.mrf.mxu0 }
 0x11d   : > { %v4250_v51 = vpop.f32.mrf.mxu1 }
 0x11e   : > { %v4252_v53 = vpop.f32.mrf.mxu0 }
 0x11f   : > { %v4254_v54 = vpop.f32.mrf.mxu1 }
 0x120   : > { %v4256_v55 = vpop.f32.mrf.mxu0 }
 0x121   : > { %v4258_v60 = vpop.f32.mrf.mxu1 }
 0x122   : > { %v4260_v62 = vpop.f32.mrf.mxu0 }
 0x123   : > { %v4262_v63 = vpop.f32.mrf.mxu1 }
 0x124   : > { %v4264_v0 = vpop.f32.mrf.mxu0 }
 0x125   : > { %v4266_v1 = vpop.f32.mrf.mxu1 }
 0x126   : > { %v4268_v2 = vpop.f32.mrf.mxu0 }
 0x127   : > { %v4270_v3 = vpop.f32.mrf.mxu1 }
 0x128   : > { %4419 = vst [vmem:[#allocation4_spill] sm:$0xff] %v4270_v3  ;;  %v4272_v8 = vpop.f32.mrf.mxu0  ;;  %v1071_v3 = vadd.f32 %v3155_v34, %v4220_v52  ;;  %v3198_v52 = vadd.f32 %v4240_v31, %v4238_v39  ;;  %v3164_v34 = vadd.f32 %v3163_v50, %v4246_v48 }
 0x129   : > { %v4274_v45 = vpop.f32.mrf.mxu1 }
 0x12a   : > { %4420 = vst [vmem:[#allocation5_spill] sm:$0xff] %v4274_v45  ;;  %v4276_v9 = vpop.f32.mrf.mxu0  ;;  %v1074_v48 = vadd.f32 %v3164_v34, %v4226_v13 }
 0x12b   : > { %4421 = vst [vmem:[#allocation6_spill] sm:$0xff] %v4276_v9  ;;  %v4278_v10 = vpop.f32.mrf.mxu1 }
 0x12c   : > { %4422 = vst [vmem:[#allocation7_spill] sm:$0xff] %v4278_v10  ;;  %v4280_v11 = vpop.f32.mrf.mxu0 }
 0x12d   : > { %4423 = vst [vmem:[#allocation8_spill] sm:$0xff] %v4280_v11  ;;  %v4282_v12 = vpop.f32.mrf.mxu1 }
 0x12e   : > { %4424 = vst [vmem:[#allocation9_spill] sm:$0xff] %v4282_v12 }
 0x12f   : > { %v3233_v14 = vpop.f32.mrf.mxu0 }
 0x130   : > { %v3273_v15 = vpop.f32.mrf.mxu1 }
 0x131   : > { %v3234_v47 = vpop.f32.mrf.mxu0 }
 0x132   : > { %v3274_v46 = vpop.f32.mrf.mxu1  ;;  %v3235_v9 = vadd.f32 %v3234_v47, %v3233_v14 }
 0x133   : > { %v3236_v16 = vpop.f32.mrf.mxu0  ;;  %v3275_v14 = vadd.f32 %v3274_v46, %v3273_v15 }
 0x134   : > { %v3276_v57 = vpop.f32.mrf.mxu1 }
 0x135   : > { %v3237_v56 = vpop.f32.mrf.mxu0 }
 0x136   : > { %v3277_v17 = vpop.f32.mrf.mxu1 }
 0x137   : > { %v3239_v19 = vpop.f32.mrf.mxu0 }
 0x138   : > { %v4284_v59 = vpop.f32.mrf.mxu1 }
 0x139   : > { %v3240_v58 = vpop.f32.mrf.mxu0 }
 0x13a   : > { %v4286_v20 = vpop.f32.mrf.mxu1  ;;  %v3241_v39 = vadd.f32 %v3240_v58, %v3239_v19 }
 0x13b   : > { %v3242_v4 = vpop.f32.mrf.mxu0 }
 0x13c   : > { %v4288_v21 = vpop.f32.mrf.mxu1 }
 0x13d   : > { %v3243_v22 = vpop.f32.mrf.mxu0 }
 0x13e   : > { %v4290_v23 = vpop.f32.mrf.mxu1 }
 0x13f   : > { %v4292_v7 = vpop.f32.mrf.mxu0 }
 0x140   : > { %v4294_v6 = vpop.f32.mrf.mxu1 }
 0x141   : > { %4425 = vst [vmem:[#allocation10_spill] sm:$0xff] %v4294_v6  ;;  %v4296_v24 = vpop.f32.mrf.mxu0  ;;  %v3158_v6 = vadd.f32 %v3157_v30, %v3156_v29  ;;  %v3238_v30 = vadd.f32 %v3237_v56, %v3236_v16  ;;  %v3278_v16 = vadd.f32 %v3277_v17, %v3276_v57 }
 0x142   : > { %v4298_v25 = vpop.f32.mrf.mxu1 }
 0x143   : > { %4426 = vst [vmem:[#allocation11_spill] sm:$0xff] %v4298_v25  ;;  %v4300_v27 = vpop.f32.mrf.mxu0 }
 0x144   : > { %v4302_v32 = vpop.f32.mrf.mxu1 }
 0x145   : > { %4427 = vst [vmem:[#allocation12_spill] sm:$0xff] %v4302_v32  ;;  %v4304_v33 = vpop.f32.mrf.mxu0  ;;  %v3195_v32 = vadd.f32 %v3194_v28, %v4236_v37 }
 0x146   : > { %v4306_v12 = vpop.f32.mrf.mxu1 }
 0x147   : > { %4428 = vst [vmem:[#allocation13_spill] sm:$0xff] %v4306_v12  ;;  %v4308_v10 = vpop.f32.mrf.mxu0  ;;  %v1323_v38 = vadd.f32 %v3195_v32, %v1071_v3  ;;  %v1072_v12 = vadd.f32 %v3158_v6, %v4222_v61  ;;  %v3201_v3 = vadd.f32 %v4244_v43, %v4242_v41  ;;  %v3167_v61 = vadd.f32 %v4256_v55, %v4252_v53 }
 0x148   : > { %4429 = vst [vmem:[#allocation14_spill] sm:$0xff] %v4308_v10  ;;  %v4310_v35 = vpop.f32.mrf.mxu1  ;;  %v3204_v41 = vadd.f32 %v4250_v51, %v4248_v49  ;;  %v3170_v53 = vadd.f32 %v4264_v0, %v4260_v62  ;;  %v3244_v55 = vadd.f32 %v3243_v22, %v3242_v4  ;;  %v3207_v49 = vadd.f32 %v4258_v60, %v4254_v54 }
 0x149   : > { %4430 = vst [vmem:[#allocation15_spill] sm:$0xff] %v4310_v35  ;;  %v4312_v45 = vpop.f32.mrf.mxu0  ;;  %v3161_v35 = vadd.f32 %v3160_v42, %v3159_v40  ;;  %v1579_v29 = vadd.f32 %v3235_v9, %v1323_v38  ;;  %v1324_v37 = vadd.f32 %v3198_v52, %v1072_v12  ;;  %v1075_v43 = vadd.f32 %v3167_v61, %v4228_v18 }
 0x14a   : > { %v4315_v11 = vpop.f32.mrf.mxu1  ;;  %v1326_v58 = vadd.f32 %v3204_v41, %v1074_v48  ;;  %v3281_v51 = vadd.f32 %v4286_v20, %v4284_v59  ;;  %v1076_v32 = vadd.f32 %v3170_v53, %v4230_v5  ;;  %v3247_v52 = vadd.f32 %v4296_v24, %v4292_v7  ;;  %v4437_v53 = vld [vmem:[#allocation4_spill] sm:$0xff] }
 0x14b   : > { %4431 = vst [vmem:[#allocation16_spill] sm:$0xff] %v4315_v11  ;;  %v4317_v25 = vpop.f32.mrf.mxu0  ;;  %v1073_v28 = vadd.f32 %v3161_v35, %v4224_v44  ;;  %v1831_v42 = vadd.f32 %v3275_v14, %v1579_v29  ;;  %v1580_v6 = vadd.f32 %v3238_v30, %v1324_v37  ;;  %v1327_v30 = vadd.f32 %v3207_v49, %v1075_v43 }
 0x14c   : > { %v4320_v26 = vpop.f32.mrf.mxu1  ;;  %v1582_v38 = vadd.f32 %v3244_v55, %v1326_v58  ;;  %v3210_v59 = vadd.f32 %v4266_v1, %v4262_v63  ;;  %v3173_v20 = vadd.f32 %v4272_v8, %v4268_v2  ;;  %v3284_v5 = vadd.f32 %v4290_v23, %v4288_v21  ;;  %v4438_v55 = vld [vmem:[#allocation5_spill] sm:$0xff] }
 0x14d   : > { %v4322_v36 = vpop.f32.mrf.mxu0  ;;  %v1325_v12 = vadd.f32 %v3201_v3, %v1073_v28  ;;  %v1832_v46 = vadd.f32 %v3278_v16, %v1580_v6  ;;  %v3250_v63 = vadd.f32 %v4304_v33, %v4300_v27  ;;  %v4432_v6 = vld [vmem:[#allocation2_spill] sm:$0xff] }
 0x14e   : > { %v4325_v10 = vpop.f32.mrf.mxu1  ;;  %v1328_v61 = vadd.f32 %v3210_v59, %v1076_v32  ;;  %v4442_v32 = vld [vmem:[#allocation13_spill] sm:$0xff] }
 0x14f   : > { %v1581_v57 = vadd.f32 %v3241_v39, %v1325_v12  ;;  %v1077_v39 = vadd.f32 %v3173_v20, %v4432_v6  ;;  %v4436_v12 = vld [vmem:[#allocation11_spill] sm:$0xff] }
 0x150   : > { %v3313_v11 = vpop.f32.mrf.mxu0 }
 0x151   : > { %v3353_v47 = vpop.f32.mrf.mxu1  ;;  %v1833_v34 = vadd.f32 %v3281_v51, %v1581_v57  ;;  %v4439_v57 = vld [vmem:[#allocation14_spill] sm:$0xff] }
 0x152   : > { %v3314_v40 = vpop.f32.mrf.mxu0 }
 0x153   : > { %v3315_v31 = vadd.f32 %v3314_v40, %v3313_v11  ;;  %v3354_v9 = vpop.f32.mrf.mxu1  ;;  %v4344_v11 = vld [vmem:[%s4415_s5] ss:$0 sm:$0xff]  ;;  %v1834_v40 = vadd.f32 %v3284_v5, %v1582_v38 }
 0x154   : > { %v3316_v50 = vpop.f32.mrf.mxu0  ;;  %v3355_v35 = vadd.f32 %v3354_v9, %v3353_v47  ;;  %v4434_v9 = vld [vmem:[#allocation8_spill] sm:$0xff] }
 0x155   : > { %v2083_v44 = vadd.f32 %v3315_v31, %v1831_v42  ;;  %v3356_v15 = vpop.f32.mrf.mxu1  ;;  %v1583_v42 = vadd.f32 %v3247_v52, %v1327_v30  ;;  %v4433_v31 = vld [vmem:[#allocation6_spill] sm:$0xff] }
 0x156   : > { %v3317_v13 = vpop.f32.mrf.mxu0  ;;  %v3176_v48 = vadd.f32 %v4434_v9, %v4433_v31 }
 0x157   : > { %v2335_v56 = vadd.f32 %v3355_v35, %v2083_v44  ;;  %v3318_v17 = vadd.f32 %v3317_v13, %v3316_v50  ;;  %v3357_v19 = vpop.f32.mrf.mxu1  ;;  %v4435_v50 = vld [vmem:[#allocation10_spill] sm:$0xff]  ;;  %v3213_v13 = vadd.f32 %v4438_v55, %v4437_v53 }
 0x158   : > { %v3319_v18 = vpop.f32.mrf.mxu0  ;;  %v3358_v4 = vadd.f32 %v3357_v19, %v3356_v15  ;;  %v3287_v16 = vadd.f32 %v4436_v12, %v4435_v50 }
 0x159   : > { %v2350_v62 = vadd.f32 %v4344_v11, %v2335_v56  ;;  %v2084_v0 = vadd.f32 %v3318_v17, %v1832_v46  ;;  %v3359_v22 = vpop.f32.mrf.mxu1  ;;  %v1584_v46 = vadd.f32 %v3250_v63, %v1328_v61  ;;  %v3253_v56 = vadd.f32 %v4312_v45, %v4439_v57 }
 0x15a   : > { %v3320_v29 = vpop.f32.mrf.mxu0  ;;  %v1835_v58 = vadd.f32 %v3287_v16, %v1583_v42  ;;  %v4446_v42 = vld [vmem:[#allocation16_spill] sm:$0xff]  ;;  %v3296_v16 = vadd.f32 %v4325_v10, %v4320_v26 }
 0x15b   : > { %v2336_v37 = vadd.f32 %v3358_v4, %v2084_v0  ;;  %v3321_v54 = vadd.f32 %v3320_v29, %v3319_v18  ;;  %v3360_v60 = vpop.f32.mrf.mxu1  ;;  %v2366_v28 = vmul.f32 0.2, %v2350_v62  ;;  %vm2358_vm0 = vcmp.gt.f32.partialorder %v2350_v62, 0.0  ;;  %v4440_v0 = vld [vmem:[#allocation3_spill] sm:$0xff] }
 0x15c   : > { %v3322_v14 = vpop.f32.mrf.mxu0  ;;  %v3361_v47 = vadd.f32 %v3360_v60, %v3359_v22  ;;  %v1078_v4 = vadd.f32 %v3176_v48, %v4440_v0  ;;  %v4441_v22 = vld [vmem:[#allocation12_spill] sm:$0xff]  ;;  %v4444_v60 = vld [vmem:[#allocation9_spill] sm:$0xff] }
 0x15d   : > { %v2351_v7 = vadd.f32 %v4344_v11, %v2336_v37  ;;  %v2085_v24 = vadd.f32 %v3321_v54, %v1833_v34  ;;  %v3362_v3 = vpop.f32.mrf.mxu1  ;;  %v2374_v44 = vsel %vm2358_vm0, %v2350_v62, %v2366_v28  ;;  %v1329_v62 = vadd.f32 %v3213_v13, %v1077_v39  ;;  %v4443_v54 = vld [vmem:[#allocation7_spill] sm:$0xff] }
 0x15e   : > { %v3323_v1 = vpop.f32.mrf.mxu0  ;;  %v3290_v38 = vadd.f32 %v4442_v32, %v4441_v22  ;;  %v3216_v59 = vadd.f32 %v4444_v60, %v4443_v54  ;;  %v3256_v28 = vadd.f32 %v4322_v36, %v4317_v25 }
 0x15f   : > { %vm2359_vm1 = vcmp.gt.f32.partialorder %v2351_v7, 0.0  ;;  %v2367_v2 = vmul.f32 0.2, %v2351_v7  ;;  %v2337_v8 = vadd.f32 %v3361_v47, %v2085_v24  ;;  %v3324_v21 = vadd.f32 %v3323_v1, %v3322_v14  ;;  %v3363_v23 = vpop.f32.mrf.mxu1 }
 0x160   : > { %v3325_v35 = vpop.f32.mrf.mxu0  ;;  %v3364_v41 = vadd.f32 %v3363_v23, %v3362_v3  ;;  %v1836_v20 = vadd.f32 %v3290_v38, %v1584_v46  ;;  %v1585_v5 = vadd.f32 %v3253_v56, %v1329_v62  ;;  %v1330_v61 = vadd.f32 %v3216_v59, %v1078_v4 }
 0x161   : > { %v2375_v27 = vsel %vm2359_vm1, %v2351_v7, %v2367_v2  ;;  %v2352_v33 = vadd.f32 %v4344_v11, %v2337_v8  ;;  %v2086_v15 = vadd.f32 %v3324_v21, %v1834_v40  ;;  %v3365_v43 = vpop.f32.mrf.mxu1  ;;  %v4445_v40 = vld [vmem:[#allocation15_spill] sm:$0xff] }
 0x162   : > { %v3037_v17 = vpack.c.bf16 %v2375_v27, %v2374_v44  ;;  %v3326_v19 = vpop.f32.mrf.mxu0  ;;  %v3293_v63 = vadd.f32 %v4446_v42, %v4445_v40  ;;  %v1586_v36 = vadd.f32 %v3256_v28, %v1330_v61 }
 0x163   : > { %v2338_v49 = vadd.f32 %v3364_v41, %v2086_v15  ;;  %v3327_v18 = vadd.f32 %v3326_v19, %v3325_v35  ;;  %v3366_v51 = vpop.f32.mrf.mxu1  ;;  %v2368_v52 = vmul.f32 0.2, %v2352_v33  ;;  %vm2360_vm2 = vcmp.gt.f32.partialorder %v2352_v33, 0.0 }
 0x164   : > { %3038 = vst [vmem:[%s4373_s21] sm:$0xff] %v3037_v17   ;;  %v3328_v29 = vpop.f32.mrf.mxu0  ;;  %v3367_v45 = vadd.f32 %v3366_v51, %v3365_v43  ;;  %v1837_v9 = vadd.f32 %v3293_v63, %v1585_v5  ;;  %v1838_v43 = vadd.f32 %v3296_v16, %v1586_v36 }
 0x165   : > { %v2353_v30 = vadd.f32 %v4344_v11, %v2338_v49  ;;  %v2087_v34 = vadd.f32 %v3327_v18, %v1835_v58  ;;  %v3368_v37 = vpop.f32.mrf.mxu1  ;;  %v2376_v1 = vsel %vm2360_vm2, %v2352_v33, %v2368_v52 }
 0x166   : > { %v3329_v14 = vpop.f32.mrf.mxu0 }
 0x167   : > { %vm2361_vm3 = vcmp.gt.f32.partialorder %v2353_v30, 0.0  ;;  %v2369_v7 = vmul.f32 0.2, %v2353_v30  ;;  %v2339_v24 = vadd.f32 %v3367_v45, %v2087_v34  ;;  %v3330_v47 = vadd.f32 %v3329_v14, %v3328_v29  ;;  %v3369_v3 = vpop.f32.mrf.mxu1 }
 0x168   : > { %v3331_v2 = vpop.f32.mrf.mxu0  ;;  %v3370_v6 = vadd.f32 %v3369_v3, %v3368_v37 }
 0x169   : > { %v2377_v8 = vsel %vm2361_vm3, %v2353_v30, %v2369_v7  ;;  %v2354_v21 = vadd.f32 %v4344_v11, %v2339_v24  ;;  %v2088_v23 = vadd.f32 %v3330_v47, %v1836_v20  ;;  %v3371_v25 = vpop.f32.mrf.mxu1 }
 0x16a   : > { %v3042_v39 = vpack.c.bf16 %v2377_v8, %v2376_v1  ;;  %v3332_v31 = vpop.f32.mrf.mxu0 }
 0x16b   : > { %v2340_v48 = vadd.f32 %v3370_v6, %v2088_v23  ;;  %v3333_v50 = vadd.f32 %v3332_v31, %v3331_v2  ;;  %v3372_v12 = vpop.f32.mrf.mxu1  ;;  %v2370_v44 = vmul.f32 0.2, %v2354_v21  ;;  %vm2362_vm4 = vcmp.gt.f32.partialorder %v2354_v21, 0.0 }
 0x16c   : > { %3054 = vst [vmem:[%s4373_s21 + $0x8] sm:$0xff] %v3042_v39   ;;  %v3334_v35 = vpop.f32.mrf.mxu0  ;;  %v3373_v15 = vadd.f32 %v3372_v12, %v3371_v25 }
 0x16d   : > { %v2355_v27 = vadd.f32 %v4344_v11, %v2340_v48  ;;  %v2089_v33 = vadd.f32 %v3333_v50, %v1837_v9  ;;  %v3374_v41 = vpop.f32.mrf.mxu1  ;;  %v2378_v56 = vsel %vm2362_vm4, %v2354_v21, %v2370_v44 }
 0x16e   : > { %v3335_v53 = vpop.f32.mrf.mxu0 }
 0x16f   : > { %vm2363_vm5 = vcmp.gt.f32.partialorder %v2355_v27, 0.0  ;;  %v2371_v55 = vmul.f32 0.2, %v2355_v27  ;;  %v2341_v13 = vadd.f32 %v3373_v15, %v2089_v33  ;;  %v3336_v46 = vadd.f32 %v3335_v53, %v3334_v35  ;;  %v3375_v57 = vpop.f32.mrf.mxu1 }
 0x170   : > { %v3376_v19 = vadd.f32 %v3375_v57, %v3374_v41 }
 0x171   : > { %v2379_v26 = vsel %vm2363_vm5, %v2355_v27, %v2371_v55  ;;  %v2356_v10 = vadd.f32 %v4344_v11, %v2341_v13  ;;  %v2090_v17 = vadd.f32 %v3336_v46, %v1838_v43 }
 0x172   : > { %v3047_v58 = vpack.c.bf16 %v2379_v26, %v2378_v56 }
 0x173   : > { %v2342_v49 = vadd.f32 %v3376_v19, %v2090_v17  ;;  %v2372_v18 = vmul.f32 0.2, %v2356_v10  ;;  %vm2364_vm6 = vcmp.gt.f32.partialorder %v2356_v10, 0.0 }
 0x174   : > { %3055 = vst [vmem:[%s4373_s21 + $0x10] sm:$0xff] %v3047_v58  }
 0x175   : > { %v2357_v51 = vadd.f32 %v4344_v11, %v2342_v49  ;;  %v2380_v0 = vsel %vm2364_vm6, %v2356_v10, %v2372_v18 }
 0x177   : > { %vm2365_vm7 = vcmp.gt.f32.partialorder %v2357_v51, 0.0  ;;  %v2373_v62 = vmul.f32 0.2, %v2357_v51 }
 0x179   : > { %v2381_v4 = vsel %vm2365_vm7, %v2357_v51, %v2373_v62 }
 0x17a   : > { %v3052_v22 = vpack.c.bf16 %v2381_v4, %v2380_v0 }
 0x17c   : > { %3056 = vst [vmem:[%s4373_s21 + $0x18] sm:$0xff] %v3052_v22  }
 0x17d PF: > { %s16_s23 = sadd.s32 1, %s3612_s23   ;;  %s4447_s21 = smov %s3608_s22 }
 0x17e   : > { %p13_p5 = scmp.ge.s32.totalorder %s16_s23, 4   ;;  %s4448_s22 = smov %s4450_s24 }
 0x180   :  { %15 = sbr.rel (!%p13_p5) target bundleno = 2 (0x2), region = 98 }

</bundles_post_ra>
